<compile_context>
chip_gen: v7x
topology: tpu7x:2x2x1
jax: 0.10.0
libtpu: 0.0.40
codegen_flags: <defaults>
</compile_context>

<pallas_src>
import numpy as np
import jax
import jax.numpy as jnp
from jax.experimental import pallas as pl
from jax.experimental.pallas import tpu as pltpu


def _nodia_kernel(x_ref,
                  m1e_ref, m1o_ref, e1e_ref, e1o_ref,
                  m2e_ref, m2o_ref, e2e_ref, e2o_ref,
                  m3e_ref, m3o_ref, e3e_ref, e3o_ref,
                  wt_ref, mw_ref, o16_ref,
                  b1_ref, b2_ref, b3_ref, bf1_ref, wf2_ref, bf2_ref,
                  o_ref):
    f32 = jnp.float32
    bf16 = jnp.bfloat16

    def shift_lanes(a, k):
        # a[:, l] <- a[:, l + k]; wrapped lanes never reach valid outputs.
        return a if k == 0 else pltpu.roll(a, shift=a.shape[1] - k, axis=1)

    def stack_taps(a, taps):
        # f32 lane rolls (XLU) + sublane-tile-aligned concat, one bf16 cast for the MXU.
        return jnp.concatenate([shift_lanes(a, j) for j in range(taps)],
                               axis=0).astype(bf16)

    def mm(a, b):
        return jnp.dot(a, b, preferred_element_type=f32)

    def conv_pool_rows(stacked, we_ref, wo_ref, b_ref):
        # even/odd output-row conv matmuls; pool row-pair max + bias + ReLU fused.
        pre = jnp.maximum(mm(we_ref[...], stacked), mm(wo_ref[...], stacked))
        return jnp.maximum(pre + b_ref[...], 0.0)

    def pool_lanes(r, ee_ref, eo_ref):
        # even/odd lane-pair select + per-sample lane compaction (one-hot matmuls).
        rb = r.astype(bf16)
        return jnp.maximum(mm(rb, ee_ref[...]), mm(rb, eo_ref[...]))

    x = x_ref[0]                                                        # (56, B*128) f32

    # ---- conv1 (k=7) + pool1 rows ------------------------------------------------
    r1 = conv_pool_rows(stack_taps(x, 7), m1e_ref, m1o_ref, b1_ref)     # (24, B*128)
    # ---- pool1 lanes: 128 -> 64 lanes / sample ------------------------------------
    p1 = pool_lanes(r1, e1e_ref, e1o_ref)                               # (24, B*64)

    # ---- conv2 (k=3) + pool2 rows  (dropout1 = identity) --------------------------
    r2 = conv_pool_rows(stack_taps(p1, 3), m2e_ref, m2o_ref, b2_ref)    # (160, B*64)
    # ---- pool2 lanes: 64 -> 32 lanes / sample -------------------------------------
    p2 = pool_lanes(r2, e2e_ref, e2o_ref)                               # (160, B*32)

    # ---- conv3 (k=3) + pool3 rows  (dropout2 = identity) --------------------------
    r3 = conv_pool_rows(stack_taps(p2, 3), m3e_ref, m3o_ref, b3_ref)    # (128, B*32)
    # ---- pool3 lanes: 32 -> 16 lanes / sample -------------------------------------
    p3 = pool_lanes(r3, e3e_ref, e3o_ref)                               # (128, B*16)

    # ---- flatten + fc1 (1280 -> 32) over the whole batch block --------------------
    z = mm(wt_ref[...], p3.astype(bf16))                                # (320, B*16)
    zs = z[0:32, :] * mw_ref[0]
    for v in range(1, 10):
        zs = zs + z[v * 32:(v + 1) * 32, :] * mw_ref[v]
    y1 = jnp.maximum(jnp.dot(zs, o16_ref[...], preferred_element_type=f32)
                     + bf1_ref[...], 0.0)                               # (32, B)

    # ---- fc2 (32 -> 1) + sigmoid, lane-dense (1, B) output ------------------------
    y2 = jnp.dot(wf2_ref[...], y1, preferred_element_type=f32) + bf2_ref[...]
    o_ref[0] = jax.nn.sigmoid(y2)


def init_params(key):
    ks = jax.random.split(key, 10)

    def u(k, shape, fan_in):
        bound = 1.0 / np.sqrt(fan_in)
        return jax.random.uniform(k, shape, jnp.float32, -bound, bound)

    return {
        "w1": u(ks[0], (1, 1, 7, 7), 1 * 7 * 7),
        "b1": u(ks[1], (1,), 1 * 7 * 7),
        "w2": u(ks[2], (16, 1, 3, 3), 1 * 3 * 3),
        "b2": u(ks[3], (16,), 1 * 3 * 3),
        "w3": u(ks[4], (32, 16, 3, 3), 16 * 3 * 3),
        "b3": u(ks[5], (32,), 16 * 3 * 3),
        "wf1": u(ks[6], (32, 1280), 1280),
        "bf1": u(ks[7], (32,), 1280),
        "wf2": u(ks[8], (1, 32), 32),
        "bf2": u(ks[9], (1,), 32),
    }


def build_operands(p, B):
    f = np.float32
    w1 = np.asarray(p["w1"], f)
    w2 = np.asarray(p["w2"], f)
    w3 = np.asarray(p["w3"], f)
    wf1 = np.asarray(p["wf1"], f)
    wf2 = np.asarray(p["wf2"], f)

    XR, P1R, P2R = 56, 24, 160    # per-tap row-block sizes (padded to 8-row tiles)

    # conv1 banded weights with pool1's even/odd row selection folded in
    M1e = np.zeros((P1R, 7 * XR), f)
    M1o = np.zeros((P1R, 7 * XR), f)
    for h in range(22):
        for i in range(7):
            for j in range(7):
                M1e[h, j * XR + 2 * h + i] = w1[0, 0, i, j]
                M1o[h, j * XR + 2 * h + 1 + i] = w1[0, 0, i, j]

    # conv2 (16 ch x 10 pooled rows = 160 output rows per parity)
    M2e = np.zeros((160, 3 * P1R), f)
    M2o = np.zeros((160, 3 * P1R), f)
    for c in range(16):
        for h in range(10):
            for i in range(3):
                for j in range(3):
                    M2e[c * 10 + h, j * P1R + 2 * h + i] = w2[c, 0, i, j]
                    M2o[c * 10 + h, j * P1R + 2 * h + 1 + i] = w2[c, 0, i, j]

    # conv3 (32 ch x 4 pooled rows = 128 output rows per parity)
    M3e = np.zeros((128, 3 * P2R), f)
    M3o = np.zeros((128, 3 * P2R), f)
    for co in range(32):
        for h in range(4):
            for ci in range(16):
                for i in range(3):
                    for j in range(3):
                        M3e[co * 4 + h, j * P2R + ci * 10 + 2 * h + i] = w3[co, ci, i, j]
                        M3o[co * 4 + h, j * P2R + ci * 10 + 2 * h + 1 + i] = w3[co, ci, i, j]

    # pool lane-pair selection + per-sample lane compaction (block-diagonal one-hot)
    def lane_sel(blk_in, blk_out, n_pairs):
        Ee = np.zeros((B * blk_in, B * blk_out), f)
        Eo = np.zeros((B * blk_in, B * blk_out), f)
        for b in range(B):
            for u in range(n_pairs):
                Ee[b * blk_in + 2 * u, b * blk_out + u] = 1.0
                Eo[b * blk_in + 2 * u + 1, b * blk_out + u] = 1.0
        return Ee, Eo

    E1e, E1o = lane_sel(128, 64, 48)    # conv1 out width 96 -> 48
    E2e, E2o = lane_sel(64, 32, 23)     # conv2 out width 46 -> 23
    E3e, E3o = lane_sel(32, 16, 10)     # conv3 out width 21 -> 10

    # fc1 fold: Wt[v*32 + o, co*4 + hh] = wf1[o, co*40 + hh*10 + v]
    Wt = np.zeros((320, 128), f)
    wf1_r = wf1.reshape(32, 32, 4, 10)          # [o, co, hh, v]
    for v in range(10):
        for co in range(32):
            for hh in range(4):
                Wt[v * 32:(v + 1) * 32, co * 4 + hh] = wf1_r[:, co, hh, v]

    # per-offset-v lane masks and per-sample lane reduction for fc1
    MaskW = np.zeros((10, 1, B * 16), f)
    for v in range(10):
        MaskW[v, 0, np.arange(B) * 16 + v] = 1.0
    O16 = np.zeros((B * 16, B), f)
    for b in range(B):
        O16[b * 16: b * 16 + 16, b] = 1.0

    b1v = np.asarray(p["b1"], f).reshape(1, 1)
    b2v = np.repeat(np.asarray(p["b2"], f), 10).reshape(160, 1)
    b3v = np.repeat(np.asarray(p["b3"], f), 4).reshape(128, 1)
    bf1v = np.asarray(p["bf1"], f).reshape(32, 1)
    bf2v = np.asarray(p["bf2"], f).reshape(1, 1)

    bf16 = jnp.bfloat16
    ops = [
        (M1e, bf16), (M1o, bf16), (E1e, bf16), (E1o, bf16),
        (M2e, bf16), (M2o, bf16), (E2e, bf16), (E2o, bf16),
        (M3e, bf16), (M3o, bf16), (E3e, bf16), (E3o, bf16),
        (Wt, bf16), (MaskW, f), (O16, f),
        (b1v, f), (b2v, f), (b3v, f), (bf1v, f), (wf2, f), (bf2v, f),
    ]
    return [jnp.asarray(a, d) for a, d in ops]


def nodia_cnn_forward(x_nchw, params, batch_block=8):
    N = x_nchw.shape[0]
    assert x_nchw.shape[1:] == (1, 51, 102), "input_shape fixed by fc1 (32*4*10 = 1280)"
    # keep G = ceil(N/B) >= 2 when possible so ("parallel",) spans both v7x TensorCores
    B = int(max(1, min(batch_block, (N + 1) // 2)))
    G = -(-N // B)
    Npad = G * B
    L = B * 128

    # pack B samples per grid step into a lane-blocked slab (layout plumbing on host)
    x = jnp.asarray(x_nchw, jnp.float32)[:, 0, :, :]                    # (N, 51, 102)
    x = jnp.pad(x, ((0, Npad - N), (0, 56 - 51), (0, 128 - 102)))       # (Npad, 56, 128)
    x = x.reshape(G, B, 56, 128).transpose(0, 2, 1, 3).reshape(G, 56, L)

    consts = build_operands(params, B)

    in_specs = [pl.BlockSpec((1, 56, L), lambda g: (g, 0, 0))]
    for a in consts:
        zeros = (0,) * a.ndim
        # constants total ~2.5 MB in bf16; default double-buffering is still far below
        # the 64 MiB v7x VMEM, so pipeline_mode tuning is not needed here.
        in_specs.append(pl.BlockSpec(a.shape, lambda g, z=zeros: z))

    out = pl.pallas_call(
        _nodia_kernel,
        out_shape=jax.ShapeDtypeStruct((G, 1, B), jnp.float32),
        grid_spec=pltpu.PrefetchScalarGridSpec(
            num_scalar_prefetch=0,
            grid=(G,),
            in_specs=in_specs,
            out_specs=pl.BlockSpec((1, 1, B), lambda g: (g, 0, 0)),
        ),
        compiler_params=pltpu.CompilerParams(
            dimension_semantics=("parallel",),          # engages both TCs on v7x
            vmem_limit_bytes=32 * 1024 * 1024,
        ),
    )(x, *consts)
    return out.reshape(G * B)[:N]                       # matches torch's .squeeze(1)


def _reference_forward(x_nchw, p):
    # plain-JAX f32 reference of the PyTorch forward (inference mode)
    x = jnp.asarray(x_nchw, jnp.float32)

    def conv(a, w, b):
        co, ci, kh, kw = w.shape
        n, _, hh, ww = a.shape
        ho, wo = hh - kh + 1, ww - kw + 1
        out = jnp.zeros((n, co, ho, wo), jnp.float32)
        for i in range(kh):
            for j in range(kw):
                patch = a[:, :, i:i + ho, j:j + wo]
                out = out + jnp.einsum('ncHW,oc->noHW', patch, w[:, :, i, j])
        return out + b.reshape(1, co, 1, 1)

    def pool(a):
        n, c, hh, ww = a.shape
        ho, wo = hh // 2, ww // 2
        a = a[:, :, :ho * 2, :wo * 2].reshape(n, c, ho, 2, wo, 2)
        return a.max(axis=(3, 5))

    a = pool(jax.nn.relu(conv(x, p["w1"], p["b1"])))
    a = pool(jax.nn.relu(conv(a, p["w2"], p["b2"])))
    a = pool(jax.nn.relu(conv(a, p["w3"], p["b3"])))
    a = a.reshape(a.shape[0], -1)
    a = jax.nn.relu(a @ p["wf1"].T + p["bf1"])
    a = a @ p["wf2"].T + p["bf2"]
    return jax.nn.sigmoid(a)[:, 0]


if __name__ == "__main__":
    key = jax.random.PRNGKey(0)
    kx, kp = jax.random.split(key)
    # spatial dims are dictated by the module (fc1 expects 32*4*10 = 1280 features);
    # N=16 -> two full batch blocks -> grid of 2 parallel steps (both v7x TCs busy).
    x = jax.random.normal(kx, (16, 1, 51, 102), jnp.float32)
    params = init_params(kp)

    y = nodia_cnn_forward(x, params, batch_block=8)
    y = jax.block_until_ready(y)

    assert y.shape == (16,)
    assert bool(jnp.all(jnp.isfinite(y))) and bool(jnp.all((y > 0.0) & (y < 1.0)))

    y_ref = jax.block_until_ready(_reference_forward(x, params))
    # bf16 matmul operands with f32 accumulation: 2e-2 absolute tolerance on sigmoid out
    assert float(jnp.max(jnp.abs(y - y_ref))) < 2e-2

    print("KERNEL_OK")
</pallas_src>

<mosaic_0001>
module attributes {stable_mosaic.version = 11 : i64} {
  func.func @_nodia_kernel(%arg0: i32, %arg1: memref<1x56x1024xf32, #tpu.memory_space<vmem>>, %arg2: memref<24x392xbf16, #tpu.memory_space<vmem>>, %arg3: memref<24x392xbf16, #tpu.memory_space<vmem>>, %arg4: memref<1024x512xbf16, #tpu.memory_space<vmem>>, %arg5: memref<1024x512xbf16, #tpu.memory_space<vmem>>, %arg6: memref<160x72xbf16, #tpu.memory_space<vmem>>, %arg7: memref<160x72xbf16, #tpu.memory_space<vmem>>, %arg8: memref<512x256xbf16, #tpu.memory_space<vmem>>, %arg9: memref<512x256xbf16, #tpu.memory_space<vmem>>, %arg10: memref<128x480xbf16, #tpu.memory_space<vmem>>, %arg11: memref<128x480xbf16, #tpu.memory_space<vmem>>, %arg12: memref<256x128xbf16, #tpu.memory_space<vmem>>, %arg13: memref<256x128xbf16, #tpu.memory_space<vmem>>, %arg14: memref<320x128xbf16, #tpu.memory_space<vmem>>, %arg15: memref<10x1x128xf32, #tpu.memory_space<vmem>>, %arg16: memref<128x8xf32, #tpu.memory_space<vmem>>, %arg17: memref<1x1xf32, #tpu.memory_space<vmem>>, %arg18: memref<160x1xf32, #tpu.memory_space<vmem>>, %arg19: memref<128x1xf32, #tpu.memory_space<vmem>>, %arg20: memref<32x1xf32, #tpu.memory_space<vmem>>, %arg21: memref<1x32xf32, #tpu.memory_space<vmem>>, %arg22: memref<1x1xf32, #tpu.memory_space<vmem>>, %arg23: memref<1x1x8xf32, #tpu.memory_space<vmem>>) attributes {dimension_semantics = [#tpu.dimension_semantics<parallel>], iteration_bounds = array<i64: 2>, scalar_prefetch = 0 : i64, scratch_operands = 0 : i64, tpu.core_type = #tpu.core_type<tc>, window_params = [{transform_indices = @transform_0, window_bounds = array<i64: 1, 56, 1024>}, {pipeline_mode = #tpu.pipeline_mode<synchronous>, transform_indices = @transform_1, window_bounds = array<i64: 24, 392>}, {pipeline_mode = #tpu.pipeline_mode<synchronous>, transform_indices = @transform_2, window_bounds = array<i64: 24, 392>}, {pipeline_mode = #tpu.pipeline_mode<synchronous>, transform_indices = @transform_3, window_bounds = array<i64: 1024, 512>}, {pipeline_mode = #tpu.pipeline_mode<synchronous>, transform_indices = @transform_4, window_bounds = array<i64: 1024, 512>}, {pipeline_mode = #tpu.pipeline_mode<synchronous>, transform_indices = @transform_5, window_bounds = array<i64: 160, 72>}, {pipeline_mode = #tpu.pipeline_mode<synchronous>, transform_indices = @transform_6, window_bounds = array<i64: 160, 72>}, {pipeline_mode = #tpu.pipeline_mode<synchronous>, transform_indices = @transform_7, window_bounds = array<i64: 512, 256>}, {pipeline_mode = #tpu.pipeline_mode<synchronous>, transform_indices = @transform_8, window_bounds = array<i64: 512, 256>}, {pipeline_mode = #tpu.pipeline_mode<synchronous>, transform_indices = @transform_9, window_bounds = array<i64: 128, 480>}, {pipeline_mode = #tpu.pipeline_mode<synchronous>, transform_indices = @transform_10, window_bounds = array<i64: 128, 480>}, {pipeline_mode = #tpu.pipeline_mode<synchronous>, transform_indices = @transform_11, window_bounds = array<i64: 256, 128>}, {pipeline_mode = #tpu.pipeline_mode<synchronous>, transform_indices = @transform_12, window_bounds = array<i64: 256, 128>}, {pipeline_mode = #tpu.pipeline_mode<synchronous>, transform_indices = @transform_13, window_bounds = array<i64: 320, 128>}, {pipeline_mode = #tpu.pipeline_mode<synchronous>, transform_indices = @transform_14, window_bounds = array<i64: 10, 1, 128>}, {pipeline_mode = #tpu.pipeline_mode<synchronous>, transform_indices = @transform_15, window_bounds = array<i64: 128, 8>}, {pipeline_mode = #tpu.pipeline_mode<synchronous>, transform_indices = @transform_16, window_bounds = array<i64: 1, 1>}, {pipeline_mode = #tpu.pipeline_mode<synchronous>, transform_indices = @transform_17, window_bounds = array<i64: 160, 1>}, {pipeline_mode = #tpu.pipeline_mode<synchronous>, transform_indices = @transform_18, window_bounds = array<i64: 128, 1>}, {pipeline_mode = #tpu.pipeline_mode<synchronous>, transform_indices = @transform_19, window_bounds = array<i64: 32, 1>}, {pipeline_mode = #tpu.pipeline_mode<synchronous>, transform_indices = @transform_20, window_bounds = array<i64: 1, 32>}, {pipeline_mode = #tpu.pipeline_mode<synchronous>, transform_indices = @transform_21, window_bounds = array<i64: 1, 1>}, {transform_indices = @transform_22, window_bounds = array<i64: 1, 1, 8>}]} {
    %c0 = arith.constant 0 : index
    %c0_0 = arith.constant 0 : index
    %c0_1 = arith.constant 0 : index
    %0 = vector.load %arg1[%c0, %c0_0, %c0_1] : memref<1x56x1024xf32, #tpu.memory_space<vmem>>, vector<1x56x1024xf32>
    %1 = vector.shape_cast %0 : vector<1x56x1024xf32> to vector<56x1024xf32>
    %c1023_i32 = arith.constant 1023 : i32
    %2 = tpu.dynamic_rotate %1 by %c1023_i32 dim 1 : vector<56x1024xf32>, i32 -> vector<56x1024xf32>
    %c1022_i32 = arith.constant 1022 : i32
    %3 = tpu.dynamic_rotate %1 by %c1022_i32 dim 1 : vector<56x1024xf32>, i32 -> vector<56x1024xf32>
    %c1021_i32 = arith.constant 1021 : i32
    %4 = tpu.dynamic_rotate %1 by %c1021_i32 dim 1 : vector<56x1024xf32>, i32 -> vector<56x1024xf32>
    %c1020_i32 = arith.constant 1020 : i32
    %5 = tpu.dynamic_rotate %1 by %c1020_i32 dim 1 : vector<56x1024xf32>, i32 -> vector<56x1024xf32>
    %c1019_i32 = arith.constant 1019 : i32
    %6 = tpu.dynamic_rotate %1 by %c1019_i32 dim 1 : vector<56x1024xf32>, i32 -> vector<56x1024xf32>
    %c1018_i32 = arith.constant 1018 : i32
    %7 = tpu.dynamic_rotate %1 by %c1018_i32 dim 1 : vector<56x1024xf32>, i32 -> vector<56x1024xf32>
    %8 = tpu.concatenate %1, %2, %3, %4, %5, %6, %7 in 0 : vector<56x1024xf32>, vector<56x1024xf32>, vector<56x1024xf32>, vector<56x1024xf32>, vector<56x1024xf32>, vector<56x1024xf32>, vector<56x1024xf32> -> vector<392x1024xf32>
    %9 = arith.truncf %8 : vector<392x1024xf32> to vector<392x1024xbf16>
    %c0_2 = arith.constant 0 : index
    %c0_3 = arith.constant 0 : index
    %10 = vector.load %arg2[%c0_2, %c0_3] : memref<24x392xbf16, #tpu.memory_space<vmem>>, vector<24x392xbf16>
    %cst = arith.constant dense<0.000000e+00> : vector<24x1024xf32>
    %11 = tpu.matmul %10, %9, %cst {dimension_numbers = #tpu.dot_dimension_numbers<[1], [0], [0], [1], [0, 0, 1, 1], [], []>} : vector<24x392xbf16>, vector<392x1024xbf16>, vector<24x1024xf32> -> vector<24x1024xf32>
    %c0_4 = arith.constant 0 : index
    %c0_5 = arith.constant 0 : index
    %12 = vector.load %arg3[%c0_4, %c0_5] : memref<24x392xbf16, #tpu.memory_space<vmem>>, vector<24x392xbf16>
    %cst_6 = arith.constant dense<0.000000e+00> : vector<24x1024xf32>
    %13 = tpu.matmul %12, %9, %cst_6 {dimension_numbers = #tpu.dot_dimension_numbers<[1], [0], [0], [1], [0, 0, 1, 1], [], []>} : vector<24x392xbf16>, vector<392x1024xbf16>, vector<24x1024xf32> -> vector<24x1024xf32>
    %14 = arith.maximumf %11, %13 : vector<24x1024xf32>
    %c0_7 = arith.constant 0 : index
    %c0_8 = arith.constant 0 : index
    %15 = vector.load %arg17[%c0_7, %c0_8] : memref<1x1xf32, #tpu.memory_space<vmem>>, vector<1x1xf32>
    %16 = vector.broadcast %15 : vector<1x1xf32> to vector<24x1024xf32>
    %17 = arith.addf %14, %16 : vector<24x1024xf32>
    %cst_9 = arith.constant 0.000000e+00 : f32
    %18 = vector.broadcast %cst_9 : f32 to vector<24x1024xf32>
    %19 = arith.maximumf %17, %18 : vector<24x1024xf32>
    %20 = arith.truncf %19 : vector<24x1024xf32> to vector<24x1024xbf16>
    %c0_10 = arith.constant 0 : index
    %c0_11 = arith.constant 0 : index
    %21 = vector.load %arg4[%c0_10, %c0_11] : memref<1024x512xbf16, #tpu.memory_space<vmem>>, vector<1024x512xbf16>
    %cst_12 = arith.constant dense<0.000000e+00> : vector<24x512xf32>
    %22 = tpu.matmul %20, %21, %cst_12 {dimension_numbers = #tpu.dot_dimension_numbers<[1], [0], [0], [1], [0, 0, 1, 1], [], []>} : vector<24x1024xbf16>, vector<1024x512xbf16>, vector<24x512xf32> -> vector<24x512xf32>
    %c0_13 = arith.constant 0 : index
    %c0_14 = arith.constant 0 : index
    %23 = vector.load %arg5[%c0_13, %c0_14] : memref<1024x512xbf16, #tpu.memory_space<vmem>>, vector<1024x512xbf16>
    %cst_15 = arith.constant dense<0.000000e+00> : vector<24x512xf32>
    %24 = tpu.matmul %20, %23, %cst_15 {dimension_numbers = #tpu.dot_dimension_numbers<[1], [0], [0], [1], [0, 0, 1, 1], [], []>} : vector<24x1024xbf16>, vector<1024x512xbf16>, vector<24x512xf32> -> vector<24x512xf32>
    %25 = arith.maximumf %22, %24 : vector<24x512xf32>
    %c511_i32 = arith.constant 511 : i32
    %26 = tpu.dynamic_rotate %25 by %c511_i32 dim 1 : vector<24x512xf32>, i32 -> vector<24x512xf32>
    %c510_i32 = arith.constant 510 : i32
    %27 = tpu.dynamic_rotate %25 by %c510_i32 dim 1 : vector<24x512xf32>, i32 -> vector<24x512xf32>
    %28 = tpu.concatenate %25, %26, %27 in 0 : vector<24x512xf32>, vector<24x512xf32>, vector<24x512xf32> -> vector<72x512xf32>
    %29 = arith.truncf %28 : vector<72x512xf32> to vector<72x512xbf16>
    %c0_16 = arith.constant 0 : index
    %c0_17 = arith.constant 0 : index
    %30 = vector.load %arg6[%c0_16, %c0_17] : memref<160x72xbf16, #tpu.memory_space<vmem>>, vector<160x72xbf16>
    %cst_18 = arith.constant dense<0.000000e+00> : vector<160x512xf32>
    %31 = tpu.matmul %30, %29, %cst_18 {dimension_numbers = #tpu.dot_dimension_numbers<[1], [0], [0], [1], [0, 0, 1, 1], [], []>} : vector<160x72xbf16>, vector<72x512xbf16>, vector<160x512xf32> -> vector<160x512xf32>
    %c0_19 = arith.constant 0 : index
    %c0_20 = arith.constant 0 : index
    %32 = vector.load %arg7[%c0_19, %c0_20] : memref<160x72xbf16, #tpu.memory_space<vmem>>, vector<160x72xbf16>
    %cst_21 = arith.constant dense<0.000000e+00> : vector<160x512xf32>
    %33 = tpu.matmul %32, %29, %cst_21 {dimension_numbers = #tpu.dot_dimension_numbers<[1], [0], [0], [1], [0, 0, 1, 1], [], []>} : vector<160x72xbf16>, vector<72x512xbf16>, vector<160x512xf32> -> vector<160x512xf32>
    %34 = arith.maximumf %31, %33 : vector<160x512xf32>
    %c0_22 = arith.constant 0 : index
    %c0_23 = arith.constant 0 : index
    %35 = vector.load %arg18[%c0_22, %c0_23] : memref<160x1xf32, #tpu.memory_space<vmem>>, vector<160x1xf32>
    %36 = vector.broadcast %35 : vector<160x1xf32> to vector<160x512xf32>
    %37 = arith.addf %34, %36 : vector<160x512xf32>
    %cst_24 = arith.constant 0.000000e+00 : f32
    %38 = vector.broadcast %cst_24 : f32 to vector<160x512xf32>
    %39 = arith.maximumf %37, %38 : vector<160x512xf32>
    %40 = arith.truncf %39 : vector<160x512xf32> to vector<160x512xbf16>
    %c0_25 = arith.constant 0 : index
    %c0_26 = arith.constant 0 : index
    %41 = vector.load %arg8[%c0_25, %c0_26] : memref<512x256xbf16, #tpu.memory_space<vmem>>, vector<512x256xbf16>
    %cst_27 = arith.constant dense<0.000000e+00> : vector<160x256xf32>
    %42 = tpu.matmul %40, %41, %cst_27 {dimension_numbers = #tpu.dot_dimension_numbers<[1], [0], [0], [1], [0, 0, 1, 1], [], []>} : vector<160x512xbf16>, vector<512x256xbf16>, vector<160x256xf32> -> vector<160x256xf32>
    %c0_28 = arith.constant 0 : index
    %c0_29 = arith.constant 0 : index
    %43 = vector.load %arg9[%c0_28, %c0_29] : memref<512x256xbf16, #tpu.memory_space<vmem>>, vector<512x256xbf16>
    %cst_30 = arith.constant dense<0.000000e+00> : vector<160x256xf32>
    %44 = tpu.matmul %40, %43, %cst_30 {dimension_numbers = #tpu.dot_dimension_numbers<[1], [0], [0], [1], [0, 0, 1, 1], [], []>} : vector<160x512xbf16>, vector<512x256xbf16>, vector<160x256xf32> -> vector<160x256xf32>
    %45 = arith.maximumf %42, %44 : vector<160x256xf32>
    %c255_i32 = arith.constant 255 : i32
    %46 = tpu.dynamic_rotate %45 by %c255_i32 dim 1 : vector<160x256xf32>, i32 -> vector<160x256xf32>
    %c254_i32 = arith.constant 254 : i32
    %47 = tpu.dynamic_rotate %45 by %c254_i32 dim 1 : vector<160x256xf32>, i32 -> vector<160x256xf32>
    %48 = tpu.concatenate %45, %46, %47 in 0 : vector<160x256xf32>, vector<160x256xf32>, vector<160x256xf32> -> vector<480x256xf32>
    %49 = arith.truncf %48 : vector<480x256xf32> to vector<480x256xbf16>
    %c0_31 = arith.constant 0 : index
    %c0_32 = arith.constant 0 : index
    %50 = vector.load %arg10[%c0_31, %c0_32] : memref<128x480xbf16, #tpu.memory_space<vmem>>, vector<128x480xbf16>
    %cst_33 = arith.constant dense<0.000000e+00> : vector<128x256xf32>
    %51 = tpu.matmul %50, %49, %cst_33 {dimension_numbers = #tpu.dot_dimension_numbers<[1], [0], [0], [1], [0, 0, 1, 1], [], []>} : vector<128x480xbf16>, vector<480x256xbf16>, vector<128x256xf32> -> vector<128x256xf32>
    %c0_34 = arith.constant 0 : index
    %c0_35 = arith.constant 0 : index
    %52 = vector.load %arg11[%c0_34, %c0_35] : memref<128x480xbf16, #tpu.memory_space<vmem>>, vector<128x480xbf16>
    %cst_36 = arith.constant dense<0.000000e+00> : vector<128x256xf32>
    %53 = tpu.matmul %52, %49, %cst_36 {dimension_numbers = #tpu.dot_dimension_numbers<[1], [0], [0], [1], [0, 0, 1, 1], [], []>} : vector<128x480xbf16>, vector<480x256xbf16>, vector<128x256xf32> -> vector<128x256xf32>
    %54 = arith.maximumf %51, %53 : vector<128x256xf32>
    %c0_37 = arith.constant 0 : index
    %c0_38 = arith.constant 0 : index
    %55 = vector.load %arg19[%c0_37, %c0_38] : memref<128x1xf32, #tpu.memory_space<vmem>>, vector<128x1xf32>
    %56 = vector.broadcast %55 : vector<128x1xf32> to vector<128x256xf32>
    %57 = arith.addf %54, %56 : vector<128x256xf32>
    %cst_39 = arith.constant 0.000000e+00 : f32
    %58 = vector.broadcast %cst_39 : f32 to vector<128x256xf32>
    %59 = arith.maximumf %57, %58 : vector<128x256xf32>
    %60 = arith.truncf %59 : vector<128x256xf32> to vector<128x256xbf16>
    %c0_40 = arith.constant 0 : index
    %c0_41 = arith.constant 0 : index
    %61 = vector.load %arg12[%c0_40, %c0_41] : memref<256x128xbf16, #tpu.memory_space<vmem>>, vector<256x128xbf16>
    %cst_42 = arith.constant dense<0.000000e+00> : vector<128x128xf32>
    %62 = tpu.matmul %60, %61, %cst_42 {dimension_numbers = #tpu.dot_dimension_numbers<[1], [0], [0], [1], [0, 0, 1, 1], [], []>} : vector<128x256xbf16>, vector<256x128xbf16>, vector<128x128xf32> -> vector<128x128xf32>
    %c0_43 = arith.constant 0 : index
    %c0_44 = arith.constant 0 : index
    %63 = vector.load %arg13[%c0_43, %c0_44] : memref<256x128xbf16, #tpu.memory_space<vmem>>, vector<256x128xbf16>
    %cst_45 = arith.constant dense<0.000000e+00> : vector<128x128xf32>
    %64 = tpu.matmul %60, %63, %cst_45 {dimension_numbers = #tpu.dot_dimension_numbers<[1], [0], [0], [1], [0, 0, 1, 1], [], []>} : vector<128x256xbf16>, vector<256x128xbf16>, vector<128x128xf32> -> vector<128x128xf32>
    %65 = arith.maximumf %62, %64 : vector<128x128xf32>
    %c0_46 = arith.constant 0 : index
    %c0_47 = arith.constant 0 : index
    %66 = vector.load %arg14[%c0_46, %c0_47] : memref<320x128xbf16, #tpu.memory_space<vmem>>, vector<320x128xbf16>
    %67 = arith.truncf %65 : vector<128x128xf32> to vector<128x128xbf16>
    %cst_48 = arith.constant dense<0.000000e+00> : vector<320x128xf32>
    %68 = tpu.matmul %66, %67, %cst_48 {dimension_numbers = #tpu.dot_dimension_numbers<[1], [0], [0], [1], [0, 0, 1, 1], [], []>} : vector<320x128xbf16>, vector<128x128xbf16>, vector<320x128xf32> -> vector<320x128xf32>
    %69 = vector.extract_strided_slice %68 {offsets = [0, 0], sizes = [32, 128], strides = [1, 1]} : vector<320x128xf32> to vector<32x128xf32>
    %c0_49 = arith.constant 0 : index
    %c0_50 = arith.constant 0 : index
    %c0_51 = arith.constant 0 : index
    %70 = vector.load %arg15[%c0_49, %c0_50, %c0_51] : memref<10x1x128xf32, #tpu.memory_space<vmem>>, vector<1x1x128xf32>
    %71 = vector.shape_cast %70 : vector<1x1x128xf32> to vector<1x128xf32>
    %72 = vector.broadcast %71 : vector<1x128xf32> to vector<32x128xf32>
    %73 = arith.mulf %69, %72 : vector<32x128xf32>
    %74 = vector.extract_strided_slice %68 {offsets = [32, 0], sizes = [32, 128], strides = [1, 1]} : vector<320x128xf32> to vector<32x128xf32>
    %c1 = arith.constant 1 : index
    %c0_52 = arith.constant 0 : index
    %c0_53 = arith.constant 0 : index
    %75 = vector.load %arg15[%c1, %c0_52, %c0_53] : memref<10x1x128xf32, #tpu.memory_space<vmem>>, vector<1x1x128xf32>
    %76 = vector.shape_cast %75 : vector<1x1x128xf32> to vector<1x128xf32>
    %77 = vector.broadcast %76 : vector<1x128xf32> to vector<32x128xf32>
    %78 = arith.mulf %74, %77 : vector<32x128xf32>
    %79 = arith.addf %73, %78 : vector<32x128xf32>
    %80 = vector.extract_strided_slice %68 {offsets = [64, 0], sizes = [32, 128], strides = [1, 1]} : vector<320x128xf32> to vector<32x128xf32>
    %c2 = arith.constant 2 : index
    %c0_54 = arith.constant 0 : index
    %c0_55 = arith.constant 0 : index
    %81 = vector.load %arg15[%c2, %c0_54, %c0_55] : memref<10x1x128xf32, #tpu.memory_space<vmem>>, vector<1x1x128xf32>
    %82 = vector.shape_cast %81 : vector<1x1x128xf32> to vector<1x128xf32>
    %83 = vector.broadcast %82 : vector<1x128xf32> to vector<32x128xf32>
    %84 = arith.mulf %80, %83 : vector<32x128xf32>
    %85 = arith.addf %79, %84 : vector<32x128xf32>
    %86 = vector.extract_strided_slice %68 {offsets = [96, 0], sizes = [32, 128], strides = [1, 1]} : vector<320x128xf32> to vector<32x128xf32>
    %c3 = arith.constant 3 : index
    %c0_56 = arith.constant 0 : index
    %c0_57 = arith.constant 0 : index
    %87 = vector.load %arg15[%c3, %c0_56, %c0_57] : memref<10x1x128xf32, #tpu.memory_space<vmem>>, vector<1x1x128xf32>
    %88 = vector.shape_cast %87 : vector<1x1x128xf32> to vector<1x128xf32>
    %89 = vector.broadcast %88 : vector<1x128xf32> to vector<32x128xf32>
    %90 = arith.mulf %86, %89 : vector<32x128xf32>
    %91 = arith.addf %85, %90 : vector<32x128xf32>
    %92 = vector.extract_strided_slice %68 {offsets = [128, 0], sizes = [32, 128], strides = [1, 1]} : vector<320x128xf32> to vector<32x128xf32>
    %c4 = arith.constant 4 : index
    %c0_58 = arith.constant 0 : index
    %c0_59 = arith.constant 0 : index
    %93 = vector.load %arg15[%c4, %c0_58, %c0_59] : memref<10x1x128xf32, #tpu.memory_space<vmem>>, vector<1x1x128xf32>
    %94 = vector.shape_cast %93 : vector<1x1x128xf32> to vector<1x128xf32>
    %95 = vector.broadcast %94 : vector<1x128xf32> to vector<32x128xf32>
    %96 = arith.mulf %92, %95 : vector<32x128xf32>
    %97 = arith.addf %91, %96 : vector<32x128xf32>
    %98 = vector.extract_strided_slice %68 {offsets = [160, 0], sizes = [32, 128], strides = [1, 1]} : vector<320x128xf32> to vector<32x128xf32>
    %c5 = arith.constant 5 : index
    %c0_60 = arith.constant 0 : index
    %c0_61 = arith.constant 0 : index
    %99 = vector.load %arg15[%c5, %c0_60, %c0_61] : memref<10x1x128xf32, #tpu.memory_space<vmem>>, vector<1x1x128xf32>
    %100 = vector.shape_cast %99 : vector<1x1x128xf32> to vector<1x128xf32>
    %101 = vector.broadcast %100 : vector<1x128xf32> to vector<32x128xf32>
    %102 = arith.mulf %98, %101 : vector<32x128xf32>
    %103 = arith.addf %97, %102 : vector<32x128xf32>
    %104 = vector.extract_strided_slice %68 {offsets = [192, 0], sizes = [32, 128], strides = [1, 1]} : vector<320x128xf32> to vector<32x128xf32>
    %c6 = arith.constant 6 : index
    %c0_62 = arith.constant 0 : index
    %c0_63 = arith.constant 0 : index
    %105 = vector.load %arg15[%c6, %c0_62, %c0_63] : memref<10x1x128xf32, #tpu.memory_space<vmem>>, vector<1x1x128xf32>
    %106 = vector.shape_cast %105 : vector<1x1x128xf32> to vector<1x128xf32>
    %107 = vector.broadcast %106 : vector<1x128xf32> to vector<32x128xf32>
    %108 = arith.mulf %104, %107 : vector<32x128xf32>
    %109 = arith.addf %103, %108 : vector<32x128xf32>
    %110 = vector.extract_strided_slice %68 {offsets = [224, 0], sizes = [32, 128], strides = [1, 1]} : vector<320x128xf32> to vector<32x128xf32>
    %c7 = arith.constant 7 : index
    %c0_64 = arith.constant 0 : index
    %c0_65 = arith.constant 0 : index
    %111 = vector.load %arg15[%c7, %c0_64, %c0_65] : memref<10x1x128xf32, #tpu.memory_space<vmem>>, vector<1x1x128xf32>
    %112 = vector.shape_cast %111 : vector<1x1x128xf32> to vector<1x128xf32>
    %113 = vector.broadcast %112 : vector<1x128xf32> to vector<32x128xf32>
    %114 = arith.mulf %110, %113 : vector<32x128xf32>
    %115 = arith.addf %109, %114 : vector<32x128xf32>
    %116 = vector.extract_strided_slice %68 {offsets = [256, 0], sizes = [32, 128], strides = [1, 1]} : vector<320x128xf32> to vector<32x128xf32>
    %c8 = arith.constant 8 : index
    %c0_66 = arith.constant 0 : index
    %c0_67 = arith.constant 0 : index
    %117 = vector.load %arg15[%c8, %c0_66, %c0_67] : memref<10x1x128xf32, #tpu.memory_space<vmem>>, vector<1x1x128xf32>
    %118 = vector.shape_cast %117 : vector<1x1x128xf32> to vector<1x128xf32>
    %119 = vector.broadcast %118 : vector<1x128xf32> to vector<32x128xf32>
    %120 = arith.mulf %116, %119 : vector<32x128xf32>
    %121 = arith.addf %115, %120 : vector<32x128xf32>
    %122 = vector.extract_strided_slice %68 {offsets = [288, 0], sizes = [32, 128], strides = [1, 1]} : vector<320x128xf32> to vector<32x128xf32>
    %c9 = arith.constant 9 : index
    %c0_68 = arith.constant 0 : index
    %c0_69 = arith.constant 0 : index
    %123 = vector.load %arg15[%c9, %c0_68, %c0_69] : memref<10x1x128xf32, #tpu.memory_space<vmem>>, vector<1x1x128xf32>
    %124 = vector.shape_cast %123 : vector<1x1x128xf32> to vector<1x128xf32>
    %125 = vector.broadcast %124 : vector<1x128xf32> to vector<32x128xf32>
    %126 = arith.mulf %122, %125 : vector<32x128xf32>
    %127 = arith.addf %121, %126 : vector<32x128xf32>
    %c0_70 = arith.constant 0 : index
    %c0_71 = arith.constant 0 : index
    %128 = vector.load %arg16[%c0_70, %c0_71] : memref<128x8xf32, #tpu.memory_space<vmem>>, vector<128x8xf32>
    %cst_72 = arith.constant dense<0.000000e+00> : vector<32x8xf32>
    %129 = tpu.matmul %127, %128, %cst_72 {dimension_numbers = #tpu.dot_dimension_numbers<[1], [0], [0], [1], [0, 0, 1, 1], [], []>} : vector<32x128xf32>, vector<128x8xf32>, vector<32x8xf32> -> vector<32x8xf32>
    %c0_73 = arith.constant 0 : index
    %c0_74 = arith.constant 0 : index
    %130 = vector.load %arg20[%c0_73, %c0_74] : memref<32x1xf32, #tpu.memory_space<vmem>>, vector<32x1xf32>
    %131 = vector.broadcast %130 : vector<32x1xf32> to vector<32x8xf32>
    %132 = arith.addf %129, %131 : vector<32x8xf32>
    %cst_75 = arith.constant 0.000000e+00 : f32
    %133 = vector.broadcast %cst_75 : f32 to vector<32x8xf32>
    %134 = arith.maximumf %132, %133 : vector<32x8xf32>
    %c0_76 = arith.constant 0 : index
    %c0_77 = arith.constant 0 : index
    %135 = vector.load %arg21[%c0_76, %c0_77] : memref<1x32xf32, #tpu.memory_space<vmem>>, vector<1x32xf32>
    %cst_78 = arith.constant dense<0.000000e+00> : vector<1x8xf32>
    %136 = tpu.matmul %135, %134, %cst_78 {dimension_numbers = #tpu.dot_dimension_numbers<[1], [0], [0], [1], [0, 0, 1, 1], [], []>} : vector<1x32xf32>, vector<32x8xf32>, vector<1x8xf32> -> vector<1x8xf32>
    %c0_79 = arith.constant 0 : index
    %c0_80 = arith.constant 0 : index
    %137 = vector.load %arg22[%c0_79, %c0_80] : memref<1x1xf32, #tpu.memory_space<vmem>>, vector<1x1xf32>
    %138 = vector.broadcast %137 : vector<1x1xf32> to vector<1x8xf32>
    %139 = arith.addf %136, %138 : vector<1x8xf32>
    %140 = arith.negf %139 : vector<1x8xf32>
    %141 = math.exp %140 : vector<1x8xf32>
    %cst_81 = arith.constant 1.000000e+00 : f32
    %142 = vector.broadcast %cst_81 : f32 to vector<1x8xf32>
    %143 = arith.addf %142, %141 : vector<1x8xf32>
    %144 = arith.divf %142, %143 : vector<1x8xf32>
    %c0_82 = arith.constant 0 : index
    %c0_83 = arith.constant 0 : index
    %c0_84 = arith.constant 0 : index
    %145 = vector.load %arg23[%c0_82, %c0_83, %c0_84] : memref<1x1x8xf32, #tpu.memory_space<vmem>>, vector<1x1x8xf32>
    %146 = vector.shape_cast %145 : vector<1x1x8xf32> to vector<1x8xf32>
    %147 = vector.shape_cast %144 : vector<1x8xf32> to vector<1x1x8xf32>
    tpu.vector_store %arg23[%c0_82, %c0_83, %c0_84], %147 {strides = array<i32>} : memref<1x1x8xf32, #tpu.memory_space<vmem>>, vector<1x1x8xf32>,
    return
  }
  func.func @transform_0(%arg0: i32) -> (i32, i32, i32) {
    %c0_i32 = arith.constant 0 : i32
    %c0_i32_0 = arith.constant 0 : i32
    %c0_i32_1 = arith.constant 0 : i32
    return %arg0, %c0_i32, %c0_i32_0 : i32, i32, i32
  }
  func.func @transform_1(%arg0: i32) -> (i32, i32) {
    %c0_i32 = arith.constant 0 : i32
    %c0_i32_0 = arith.constant 0 : i32
    %c0_i32_1 = arith.constant 0 : i32
    return %c0_i32, %c0_i32_0 : i32, i32
  }
  func.func @transform_2(%arg0: i32) -> (i32, i32) {
    %c0_i32 = arith.constant 0 : i32
    %c0_i32_0 = arith.constant 0 : i32
    %c0_i32_1 = arith.constant 0 : i32
    return %c0_i32, %c0_i32_0 : i32, i32
  }
  func.func @transform_3(%arg0: i32) -> (i32, i32) {
    %c0_i32 = arith.constant 0 : i32
    %c0_i32_0 = arith.constant 0 : i32
    %c0_i32_1 = arith.constant 0 : i32
    return %c0_i32, %c0_i32_0 : i32, i32
  }
  func.func @transform_4(%arg0: i32) -> (i32, i32) {
    %c0_i32 = arith.constant 0 : i32
    %c0_i32_0 = arith.constant 0 : i32
    %c0_i32_1 = arith.constant 0 : i32
    return %c0_i32, %c0_i32_0 : i32, i32
  }
  func.func @transform_5(%arg0: i32) -> (i32, i32) {
    %c0_i32 = arith.constant 0 : i32
    %c0_i32_0 = arith.constant 0 : i32
    %c0_i32_1 = arith.constant 0 : i32
    return %c0_i32, %c0_i32_0 : i32, i32
  }
  func.func @transform_6(%arg0: i32) -> (i32, i32) {
    %c0_i32 = arith.constant 0 : i32
    %c0_i32_0 = arith.constant 0 : i32
    %c0_i32_1 = arith.constant 0 : i32
    return %c0_i32, %c0_i32_0 : i32, i32
  }
  func.func @transform_7(%arg0: i32) -> (i32, i32) {
    %c0_i32 = arith.constant 0 : i32
    %c0_i32_0 = arith.constant 0 : i32
    %c0_i32_1 = arith.constant 0 : i32
    return %c0_i32, %c0_i32_0 : i32, i32
  }
  func.func @transform_8(%arg0: i32) -> (i32, i32) {
    %c0_i32 = arith.constant 0 : i32
    %c0_i32_0 = arith.constant 0 : i32
    %c0_i32_1 = arith.constant 0 : i32
    return %c0_i32, %c0_i32_0 : i32, i32
  }
  func.func @transform_9(%arg0: i32) -> (i32, i32) {
    %c0_i32 = arith.constant 0 : i32
    %c0_i32_0 = arith.constant 0 : i32
    %c0_i32_1 = arith.constant 0 : i32
    return %c0_i32, %c0_i32_0 : i32, i32
  }
  func.func @transform_10(%arg0: i32) -> (i32, i32) {
    %c0_i32 = arith.constant 0 : i32
    %c0_i32_0 = arith.constant 0 : i32
    %c0_i32_1 = arith.constant 0 : i32
    return %c0_i32, %c0_i32_0 : i32, i32
  }
  func.func @transform_11(%arg0: i32) -> (i32, i32) {
    %c0_i32 = arith.constant 0 : i32
    %c0_i32_0 = arith.constant 0 : i32
    %c0_i32_1 = arith.constant 0 : i32
    return %c0_i32, %c0_i32_0 : i32, i32
  }
  func.func @transform_12(%arg0: i32) -> (i32, i32) {
    %c0_i32 = arith.constant 0 : i32
    %c0_i32_0 = arith.constant 0 : i32
    %c0_i32_1 = arith.constant 0 : i32
    return %c0_i32, %c0_i32_0 : i32, i32
  }
  func.func @transform_13(%arg0: i32) -> (i32, i32) {
    %c0_i32 = arith.constant 0 : i32
    %c0_i32_0 = arith.constant 0 : i32
    %c0_i32_1 = arith.constant 0 : i32
    return %c0_i32, %c0_i32_0 : i32, i32
  }
  func.func @transform_14(%arg0: i32) -> (i32, i32, i32) {
    %c0_i32 = arith.constant 0 : i32
    %c0_i32_0 = arith.constant 0 : i32
    %c0_i32_1 = arith.constant 0 : i32
    %c0_i32_2 = arith.constant 0 : i32
    return %c0_i32, %c0_i32_0, %c0_i32_1 : i32, i32, i32
  }
  func.func @transform_15(%arg0: i32) -> (i32, i32) {
    %c0_i32 = arith.constant 0 : i32
    %c0_i32_0 = arith.constant 0 : i32
    %c0_i32_1 = arith.constant 0 : i32
    return %c0_i32, %c0_i32_0 : i32, i32
  }
  func.func @transform_16(%arg0: i32) -> (i32, i32) {
    %c0_i32 = arith.constant 0 : i32
    %c0_i32_0 = arith.constant 0 : i32
    %c0_i32_1 = arith.constant 0 : i32
    return %c0_i32, %c0_i32_0 : i32, i32
  }
  func.func @transform_17(%arg0: i32) -> (i32, i32) {
    %c0_i32 = arith.constant 0 : i32
    %c0_i32_0 = arith.constant 0 : i32
    %c0_i32_1 = arith.constant 0 : i32
    return %c0_i32, %c0_i32_0 : i32, i32
  }
  func.func @transform_18(%arg0: i32) -> (i32, i32) {
    %c0_i32 = arith.constant 0 : i32
    %c0_i32_0 = arith.constant 0 : i32
    %c0_i32_1 = arith.constant 0 : i32
    return %c0_i32, %c0_i32_0 : i32, i32
  }
  func.func @transform_19(%arg0: i32) -> (i32, i32) {
    %c0_i32 = arith.constant 0 : i32
    %c0_i32_0 = arith.constant 0 : i32
    %c0_i32_1 = arith.constant 0 : i32
    return %c0_i32, %c0_i32_0 : i32, i32
  }
  func.func @transform_20(%arg0: i32) -> (i32, i32) {
    %c0_i32 = arith.constant 0 : i32
    %c0_i32_0 = arith.constant 0 : i32
    %c0_i32_1 = arith.constant 0 : i32
    return %c0_i32, %c0_i32_0 : i32, i32
  }
  func.func @transform_21(%arg0: i32) -> (i32, i32) {
    %c0_i32 = arith.constant 0 : i32
    %c0_i32_0 = arith.constant 0 : i32
    %c0_i32_1 = arith.constant 0 : i32
    return %c0_i32, %c0_i32_0 : i32, i32
  }
  func.func @transform_22(%arg0: i32) -> (i32, i32, i32) {
    %c0_i32 = arith.constant 0 : i32
    %c0_i32_0 = arith.constant 0 : i32
    %c0_i32_1 = arith.constant 0 : i32
    return %arg0, %c0_i32, %c0_i32_0 : i32, i32, i32
  }
}

</mosaic_0001>

<bundles_post_ra>
// kernel: tpu_custom_call.1
= control target key start
LH: loop header
LB: loop body
LE: loop exit
PB: predicated region body
PF: predicated region fallthrough
CT: control target
= control target key end

     0   :  { %s22578_s0 = inlined_call_operand.vmem [shape: f32[2,56,1024], index: 0, kind: input, shape index: {}]   ;;  %s22579_s1 = inlined_call_operand.hbm [shape: bf16[24,392], index: 1, kind: input, shape index: {}]   ;;  %s22580_s2 = inlined_call_operand.hbm [shape: bf16[24,392], index: 2, kind: input, shape index: {}]   ;;  %s22581_s3 = inlined_call_operand.hbm [shape: bf16[1024,512], index: 3, kind: input, shape index: {}]   ;;  %s22582_s4 = inlined_call_operand.hbm [shape: bf16[1024,512], index: 4, kind: input, shape index: {}]   ;;  %s22583_s5 = inlined_call_operand.vmem [shape: bf16[160,72], index: 5, kind: input, shape index: {}]   ;;  %s22584_s6 = inlined_call_operand.vmem [shape: bf16[160,72], index: 6, kind: input, shape index: {}]   ;;  %s22585_s7 = inlined_call_operand.vmem [shape: bf16[512,256], index: 7, kind: input, shape index: {}]   ;;  %s22586_s8 = inlined_call_operand.hbm [shape: bf16[512,256], index: 8, kind: input, shape index: {}]   ;;  %s22587_s9 = inlined_call_operand.vmem [shape: bf16[128,480], index: 9, kind: input, shape index: {}]   ;;  %s22588_s10 = inlined_call_operand.vmem [shape: bf16[128,480], index: 10, kind: input, shape index: {}]   ;;  %s22589_s11 = inlined_call_operand.hbm [shape: bf16[256,128], index: 11, kind: input, shape index: {}]   ;;  %s22590_s12 = inlined_call_operand.hbm [shape: bf16[256,128], index: 12, kind: input, shape index: {}]   ;;  %s22591_s13 = inlined_call_operand.vmem [shape: bf16[320,128], index: 13, kind: input, shape index: {}]   ;;  %s22592_s14 = inlined_call_operand.hbm [shape: f32[10,1,128], index: 14, kind: input, shape index: {}]   ;;  %s22593_s15 = inlined_call_operand.vmem [shape: f32[128,8], index: 15, kind: input, shape index: {}]   ;;  %s22594_s16 = inlined_call_operand.<no memory space> [shape: f32[1,1], index: 16, kind: input, shape index: {}]   ;;  %s22595_s17 = inlined_call_operand.vmem [shape: f32[160,1], index: 17, kind: input, shape index: {}]   ;;  %s22596_s18 = inlined_call_operand.vmem [shape: f32[128,1], index: 18, kind: input, shape index: {}]   ;;  %s22597_s19 = inlined_call_operand.vmem [shape: f32[32,1], index: 19, kind: input, shape index: {}]   ;;  %s22598_s20 = inlined_call_operand.vmem [shape: f32[1,32], index: 20, kind: input, shape index: {}]   ;;  %s22599_s22 = inlined_call_operand.hbm [shape: f32[2,1,8], index: 22, kind: output, shape index: {}]   ;;  %s22600_s21 = inlined_call_operand.<no memory space> [shape: f32[1,1], index: 21, kind: input, shape index: {}]  }
   0x1   :  { %23003 = sst [smem:[#allocation225_spill]] %s22578_s0  ;;  %v27_v0 = vstv %s22594_s16  ;;  %v29_v1 = vstv %s22600_s21 }
   0x2   :  { %23004 = sst [smem:[#allocation226_spill]] %s22579_s1  ;;  %28 = vst [vmem:[#allocation2] sm:$0x1] %v27_v0  ;;  %30 = vst [vmem:[#allocation3] sm:$0x1] %v29_v1 }
   0x3   :  { %23005 = sst [smem:[#allocation227_spill]] %s22580_s2 }
   0x4   :  { %23006 = sst [smem:[#allocation228_spill]] %s22581_s3 }
   0x5   :  { %23007 = sst [smem:[#allocation229_spill]] %s22582_s4 }
   0x6   :  { %23008 = sst [smem:[#allocation230_spill]] %s22583_s5 }
   0x7   :  { %23009 = sst [smem:[#allocation231_spill]] %s22584_s6 }
   0x8   :  { %23010 = sst [smem:[#allocation232_spill]] %s22591_s13 }
   0x9   :  { %23011 = sst [smem:[#allocation233_spill]] %s22593_s15 }
   0xa   :  { %23012 = sst [smem:[#allocation234_spill]] %s22598_s20 }
   0xb   :  { %23013 = sst [smem:[#allocation235_spill]] %s22599_s22 }
   0xc   :  { %31 = vsyncpa [#allocation5], 0 }
   0xd   :  { %32 = vsyncpa [#allocation8], 0 }
   0xe   :  { %33 = vsyncpa [#allocation11], 0 }
   0xf   :  { %34 = vsyncpa [#allocation14], 0 }
  0x10   :  { %35 = vsyncpa [#allocation17], 0 }
  0x11   :  { %36 = vsyncpa [#allocation6], 0 }
  0x12   :  { %38 = vsyncpa [#allocation6 + $0x1], 0  ;;  %s16729_s4 = smov 0   ;;  %s16731_s0 = smov 0  }
  0x13   :  { %s16733_s23 = smov 0   ;;  %s16735_s16 = smov 0  }
  0x14 LB: > { %23014 = sst [smem:[#allocation25_spill]] %s16568_s4  ;;  %s16750_s21 = sadd.s32 4294967295, %s16580_s16   ;;  %s16580_s16 = sphi %s16735_s16, %s23811_s16   ;;  %s16576_s23 = sphi %s16733_s23, %s23814_s23   ;;  %s16572_s0 = sphi %s16731_s0, %s23813_s0   ;;  %s16568_s4 = sphi %s16729_s4, %s23812_s4  }
  0x15   : > { %23015 = sst [smem:[#allocation26_spill]] %s16572_s0  ;;  %s12308_s1 = sadd.s32 4294967294, %s16580_s16  }
  0x16   : > { %23016 = sst [smem:[#allocation27_spill]] %s16576_s23  ;;  %s16754_s5 = sadd.s32 1, %s16580_s16  }
  0x17   : > { %23017 = sst [smem:[#allocation28_spill]] %s16580_s16  ;;  %s518_s24 = sadd.s32 1, %s16576_s23 }
  0x18   : > { %23018 = sst [smem:[#allocation29_spill]] %s16754_s5  ;;  %s515_s6 = ssub.s32 %s16580_s16, %s16754_s5 }
  0x19   : > { %p528_p0 = scmp.ne.s32.totalorder %s16576_s23, %s16572_s0  ;;  %p516_p1 = scmp.eq.s32.totalorder %s515_s6, 0 }
  0x1a   : > { %p529_p2 = scmp.eq.s32.totalorder %s16750_s21, 1  ;;  %p534_p3 = scmp.ne.s32.totalorder %s16572_s0, %s16568_s4 }
  0x1b   : > { %p535_p4 = scmp.eq.s32.totalorder %s12308_s1, 1  ;;  %p12309_p7 = scmp.ge.s32.totalorder %s16580_s16, 1 }
  0x1c   : > { %s16765_s25 = scalar_select %p516_p1, %s16576_s23, %s518_s24  }
  0x1d   : > { %p16767_p5 = por %p529_p2, %p528_p0  ;;  %p16771_p6 = por %p535_p4, %p534_p3 }
  0x1e   : > { %23019 = sst [smem:[#allocation30_spill]] %s16765_s25  ;;  %p542_p8 = scmp.lt.s32.totalorder %s16580_s16, 3 }
  0x1f   : > { %s23020_s26 = scalar_select %p16767_p5, 1, 0 }
  0x20   : > { %s23022_s2 = scalar_select %p16771_p6, 1, 0 }
  0x21   : > { %23021 = sst [smem:[#allocation31_spill]] %s23020_s26  ;;  %p22613_p9 = scmp.eq.s32.totalorder %s16750_s21, 0 }
  0x22   : > { %23023 = sst [smem:[#allocation32_spill]] %s23022_s2  ;;  %p16778_p10 = pnand %p12309_p7, %p542_p8 }
  0x23   : > { %s16582_s3 = smov [#allocation7]   ;;  %s16583_s30 = smov [#allocation10]  }
  0x24   : > { %s23024_s27 = scalar_select %p16778_p10, 1, 0 }
  0x25   : > { %p13882_p11 = pneg %p16778_p10  ;;  %s567_s28 = sshll.u32 %s16582_s3, 4  ;;  %s16784_s28 = int_to_ptr.vmem [resolvable:$true] %s567_s28 }
  0x26   : > { %s593_s1 = sshll.u32 %s16583_s30, 4  ;;  %s16584_s24 = smov [#allocation13]   ;;  %s16792_s1 = int_to_ptr.vmem [resolvable:$true] %s593_s1 }
  0x27   : > { %p16788_p12 = pnand %p22613_p9, %p13882_p11  ;;  %s16794_s6 = sshll.u32 %s16584_s24, 4  ;;  %s635_s6 = int_to_ptr.vmem [resolvable:$true] %s16794_s6 }
  0x28   : > { %s23026_s5 = sld [smem:[#allocation227_spill]] }
  0x29   : > { %p16804_p0 = pneg %p16788_p12 }
  0x2e   : > { %s16274_s2 = scalar_lea.hbm %s23026_s5, 768 }
  0x2f   : > { %p16275_p13 = scmp.ne.s32.totalorder %s23026_s5, %s16274_s2  ;;  %p16281_p3 = scmp.lt.u32.totalorder %s16274_s2, %s23026_s5 }
  0x31   : > { %p16277_p1 = pnand %p16804_p0, %p16275_p13 }
  0x33   : > { %p16278_p2 = pneg %p16277_p1 }
  0x35   : > { %p16283_p4 = pnand %p16281_p3, %p16278_p2 }
  0x37   : > { %16286 = shalt.err (!%p16283_p4)
}
  0x38   : > { %s16287_s4 = scalar_lea.vmem %s16784_s28, 768  ;;  %p16295_p9 = scmp.lt.s32.totalorder %s16784_s28, %s16784_s28 }
  0x39   : > { %p16288_p7 = scmp.ne.s32.totalorder %s16784_s28, %s16287_s4  ;;  %p16296_p6 = scmp.lt.s32.totalorder %s16287_s4, %s16287_s4 }
  0x3b   : > { %p16290_p8 = pnand %p16288_p7, %p16804_p0  ;;  %p16297_p13 = por %p16296_p6, %p16295_p9 }
  0x3d   : > { %p16291_p11 = pneg %p16290_p8 }
  0x3f   : > { %p16298_p1 = pnand %p16297_p13, %p16291_p11 }
  0x41   : > { %16301 = shalt.err (!%p16298_p1)
}
  0x42   : > { %s22621_s23 = smov 256   ;;  %s22623_s25 = smov 16  }
  0x43   : > { %13888 = dma.hbm_to_vmem [thread:$0]  (!%p16788_p12), %s23026_s5, 768, %s16784_s28, [#allocation8], %s22621_s23, %s22621_s23, %s22623_s25  }
  0x44   : > { %s23028_s22 = sld [smem:[#allocation229_spill]] }
  0x4a   : > { %s16302_s4 = scalar_lea.hbm %s23028_s22, 32768 }
  0x4b   : > { %p16303_p6 = scmp.ne.s32.totalorder %s23028_s22, %s16302_s4  ;;  %p16309_p3 = scmp.lt.u32.totalorder %s16302_s4, %s23028_s22 }
  0x4d   : > { %p16305_p9 = pnand %p16303_p6, %p16804_p0 }
  0x4f   : > { %p16306_p2 = pneg %p16305_p9 }
  0x51   : > { %p16311_p4 = pnand %p16309_p3, %p16306_p2 }
  0x53   : > { %16314 = shalt.err (!%p16311_p4)
}
  0x54   : > { %s16315_s28 = scalar_lea.vmem %s16792_s1, 32768  ;;  %p16323_p13 = scmp.lt.s32.totalorder %s16792_s1, %s16792_s1 }
  0x55   : > { %p16316_p7 = scmp.ne.s32.totalorder %s16792_s1, %s16315_s28  ;;  %p16324_p1 = scmp.lt.s32.totalorder %s16315_s28, %s16315_s28 }
  0x57   : > { %p16318_p8 = pnand %p16316_p7, %p16804_p0  ;;  %p16325_p6 = por %p16324_p1, %p16323_p13 }
  0x59   : > { %p16319_p11 = pneg %p16318_p8 }
  0x5b   : > { %p16326_p9 = pnand %p16325_p6, %p16319_p11 }
  0x5d   : > { %16329 = shalt.err (!%p16326_p9)
}
  0x5e   : > { %13894 = dma.hbm_to_vmem [thread:$0]  (!%p16788_p12), %s23028_s22, 32768, %s16792_s1, [#allocation11], %s22621_s23, %s22621_s23, %s22623_s25  }
  0x5f   : > { %s16330_s2 = scalar_lea.hbm %s22589_s11, 2048 }
  0x60   : > { %p16331_p2 = scmp.ne.s32.totalorder %s22589_s11, %s16330_s2  ;;  %p16337_p7 = scmp.lt.u32.totalorder %s16330_s2, %s22589_s11 }
  0x62   : > { %p16333_p3 = pnand %p16331_p2, %p16804_p0 }
  0x64   : > { %p16334_p4 = pneg %p16333_p3 }
  0x66   : > { %p16339_p8 = pnand %p16337_p7, %p16334_p4 }
  0x68   : > { %16342 = shalt.err (!%p16339_p8)
}
  0x69   : > { %s16343_s28 = scalar_lea.vmem %s635_s6, 2048  ;;  %p16351_p6 = scmp.lt.s32.totalorder %s635_s6, %s635_s6 }
  0x6a   : > { %p16344_p11 = scmp.ne.s32.totalorder %s635_s6, %s16343_s28  ;;  %p16352_p9 = scmp.lt.s32.totalorder %s16343_s28, %s16343_s28 }
  0x6c   : > { %p16346_p13 = pnand %p16344_p11, %p16804_p0  ;;  %p16353_p5 = por %p16352_p9, %p16351_p6 }
  0x6e   : > { %p16347_p1 = pneg %p16346_p13 }
  0x70   : > { %p16354_p10 = pnand %p16353_p5, %p16347_p1 }
  0x72   : > { %16357 = shalt.err (!%p16354_p10)
}
  0x73   : > { %s22628_s1 = smov 64   ;;  %s22629_s15 = smov 4  }
  0x74   : > { %13900 = dma.hbm_to_vmem [thread:$0]  (!%p16788_p12), %s22589_s11, 2048, %s635_s6, [#allocation14], %s22628_s1, %s22628_s1, %s22629_s15  }
  0x75   : > { %s16589_s26 = smov [#allocation4]   ;;  %s16590_s3 = smov [#allocation9]  }
  0x76   : > { %s554_s2 = sshll.u32 %s16589_s26, 4  ;;  %s580_s30 = sshll.u32 %s16590_s3, 4  ;;  %s555_s2 = int_to_ptr.vmem [resolvable:$true] %s554_s2  ;;  %s581_s30 = int_to_ptr.vmem [resolvable:$true] %s580_s30 }
  0x77   : > { %s23029_s28 = sld [smem:[#allocation226_spill]] }
  0x7d   : > { %s16358_s23 = scalar_lea.hbm %s23029_s28, 768 }
  0x7e   : > { %p16359_p5 = scmp.ne.s32.totalorder %s23029_s28, %s16358_s23  ;;  %p16365_p3 = scmp.lt.u32.totalorder %s16358_s23, %s23029_s28 }
  0x80   : > { %p16361_p10 = pnand %p16359_p5, %p16804_p0 }
  0x82   : > { %p16362_p2 = pneg %p16361_p10 }
  0x84   : > { %p16367_p4 = pnand %p16365_p3, %p16362_p2 }
  0x86   : > { %16370 = shalt.err (!%p16367_p4)
}
  0x87   : > { %s16371_s6 = scalar_lea.vmem %s555_s2, 768  ;;  %p16379_p13 = scmp.lt.s32.totalorder %s555_s2, %s555_s2 }
  0x88   : > { %p16372_p7 = scmp.ne.s32.totalorder %s555_s2, %s16371_s6  ;;  %p16380_p1 = scmp.lt.s32.totalorder %s16371_s6, %s16371_s6 }
  0x8a   : > { %p16374_p8 = pnand %p16372_p7, %p16804_p0  ;;  %p16381_p6 = por %p16380_p1, %p16379_p13 }
  0x8c   : > { %p16375_p11 = pneg %p16374_p8 }
  0x8e   : > { %p16382_p9 = pnand %p16381_p6, %p16375_p11 }
  0x90   : > { %16385 = shalt.err (!%p16382_p9)
}
  0x91   : > { %s23030_s5 = smov 16   ;;  %s23031_s25 = smov 256  }
  0x92   : > { %13885 = dma.hbm_to_vmem [thread:$0]  (!%p16788_p12), %s23029_s28, 768, %s555_s2, [#allocation5], %s23031_s25, %s23031_s25, %s23030_s5  }
  0x93   : > { %s23032_s0 = sld [smem:[#allocation228_spill]] }
  0x99   : > { %s23033_s26 = smov %s23032_s0  ;;  %s16386_s3 = scalar_lea.hbm %s23032_s0, 32768 }
  0x9a   : > { %p16387_p5 = scmp.ne.s32.totalorder %s23033_s26, %s16386_s3  ;;  %p16393_p3 = scmp.lt.u32.totalorder %s16386_s3, %s23033_s26 }
  0x9c   : > { %p16389_p10 = pnand %p16387_p5, %p16804_p0 }
  0x9e   : > { %p16390_p2 = pneg %p16389_p10 }
  0xa0   : > { %p16395_p4 = pnand %p16393_p3, %p16390_p2 }
  0xa2   : > { %16398 = shalt.err (!%p16395_p4)
}
  0xa3   : > { %s16399_s13 = scalar_lea.vmem %s581_s30, 32768  ;;  %p16407_p13 = scmp.lt.s32.totalorder %s581_s30, %s581_s30 }
  0xa4   : > { %p16400_p7 = scmp.ne.s32.totalorder %s581_s30, %s16399_s13  ;;  %p16408_p1 = scmp.lt.s32.totalorder %s16399_s13, %s16399_s13 }
  0xa6   : > { %p16402_p8 = pnand %p16400_p7, %p16804_p0  ;;  %p16409_p6 = por %p16408_p1, %p16407_p13 }
  0xa8   : > { %p16403_p11 = pneg %p16402_p8 }
  0xaa   : > { %p16410_p9 = pnand %p16409_p6, %p16403_p11 }
  0xac   : > { %16413 = shalt.err (!%p16410_p9)
}
  0xad   : > { %13891 = dma.hbm_to_vmem [thread:$0]  (!%p16788_p12), %s23033_s26, 32768, %s581_s30, [#allocation8], %s23031_s25, %s23031_s25, %s23030_s5  }
  0xae   : > { %s16591_s22 = smov [#allocation12]   ;;  %s16414_s3 = scalar_lea.hbm %s22586_s8, 8192 }
  0xaf   : > { %s615_s23 = sshll.u32 %s16591_s22, 4  ;;  %p16415_p5 = scmp.ne.s32.totalorder %s22586_s8, %s16414_s3  ;;  %s616_s23 = int_to_ptr.vmem [resolvable:$true] %s615_s23 }
  0xb0   : > { %p16421_p3 = scmp.lt.u32.totalorder %s16414_s3, %s22586_s8 }
  0xb1   : > { %p16417_p10 = pnand %p16415_p5, %p16804_p0 }
  0xb3   : > { %p16418_p2 = pneg %p16417_p10 }
  0xb5   : > { %p16423_p4 = pnand %p16421_p3, %p16418_p2 }
  0xb7   : > { %16426 = shalt.err (!%p16423_p4)
}
  0xb8   : > { %s16427_s30 = scalar_lea.vmem %s616_s23, 8192  ;;  %p16435_p13 = scmp.lt.s32.totalorder %s616_s23, %s616_s23 }
  0xb9   : > { %p16428_p7 = scmp.ne.s32.totalorder %s616_s23, %s16427_s30  ;;  %p16436_p1 = scmp.lt.s32.totalorder %s16427_s30, %s16427_s30 }
  0xbb   : > { %p16430_p8 = pnand %p16428_p7, %p16804_p0  ;;  %p16437_p6 = por %p16436_p1, %p16435_p13 }
  0xbd   : > { %p16431_p11 = pneg %p16430_p8 }
  0xbf   : > { %p16438_p9 = pnand %p16437_p6, %p16431_p11 }
  0xc1   : > { %16441 = shalt.err (!%p16438_p9)
}
  0xc2   : > { %s16592_s25 = smov 128   ;;  %s16593_s1 = smov 8  }
  0xc3   : > { %13897 = dma.hbm_to_vmem [thread:$0]  (!%p16788_p12), %s22586_s8, 8192, %s616_s23, [#allocation11], %s16592_s25, %s16592_s25, %s16593_s1  }
  0xc4   : > { %s16594_s20 = smov [#allocation15]   ;;  %s16595_s3 = smov [#allocation16]  }
  0xc5   : > { %s647_s0 = sshll.u32 %s16594_s20, 4  ;;  %s663_s24 = sshll.u32 %s16595_s3, 4  ;;  %s648_s0 = int_to_ptr.vmem [resolvable:$true] %s647_s0  ;;  %s16936_s24 = int_to_ptr.vmem [resolvable:$true] %s663_s24 }
  0xc6   : > { %s16442_s13 = scalar_lea.hbm %s22590_s12, 2048 }
  0xc7   : > { %p16443_p5 = scmp.ne.s32.totalorder %s22590_s12, %s16442_s13  ;;  %p16449_p3 = scmp.lt.u32.totalorder %s16442_s13, %s22590_s12 }
  0xc9   : > { %p16445_p10 = pnand %p16443_p5, %p16804_p0 }
  0xcb   : > { %p16446_p2 = pneg %p16445_p10 }
  0xcd   : > { %p16451_p4 = pnand %p16449_p3, %p16446_p2 }
  0xcf   : > { %16454 = shalt.err (!%p16451_p4)
}
  0xd0   : > { %s16455_s25 = scalar_lea.vmem %s648_s0, 2048  ;;  %p16463_p13 = scmp.lt.s32.totalorder %s648_s0, %s648_s0 }
  0xd1   : > { %p16456_p7 = scmp.ne.s32.totalorder %s648_s0, %s16455_s25  ;;  %p16464_p1 = scmp.lt.s32.totalorder %s16455_s25, %s16455_s25 }
  0xd3   : > { %p16458_p8 = pnand %p16456_p7, %p16804_p0  ;;  %p16465_p6 = por %p16464_p1, %p16463_p13 }
  0xd5   : > { %p16459_p11 = pneg %p16458_p8 }
  0xd7   : > { %p16466_p9 = pnand %p16465_p6, %p16459_p11 }
  0xd9   : > { %16469 = shalt.err (!%p16466_p9)
}
  0xda   : > { %s23034_s15 = smov 4   ;;  %s23035_s1 = smov 64  }
  0xdb   : > { %13903 = dma.hbm_to_vmem [thread:$0]  (!%p16788_p12), %s22590_s12, 2048, %s648_s0, [#allocation14], %s23035_s1, %s23035_s1, %s23034_s15  }
  0xdc   : > { %s16470_s6 = scalar_lea.hbm %s22592_s14, 160 }
  0xdd   : > { %p16471_p5 = scmp.ne.s32.totalorder %s22592_s14, %s16470_s6  ;;  %p16477_p3 = scmp.lt.u32.totalorder %s16470_s6, %s22592_s14 }
  0xdf   : > { %p16473_p10 = pnand %p16471_p5, %p16804_p0 }
  0xe1   : > { %p16474_p2 = pneg %p16473_p10 }
  0xe3   : > { %p16479_p4 = pnand %p16477_p3, %p16474_p2 }
  0xe5   : > { %16482 = shalt.err (!%p16479_p4)
}
  0xe6   : > { %s16483_s0 = scalar_lea.vmem %s16936_s24, 160  ;;  %p16491_p13 = scmp.lt.s32.totalorder %s16936_s24, %s16936_s24 }
  0xe7   : > { %p16484_p7 = scmp.ne.s32.totalorder %s16936_s24, %s16483_s0  ;;  %p16492_p1 = scmp.lt.s32.totalorder %s16483_s0, %s16483_s0 }
  0xe9   : > { %p16486_p8 = pnand %p16484_p7, %p16804_p0  ;;  %p16493_p6 = por %p16492_p1, %p16491_p13 }
  0xeb   : > { %p16487_p11 = pneg %p16486_p8 }
  0xed   : > { %p16494_p9 = pnand %p16493_p6, %p16487_p11 }
  0xef   : > { %16497 = shalt.err (!%p16494_p9)
}
  0xf0   : > { %s16596_s25 = smov 1   ;;  %p23036_p5 = scmp.ne.s32.totalorder %s23024_s27, 0 }
  0xf1   : > { %13906 = dma.hbm_to_vmem [thread:$0]  (!%p16788_p12), %s22592_s14, 160, %s16936_s24, [#allocation17], %s23030_s5, %s23030_s5, %s16596_s25  }
  0xf2   : > { %708 = sbr.rel (%p23036_p5) target bundleno = 3962 (0xf7a), region = 108 }
  0xf9   : > { %p23037_p0 = scmp.eq.s32.totalorder %s16750_s21, 0 }
  0xfb   : > { %16543 = dma.done.wait (%p23037_p0), [#allocation5], 768   ;;  %p23038_p10 = pmov %p23037_p0 }
  0xfc   : > { %p23039_p2 = pmov %p23037_p0 }
  0xfd   : > { %16545 = vsyncadd (%p23038_p10), [#allocation5], 4294966528 }
  0xfe   : > { %16547 = dma.done.wait (%p23039_p2), [#allocation8], 33536   ;;  %p23040_p3 = pmov %p23037_p0 }
  0xff   : > { %p23041_p4 = pmov %p23037_p0 }
 0x100   : > { %16549 = vsyncadd (%p23040_p3), [#allocation8], 4294933760 }
 0x101   : > { %16551 = dma.done.wait (%p23041_p4), [#allocation11], 40960   ;;  %p23042_p12 = pmov %p23037_p0 }
 0x102   : > { %p23043_p7 = pmov %p23037_p0 }
 0x103   : > { %16553 = vsyncadd (%p23042_p12), [#allocation11], 4294926336 }
 0x104   : > { %16555 = dma.done.wait (%p23043_p7), [#allocation14], 4096   ;;  %p23044_p8 = pmov %p23037_p0 }
 0x105   : > { %p23045_p11 = pmov %p23037_p0 }
 0x106   : > { %16557 = vsyncadd (%p23044_p8), [#allocation14], 4294963200 }
 0x107   : > { %16559 = dma.done.wait (%p23045_p11), [#allocation17], 160   ;;  %p23046_p13 = pmov %p23037_p0 }
 0x108   : > { %p797_p1 = scmp.lt.s32.totalorder %s16750_s21, 1  ;;  %s23047_s24 = sld [smem:[#allocation225_spill]]  ;;  %v15052_v56 = vld [vmem:[#allocation4 + $0xc] ss:$16 sps:$4 sm:$0xff]   ;;  %vm2113_vm0 = vcmask 64512   ;;  %vm2120_vm5 = vcmask 1043456  }
 0x109   : > { %16561 = vsyncadd (%p23046_p13), [#allocation17], 4294967136  ;;  %s16597_s20 = smov 124   ;;  %s16598_s3 = smov 123   ;;  %12338 = vmatprep.mubr.msk.bf16.mxu1 %vm2113_vm0, %v15052_v56  ;;  %vm7165_vm8 = vcmask 588800   ;;  %vm10064_vm9 = vcmask 785408  }
 0x10a   : > { %s798_s16 = scalar_select %p797_p1, %s16750_s21, 1  ;;  %vm16605_vm10 = vmmov 0   ;;  %vm12079_vm11 = vcmask 261120   ;;  %vm12159_vm12 = vcmask 57344  }
 0x10b   : > { %s16599_s4 = smov 122   ;;  %s16600_s6 = smov 127  }
 0x10c   : > { %s13847_s27 = smul.u32 448, %s798_s16  ;;  %s16601_s13 = smov 126  }
 0x10d   : > { %s16602_s30 = smov 125   ;;  %s23724_s16 = sld [smem:[#allocation230_spill]] }
 0x10e   : > { %s17011_s22 = scalar_lea.vmem %s23047_s24, %s13847_s27  ;;  %s23726_s0 = sld [smem:[#allocation231_spill]] }
 0x10f   : > { %v17014_v2 = vld [vmem:[%s17011_s22 + $0x108] sm:$0xff]  ;;  %v17020_v4 = vld [vmem:[%s17011_s22 + $0x100] sm:$0xff]  ;;  %v837_v7 = vld [vmem:[%s17011_s22 + $0x110] sm:$0xff]  ;;  %s23801_s1 = sld [smem:[#allocation234_spill]]  ;;  %s13218_s24 = sshll.u32 %s16750_s21, 4 }
 0x110   : > { %v17017_v3 = vld [vmem:[%s17011_s22 + $0x148] sm:$0xff]  ;;  %v17027_v6 = vld [vmem:[%s17011_s22 + $0x140] sm:$0xff]  ;;  %v845_v8 = vld [vmem:[%s17011_s22 + $0x150] sm:$0xff]  ;;  %s23804_s29 = sld [smem:[#allocation31_spill]]  ;;  %s16607_s21 = smov [#allocation18]  }
 0x111   : > { %v17024_v5 = vpack.i.bf16 %v17017_v3, %v17014_v2  ;;  %v17033_v9 = vpack.i.bf16 %v17017_v3, %v17020_v4  ;;  %v17037_v10 = vpack.i.bf16 %v17027_v6, %v17020_v4  ;;  %v17040_v11 = vld [vmem:[%s17011_s22 + $0x188] sm:$0xff]  ;;  %v17043_v12 = vld [vmem:[%s17011_s22 + $0x190] sm:$0xff]  ;;  %v17047_v13 = vpack.i.bf16 %v845_v8, %v837_v7  ;;  %v17058_v17 = vld [vmem:[%s17011_s22 + $0x180] sm:$0xff]  ;;  %s16502_s15 = sshll.u32 %s16607_s21, 4  ;;  %s16503_s15 = int_to_ptr.vmem [resolvable:$false] %s16502_s15 }
 0x112   : > { %v17053_v14 = vpack.i.bf16 %v17043_v12, %v17040_v11  ;;  %v804_v15 = vld [vmem:[%s17011_s22 + $0x8] sm:$0xff]  ;;  %v805_v16 = vld [vmem:[%s17011_s22 + $0x10] sm:$0xff]  ;;  %v803_v20 = vld [vmem:[%s17011_s22] sm:$0xff]  ;;  %v14050_v44 = vpack.i.bf16 %v845_v8, %v17040_v11  ;;  %v14055_v47 = vpack.i.bf16 %v17027_v6, %v17043_v12  ;;  %v17157_v49 = vpack.c.bf16 %v17017_v3, %v17014_v2 }
 0x113   : > { %13986 = vrot.lane.b32.xlu0 %v17024_v5, %s16597_s20  ;;  %13996 = vrot.lane.b32.xlu1 %v17037_v10, %s16597_s20  ;;  %v17062_v18 = vpack.i.bf16 %v805_v16, %v804_v15  ;;  %v14010_v19 = vpack.i.bf16 %v804_v15, %v17058_v17  ;;  %v812_v21 = vld [vmem:[%s17011_s22 + $0x48] sm:$0xff]  ;;  %v813_v22 = vld [vmem:[%s17011_s22 + $0x50] sm:$0xff]  ;;  %v17161_v50 = vpack.c.bf16 %v17027_v6, %v17020_v4  ;;  %s23725_s27 = smov %s23724_s16 }
 0x114   : > { %v17071_v23 = vld [vmem:[%s17011_s22 + $0x88] sm:$0xff]  ;;  %v819_v24 = vld [vmem:[%s17011_s22 + $0x80] sm:$0xff]  ;;  %v17081_v28 = vpack.i.bf16 %v812_v21, %v804_v15  ;;  %v17085_v29 = vpack.i.bf16 %v812_v21, %v803_v20  ;;  %v821_v30 = vld [vmem:[%s17011_s22 + $0x90] sm:$0xff]  ;;  %v17123_v41 = vpack.c.bf16 %v812_v21, %v804_v15  ;;  %23052 = vst [vmem:[#allocation37_spill] sm:$0xff] %v17157_v49  ;;  %v14070_v52 = vpack.i.bf16 %v813_v22, %v805_v16  ;;  %s23727_s25 = smov %s23726_s0 }
 0x115   : > { %v828_v25 = vld [vmem:[%s17011_s22 + $0xc8] sm:$0xff]  ;;  %v17076_v26 = vld [vmem:[%s17011_s22 + $0x40] sm:$0xff]  ;;  %v17099_v34 = vpack.i.bf16 %v813_v22, %v17071_v23  ;;  %v829_v35 = vld [vmem:[%s17011_s22 + $0xd0] sm:$0xff]  ;;  %23053 = vst [vmem:[#allocation38_spill] sm:$0xff] %v17161_v50  ;;  %v14145_v54 = vpack.i.bf16 %v17040_v11, %v17058_v17  ;;  %v22630_v11 = vlaneseq }
 0x116   : > { %v17079_v27 = vld [vmem:[%s17011_s22 + $0xc0] sm:$0xff]  ;;  %v17089_v31 = vpack.i.bf16 %v828_v25, %v17071_v23  ;;  %v17092_v32 = vpack.i.bf16 %v17076_v26, %v803_v20  ;;  %v17105_v36 = vpack.i.bf16 %v17076_v26, %v821_v30  ;;  %v17107_v37 = vpack.i.bf16 %v828_v25, %v819_v24  ;;  %23048 = vst [vmem:[#allocation33_spill] sm:$0xff] %v17123_v41  ;;  %v17132_v43 = vld [vmem:[%s17011_s22 + $0x18] sm:$0xff]  ;;  %p23806_p9 = scmp.ne.s32.totalorder %s23804_s29, 0 }
 0x117   : > { %13991 = vrot.lane.b32.xlu0 %v17047_v13, %s16597_s20  ;;  %14001 = vrot.lane.b32.xlu1 %v17053_v14, %s16597_s20  ;;  %v17095_v33 = vpack.i.bf16 %v17079_v27, %v819_v24  ;;  %v17114_v38 = vpack.i.bf16 %v829_v35, %v17014_v2  ;;  %v14350_v39 = vpack.i.bf16 %v17071_v23, %v17076_v26  ;;  %v17217_v57 = vld [vmem:[%s17011_s22 + $0x20] sm:$0xff]  ;;  %v17220_v58 = vld [vmem:[%s17011_s22 + $0x58] sm:$0xff]  ;;  %v17314_v15 = vand.u32 127, %v22630_v11 }
 0x118   : > { %v17121_v40 = vpack.i.bf16 %v17079_v27, %v837_v7  ;;  %v17126_v42 = vpack.c.bf16 %v17076_v26, %v803_v20  ;;  %2145 = vmatprep.subr.bf16.mxu0 %v17123_v41  ;;  %v17139_v45 = vpack.c.bf16 %v828_v25, %v17071_v23  ;;  %v17142_v46 = vpack.c.bf16 %v17079_v27, %v819_v24  ;;  %v17234_v60 = vld [vmem:[%s17011_s22 + $0x60] sm:$0xff]  ;;  %v17237_v61 = vld [vmem:[%s17011_s22 + $0x98] sm:$0xff]  ;;  %v17867_v41 = vld [vmem:[%s17011_s22 + $0x170] sm:$0xff] }
 0x119   : > { %v17153_v48 = vpack.i.bf16 %v17132_v43, %v17058_v17  ;;  %v14090_v53 = vpack.i.bf16 %v829_v35, %v821_v30  ;;  %v14150_v55 = vpack.i.bf16 %v17132_v43, %v17043_v12  ;;  %v17229_v59 = vpack.i.bf16 %v17220_v58, %v17217_v57  ;;  %v17242_v62 = vld [vmem:[%s17011_s22 + $0xa0] sm:$0xff]  ;;  %v17245_v63 = vld [vmem:[%s17011_s22 + $0xd8] sm:$0xff]  ;;  %v808_v12 = vld [vmem:[%s17011_s22 + $0x28] sm:$0xff]  ;;  %23054 = vst [vmem:[#allocation39_spill] sm:$0xff] %v17314_v15 }
 0x11a   : > { %23049 = vst [vmem:[#allocation34_spill] sm:$0xff] %v17126_v42  ;;  %2146 = vmatpush1.bf16.msra.mxu0 %v17126_v42  ;;  %23050 = vst [vmem:[#allocation35_spill] sm:$0xff] %v17139_v45  ;;  %v17253_v0 = vpack.i.bf16 %v17234_v60, %v17237_v61  ;;  %v17259_v1 = vpack.i.bf16 %v17245_v63, %v17242_v62  ;;  %v17266_v2 = vld [vmem:[%s17011_s22 + $0xe0] sm:$0xff]  ;;  %v17269_v3 = vld [vmem:[%s17011_s22 + $0x118] sm:$0xff]  ;;  %vm1480_vm1 = vcmp.lt.s32.totalorder %v17314_v15, 124  ;;  %vm1649_vm2 = vcmp.lt.s32.totalorder %v17314_v15, 123 }
 0x11b   : > { %14006 = vrot.lane.b32.xlu0 %v17062_v18, %s16598_s3  ;;  %14011 = vrot.lane.b32.xlu1 %v14010_v19, %s16597_s20  ;;  %23051 = vst [vmem:[#allocation36_spill] sm:$0xff] %v17142_v46  ;;  %v17274_v4 = vld [vmem:[%s17011_s22 + $0x120] sm:$0xff]  ;;  %v17285_v6 = vpack.i.bf16 %v17266_v2, %v17269_v3  ;;  %vm1818_vm3 = vcmp.lt.s32.totalorder %v17314_v15, 122  ;;  %vm973_vm4 = vcmp.lt.s32.totalorder %v17314_v15, 127  ;;  %v17864_v42 = vld [vmem:[%s17011_s22 + $0x1b0] sm:$0xff]  ;;  %vm1142_vm6 = vcmp.lt.s32.totalorder %v17314_v15, 126 }
 0x11c   : > { %2147 = vmatprep.subr.bf16.mxu0 %v17139_v45  ;;  %v17296_v8 = vld [vmem:[%s17011_s22 + $0x160] sm:$0xff]  ;;  %vm1311_vm7 = vcmp.lt.s32.totalorder %v17314_v15, 125 }
 0x11e   : > { %2148 = vmatpush1.bf16.msra.mxu0 %v17142_v46 }
 0x11f   : > { %14016 = vrot.lane.b32.xlu0 %v17085_v29, %s16598_s3  ;;  %14021 = vrot.lane.b32.xlu1 %v17099_v34, %s16598_s3 }
 0x120   : > { %2149 = vmatprep.subr.bf16.mxu0 %v17157_v49 }
 0x122   : > { %2150 = vmatpush1.bf16.msra.mxu0 %v17161_v50 }
 0x123   : > { %14026 = vrot.lane.b32.xlu0 %v17105_v36, %s16598_s3  ;;  %14031 = vrot.lane.b32.xlu1 %v17107_v37, %s16598_s3 }
 0x127   : > { %14036 = vrot.lane.b32.xlu0 %v17114_v38, %s16598_s3  ;;  %14041 = vrot.lane.b32.xlu1 %v17121_v40, %s16598_s3 }
 0x12b   : > { %14046 = vrot.lane.b32.xlu0 %v17033_v9, %s16598_s3  ;;  %14051 = vrot.lane.b32.xlu1 %v14050_v44, %s16598_s3 }
 0x12f   : > { %14056 = vrot.lane.b32.xlu0 %v14055_v47, %s16598_s3  ;;  %14061 = vrot.lane.b32.xlu1 %v17153_v48, %s16598_s3 }
 0x133   : > { %14066 = vrot.lane.b32.xlu0 %v17081_v28, %s16599_s4  ;;  %14071 = vrot.lane.b32.xlu1 %v14070_v52, %s16599_s4 }
 0x137   : > { %14076 = vrot.lane.b32.xlu0 %v17092_v32, %s16599_s4  ;;  %14081 = vrot.lane.b32.xlu1 %v17062_v18, %s16600_s6 }
 0x13b   : > { %14086 = vrot.lane.b32.xlu0 %v17089_v31, %s16599_s4  ;;  %14091 = vrot.lane.b32.xlu1 %v14090_v53, %s16599_s4 }
 0x13f   : > { %14096 = vrot.lane.b32.xlu0 %v17085_v29, %s16600_s6  ;;  %14101 = vrot.lane.b32.xlu1 %v17095_v33, %s16599_s4 }
 0x143   : > { %14106 = vrot.lane.b32.xlu0 %v17099_v34, %s16600_s6  ;;  %14111 = vrot.lane.b32.xlu1 %v17105_v36, %s16600_s6 }
 0x147   : > { %14116 = vrot.lane.b32.xlu0 %v17024_v5, %s16599_s4  ;;  %14121 = vrot.lane.b32.xlu1 %v17047_v13, %s16599_s4 }
 0x14b   : > { %14126 = vrot.lane.b32.xlu0 %v17107_v37, %s16600_s6  ;;  %14131 = vrot.lane.b32.xlu1 %v17037_v10, %s16599_s4 }
 0x14f   : > { %14136 = vrot.lane.b32.xlu0 %v17114_v38, %s16600_s6  ;;  %14141 = vrot.lane.b32.xlu1 %v17121_v40, %s16600_s6 }
 0x153   : > { %14146 = vrot.lane.b32.xlu0 %v14145_v54, %s16599_s4  ;;  %14151 = vrot.lane.b32.xlu1 %v14150_v55, %s16599_s4  ;;  %v14310_v55 = vpack.i.bf16 %v17237_v61, %v17234_v60 }
 0x157   : > { %14156 = vrot.lane.b32.xlu0 %v17033_v9, %s16600_s6  ;;  %14161 = vrot.lane.b32.xlu1 %v14050_v44, %s16600_s6 }
 0x15b   : > { %14166 = vrot.lane.b32.xlu0 %v14055_v47, %s16600_s6  ;;  %14171 = vrot.lane.b32.xlu1 %v17153_v48, %s16600_s6 }
 0x15f   : > { %14176 = vrot.lane.b32.xlu0 %v17081_v28, %s16601_s13  ;;  %14181 = vrot.lane.b32.xlu1 %v14070_v52, %s16601_s13  ;;  %v14305_v52 = vpack.i.bf16 %v17217_v57, %v17220_v58 }
 0x163   : > { %14186 = vrot.lane.b32.xlu0 %v17092_v32, %s16601_s13  ;;  %14191 = vrot.lane.b32.xlu1 %v17089_v31, %s16601_s13 }
 0x167   : > { %14196 = vrot.lane.b32.xlu0 %v14090_v53, %s16601_s13  ;;  %14201 = vrot.lane.b32.xlu1 %v17095_v33, %s16601_s13 }
 0x16b   : > { %14206 = vrot.lane.b32.xlu0 %v17229_v59, %s16600_s6  ;;  %14211 = vrot.lane.b32.xlu1 %v17024_v5, %s16601_s13  ;;  %v17277_v5 = vld [vmem:[%s17011_s22 + $0x158] sm:$0xff] }
 0x16c   : > { %v17291_v7 = vpack.i.bf16 %v17277_v5, %v17274_v4 }
 0x16f   : > { %14216 = vrot.lane.b32.xlu0 %v17047_v13, %s16601_s13  ;;  %14221 = vrot.lane.b32.xlu1 %v17037_v10, %s16601_s13  ;;  %v17299_v10 = vld [vmem:[%s17011_s22 + $0x198] sm:$0xff]  ;;  %v855_v13 = vld [vmem:[%s17011_s22 + $0x1a0] sm:$0xff] }
 0x173   : > { %14226 = vrot.lane.b32.xlu0 %v17253_v0, %s16600_s6  ;;  %14231 = vrot.lane.b32.xlu1 %v17259_v1, %s16600_s6 }
 0x177   : > { %14236 = vrot.lane.b32.xlu0 %v17053_v14, %s16601_s13  ;;  %14241 = vrot.lane.b32.xlu1 %v17062_v18, %s16602_s30  ;;  %v17311_v14 = vpack.i.bf16 %v17296_v8, %v17299_v10  ;;  %v17318_v18 = vpack.i.bf16 %v808_v12, %v855_v13  ;;  %v16204_v12 = vld [vmem:[%s17011_s22 + $0x140] sm:$0xff]  ;;  %v16205_v13 = vld [vmem:[%s17011_s22 + $0x190] sm:$0xff] }
 0x17b   : > { %14246 = vrot.lane.b32.xlu0 %v17153_v48, %s16601_s13  ;;  %14251 = vrot.lane.b32.xlu1 %v17085_v29, %s16602_s30 }
 0x17f   : > { %14256 = vrot.lane.b32.xlu0 %v17285_v6, %s16600_s6  ;;  %14261 = vrot.lane.b32.xlu1 %v17291_v7, %s16600_s6 }
 0x183   : > { %14266 = vrot.lane.b32.xlu0 %v17099_v34, %s16602_s30  ;;  %14271 = vrot.lane.b32.xlu1 %v17105_v36, %s16602_s30 }
 0x185   : > { %v13987_v16 = vpop.permute.xlu0 %13986  ;;  %v17316_v17 = vpop.permute.xlu1 %13996 }
 0x186   : > { %23055 = vst [vmem:[#allocation40_spill] sm:$0xff] %v17316_v17  ;;  %v13989_v19 = vunpack.i.h.bf16 %v13987_v16  ;;  %v13988_v20 = vunpack.i.l.bf16 %v13987_v16  ;;  %v22633_v21 = vunpack.i.h.bf16 %v17316_v17  ;;  %v22634_v22 = vunpack.i.l.bf16 %v17316_v17 }
 0x187   : > { %14276 = vrot.lane.b32.xlu0 %v17107_v37, %s16602_s30  ;;  %14281 = vrot.lane.b32.xlu1 %v17311_v14, %s16600_s6  ;;  %v14320_v16 = vpack.i.bf16 %v16204_v12, %v16205_v13 }
 0x188   : > { %v1527_v30 = vsel %vm1480_vm1, %v22634_v22, %v13988_v20  ;;  %v1528_v31 = vsel %vm1480_vm1, %v22633_v21, %v13989_v19 }
 0x189   : > { %v17327_v24 = vpop.permute.xlu0 %13991  ;;  %v17331_v29 = vpop.permute.xlu1 %14001  ;;  %v17364_v48 = vpack.c.bf16 %v1528_v31, %v1527_v30 }
 0x18a   : > { %23056 = vst [vmem:[#allocation41_spill] sm:$0xff] %v17327_v24  ;;  %v22643_v25 = vunpack.i.h.bf16 %v17327_v24  ;;  %v22644_v28 = vunpack.i.l.bf16 %v17327_v24  ;;  %23057 = vst [vmem:[#allocation42_spill] sm:$0xff] %v17331_v29  ;;  %v22641_v32 = vunpack.i.h.bf16 %v17331_v29  ;;  %v14003_v33 = vunpack.i.l.bf16 %v17331_v29 }
 0x18b   : > { %14286 = vrot.lane.b32.xlu0 %v17318_v18, %s16600_s6  ;;  %14291 = vrot.lane.b32.xlu1 %v17114_v38, %s16602_s30  ;;  %23061 = vst [vmem:[#allocation46_spill] sm:$0xff] %v17364_v48 }
 0x18c   : > { %v1520_v34 = vsel %vm1480_vm1, %v13988_v20, %v22644_v28  ;;  %v1521_v35 = vsel %vm1480_vm1, %v13989_v19, %v22643_v25  ;;  %v1522_v54 = vsel %vm1480_vm1, %v14003_v33, %v22641_v32  ;;  %v17397_v19 = vld [vmem:[%s17011_s22 + $0x150] sm:$0xff]  ;;  %v17400_v20 = vld [vmem:[%s17011_s22 + $0x188] sm:$0xff] }
 0x18d   : > { %v17355_v36 = vpop.permute.xlu0 %14006  ;;  %v17357_v37 = vpack.c.bf16 %v1521_v35, %v1520_v34  ;;  %v17360_v44 = vpop.permute.xlu1 %14011  ;;  %v14315_v60 = vpack.i.bf16 %v17397_v19, %v17400_v20 }
 0x18e   : > { %23058 = vst [vmem:[#allocation43_spill] sm:$0xff] %v17355_v36  ;;  %23060 = vst [vmem:[#allocation45_spill] sm:$0xff] %v17360_v44  ;;  %v22640_v38 = vunpack.i.h.bf16 %v17355_v36  ;;  %v14008_v47 = vunpack.i.l.bf16 %v17355_v36  ;;  %v22632_v53 = vunpack.i.l.bf16 %v17360_v44 }
 0x18f   : > { %23059 = vst [vmem:[#allocation44_spill] sm:$0xff] %v17357_v37  ;;  %2196 = vmatprep.subr.bf16.mxu1 %v17357_v37  ;;  %14296 = vrot.lane.b32.xlu0 %v17121_v40, %s16602_s30 }
 0x190   : > { %14301 = vrot.lane.b32.xlu1 %v17033_v9, %s16602_s30  ;;  %2197 = vmatpush1.bf16.msra.mxu1 %v17364_v48  ;;  %v1685_v40 = vsel %vm1649_vm2, %v14008_v47, %v22640_v38  ;;  %v1529_v31 = vsel %vm1480_vm1, %v22632_v53, %v14003_v33  ;;  %v17428_v33 = vld [vmem:[%s17011_s22 + $0x180] sm:$0xff] }
 0x191   : > { %v17385_v56 = vpop.permute.xlu0 %14016  ;;  %v17387_v57 = vpack.c.bf16 %v1685_v40, %v1522_v54  ;;  %v17389_v9 = vpop.permute.xlu1 %14021 }
 0x192   : > { %23062 = vst [vmem:[#allocation47_spill] sm:$0xff] %v17385_v56  ;;  %23064 = vst [vmem:[#allocation49_spill] sm:$0xff] %v17389_v9  ;;  %v22631_v58 = vunpack.i.l.bf16 %v17385_v56  ;;  %v22638_v61 = vunpack.i.h.bf16 %v17389_v9  ;;  %v14019_v30 = vunpack.i.h.bf16 %v17385_v56  ;;  %v14023_v54 = vunpack.i.l.bf16 %v17389_v9 }
 0x193   : > { %23063 = vst [vmem:[#allocation48_spill] sm:$0xff] %v17387_v57  ;;  %2198 = vmatprep.subr.bf16.mxu1 %v17387_v57  ;;  %14306 = vrot.lane.b32.xlu0 %v14305_v52, %s16601_s13 }
 0x194   : > { %14311 = vrot.lane.b32.xlu1 %v14310_v55, %s16601_s13  ;;  %v1692_v34 = vsel %vm1649_vm2, %v22631_v58, %v14008_v47  ;;  %v14325_v47 = vpack.i.bf16 %v17132_v43, %v17428_v33 }
 0x195   : > { %v17415_v35 = vpop.permute.xlu0 %14026  ;;  %v17417_v52 = vpack.c.bf16 %v1692_v34, %v1529_v31  ;;  %v17420_v40 = vpop.permute.xlu1 %14031  ;;  %v14330_v31 = vpack.i.bf16 %v17242_v62, %v17245_v63  ;;  %v1686_v34 = vsel %vm1649_vm2, %v14019_v30, %v22638_v61  ;;  %v17493_v61 = vld [vmem:[%s17011_s22 + $0x50] sm:$0xff] }
 0x196   : > { %23065 = vst [vmem:[#allocation50_spill] sm:$0xff] %v17415_v35  ;;  %23067 = vst [vmem:[#allocation52_spill] sm:$0xff] %v17420_v40  ;;  %v22635_v55 = vunpack.i.h.bf16 %v17415_v35  ;;  %v22637_v12 = vunpack.i.l.bf16 %v17415_v35  ;;  %v22636_v13 = vunpack.i.l.bf16 %v17420_v40  ;;  %v14034_v58 = vunpack.i.h.bf16 %v17420_v40 }
 0x197   : > { %23066 = vst [vmem:[#allocation51_spill] sm:$0xff] %v17417_v52  ;;  %14316 = vrot.lane.b32.xlu0 %v14315_v60, %s16602_s30  ;;  %2199 = vmatpush1.bf16.msra.mxu1 %v17417_v52 }
 0x198   : > { %14321 = vrot.lane.b32.xlu1 %v14320_v16, %s16602_s30  ;;  %v1687_v60 = vsel %vm1649_vm2, %v14023_v54, %v22637_v12  ;;  %v1693_v11 = vsel %vm1649_vm2, %v22635_v55, %v14019_v30  ;;  %v1694_v63 = vsel %vm1649_vm2, %v22636_v13, %v14023_v54  ;;  %v14335_v54 = vpack.i.bf16 %v17269_v3, %v17266_v2 }
 0x199   : > { %v17447_v16 = vpop.permute.xlu0 %14036  ;;  %v17449_v62 = vpack.c.bf16 %v1687_v60, %v1686_v34  ;;  %v17456_v53 = vpop.permute.xlu1 %14041  ;;  %v17460_v30 = vpack.c.bf16 %v1694_v63, %v1693_v11  ;;  %v17471_v60 = vld [vmem:[%s17011_s22 + $0x10] sm:$0xff]  ;;  %v16210_v11 = vld [vmem:[%s17011_s22 + $0x48] sm:$0xff] }
 0x19a   : > { %23068 = vst [vmem:[#allocation53_spill] sm:$0xff] %v17447_v16  ;;  %23070 = vst [vmem:[#allocation55_spill] sm:$0xff] %v17456_v53  ;;  %v22639_v21 = vunpack.i.h.bf16 %v17447_v16  ;;  %v14038_v22 = vunpack.i.l.bf16 %v17447_v16  ;;  %v22642_v55 = vunpack.i.l.bf16 %v17456_v53  ;;  %v22648_v34 = vunpack.i.h.bf16 %v17456_v53 }
 0x19b   : > { %23069 = vst [vmem:[#allocation54_spill] sm:$0xff] %v17449_v62  ;;  %23071 = vst [vmem:[#allocation56_spill] sm:$0xff] %v17460_v30  ;;  %14326 = vrot.lane.b32.xlu0 %v14325_v47, %s16602_s30  ;;  %2200 = vmatprep.subr.bf16.mxu1 %v17449_v62  ;;  %v14340_v63 = vpack.i.bf16 %v17471_v60, %v16210_v11  ;;  %v16211_v11 = vld [vmem:[%s17011_s22] sm:$0xff] }
 0x19c   : > { %14331 = vrot.lane.b32.xlu1 %v14330_v31, %s16601_s13  ;;  %2201 = vmatpush1.bf16.msra.mxu1 %v17460_v30  ;;  %v1688_v47 = vsel %vm1649_vm2, %v14034_v58, %v22639_v21  ;;  %v1689_v2 = vsel %vm1649_vm2, %v14038_v22, %v22642_v55  ;;  %v14345_v21 = vpack.i.bf16 %v16211_v11, %v17493_v61  ;;  %v17707_v30 = vld [vmem:[%s17011_s22 + $0xb0] sm:$0xff] }
 0x19d   : > { %v17479_v13 = vpop.permute.xlu0 %14046  ;;  %v17485_v3 = vpop.permute.xlu1 %14051  ;;  %v17488_v12 = vpack.c.bf16 %v1689_v2, %v1688_v47  ;;  %v1695_v47 = vsel %vm1649_vm2, %v22648_v34, %v14034_v58  ;;  %v14360_v58 = vpack.i.bf16 %v17299_v10, %v17296_v8 }
 0x19e   : > { %23072 = vst [vmem:[#allocation57_spill] sm:$0xff] %v17479_v13  ;;  %23073 = vst [vmem:[#allocation58_spill] sm:$0xff] %v17485_v3  ;;  %v22647_v31 = vunpack.i.l.bf16 %v17479_v13  ;;  %v22650_v38 = vunpack.i.h.bf16 %v17485_v3  ;;  %v14049_v32 = vunpack.i.h.bf16 %v17479_v13  ;;  %v14053_v55 = vunpack.i.l.bf16 %v17485_v3 }
 0x19f   : > { %23074 = vst [vmem:[#allocation59_spill] sm:$0xff] %v17488_v12  ;;  %14336 = vrot.lane.b32.xlu0 %v14335_v54, %s16601_s13  ;;  %2202 = vmatprep.subr.bf16.mxu1 %v17488_v12 }
 0x1a0   : > { %14341 = vrot.lane.b32.xlu1 %v14340_v63, %s16597_s20  ;;  %v1696_v54 = vsel %vm1649_vm2, %v22647_v31, %v14038_v22  ;;  %v14355_v22 = vpack.i.bf16 %v17274_v4, %v17277_v5 }
 0x1a1   : > { %v17508_v2 = vpop.permute.xlu0 %14056  ;;  %v17510_v11 = vpack.c.bf16 %v1696_v54, %v1695_v47  ;;  %v17513_v25 = vpop.permute.xlu1 %14061  ;;  %v1690_v47 = vsel %vm1649_vm2, %v14049_v32, %v22650_v38 }
 0x1a2   : > { %23075 = vst [vmem:[#allocation60_spill] sm:$0xff] %v17508_v2  ;;  %23077 = vst [vmem:[#allocation62_spill] sm:$0xff] %v17513_v25  ;;  %v22645_v63 = vunpack.i.h.bf16 %v17508_v2  ;;  %v22649_v28 = vunpack.i.l.bf16 %v17508_v2  ;;  %v22646_v51 = vunpack.i.l.bf16 %v17513_v25 }
 0x1a3   : > { %23076 = vst [vmem:[#allocation61_spill] sm:$0xff] %v17510_v11  ;;  %14346 = vrot.lane.b32.xlu0 %v14345_v21, %s16597_s20  ;;  %2203 = vmatpush1.bf16.msra.mxu1 %v17510_v11 }
 0x1a4   : > { %14351 = vrot.lane.b32.xlu1 %v14350_v39, %s16597_s20  ;;  %v1691_v4 = vsel %vm1649_vm2, %v14053_v55, %v22649_v28  ;;  %v1697_v23 = vsel %vm1649_vm2, %v22645_v63, %v14049_v32  ;;  %v1698_v5 = vsel %vm1649_vm2, %v22646_v51, %v14053_v55  ;;  %v17557_v63 = vld [vmem:[%s17011_s22 + $0x90] sm:$0xff] }
 0x1a5   : > { %v14067_v26 = vpop.permute.xlu0 %14066  ;;  %v17540_v39 = vpack.c.bf16 %v1691_v4, %v1690_v47  ;;  %v17546_v8 = vpop.permute.xlu1 %14071  ;;  %v17548_v54 = vpack.c.bf16 %v1698_v5, %v1697_v23  ;;  %v16213_v4 = vld [vmem:[%s17011_s22 + $0xc8] sm:$0xff]  ;;  %v16215_v23 = vld [vmem:[%s17011_s22 + $0x80] sm:$0xff] }
 0x1a6   : > { %23079 = vst [vmem:[#allocation64_spill] sm:$0xff] %v17546_v8  ;;  %v14069_v10 = vunpack.i.h.bf16 %v14067_v26  ;;  %v14068_v21 = vunpack.i.l.bf16 %v14067_v26  ;;  %v22652_v32 = vunpack.i.h.bf16 %v17546_v8  ;;  %v22651_v47 = vunpack.i.l.bf16 %v17546_v8  ;;  %v17564_v26 = vld [vmem:[%s17011_s22 + $0xd0] sm:$0xff]  ;;  %v17892_v8 = vld [vmem:[%s17011_s22 + $0xa0] sm:$0xff] }
 0x1a7   : > { %23078 = vst [vmem:[#allocation63_spill] sm:$0xff] %v17540_v39  ;;  %23080 = vst [vmem:[#allocation65_spill] sm:$0xff] %v17548_v54  ;;  %14356 = vrot.lane.b32.xlu0 %v14355_v22, %s16601_s13  ;;  %2204 = vmatprep.subr.bf16.mxu1 %v17540_v39  ;;  %v14365_v55 = vpack.i.bf16 %v17557_v63, %v16213_v4  ;;  %v14370_v5 = vpack.i.bf16 %v16215_v23, %v17564_v26 }
 0x1a8   : > { %14361 = vrot.lane.b32.xlu1 %v14360_v58, %s16601_s13  ;;  %2205 = vmatpush1.bf16.msra.mxu1 %v17548_v54  ;;  %v1854_v22 = vsel %vm1818_vm3, %v14068_v21, %v22651_v47  ;;  %v1855_v4 = vsel %vm1818_vm3, %v14069_v10, %v22652_v32  ;;  %v17577_v58 = vld [vmem:[#allocation4 + $0x4] ss:$16 sps:$4 sm:$0xff]  }
 0x1a9   : > { %v17567_v51 = vpop.permute.xlu0 %14076  ;;  %v17580_v31 = vpop.permute.xlu1 %14081  ;;  %v17584_v28 = vpack.c.bf16 %v1855_v4, %v1854_v22  ;;  %2177 = vmatprep.mubr.bf16.mxu0 %v17577_v58 }
 0x1aa   : > { %23081 = vst [vmem:[#allocation66_spill] sm:$0xff] %v17567_v51  ;;  %v22657_v23 = vunpack.i.h.bf16 %v17567_v51  ;;  %v22658_v34 = vunpack.i.l.bf16 %v17567_v51  ;;  %v22661_v38 = vunpack.i.h.bf16 %v17580_v31  ;;  %v14083_v47 = vunpack.i.l.bf16 %v17580_v31 }
 0x1ab   : > { %23082 = vst [vmem:[#allocation67_spill] sm:$0xff] %v17584_v28  ;;  %14366 = vrot.lane.b32.xlu0 %v14365_v55, %s16597_s20  ;;  %2206 = vmatprep.subr.bf16.mxu1 %v17584_v28 }
 0x1ac   : > { %14371 = vrot.lane.b32.xlu1 %v14370_v5, %s16597_s20  ;;  %v1861_v32 = vsel %vm1818_vm3, %v22658_v34, %v14068_v21  ;;  %v1862_v22 = vsel %vm1818_vm3, %v22657_v23, %v14069_v10  ;;  %v1009_v55 = vsel %vm973_vm4, %v14083_v47, %v22661_v38  ;;  %v23086_v23 = vpack.i.bf16 %v17132_v43, %v17079_v27  ;;  %v17641_v34 = vld [vmem:[%s17011_s22 + $0x30] sm:$0xff] }
 0x1ad   : > { %v14087_v4 = vpop.permute.xlu0 %14086  ;;  %v17604_v54 = vpack.c.bf16 %v1862_v22, %v1861_v32  ;;  %v17606_v5 = vpop.permute.xlu1 %14091  ;;  %v17609_v11 = vpack.c.bf16 %v1009_v55, %v17400_v20 }
 0x1ae   : > { %23084 = vst [vmem:[#allocation69_spill] sm:$0xff] %v17606_v5  ;;  %v14089_v28 = vunpack.i.h.bf16 %v14087_v4  ;;  %v14088_v39 = vunpack.i.l.bf16 %v14087_v4  ;;  %v22660_v21 = vunpack.i.h.bf16 %v17606_v5  ;;  %v22659_v10 = vunpack.i.l.bf16 %v17606_v5 }
 0x1af   : > { %23083 = vst [vmem:[#allocation68_spill] sm:$0xff] %v17604_v54  ;;  %23085 = vst [vmem:[#allocation70_spill] sm:$0xff] %v17609_v11  ;;  %14376 = vrot.lane.b32.xlu0 %v23086_v23, %s16597_s20  ;;  %2207 = vmatpush1.bf16.msra.mxu1 %v17604_v54  ;;  %v17700_v54 = vld [vmem:[%s17011_s22 + $0xa8] sm:$0xff] }
 0x1b0   : > { %14381 = vrot.lane.b32.xlu1 %v17318_v18, %s16601_s13  ;;  %2151 = vmatprep.subr.bf16.mxu0 %v17609_v11  ;;  %v1856_v32 = vsel %vm1818_vm3, %v14088_v39, %v22659_v10  ;;  %v1857_v27 = vsel %vm1818_vm3, %v14089_v28, %v22660_v21  ;;  %v17644_v10 = vld [vmem:[%s17011_s22 + $0x68] sm:$0xff] }
 0x1b1   : > { %v17621_v20 = vpop.permute.xlu0 %14096  ;;  %v17631_v43 = vpop.permute.xlu1 %14101  ;;  %v17634_v22 = vpack.c.bf16 %v1857_v27, %v1856_v32 }
 0x1b2   : > { %23087 = vst [vmem:[#allocation71_spill] sm:$0xff] %v17621_v20  ;;  %23088 = vst [vmem:[#allocation72_spill] sm:$0xff] %v17631_v43  ;;  %v22663_v23 = vunpack.i.l.bf16 %v17621_v20  ;;  %v22664_v4 = vunpack.i.h.bf16 %v17631_v43  ;;  %v22665_v55 = vunpack.i.l.bf16 %v17631_v43  ;;  %v14099_v38 = vunpack.i.h.bf16 %v17621_v20  ;;  %v17774_v43 = vld [vmem:[%s17011_s22 + $0xf0] sm:$0xff]  ;;  %v17870_v20 = vld [vmem:[%s17011_s22 + $0x1a8] sm:$0xff] }
 0x1b3   : > { %23089 = vst [vmem:[#allocation73_spill] sm:$0xff] %v17634_v22  ;;  %14386 = vrot.lane.b32.xlu0 %v17229_v59, %s16602_s30  ;;  %2208 = vmatprep.subr.bf16.mxu1 %v17634_v22 }
 0x1b4   : > { %14391 = vrot.lane.b32.xlu1 %v17253_v0, %s16602_s30  ;;  %v1016_v32 = vsel %vm973_vm4, %v22663_v23, %v14083_v47  ;;  %v1863_v59 = vsel %vm1818_vm3, %v22665_v55, %v14088_v39  ;;  %v1864_v0 = vsel %vm1818_vm3, %v22664_v4, %v14089_v28  ;;  %v17682_v28 = vpack.i.bf16 %v17644_v10, %v17641_v34 }
 0x1b5   : > { %v17653_v27 = vpop.permute.xlu0 %14106  ;;  %v17656_v21 = vpack.c.bf16 %v1016_v32, %v17428_v33  ;;  %v17667_v22 = vpop.permute.xlu1 %14111  ;;  %v17671_v32 = vpack.c.bf16 %v1864_v0, %v1863_v59 }
 0x1b6   : > { %23091 = vst [vmem:[#allocation75_spill] sm:$0xff] %v17667_v22  ;;  %v22669_v47 = vunpack.i.h.bf16 %v17653_v27  ;;  %v14108_v33 = vunpack.i.l.bf16 %v17653_v27  ;;  %v22671_v23 = vunpack.i.l.bf16 %v17667_v22 }
 0x1b7   : > { %23090 = vst [vmem:[#allocation74_spill] sm:$0xff] %v17656_v21  ;;  %23092 = vst [vmem:[#allocation76_spill] sm:$0xff] %v17671_v32  ;;  %14396 = vrot.lane.b32.xlu0 %v17259_v1, %s16602_s30  ;;  %2152 = vmatpush1.bf16.msra.mxu0 %v17656_v21 }
 0x1b8   : > { %14401 = vrot.lane.b32.xlu1 %v17285_v6, %s16602_s30  ;;  %2209 = vmatpush1.bf16.msra.mxu1 %v17671_v32  ;;  %v1010_v39 = vsel %vm973_vm4, %v14099_v38, %v22669_v47  ;;  %v1011_v1 = vsel %vm973_vm4, %v14108_v33, %v22671_v23  ;;  %v17697_v32 = vld [vmem:[%s17011_s22 + $0x70] sm:$0xff]  ;;  %v17710_v23 = vld [vmem:[%s17011_s22 + $0xe8] sm:$0xff] }
 0x1b9   : > { %v14117_v59 = vpop.permute.xlu0 %14116  ;;  %v17692_v0 = vpop.permute.xlu1 %14121  ;;  %v17694_v55 = vpack.c.bf16 %v1011_v1, %v1010_v39 }
 0x1ba   : > { %23093 = vst [vmem:[#allocation77_spill] sm:$0xff] %v17692_v0  ;;  %v14119_v6 = vunpack.i.h.bf16 %v14117_v59  ;;  %v14118_v4 = vunpack.i.l.bf16 %v14117_v59  ;;  %v22677_v12 = vunpack.i.h.bf16 %v17692_v0  ;;  %v22676_v47 = vunpack.i.l.bf16 %v17692_v0  ;;  %v16221_v0 = vld [vmem:[%s17011_s22 + $0x18] sm:$0xff] }
 0x1bb   : > { %23094 = vst [vmem:[#allocation78_spill] sm:$0xff] %v17694_v55  ;;  %14406 = vrot.lane.b32.xlu0 %v17291_v7, %s16602_s30  ;;  %2153 = vmatprep.subr.bf16.mxu0 %v17694_v55 }
 0x1bc   : > { %14411 = vrot.lane.b32.xlu1 %v17682_v28, %s16600_s6  ;;  %v1858_v59 = vsel %vm1818_vm3, %v14118_v4, %v22676_v47  ;;  %v1859_v7 = vsel %vm1818_vm3, %v14119_v6, %v22677_v12  ;;  %v17737_v47 = vpack.i.bf16 %v17697_v32, %v17700_v54 }
 0x1bd   : > { %v17716_v39 = vpop.permute.xlu0 %14126  ;;  %v17726_v1 = vpop.permute.xlu1 %14131  ;;  %v17729_v52 = vpack.c.bf16 %v1859_v7, %v1858_v59  ;;  %v17744_v59 = vpack.i.bf16 %v17710_v23, %v17707_v30  ;;  %v23098_v7 = vunpack.i.h.bf16 %v17667_v22 }
 0x1be   : > { %23095 = vst [vmem:[#allocation79_spill] sm:$0xff] %v17716_v39  ;;  %23096 = vst [vmem:[#allocation80_spill] sm:$0xff] %v17726_v1  ;;  %v22680_v62 = vunpack.i.l.bf16 %v17716_v39  ;;  %v22683_v48 = vunpack.i.l.bf16 %v17726_v1  ;;  %v23100_v37 = vunpack.i.h.bf16 %v17726_v1  ;;  %v23104_v13 = vunpack.i.h.bf16 %v17716_v39 }
 0x1bf   : > { %23097 = vst [vmem:[#allocation81_spill] sm:$0xff] %v17729_v52  ;;  %14416 = vrot.lane.b32.xlu0 %v17311_v14, %s16602_s30  ;;  %2210 = vmatprep.subr.bf16.mxu1 %v17729_v52  ;;  %v1017_v14 = vsel %vm973_vm4, %v23098_v7, %v14099_v38  ;;  %v23113_v3 = vunpack.i.h.bf16 %v17716_v39 }
 0x1c0   : > { %14421 = vrot.lane.b32.xlu1 %v17318_v18, %s16602_s30  ;;  %v1018_v12 = vsel %vm973_vm4, %v22680_v62, %v14108_v33  ;;  %v1865_v52 = vsel %vm1818_vm3, %v22683_v48, %v14118_v4  ;;  %v1866_v38 = vsel %vm1818_vm3, %v23100_v37, %v14119_v6  ;;  %v17777_v4 = vld [vmem:[%s17011_s22 + $0x128] sm:$0xff]  ;;  %v17784_v37 = vld [vmem:[%s17011_s22 + $0x20] sm:$0xff]  ;;  %v17787_v6 = vld [vmem:[%s17011_s22 + $0x58] sm:$0xff] }
 0x1c1   : > { %v17754_v57 = vpop.permute.xlu0 %14136  ;;  %v17756_v18 = vpack.c.bf16 %v1018_v12, %v1017_v14  ;;  %v17767_v33 = vpop.permute.xlu1 %14141  ;;  %v17771_v62 = vpack.c.bf16 %v1866_v38, %v1865_v52  ;;  %v17791_v7 = vpack.i.bf16 %v17784_v37, %v17787_v6  ;;  %v17794_v52 = vld [vmem:[%s17011_s22 + $0x130] sm:$0xff]  ;;  %v17797_v38 = vld [vmem:[%s17011_s22 + $0x168] sm:$0xff]  ;;  %v17803_v48 = vld [vmem:[%s17011_s22 + $0x60] sm:$0xff]  ;;  %v17874_v5 = vpack.c.bf16 %v17787_v6, %v16221_v0 }
 0x1c2   : > { %23101 = vst [vmem:[#allocation83_spill] sm:$0xff] %v17767_v33  ;;  %v14138_v14 = vunpack.i.l.bf16 %v17754_v57  ;;  %v17806_v12 = vld [vmem:[%s17011_s22 + $0x98] sm:$0xff]  ;;  %v23103_v51 = vunpack.i.h.bf16 %v17754_v57  ;;  %v23114_v53 = vunpack.i.h.bf16 %v17767_v33 }
 0x1c3   : > { %23099 = vst [vmem:[#allocation82_spill] sm:$0xff] %v17756_v18  ;;  %23102 = vst [vmem:[#allocation84_spill] sm:$0xff] %v17771_v62  ;;  %14426 = vrot.lane.b32.xlu0 %v17737_v47, %s16600_s6  ;;  %2154 = vmatpush1.bf16.msra.mxu0 %v17756_v18  ;;  %v17810_v1 = vpack.i.bf16 %v17806_v12, %v17803_v48  ;;  %v23106_v18 = vunpack.i.l.bf16 %v17767_v33 }
 0x1c4   : > { %14431 = vrot.lane.b32.xlu1 %v17744_v59, %s16600_s6  ;;  %2211 = vmatpush1.bf16.msra.mxu1 %v17771_v62  ;;  %v1012_v40 = vsel %vm973_vm4, %v23104_v13, %v23103_v51  ;;  %v17835_v51 = vpack.i.bf16 %v17774_v43, %v17777_v4  ;;  %23111 = vst [vmem:[#allocation90_spill] sm:$0xff] %v17874_v5 }
 0x1c5   : > { %v17818_v56 = vpop.permute.xlu0 %14146  ;;  %v1013_v62 = vsel %vm973_vm4, %v14138_v14, %v23106_v18  ;;  %v17824_v17 = vpop.permute.xlu1 %14151  ;;  %v17849_v18 = vld [vmem:[#allocation4 + $0x28] sm:$0xff]  ;;  %v1019_v16 = vsel %vm973_vm4, %v23114_v53, %v23113_v3 }
 0x1c6   : > { %23105 = vst [vmem:[#allocation85_spill] sm:$0xff] %v17818_v56  ;;  %23107 = vst [vmem:[#allocation86_spill] sm:$0xff] %v17824_v17  ;;  %v14149_v55 = vunpack.i.h.bf16 %v17818_v56  ;;  %v22704_v21 = vunpack.i.l.bf16 %v17818_v56  ;;  %v17828_v11 = vpack.c.bf16 %v1013_v62, %v1012_v40  ;;  %v22712_v50 = vunpack.i.l.bf16 %v17824_v17  ;;  %v17895_v17 = vld [vmem:[%s17011_s22 + $0xd8] sm:$0xff] }
 0x1c7   : > { %14436 = vrot.lane.b32.xlu0 %v17791_v7, %s16597_s20  ;;  %v17843_v40 = vpack.i.bf16 %v17797_v38, %v17794_v52  ;;  %v17899_v0 = vpack.i.bf16 %v17892_v8, %v17895_v17  ;;  %v17928_v39 = vcombine.high %v17849_v18, %v17849_v18 }
 0x1c8   : > { %23108 = vst [vmem:[#allocation87_spill] sm:$0xff] %v17828_v11  ;;  %14441 = vrot.lane.b32.xlu1 %v17810_v1, %s16597_s20  ;;  %2155 = vmatprep.subr.bf16.mxu0 %v17828_v11  ;;  %v1867_v62 = vsel %vm1818_vm3, %v22704_v21, %v14149_v55  ;;  %v1860_v11 = vsel %vm1818_vm3, %v14149_v55, %v22712_v50  ;;  %v810_v21 = vld [vmem:[%s17011_s22 + $0x38] sm:$0xff] }
 0x1c9   : > { %v17851_v13 = vpop.permute.xlu0 %14156  ;;  %v2067_v49 = vpack.c.bf16 %v1867_v62, %v1867_v62  ;;  %v17857_v46 = vpop.permute.xlu1 %14161  ;;  %v17860_v45 = vpack.c.bf16 %v1860_v11, %v1860_v11  ;;  %v15054_v55 = vld [vmem:[#allocation4 + $0x8] ss:$16 sps:$4 sm:$0xff]   ;;  %v17882_v11 = vld [vmem:[%s17011_s22 + $0xe0] sm:$0xff]  ;;  %23119 = vst [vmem:[#allocation95_spill] sm:$0xff] %v17928_v39 }
 0x1ca   : > { %23109 = vst [vmem:[#allocation88_spill] sm:$0xff] %v17851_v13  ;;  %v17885_v50 = vld [vmem:[%s17011_s22 + $0x118] sm:$0xff]  ;;  %v23115_v35 = vunpack.i.l.bf16 %v17851_v13  ;;  %v14163_v53 = vunpack.i.l.bf16 %v17857_v46 }
 0x1cb   : > { %23110 = vst [vmem:[#allocation89_spill] sm:$0xff] %v17860_v45  ;;  %14446 = vrot.lane.b32.xlu0 %v17835_v51, %s16600_s6  ;;  %v17879_v62 = vsel %vm2120_vm5, %v2067_v49, 0  ;;  %v17889_v56 = vpack.i.bf16 %v17885_v50, %v17882_v11  ;;  %v14159_v49 = vunpack.i.h.bf16 %v17851_v13  ;;  %12337 = vmatprep.subr.msk.bf16.mxu1 %vm2120_vm5, %v17860_v45  ;;  %v17924_v45 = vpack.c.bf16 %v17493_v61, %v17471_v60 }
 0x1cc   : > { %23112 = vst [vmem:[#allocation91_spill] sm:$0xff] %v17879_v62  ;;  %14451 = vrot.lane.b32.xlu1 %v17843_v40, %s16600_s6  ;;  %v1020_v2 = vsel %vm973_vm4, %v23115_v35, %v14138_v14  ;;  %2213 = vmatpush1.bf16.msra.mxu1 %v17879_v62  ;;  %v14470_v60 = vpack.i.bf16 %v810_v21, %v17864_v42  ;;  %v23123_v35 = vunpack.i.h.bf16 %v17857_v46 }
 0x1cd   : > { %v17918_v9 = vpop.permute.xlu0 %14166  ;;  %v17920_v36 = vpack.c.bf16 %v1020_v2, %v1019_v16  ;;  %23118 = vst [vmem:[#allocation94_spill] sm:$0xff] %v17924_v45  ;;  %v17931_v3 = vpop.permute.xlu1 %14171  ;;  %2247 = vmatprep.subr.bf16.mxu1 %v17874_v5  ;;  %v17938_v16 = vpack.c.bf16 %v17895_v17, %v17806_v12  ;;  %v17947_v2 = vpack.i.bf16 %v17867_v41, %v17870_v20 }
 0x1ce   : > { %23116 = vst [vmem:[#allocation92_spill] sm:$0xff] %v17918_v9  ;;  %23120 = vst [vmem:[#allocation96_spill] sm:$0xff] %v17931_v3  ;;  %v1014_v14 = vsel %vm973_vm4, %v14159_v49, %v23123_v35  ;;  %v23124_v61 = vunpack.i.l.bf16 %v17918_v9  ;;  %v23125_v21 = vunpack.i.h.bf16 %v17918_v9  ;;  %v23127_v29 = vunpack.i.l.bf16 %v17931_v3 }
 0x1cf   : > { %23117 = vst [vmem:[#allocation93_spill] sm:$0xff] %v17920_v36  ;;  %23121 = vst [vmem:[#allocation97_spill] sm:$0xff] %v17938_v16  ;;  %14456 = vrot.lane.b32.xlu0 %v17899_v0, %s16597_s20  ;;  %2156 = vmatpush1.bf16.msra.mxu0 %v17920_v36 }
 0x1d0   : > { %23122 = vst [vmem:[#allocation98_spill] sm:$0xff] %v17947_v2  ;;  %14461 = vrot.lane.b32.xlu1 %v17889_v56, %s16597_s20  ;;  %v1015_v62 = vsel %vm973_vm4, %v14163_v53, %v23124_v61  ;;  %v1021_v5 = vsel %vm973_vm4, %v23125_v21, %v14159_v49  ;;  %2229 = vmatmul.mubr.bf16.vlgmr.msra.gmra.mrb[0].mxu1 %v15054_v55  ;;  %v18004_v21 = vld [vmem:[%s17011_s22 + $0x160] sm:$0xff] }
 0x1d1   : > { %v14177_v36 = vpop.permute.xlu0 %14176  ;;  %v17964_v13 = vpack.c.bf16 %v1015_v62, %v1014_v14  ;;  %v1022_v35 = vsel %vm973_vm4, %v23127_v29, %v14163_v53  ;;  %2248 = vmatpush1.bf16.msra.mxu1 %v17924_v45  ;;  %v17973_v61 = vpack.c.bf16 %v17564_v26, %v17557_v63  ;;  %12339 = vmatprep.mubr.msk.bf16.mxu1 %vm2113_vm0, %v17928_v39  ;;  %v17977_v55 = vpop.permute.xlu1 %14181  ;;  %v17983_v29 = vld [vmem:[%s17011_s22 + $0x158] sm:$0xff] }
 0x1d2   : > { %v14179_v62 = vunpack.i.h.bf16 %v14177_v36  ;;  %v14178_v49 = vunpack.i.l.bf16 %v14177_v36  ;;  %v17979_v14 = vpack.c.bf16 %v1022_v35, %v1021_v5  ;;  %2249 = vmatprep.subr.bf16.mxu1 %v17938_v16  ;;  %v17987_v53 = vpack.c.bf16 %v17983_v29, %v17885_v50  ;;  %v17995_v36 = vld [vmem:[%s17011_s22 + $0x120] sm:$0xff]  ;;  %v18007_v35 = vld [vmem:[%s17011_s22 + $0x198] sm:$0xff] }
 0x1d3   : > { %23126 = vst [vmem:[#allocation99_spill] sm:$0xff] %v17964_v13  ;;  %23128 = vst [vmem:[#allocation100_spill] sm:$0xff] %v17973_v61  ;;  %14466 = vrot.lane.b32.xlu0 %v17947_v2, %s16600_s6  ;;  %2157 = vmatprep.subr.bf16.mxu0 %v17964_v13  ;;  %v17999_v5 = vpack.i.bf16 %v17995_v36, %v17983_v29  ;;  %v18011_v63 = vpack.i.bf16 %v18007_v35, %v18004_v21  ;;  %v23132_v16 = vunpack.i.l.bf16 %v17977_v55 }
 0x1d4   : > { %23129 = vst [vmem:[#allocation101_spill] sm:$0xff] %v17979_v14  ;;  %23130 = vst [vmem:[#allocation102_spill] sm:$0xff] %v17987_v53  ;;  %14471 = vrot.lane.b32.xlu1 %v14470_v60, %s16600_s6  ;;  %2158 = vmatpush1.bf16.msra.mxu0 %v17979_v14  ;;  %v23133_v13 = vunpack.i.h.bf16 %v17977_v55  ;;  %v16230_v14 = vld [vmem:[%s17011_s22 + $0x110] sm:$0xff] }
 0x1d5   : > { %v18013_v26 = vpop.permute.xlu0 %14186  ;;  %v1178_v45 = vsel %vm1142_vm6, %v14178_v49, %v23132_v16  ;;  %2250 = vmatpush1.bf16.msra.mxu1 %v17973_v61  ;;  %v18026_v39 = vpack.c.bf16 %v17397_v19, %v16230_v14  ;;  %v14192_v25 = vpop.permute.xlu1 %14191  ;;  %v18035_v16 = vcombine.low %v17849_v18, %v17849_v18  ;;  %v14485_v19 = vpack.i.bf16 %v17641_v34, %v17644_v10 }
 0x1d6   : > { %23131 = vst [vmem:[#allocation103_spill] sm:$0xff] %v18013_v26  ;;  %v1179_v60 = vsel %vm1142_vm6, %v14179_v62, %v23133_v13  ;;  %v22748_v24 = vunpack.i.h.bf16 %v18013_v26  ;;  %v22747_v44 = vunpack.i.l.bf16 %v18013_v26  ;;  %2251 = vmatprep.subr.bf16.mxu1 %v17987_v53  ;;  %v14174_v34 = vunpack.i.h.bf16 %v17931_v3  ;;  %v18688_v26 = vld [vmem:[%s17011_s22 + $0xf8] sm:$0xff]  ;;  %v2079_v3 = vld [vmem:[#allocation4 + $0x20] sm:$0xff] }
 0x1d7   : > { %23134 = vst [vmem:[#allocation104_spill] sm:$0xff] %v18026_v39  ;;  %v18030_v2 = vpack.c.bf16 %v1179_v60, %v1178_v45  ;;  %23136 = vst [vmem:[#allocation106_spill] sm:$0xff] %v18035_v16  ;;  %14476 = vrot.lane.b32.xlu0 %v17999_v5, %s16597_s20  ;;  %v14490_v45 = vpack.i.bf16 %v17700_v54, %v17697_v32  ;;  %v14194_v54 = vunpack.i.h.bf16 %v14192_v25  ;;  %v14193_v32 = vunpack.i.l.bf16 %v14192_v25 }
 0x1d8   : > { %14481 = vrot.lane.b32.xlu1 %v18011_v63, %s16597_s20  ;;  %v1185_v13 = vsel %vm1142_vm6, %v22747_v44, %v14178_v49  ;;  %v1186_v18 = vsel %vm1142_vm6, %v22748_v24, %v14179_v62  ;;  %2239 = vmatmul.mubr.bf16.gmra.mrb[4].mxu1 %v18035_v16  ;;  %v14500_v49 = vpack.i.bf16 %v17787_v6, %v17784_v37  ;;  %v23143_v61 = vunpack.i.h.bf16 %v17580_v31 }
 0x1d9   : > { %23135 = vst [vmem:[#allocation105_spill] sm:$0xff] %v18030_v2  ;;  %2159 = vmatprep.subr.bf16.mxu0 %v18030_v2  ;;  %v18055_v10 = vpop.permute.xlu0 %14196  ;;  %v18057_v14 = vpack.c.bf16 %v1186_v18, %v1185_v13  ;;  %2252 = vmatpush1.bf16.msra.mxu1 %v18026_v39  ;;  %v18060_v60 = vpop.permute.xlu1 %14201  ;;  %v18070_v13 = vld [vmem:[%s17011_s22 + $0x28] sm:$0xff]  ;;  %v18073_v18 = vld [vmem:[%s17011_s22 + $0x1a0] sm:$0xff]  ;;  %v14510_v31 = vpack.i.bf16 %v17777_v4, %v17774_v43 }
 0x1da   : > { %23138 = vst [vmem:[#allocation108_spill] sm:$0xff] %v18060_v60  ;;  %v22751_v44 = vunpack.i.l.bf16 %v18055_v10  ;;  %v18077_v25 = vpack.i.bf16 %v18070_v13, %v18073_v18  ;;  %v23139_v62 = vunpack.i.h.bf16 %v18055_v10  ;;  %2279 = vmatprep.mubr.bf16.mxu1 %v17577_v58  ;;  %v23142_v6 = vunpack.i.h.bf16 %v18060_v60 }
 0x1db   : > { %23137 = vst [vmem:[#allocation107_spill] sm:$0xff] %v18057_v14  ;;  %14486 = vrot.lane.b32.xlu0 %v14485_v19, %s16601_s13  ;;  %2160 = vmatpush1.bf16.msra.mxu0 %v18057_v14  ;;  %v1002_v58 = vsel %vm973_vm4, %v23143_v61, %v14174_v34 }
 0x1dc   : > { %14491 = vrot.lane.b32.xlu1 %v14490_v45, %s16601_s13  ;;  %v1180_v19 = vsel %vm1142_vm6, %v14193_v32, %v22751_v44  ;;  %v1181_v24 = vsel %vm1142_vm6, %v14194_v54, %v23139_v62  ;;  %v23141_v45 = vunpack.i.l.bf16 %v18060_v60  ;;  %v1188_v44 = vsel %vm1142_vm6, %v23142_v6, %v14194_v54  ;;  %v18691_v60 = vld [vmem:[%s17011_s22 + $0x138] sm:$0xff] }
 0x1dd   : > { %v18091_v39 = vpop.permute.xlu0 %14206  ;;  %v18093_v53 = vpack.c.bf16 %v1181_v24, %v1180_v19  ;;  %v14212_v62 = vpop.permute.xlu1 %14211 }
 0x1de   : > { %v1187_v37 = vsel %vm1142_vm6, %v23141_v45, %v14193_v32  ;;  %v22753_v24 = vunpack.i.l.bf16 %v18091_v39  ;;  %v14505_v32 = vpack.i.bf16 %v17707_v30, %v17710_v23  ;;  %v16233_v45 = vld [vmem:[%s17011_s22 + $0x190] sm:$0xff]  ;;  %v14214_v30 = vunpack.i.h.bf16 %v14212_v62 }
 0x1df   : > { %23140 = vst [vmem:[#allocation109_spill] sm:$0xff] %v18093_v53  ;;  %v18108_v19 = vpack.c.bf16 %v1188_v44, %v1187_v37  ;;  %14496 = vrot.lane.b32.xlu0 %v18077_v25, %s16597_s20  ;;  %2161 = vmatprep.subr.bf16.mxu0 %v18093_v53  ;;  %v18129_v37 = vpack.c.bf16 %v1002_v58, %v16233_v45  ;;  %v14213_v23 = vunpack.i.l.bf16 %v14212_v62 }
 0x1e0   : > { %14501 = vrot.lane.b32.xlu1 %v14500_v49, %s16598_s3  ;;  %v995_v44 = vsel %vm973_vm4, %v14174_v34, %v22753_v24  ;;  %v14515_v58 = vpack.i.bf16 %v17803_v48, %v17806_v12  ;;  %v14520_v62 = vpack.i.bf16 %v17895_v17, %v17892_v8 }
 0x1e1   : > { %23144 = vst [vmem:[#allocation110_spill] sm:$0xff] %v18108_v19  ;;  %2162 = vmatpush1.bf16.msra.mxu0 %v18108_v19  ;;  %v18123_v61 = vpop.permute.xlu0 %14216  ;;  %v18126_v54 = vpack.c.bf16 %v995_v44, %v18007_v35  ;;  %23146 = vst [vmem:[#allocation112_spill] sm:$0xff] %v18129_v37  ;;  %v18131_v49 = vpop.permute.xlu1 %14221  ;;  %v14209_v44 = vunpack.i.h.bf16 %v18091_v39 }
 0x1e2   : > { %23147 = vst [vmem:[#allocation113_spill] sm:$0xff] %v18131_v49  ;;  %v22754_v6 = vunpack.i.h.bf16 %v18123_v61  ;;  %v22755_v43 = vunpack.i.l.bf16 %v18123_v61  ;;  %v22756_v4 = vunpack.i.h.bf16 %v18131_v49  ;;  %v22757_v34 = vunpack.i.l.bf16 %v18131_v49 }
 0x1e3   : > { %23145 = vst [vmem:[#allocation111_spill] sm:$0xff] %v18126_v54  ;;  %14506 = vrot.lane.b32.xlu0 %v14505_v32, %s16601_s13  ;;  %2253 = vmatprep.subr.bf16.mxu1 %v18126_v54 }
 0x1e4   : > { %14511 = vrot.lane.b32.xlu1 %v14510_v31, %s16601_s13  ;;  %2254 = vmatpush1.bf16.msra.mxu1 %v18129_v37  ;;  %v1182_v45 = vsel %vm1142_vm6, %v14213_v23, %v22755_v43  ;;  %v1183_v32 = vsel %vm1142_vm6, %v14214_v30, %v22754_v6  ;;  %v1189_v31 = vsel %vm1142_vm6, %v22757_v34, %v14213_v23 }
 0x1e5   : > { %v18154_v48 = vpop.permute.xlu0 %14226  ;;  %v18156_v12 = vpack.c.bf16 %v1183_v32, %v1182_v45  ;;  %v1190_v17 = vsel %vm1142_vm6, %v22756_v4, %v14214_v30  ;;  %v18166_v8 = vpop.permute.xlu1 %14231  ;;  %v14530_v23 = vpack.i.bf16 %v17870_v20, %v17867_v41  ;;  %v14525_v30 = vpack.i.bf16 %v17794_v52, %v17797_v38 }
 0x1e6   : > { %v22759_v24 = vunpack.i.h.bf16 %v18154_v48  ;;  %v14228_v6 = vunpack.i.l.bf16 %v18154_v48  ;;  %v18170_v43 = vpack.c.bf16 %v1190_v17, %v1189_v31  ;;  %v22758_v45 = vunpack.i.l.bf16 %v18166_v8 }
 0x1e7   : > { %23148 = vst [vmem:[#allocation114_spill] sm:$0xff] %v18156_v12  ;;  %14516 = vrot.lane.b32.xlu0 %v14515_v58, %s16598_s3  ;;  %2163 = vmatprep.subr.bf16.mxu0 %v18156_v12  ;;  %v23150_v32 = vunpack.i.h.bf16 %v17653_v27  ;;  %v23151_v31 = vunpack.i.l.bf16 %v17667_v22  ;;  %v18554_v12 = vld [vmem:[%s17011_s22 + $0x128] sm:$0xff] }
 0x1e8   : > { %23149 = vst [vmem:[#allocation115_spill] sm:$0xff] %v18170_v43  ;;  %14521 = vrot.lane.b32.xlu1 %v14520_v62, %s16598_s3  ;;  %2164 = vmatpush1.bf16.msra.mxu0 %v18170_v43  ;;  %v996_v41 = vsel %vm973_vm4, %v14209_v44, %v22759_v24  ;;  %v997_v27 = vsel %vm973_vm4, %v14228_v6, %v22758_v45 }
 0x1e9   : > { %v1003_v4 = vsel %vm973_vm4, %v23150_v32, %v14209_v44  ;;  %v1004_v17 = vsel %vm973_vm4, %v23151_v31, %v14228_v6  ;;  %v18193_v20 = vpop.permute.xlu0 %14236  ;;  %v18201_v38 = vpop.permute.xlu1 %14241  ;;  %v18205_v32 = vpack.c.bf16 %v997_v27, %v996_v41  ;;  %v14535_v6 = vpack.i.bf16 %v17882_v11, %v17885_v50 }
 0x1ea   : > { %v18199_v52 = vpack.c.bf16 %v1004_v17, %v1003_v4  ;;  %v22763_v58 = vunpack.i.h.bf16 %v18193_v20  ;;  %v14238_v62 = vunpack.i.l.bf16 %v18193_v20  ;;  %v22762_v44 = vunpack.i.h.bf16 %v18201_v38 }
 0x1eb   : > { %23153 = vst [vmem:[#allocation117_spill] sm:$0xff] %v18205_v32  ;;  %v14243_v31 = vunpack.i.l.bf16 %v18201_v38  ;;  %14526 = vrot.lane.b32.xlu0 %v14525_v30, %s16601_s13  ;;  %2255 = vmatprep.subr.bf16.mxu1 %v18205_v32  ;;  %v14540_v4 = vpack.i.bf16 %v17983_v29, %v17995_v36  ;;  %v14234_v36 = vunpack.i.h.bf16 %v18166_v8 }
 0x1ec   : > { %23152 = vst [vmem:[#allocation116_spill] sm:$0xff] %v18199_v52  ;;  %14531 = vrot.lane.b32.xlu1 %v14530_v23, %s16601_s13  ;;  %v1184_v17 = vsel %vm1142_vm6, %v14238_v62, %v22763_v58  ;;  %2256 = vmatpush1.bf16.msra.mxu1 %v18199_v52 }
 0x1ed   : > { %v18222_v41 = vpop.permute.xlu0 %14246  ;;  %v1347_v50 = vsel %vm1311_vm7, %v14243_v31, %v22762_v44  ;;  %v18228_v11 = vpop.permute.xlu1 %14251 }
 0x1ee   : > { %23154 = vst [vmem:[#allocation118_spill] sm:$0xff] %v18222_v41  ;;  %23155 = vst [vmem:[#allocation119_spill] sm:$0xff] %v18228_v11  ;;  %v22760_v23 = vunpack.i.l.bf16 %v18222_v41  ;;  %v18231_v30 = vpack.c.bf16 %v1347_v50, %v1184_v17  ;;  %v22761_v29 = vunpack.i.l.bf16 %v18228_v11 }
 0x1ef   : > { %14536 = vrot.lane.b32.xlu0 %v14535_v6, %s16598_s3 }
 0x1f0   : > { %23156 = vst [vmem:[#allocation120_spill] sm:$0xff] %v18231_v30  ;;  %14541 = vrot.lane.b32.xlu1 %v14540_v4, %s16598_s3  ;;  %2165 = vmatprep.subr.bf16.mxu0 %v18231_v30  ;;  %v1191_v27 = vsel %vm1142_vm6, %v22760_v23, %v14238_v62  ;;  %v1354_v17 = vsel %vm1311_vm7, %v22761_v29, %v14243_v31  ;;  %v23158_v23 = vunpack.i.h.bf16 %v17754_v57  ;;  %v23159_v29 = vunpack.i.l.bf16 %v17767_v33 }
 0x1f1   : > { %v18242_v34 = vpop.permute.xlu0 %14256  ;;  %v18248_v50 = vpop.permute.xlu1 %14261  ;;  %v18252_v45 = vpack.c.bf16 %v1354_v17, %v1191_v27  ;;  %v14550_v62 = vpack.i.bf16 %v18004_v21, %v18007_v35 }
 0x1f2   : > { %v22764_v6 = vunpack.i.h.bf16 %v18242_v34  ;;  %v14258_v4 = vunpack.i.l.bf16 %v18242_v34  ;;  %v22765_v24 = vunpack.i.l.bf16 %v18248_v50  ;;  %v1005_v31 = vsel %vm973_vm4, %v23158_v23, %v14234_v36 }
 0x1f3   : > { %23157 = vst [vmem:[#allocation121_spill] sm:$0xff] %v18252_v45  ;;  %1126 = vrot.lane.b32.xlu0 %v17864_v42, %s16601_s13  ;;  %2166 = vmatpush1.bf16.msra.mxu0 %v18252_v45 }
 0x1f4   : > { %v1006_v44 = vsel %vm973_vm4, %v23159_v29, %v14258_v4  ;;  %14546 = vrot.lane.b32.xlu1 %v17682_v28, %s16602_s30  ;;  %v998_v21 = vsel %vm973_vm4, %v14234_v36, %v22764_v6  ;;  %v999_v57 = vsel %vm973_vm4, %v14258_v4, %v22765_v24  ;;  %v14254_v29 = vunpack.i.h.bf16 %v18228_v11 }
 0x1f5   : > { %v18274_v35 = vpop.permute.xlu0 %14266  ;;  %v18280_v23 = vpack.c.bf16 %v1006_v44, %v1005_v31  ;;  %v18283_v27 = vpop.permute.xlu1 %14271  ;;  %v18287_v58 = vpack.c.bf16 %v999_v57, %v998_v21 }
 0x1f6   : > { %v22766_v28 = vunpack.i.h.bf16 %v18274_v35  ;;  %v14268_v17 = vunpack.i.l.bf16 %v18274_v35  ;;  %v22767_v36 = vunpack.i.l.bf16 %v18283_v27  ;;  %v22770_v6 = vunpack.i.h.bf16 %v18283_v27 }
 0x1f7   : > { %23160 = vst [vmem:[#allocation122_spill] sm:$0xff] %v18280_v23  ;;  %23161 = vst [vmem:[#allocation123_spill] sm:$0xff] %v18287_v58  ;;  %14551 = vrot.lane.b32.xlu0 %v14550_v62, %s16598_s3  ;;  %2257 = vmatprep.subr.bf16.mxu1 %v18287_v58 }
 0x1f8   : > { %14556 = vrot.lane.b32.xlu1 %v18077_v25, %s16598_s3  ;;  %v1348_v44 = vsel %vm1311_vm7, %v14254_v29, %v22766_v28  ;;  %2258 = vmatpush1.bf16.msra.mxu1 %v18280_v23  ;;  %v1349_v62 = vsel %vm1311_vm7, %v14268_v17, %v22767_v36  ;;  %v1355_v28 = vsel %vm1311_vm7, %v22770_v6, %v14254_v29  ;;  %v23165_v23 = vunpack.i.l.bf16 %v17918_v9 }
 0x1f9   : > { %v18300_v4 = vpop.permute.xlu0 %14276  ;;  %v18306_v31 = vpop.permute.xlu1 %14281  ;;  %v18309_v21 = vpack.c.bf16 %v1349_v62, %v1348_v44  ;;  %v14264_v62 = vunpack.i.h.bf16 %v18248_v50  ;;  %v23218_v9 = vunpack.i.h.bf16 %v18193_v20 }
 0x1fa   : > { %23162 = vst [vmem:[#allocation124_spill] sm:$0xff] %v18300_v4  ;;  %v22769_v25 = vunpack.i.l.bf16 %v18300_v4  ;;  %v14283_v57 = vunpack.i.l.bf16 %v18306_v31  ;;  %v14279_v6 = vunpack.i.h.bf16 %v18300_v4 }
 0x1fb   : > { %23163 = vst [vmem:[#allocation125_spill] sm:$0xff] %v18309_v21  ;;  %14561 = vrot.lane.b32.xlu0 %v17737_v47, %s16602_s30  ;;  %2167 = vmatprep.subr.bf16.mxu0 %v18309_v21 }
 0x1fc   : > { %14566 = vrot.lane.b32.xlu1 %v17744_v59, %s16602_s30  ;;  %v1356_v44 = vsel %vm1311_vm7, %v22769_v25, %v14268_v17  ;;  %v1008_v29 = vsel %vm973_vm4, %v23165_v23, %v14283_v57  ;;  %v23167_v25 = vunpack.i.h.bf16 %v17857_v46 }
 0x1fd   : > { %v18327_v47 = vpop.permute.xlu0 %14286  ;;  %v18329_v36 = vpack.c.bf16 %v1356_v44, %v1355_v28  ;;  %v18331_v24 = vpop.permute.xlu1 %14291  ;;  %v23166_v28 = vunpack.i.h.bf16 %v18306_v31 }
 0x1fe   : > { %v22774_v59 = vunpack.i.l.bf16 %v18327_v47  ;;  %v14293_v58 = vunpack.i.l.bf16 %v18331_v24 }
 0x1ff   : > { %23164 = vst [vmem:[#allocation126_spill] sm:$0xff] %v18329_v36  ;;  %14571 = vrot.lane.b32.xlu0 %v17791_v7, %s16599_s4  ;;  %2168 = vmatpush1.bf16.msra.mxu0 %v18329_v36  ;;  %v1000_v44 = vsel %vm973_vm4, %v14264_v62, %v23166_v28  ;;  %v1007_v7 = vsel %vm973_vm4, %v23167_v25, %v14264_v62  ;;  %v14249_v25 = vunpack.i.h.bf16 %v18222_v41  ;;  %v23171_v62 = vunpack.i.h.bf16 %v18331_v24 }
 0x200   : > { %14576 = vrot.lane.b32.xlu1 %v17810_v1, %s16599_s4  ;;  %v1001_v23 = vsel %vm973_vm4, %v14283_v57, %v22774_v59  ;;  %v18366_v57 = vpack.c.bf16 %v1008_v29, %v1007_v7  ;;  %v23189_v36 = vunpack.i.h.bf16 %v18055_v10 }
 0x201   : > { %v18357_v17 = vpop.permute.xlu0 %14296  ;;  %v18359_v1 = vpack.c.bf16 %v1001_v23, %v1000_v44  ;;  %v1350_v29 = vsel %vm1311_vm7, %v14279_v6, %v23171_v62 }
 0x202   : > { %v18362_v52 = vpop.permute.xlu1 %14301  ;;  %v22779_v28 = vunpack.i.h.bf16 %v18357_v17  ;;  %v22775_v32 = vunpack.i.l.bf16 %v18357_v17  ;;  %23170 = vst [vmem:[#allocation129_spill] sm:$0xff] %v18366_v57 }
 0x203   : > { %23168 = vst [vmem:[#allocation127_spill] sm:$0xff] %v18359_v1  ;;  %23169 = vst [vmem:[#allocation128_spill] sm:$0xff] %v18362_v52  ;;  %v22778_v46 = vunpack.i.l.bf16 %v18362_v52  ;;  %14581 = vrot.lane.b32.xlu0 %v17835_v51, %s16602_s30  ;;  %2259 = vmatprep.subr.bf16.mxu1 %v18359_v1 }
 0x204   : > { %14586 = vrot.lane.b32.xlu1 %v17843_v40, %s16602_s30  ;;  %2260 = vmatpush1.bf16.msra.mxu1 %v18366_v57  ;;  %v1351_v44 = vsel %vm1311_vm7, %v14293_v58, %v22775_v32  ;;  %v1357_v51 = vsel %vm1311_vm7, %v22779_v28, %v14279_v6  ;;  %v23176_v6 = vunpack.i.l.bf16 %v17977_v55 }
 0x205   : > { %v18388_v23 = vpop.permute.xlu0 %14306  ;;  %v18390_v40 = vpack.c.bf16 %v1351_v44, %v1350_v29  ;;  %v1358_v7 = vsel %vm1311_vm7, %v22778_v46, %v14293_v58  ;;  %v23177_v29 = vunpack.i.h.bf16 %v17977_v55 }
 0x206   : > { %23172 = vst [vmem:[#allocation130_spill] sm:$0xff] %v18388_v23  ;;  %v18396_v62 = vpop.permute.xlu1 %14311  ;;  %v22780_v59 = vunpack.i.h.bf16 %v18388_v23  ;;  %v14308_v32 = vunpack.i.l.bf16 %v18388_v23  ;;  %v18400_v57 = vpack.c.bf16 %v1358_v7, %v1357_v51  ;;  %v1171_v58 = vsel %vm1142_vm6, %v23176_v6, %v14249_v25 }
 0x207   : > { %23173 = vst [vmem:[#allocation131_spill] sm:$0xff] %v18390_v40  ;;  %23174 = vst [vmem:[#allocation132_spill] sm:$0xff] %v18396_v62  ;;  %v22781_v1 = vunpack.i.l.bf16 %v18396_v62  ;;  %14591 = vrot.lane.b32.xlu0 %v17899_v0, %s16599_s4  ;;  %2169 = vmatprep.subr.bf16.mxu0 %v18390_v40  ;;  %v14304_v6 = vunpack.i.h.bf16 %v18362_v52  ;;  %v14314_v37 = vunpack.i.h.bf16 %v18396_v62  ;;  %v18761_v23 = vcombine.high %v2079_v3, %v2079_v3 }
 0x208   : > { %23175 = vst [vmem:[#allocation133_spill] sm:$0xff] %v18400_v57  ;;  %v1172_v44 = vsel %vm1142_vm6, %v23177_v29, %v14308_v32  ;;  %14596 = vrot.lane.b32.xlu1 %v17889_v56, %s16599_s4  ;;  %2170 = vmatpush1.bf16.msra.mxu0 %v18400_v57  ;;  %v1164_v0 = vsel %vm1142_vm6, %v14249_v25, %v22780_v59  ;;  %v23181_v59 = vld [vmem:[#allocation98_spill] sm:$0xff] }
 0x209   : > { %v18421_v51 = vpop.permute.xlu0 %14316  ;;  %v1165_v55 = vsel %vm1142_vm6, %v14308_v32, %v22781_v1  ;;  %v18427_v7 = vpack.c.bf16 %v1172_v44, %v1171_v58  ;;  %v18466_v32 = vld [vmem:[%s17011_s22 + $0x68] sm:$0xff] }
 0x20a   : > { %v18430_v29 = vpop.permute.xlu1 %14321  ;;  %v22782_v56 = vunpack.i.h.bf16 %v18421_v51  ;;  %v14318_v46 = vunpack.i.l.bf16 %v18421_v51  ;;  %v18434_v28 = vpack.c.bf16 %v1165_v55, %v1164_v0  ;;  %v18671_v49 = vpack.c.bf16 %v18466_v32, %v18070_v13  ;;  %v18685_v13 = vld [vmem:[#allocation4] ss:$16 sps:$4 sm:$0xff]  }
 0x20b   : > { %23178 = vst [vmem:[#allocation134_spill] sm:$0xff] %v18427_v7  ;;  %23179 = vst [vmem:[#allocation135_spill] sm:$0xff] %v18430_v29  ;;  %v22784_v25 = vunpack.i.l.bf16 %v18430_v29  ;;  %14601 = vrot.lane.b32.xlu0 %v23181_v59, %s16602_s30 }
 0x20c   : > { %23180 = vst [vmem:[#allocation136_spill] sm:$0xff] %v18434_v28  ;;  %1295 = vrot.lane.b32.xlu1 %v17864_v42, %s16602_s30  ;;  %2261 = vmatprep.subr.bf16.mxu1 %v18434_v28  ;;  %v1352_v58 = vsel %vm1311_vm7, %v14304_v6, %v22782_v56  ;;  %v18463_v56 = vld [vmem:[%s17011_s22 + $0x30] sm:$0xff]  ;;  %v23185_v42 = vunpack.i.h.bf16 %v18430_v29  ;;  %23213 = vst [vmem:[#allocation156_spill] sm:$0xff] %v18671_v49 }
 0x20d   : > { %2262 = vmatpush1.bf16.msra.mxu1 %v18427_v7  ;;  %v18448_v44 = vpop.permute.xlu0 %14326  ;;  %v1353_v59 = vsel %vm1311_vm7, %v14318_v46, %v22784_v25  ;;  %v14615_v7 = vpack.i.bf16 %v18463_v56, %v18466_v32 }
 0x20e   : > { %23182 = vst [vmem:[#allocation98_spill] sm:$0xff] %v18448_v44  ;;  %v18454_v0 = vpop.permute.xlu1 %14331  ;;  %v18457_v55 = vpack.c.bf16 %v1353_v59, %v1352_v58  ;;  %v18475_v58 = vld [vmem:[%s17011_s22 + $0x70] sm:$0xff]  ;;  %v18478_v59 = vld [vmem:[%s17011_s22 + $0xa8] sm:$0xff]  ;;  %v1359_v28 = vsel %vm1311_vm7, %v23185_v42, %v14304_v6  ;;  %v23186_v25 = vunpack.i.l.bf16 %v18448_v44 }
 0x20f   : > { %23183 = vst [vmem:[#allocation137_spill] sm:$0xff] %v18454_v0  ;;  %v14333_v1 = vunpack.i.l.bf16 %v18454_v0  ;;  %14606 = vrot.lane.b32.xlu0 %v17999_v5, %s16599_s4  ;;  %v14620_v5 = vpack.i.bf16 %v18478_v59, %v18475_v58 }
 0x210   : > { %23184 = vst [vmem:[#allocation138_spill] sm:$0xff] %v18457_v55  ;;  %14611 = vrot.lane.b32.xlu1 %v18011_v63, %s16599_s4  ;;  %2171 = vmatprep.subr.bf16.mxu0 %v18457_v55  ;;  %v1360_v63 = vsel %vm1311_vm7, %v23186_v25, %v14318_v46  ;;  %v18507_v25 = vld [vmem:[%s17011_s22 + $0xb0] sm:$0xff] }
 0x211   : > { %v18491_v54 = vpop.permute.xlu0 %14336  ;;  %v18493_v55 = vpack.c.bf16 %v1360_v63, %v1359_v28  ;;  %v1174_v6 = vsel %vm1142_vm6, %v23189_v36, %v14333_v1  ;;  %v18510_v28 = vld [vmem:[%s17011_s22 + $0xe8] sm:$0xff]  ;;  %v23190_v63 = vunpack.i.h.bf16 %v18454_v0  ;;  %v16250_v0 = vld [vmem:[%s17011_s22 + $0xe0] sm:$0xff] }
 0x212   : > { %23187 = vst [vmem:[#allocation139_spill] sm:$0xff] %v18491_v54  ;;  %v18495_v57 = vpop.permute.xlu1 %14341  ;;  %v22798_v40 = vunpack.i.l.bf16 %v18491_v54  ;;  %v14625_v42 = vpack.i.bf16 %v18507_v25, %v18510_v28 }
 0x213   : > { %23188 = vst [vmem:[#allocation140_spill] sm:$0xff] %v18493_v55  ;;  %14616 = vrot.lane.b32.xlu0 %v14615_v7, %s16597_s20  ;;  %2172 = vmatpush1.bf16.msra.mxu0 %v18493_v55  ;;  %v1166_v36 = vsel %vm1142_vm6, %v14314_v37, %v23190_v63  ;;  %v23192_v55 = vunpack.i.l.bf16 %v18055_v10  ;;  %v14343_v63 = vunpack.i.l.bf16 %v18495_v57 }
 0x214   : > { %14621 = vrot.lane.b32.xlu1 %v14620_v5, %s16597_s20  ;;  %v1167_v7 = vsel %vm1142_vm6, %v14333_v1, %v22798_v40  ;;  %v23191_v5 = vld [vmem:[#allocation45_spill] sm:$0xff] }
 0x215   : > { %v14014_v46 = vunpack.i.h.bf16 %v23191_v5  ;;  %v1173_v21 = vsel %vm1142_vm6, %v23192_v55, %v14314_v37  ;;  %v18527_v45 = vpop.permute.xlu0 %14346  ;;  %v18529_v30 = vpack.c.bf16 %v1167_v7, %v1166_v36  ;;  %v18543_v37 = vld [vmem:[%s17011_s22 + $0x130] sm:$0xff]  ;;  %v18546_v55 = vld [vmem:[%s17011_s22 + $0x168] sm:$0xff] }
 0x216   : > { %23193 = vst [vmem:[#allocation141_spill] sm:$0xff] %v18527_v45  ;;  %v18532_v43 = vpop.permute.xlu1 %14351  ;;  %v22805_v1 = vunpack.i.l.bf16 %v18527_v45  ;;  %v18536_v40 = vpack.c.bf16 %v1174_v6, %v1173_v21  ;;  %v14635_v36 = vpack.i.bf16 %v18543_v37, %v18546_v55  ;;  %v18551_v7 = vld [vmem:[%s17011_s22 + $0xf0] sm:$0xff]  ;;  %v14339_v6 = vunpack.i.h.bf16 %v18491_v54  ;;  %v16249_v54 = vld [vmem:[%s17011_s22 + $0xa0] sm:$0xff] }
 0x217   : > { %23194 = vst [vmem:[#allocation142_spill] sm:$0xff] %v18529_v30  ;;  %23195 = vst [vmem:[#allocation143_spill] sm:$0xff] %v18532_v43  ;;  %1774 = vrot.lane.b32.xlu0 %v18073_v18, %s16599_s4  ;;  %2263 = vmatprep.subr.bf16.mxu1 %v18529_v30  ;;  %v14630_v21 = vpack.i.bf16 %v18554_v12, %v18551_v7  ;;  %v23197_v18 = vunpack.i.h.bf16 %v18495_v57  ;;  %v23198_v19 = vunpack.i.h.bf16 %v18527_v45 }
 0x218   : > { %23196 = vst [vmem:[#allocation144_spill] sm:$0xff] %v18536_v40  ;;  %14626 = vrot.lane.b32.xlu1 %v14625_v42, %s16597_s20  ;;  %2264 = vmatpush1.bf16.msra.mxu1 %v18536_v40  ;;  %v1517_v30 = vsel %vm1480_vm1, %v14343_v63, %v22805_v1  ;;  %v23201_v40 = vunpack.i.l.bf16 %v18532_v43  ;;  %v18759_v62 = vpack.c.bf16 %v16250_v0, %v16249_v54 }
 0x219   : > { %v1516_v10 = vsel %vm1480_vm1, %v14014_v46, %v23197_v18  ;;  %v1523_v53 = vsel %vm1480_vm1, %v23198_v19, %v14014_v46  ;;  %v18573_v14 = vpop.permute.xlu0 %14356  ;;  %v18591_v19 = vld [vmem:[%s17011_s22 + $0x170] sm:$0xff]  ;;  %v23204_v46 = vunpack.i.l.bf16 %v18123_v61 }
 0x21a   : > { %23199 = vst [vmem:[#allocation145_spill] sm:$0xff] %v18573_v14  ;;  %v18575_v42 = vpack.c.bf16 %v1517_v30, %v1516_v10  ;;  %v1524_v2 = vsel %vm1480_vm1, %v23201_v40, %v14343_v63  ;;  %v18581_v18 = vpop.permute.xlu1 %14361  ;;  %v22811_v5 = vunpack.i.h.bf16 %v18573_v14  ;;  %v14358_v1 = vunpack.i.l.bf16 %v18573_v14  ;;  %v18594_v30 = vld [vmem:[%s17011_s22 + $0x1a8] sm:$0xff]  ;;  %23224 = vst [vmem:[#allocation162_spill] sm:$0xff] %v18759_v62 }
 0x21b   : > { %23202 = vst [vmem:[#allocation147_spill] sm:$0xff] %v18581_v18  ;;  %v18585_v52 = vpack.c.bf16 %v1524_v2, %v1523_v53  ;;  %v22813_v4 = vunpack.i.l.bf16 %v18581_v18  ;;  %14631 = vrot.lane.b32.xlu0 %v14630_v21, %s16597_s20  ;;  %v14640_v40 = vpack.i.bf16 %v18594_v30, %v18591_v19  ;;  %v1175_v2 = vsel %vm1142_vm6, %v23204_v46, %v14339_v6 }
 0x21c   : > { %23200 = vst [vmem:[#allocation146_spill] sm:$0xff] %v18575_v42  ;;  %2173 = vmatprep.subr.bf16.mxu0 %v18575_v42  ;;  %v23205_v53 = vunpack.i.h.bf16 %v18123_v61  ;;  %14636 = vrot.lane.b32.xlu1 %v14635_v36, %s16597_s20  ;;  %v1168_v10 = vsel %vm1142_vm6, %v14339_v6, %v22811_v5  ;;  %v18628_v6 = vld [vmem:[%s17011_s22 + $0x78] sm:$0xff]  ;;  %v18741_v14 = vpack.i.bf16 %v18691_v60, %v18688_v26 }
 0x21d   : > { %23203 = vst [vmem:[#allocation148_spill] sm:$0xff] %v18585_v52  ;;  %2174 = vmatpush1.bf16.msra.mxu0 %v18585_v52  ;;  %v18612_v21 = vpop.permute.xlu0 %14366  ;;  %v1169_v61 = vsel %vm1142_vm6, %v14358_v1, %v22813_v4  ;;  %v18631_v5 = vld [vmem:[%s17011_s22 + $0xb8] sm:$0xff] }
 0x21e   : > { %v1176_v63 = vsel %vm1142_vm6, %v23205_v53, %v14358_v1  ;;  %v14354_v53 = vunpack.i.h.bf16 %v18532_v43  ;;  %v18621_v36 = vpop.permute.xlu1 %14371  ;;  %v22816_v52 = vunpack.i.h.bf16 %v18612_v21  ;;  %v14368_v42 = vunpack.i.l.bf16 %v18612_v21 }
 0x21f   : > { %v18618_v46 = vpack.c.bf16 %v1176_v63, %v1175_v2  ;;  %23207 = vst [vmem:[#allocation150_spill] sm:$0xff] %v18621_v36  ;;  %v18625_v11 = vpack.c.bf16 %v1169_v61, %v1168_v10  ;;  %v22820_v41 = vunpack.i.l.bf16 %v18621_v36  ;;  %14641 = vrot.lane.b32.xlu0 %v14640_v40, %s16597_s20  ;;  %v14645_v1 = vpack.i.bf16 %v18466_v32, %v18463_v56  ;;  %v18639_v63 = vld [vmem:[%s17011_s22 + $0x1b0] sm:$0xff] }
 0x220   : > { %1464 = vrot.lane.b32.xlu1 %v18639_v63, %s16597_s20  ;;  %v14650_v10 = vpack.i.bf16 %v18475_v58, %v18478_v59  ;;  %v1518_v40 = vsel %vm1480_vm1, %v14354_v53, %v22816_v52  ;;  %v18665_v52 = vpack.i.bf16 %v18631_v5, %v18628_v6 }
 0x221   : > { %23206 = vst [vmem:[#allocation149_spill] sm:$0xff] %v18618_v46  ;;  %23208 = vst [vmem:[#allocation151_spill] sm:$0xff] %v18625_v11  ;;  %2265 = vmatprep.subr.bf16.mxu1 %v18625_v11  ;;  %v18651_v61 = vpop.permute.xlu0 %14376  ;;  %v1519_v4 = vsel %vm1480_vm1, %v14368_v42, %v22820_v41  ;;  %v14364_v41 = vunpack.i.h.bf16 %v18581_v18 }
 0x222   : > { %2266 = vmatpush1.bf16.msra.mxu1 %v18618_v46  ;;  %23209 = vst [vmem:[#allocation152_spill] sm:$0xff] %v18651_v61  ;;  %v18657_v2 = vpop.permute.xlu1 %14381  ;;  %v22828_v11 = vunpack.i.l.bf16 %v18651_v61  ;;  %v18660_v43 = vpack.c.bf16 %v1519_v4, %v1518_v40  ;;  %23212 = vst [vmem:[#allocation155_spill] sm:$0xff] %v18665_v52  ;;  %v14655_v46 = vpack.i.bf16 %v18510_v28, %v18507_v25  ;;  %v23214_v4 = vunpack.i.h.bf16 %v18621_v36 }
 0x223   : > { %23210 = vst [vmem:[#allocation153_spill] sm:$0xff] %v18657_v2  ;;  %14646 = vrot.lane.b32.xlu0 %v14645_v1, %s16598_s3  ;;  %v1177_v16 = vsel %vm1142_vm6, %v23218_v9, %v14364_v41 }
 0x224   : > { %23211 = vst [vmem:[#allocation154_spill] sm:$0xff] %v18660_v43  ;;  %14651 = vrot.lane.b32.xlu1 %v14650_v10, %s16598_s3  ;;  %2175 = vmatprep.subr.bf16.mxu0 %v18660_v43  ;;  %v1525_v1 = vsel %vm1480_vm1, %v23214_v4, %v14354_v53  ;;  %v1526_v40 = vsel %vm1480_vm1, %v22828_v11, %v14368_v42  ;;  %v14329_v53 = vunpack.i.h.bf16 %v18448_v44  ;;  %v16248_v44 = vld [vmem:[%s17011_s22 + $0x60] sm:$0xff] }
 0x225   : > { %v18693_v10 = vpop.permute.xlu0 %14386  ;;  %v18695_v43 = vpack.c.bf16 %v1526_v40, %v1525_v1  ;;  %v14670_v42 = vpack.i.bf16 %v18546_v55, %v18543_v37  ;;  %v14665_v1 = vpack.i.bf16 %v18551_v7, %v18554_v12  ;;  %v16247_v40 = vld [vmem:[%s17011_s22 + $0x20] sm:$0xff] }
 0x226   : > { %23215 = vst [vmem:[#allocation157_spill] sm:$0xff] %v18693_v10  ;;  %v18698_v4 = vpop.permute.xlu1 %14391  ;;  %v14389_v33 = vunpack.i.h.bf16 %v18693_v10  ;;  %v18711_v22 = vpack.c.bf16 %v16248_v44, %v16247_v40  ;;  %v23220_v40 = vunpack.i.l.bf16 %v18693_v10 }
 0x227   : > { %23216 = vst [vmem:[#allocation158_spill] sm:$0xff] %v18695_v43  ;;  %v14393_v11 = vunpack.i.l.bf16 %v18698_v4  ;;  %14656 = vrot.lane.b32.xlu0 %v14655_v46, %s16598_s3  ;;  %2176 = vmatpush1.bf16.msra.mxu0 %v18695_v43  ;;  %v23219_v46 = vunpack.i.l.bf16 %v18657_v2  ;;  %v18735_v43 = vpack.c.bf16 %v18510_v28, %v18478_v59  ;;  %v23226_v2 = vunpack.i.h.bf16 %v18274_v35 }
 0x228   : > { %23217 = vst [vmem:[#allocation159_spill] sm:$0xff] %v18711_v22  ;;  %14661 = vrot.lane.b32.xlu1 %v18665_v52, %s16600_s6  ;;  %2349 = vmatprep.subr.bf16.mxu0 %v18671_v49  ;;  %v1333_v20 = vsel %vm1311_vm7, %v14329_v53, %v23220_v40  ;;  %v14680_v49 = vpack.i.bf16 %v18591_v19, %v18594_v30  ;;  %v23223_v40 = vunpack.i.h.bf16 %v18201_v38  ;;  %v23225_v52 = vunpack.i.l.bf16 %v18283_v27 }
 0x229   : > { %v1170_v44 = vsel %vm1142_vm6, %v14364_v41, %v23219_v46  ;;  %v18729_v9 = vpop.permute.xlu0 %14396  ;;  %23222 = vst [vmem:[#allocation161_spill] sm:$0xff] %v18735_v43  ;;  %v18744_v41 = vld [vmem:[%s17011_s22 + $0x178] sm:$0xff] }
 0x22a   : > { %v18731_v18 = vpack.c.bf16 %v1333_v20, %v1170_v44  ;;  %v18747_v46 = vld [vmem:[%s17011_s22 + $0x1b8] sm:$0xff]  ;;  %v1340_v44 = vsel %vm1311_vm7, %v23223_v40, %v14329_v53  ;;  %v18753_v20 = vpop.permute.xlu1 %14401  ;;  %2178 = vmatmul.mubr.bf16.vlgmr.msra.gmra.mrb[0].mxu0 %v18685_v13  ;;  %v1342_v38 = vsel %vm1311_vm7, %v23225_v52, %v14393_v11  ;;  %v1341_v53 = vsel %vm1311_vm7, %v23226_v2, %v14389_v33 }
 0x22b   : > { %v14399_v40 = vunpack.i.h.bf16 %v18729_v9  ;;  %14666 = vrot.lane.b32.xlu0 %v14665_v1, %s16598_s3  ;;  %v18774_v54 = vpack.c.bf16 %v1340_v44, %v1177_v16  ;;  %v14403_v10 = vunpack.i.l.bf16 %v18753_v20  ;;  %2350 = vmatpush1.bf16.msra.mxu0 %v18711_v22  ;;  %v23228_v52 = vunpack.i.h.bf16 %v18698_v4 }
 0x22c   : > { %23221 = vst [vmem:[#allocation160_spill] sm:$0xff] %v18731_v18  ;;  %2267 = vmatprep.subr.bf16.mxu1 %v18731_v18  ;;  %14671 = vrot.lane.b32.xlu1 %v14670_v42, %s16598_s3  ;;  %v23229_v2 = vunpack.i.l.bf16 %v18729_v9  ;;  %v18796_v42 = vpack.c.bf16 %v18546_v55, %v18554_v12 }
 0x22d   : > { %23227 = vst [vmem:[#allocation163_spill] sm:$0xff] %v18774_v54  ;;  %v1334_v35 = vsel %vm1311_vm7, %v14389_v33, %v23228_v52  ;;  %2268 = vmatpush1.bf16.msra.mxu1 %v18774_v54  ;;  %v18789_v1 = vpop.permute.xlu0 %14406  ;;  %2351 = vmatprep.subr.bf16.mxu0 %v18735_v43  ;;  %v18803_v52 = vpack.i.bf16 %v18747_v46, %v18744_v41  ;;  %v23233_v43 = vunpack.i.h.bf16 %v18331_v24  ;;  %v23236_v24 = vunpack.i.h.bf16 %v18753_v20 }
 0x22e   : > { %v1335_v16 = vsel %vm1311_vm7, %v14393_v11, %v23229_v2  ;;  %23231 = vst [vmem:[#allocation165_spill] sm:$0xff] %v18796_v42  ;;  %v18798_v0 = vpop.permute.xlu1 %14411  ;;  %v16251_v11 = vld [vmem:[%s17011_s22 + $0x120] sm:$0xff]  ;;  %2187 = vmatprep.mubr.bf16.mxu0 %v18761_v23  ;;  %v14409_v18 = vunpack.i.h.bf16 %v18789_v1  ;;  %v23237_v33 = vunpack.i.l.bf16 %v18789_v1 }
 0x22f   : > { %v18792_v44 = vpack.c.bf16 %v1335_v16, %v1334_v35  ;;  %v16252_v2 = vld [vmem:[%s17011_s22 + $0x160] sm:$0xff]  ;;  %v18810_v35 = vcombine.low %v2079_v3, %v2079_v3  ;;  %v14289_v16 = vunpack.i.h.bf16 %v18327_v47  ;;  %v1343_v54 = vsel %vm1311_vm7, %v23233_v43, %v14399_v40  ;;  %14676 = vrot.lane.b32.xlu0 %v18741_v14, %s16600_s6  ;;  %2352 = vmatpush1.bf16.msra.mxu0 %v18759_v62 }
 0x230   : > { %v18807_v22 = vpack.c.bf16 %v16252_v2, %v16251_v11  ;;  %v18821_v11 = vpack.c.bf16 %v1342_v38, %v1341_v53  ;;  %v23235_v2 = vunpack.i.l.bf16 %v18357_v17  ;;  %14681 = vrot.lane.b32.xlu1 %v14680_v49, %s16598_s3  ;;  %v1336_v43 = vsel %vm1311_vm7, %v14399_v40, %v23236_v24  ;;  %2353 = vmatprep.subr.bf16.mxu0 %v18796_v42 }
 0x231   : > { %23230 = vst [vmem:[#allocation164_spill] sm:$0xff] %v18792_v44  ;;  %2269 = vmatprep.subr.bf16.mxu1 %v18792_v44  ;;  %v1337_v38 = vsel %vm1311_vm7, %v14403_v10, %v23237_v33  ;;  %v18839_v53 = vpop.permute.xlu0 %14416 }
 0x232   : > { %23232 = vst [vmem:[#allocation166_spill] sm:$0xff] %v18807_v22  ;;  %23234 = vst [vmem:[#allocation167_spill] sm:$0xff] %v18821_v11  ;;  %v1344_v3 = vsel %vm1311_vm7, %v23235_v2, %v14403_v10  ;;  %2270 = vmatpush1.bf16.msra.mxu1 %v18821_v11  ;;  %v18842_v49 = vpack.c.bf16 %v1337_v38, %v1336_v43  ;;  %v23239_v2 = vunpack.i.l.bf16 %v18798_v0  ;;  %v18848_v40 = vpop.permute.xlu1 %14421  ;;  %v14418_v10 = vunpack.i.l.bf16 %v18839_v53 }
 0x233   : > { %v14695_v11 = vpack.i.bf16 %v18475_v58, %v18463_v56  ;;  %2188 = vmatmul.mubr.bf16.gmra.mrb[4].mxu0 %v18810_v35  ;;  %v23241_v43 = vunpack.i.l.bf16 %v18091_v39  ;;  %1633 = vrot.lane.b32.xlu0 %v18639_v63, %s16598_s3  ;;  %v18866_v24 = vpack.c.bf16 %v1344_v3, %v1343_v54  ;;  %v14414_v56 = vunpack.i.h.bf16 %v18798_v0 }
 0x234   : > { %23238 = vst [vmem:[#allocation168_spill] sm:$0xff] %v18842_v49  ;;  %v981_v62 = vsel %vm973_vm4, %v14289_v16, %v23239_v2  ;;  %v22857_v2 = vunpack.i.l.bf16 %v18848_v40  ;;  %2271 = vmatprep.subr.bf16.mxu1 %v18842_v49  ;;  %v23243_v58 = vunpack.i.h.bf16 %v18421_v51  ;;  %14686 = vrot.lane.b32.xlu1 %v18803_v52, %s16600_s6 }
 0x235   : > { %v18853_v33 = vpack.c.bf16 %v981_v62, %v18594_v30  ;;  %v988_v38 = vsel %vm973_vm4, %v23241_v43, %v14289_v16  ;;  %23242 = vst [vmem:[#allocation170_spill] sm:$0xff] %v18866_v24  ;;  %v16253_v62 = vld [vmem:[%s17011_s22 + $0x28] sm:$0xff]  ;;  %v23244_v16 = vunpack.i.l.bf16 %v18430_v29  ;;  %2354 = vmatpush1.bf16.msra.mxu0 %v18807_v22  ;;  %v18888_v51 = vpop.permute.xlu0 %14426 }
 0x236   : > { %v14690_v42 = vpack.i.bf16 %v18466_v32, %v16253_v62  ;;  %v1345_v39 = vsel %vm1311_vm7, %v23243_v58, %v14409_v18  ;;  %v23245_v32 = vunpack.i.h.bf16 %v18839_v53  ;;  %2272 = vmatpush1.bf16.msra.mxu1 %v18866_v24  ;;  %v1339_v3 = vsel %vm1311_vm7, %v14418_v10, %v22857_v2  ;;  %v18896_v58 = vpop.permute.xlu1 %14431  ;;  %v18902_v22 = vld [vmem:[#allocation4 + $0x4] ss:$16 sps:$4 sm:$0xff]  }
 0x237   : > { %23240 = vst [vmem:[#allocation169_spill] sm:$0xff] %v18853_v33  ;;  %v1346_v43 = vsel %vm1311_vm7, %v23244_v16, %v14418_v10  ;;  %2355 = vmatprep.subr.bf16.mxu0 %v18853_v33  ;;  %v22858_v16 = vunpack.i.h.bf16 %v18888_v51  ;;  %2381 = vmatprep.mubr.bf16.mxu0 %v18902_v22  ;;  %v16255_v24 = vld [vmem:[%s17011_s22 + $0x1a0] sm:$0xff]  ;;  %v23249_v2 = vunpack.i.h.bf16 %v18154_v48 }
 0x238   : > { %v1338_v54 = vsel %vm1311_vm7, %v14409_v18, %v23245_v32  ;;  %v18894_v62 = vpack.c.bf16 %v1346_v43, %v1345_v39  ;;  %v14428_v18 = vunpack.i.l.bf16 %v18888_v51  ;;  %14691 = vrot.lane.b32.xlu0 %v14690_v42, %s16599_s4  ;;  %v18908_v10 = vpack.c.bf16 %v988_v38, %v16255_v24  ;;  %v18913_v43 = vld [vmem:[%s17011_s22 + $0x38] sm:$0xff]  ;;  %14696 = vrot.lane.b32.xlu1 %v14695_v11, %s16599_s4 }
 0x239   : > { %v18900_v32 = vpack.c.bf16 %v1339_v3, %v1338_v54  ;;  %v14705_v39 = vpack.i.bf16 %v18510_v28, %v18478_v59  ;;  %v18917_v54 = vpack.i.bf16 %v18628_v6, %v18913_v43  ;;  %v14379_v3 = vunpack.i.h.bf16 %v18651_v61  ;;  %v18936_v48 = vpop.permute.xlu0 %14436 }
 0x23a   : > { %23246 = vst [vmem:[#allocation171_spill] sm:$0xff] %v18894_v62  ;;  %23248 = vst [vmem:[#allocation173_spill] sm:$0xff] %v18908_v10  ;;  %v989_v33 = vsel %vm973_vm4, %v23249_v2, %v14414_v56  ;;  %v23250_v42 = vunpack.i.l.bf16 %v18166_v8  ;;  %v982_v59 = vsel %vm973_vm4, %v14414_v56, %v22858_v16  ;;  %2356 = vmatpush1.bf16.msra.mxu0 %v18908_v10  ;;  %v23251_v8 = vunpack.i.l.bf16 %v18896_v58  ;;  %v18944_v11 = vpop.permute.xlu1 %14441 }
 0x23b   : > { %23247 = vst [vmem:[#allocation172_spill] sm:$0xff] %v18900_v32  ;;  %2273 = vmatprep.subr.bf16.mxu1 %v18900_v32  ;;  %v22859_v38 = vunpack.i.h.bf16 %v18936_v48  ;;  %v14438_v2 = vunpack.i.l.bf16 %v18936_v48  ;;  %v18955_v16 = vpack.i.bf16 %v18688_v26, %v18631_v5 }
 0x23c   : > { %v990_v24 = vsel %vm973_vm4, %v23250_v42, %v14428_v18  ;;  %2274 = vmatpush1.bf16.msra.mxu1 %v18894_v62  ;;  %v983_v28 = vsel %vm973_vm4, %v14428_v18, %v23251_v8  ;;  %v22860_v42 = vunpack.i.l.bf16 %v18944_v11  ;;  %14701 = vrot.lane.b32.xlu0 %v18917_v54, %s16601_s13  ;;  %v23254_v18 = vunpack.i.h.bf16 %v18495_v57 }
 0x23d   : > { %v18942_v6 = vpack.c.bf16 %v990_v24, %v989_v33  ;;  %v18948_v56 = vpack.c.bf16 %v983_v28, %v982_v59  ;;  %v14710_v33 = vpack.i.bf16 %v18551_v7, %v18507_v25  ;;  %v14434_v59 = vunpack.i.h.bf16 %v18896_v58  ;;  %14706 = vrot.lane.b32.xlu1 %v14705_v39, %s16599_s4  ;;  %v18975_v57 = vpop.permute.xlu0 %14446 }
 0x23e   : > { %v1509_v24 = vsel %vm1480_vm1, %v23254_v18, %v14379_v3  ;;  %v23255_v8 = vunpack.i.l.bf16 %v18527_v45  ;;  %v1502_v26 = vsel %vm1480_vm1, %v14379_v3, %v22859_v38  ;;  %v1503_v25 = vsel %vm1480_vm1, %v14438_v2, %v22860_v42  ;;  %v18983_v7 = vpop.permute.xlu1 %14451 }
 0x23f   : > { %23252 = vst [vmem:[#allocation174_spill] sm:$0xff] %v18942_v6  ;;  %23253 = vst [vmem:[#allocation175_spill] sm:$0xff] %v18948_v56  ;;  %2357 = vmatprep.subr.bf16.mxu0 %v18948_v56  ;;  %v22861_v39 = vunpack.i.h.bf16 %v18975_v57  ;;  %v14448_v18 = vunpack.i.l.bf16 %v18975_v57  ;;  %v22862_v3 = vunpack.i.l.bf16 %v18983_v7  ;;  %v14725_v38 = vpack.i.bf16 %v18591_v19, %v18543_v37  ;;  %v19200_v56 = vld [vmem:[#allocation4 + $0xc] ss:$16 sps:$4 sm:$0xff]  }
 0x240   : > { %v1510_v28 = vsel %vm1480_vm1, %v23255_v8, %v14438_v2  ;;  %2358 = vmatpush1.bf16.msra.mxu0 %v18942_v6  ;;  %v18987_v8 = vpack.c.bf16 %v1503_v25, %v1502_v26  ;;  %14711 = vrot.lane.b32.xlu0 %v14710_v33, %s16599_s4  ;;  %v14720_v2 = vpack.i.bf16 %v18546_v55, %v18554_v12  ;;  %v14444_v42 = vunpack.i.h.bf16 %v18944_v11 }
 0x241   : > { %v18981_v5 = vpack.c.bf16 %v1510_v28, %v1509_v24  ;;  %v23258_v24 = vunpack.i.h.bf16 %v18242_v34  ;;  %v23259_v26 = vunpack.i.l.bf16 %v18248_v50  ;;  %14716 = vrot.lane.b32.xlu1 %v18955_v16, %s16601_s13  ;;  %v984_v34 = vsel %vm973_vm4, %v14434_v59, %v22861_v39  ;;  %v19012_v12 = vpop.permute.xlu0 %14456 }
 0x242   : > { %23257 = vst [vmem:[#allocation177_spill] sm:$0xff] %v18987_v8  ;;  %2275 = vmatprep.subr.bf16.mxu1 %v18987_v8  ;;  %v985_v50 = vsel %vm973_vm4, %v14448_v18, %v22862_v3  ;;  %v19020_v55 = vpop.permute.xlu1 %14461  ;;  %v22863_v19 = vunpack.i.h.bf16 %v19012_v12  ;;  %v14458_v33 = vunpack.i.l.bf16 %v19012_v12  ;;  %v14454_v39 = vunpack.i.h.bf16 %v18983_v7 }
 0x243   : > { %23256 = vst [vmem:[#allocation176_spill] sm:$0xff] %v18981_v5  ;;  %v991_v28 = vsel %vm973_vm4, %v23258_v24, %v14434_v59  ;;  %v992_v25 = vsel %vm973_vm4, %v23259_v26, %v14448_v18  ;;  %2276 = vmatpush1.bf16.msra.mxu1 %v18981_v5  ;;  %v19024_v24 = vpack.c.bf16 %v985_v50, %v984_v34  ;;  %v22865_v59 = vunpack.i.l.bf16 %v19020_v55 }
 0x244   : > { %v19018_v37 = vpack.c.bf16 %v992_v25, %v991_v28  ;;  %14721 = vrot.lane.b32.xlu0 %v14720_v2, %s16599_s4  ;;  %v14735_v26 = vpack.i.bf16 %v18639_v63, %v18594_v30  ;;  %v19032_v18 = vpack.i.bf16 %v18744_v41, %v18691_v60  ;;  %v23262_v28 = vunpack.i.h.bf16 %v18612_v21 }
 0x245   : > { %23261 = vst [vmem:[#allocation179_spill] sm:$0xff] %v19024_v24  ;;  %v23263_v34 = vunpack.i.l.bf16 %v18621_v36  ;;  %14726 = vrot.lane.b32.xlu1 %v14725_v38, %s16599_s4  ;;  %2359 = vmatprep.subr.bf16.mxu0 %v19024_v24  ;;  %v1504_v60 = vsel %vm1480_vm1, %v14444_v42, %v22863_v19  ;;  %v19050_v30 = vpop.permute.xlu0 %14466  ;;  %v1505_v21 = vsel %vm1480_vm1, %v14458_v33, %v22865_v59  ;;  %v23283_v24 = vld [vmem:[#allocation62_spill] sm:$0xff]  ;;  %v23315_v36 = vld [vmem:[#allocation53_spill] sm:$0xff] }
 0x246   : > { %23260 = vst [vmem:[#allocation178_spill] sm:$0xff] %v19018_v37  ;;  %v1511_v25 = vsel %vm1480_vm1, %v23262_v28, %v14444_v42  ;;  %2360 = vmatpush1.bf16.msra.mxu0 %v19018_v37  ;;  %v19058_v41 = vpop.permute.xlu1 %14471  ;;  %v22864_v38 = vunpack.i.h.bf16 %v19050_v30  ;;  %v14468_v2 = vunpack.i.l.bf16 %v19050_v30  ;;  %v19062_v28 = vpack.c.bf16 %v1505_v21, %v1504_v60  ;;  %v23271_v37 = vld [vmem:[#allocation41_spill] sm:$0xff] }
 0x247   : > { %v1512_v50 = vsel %vm1480_vm1, %v23263_v34, %v14458_v33  ;;  %v22868_v42 = vunpack.i.l.bf16 %v19058_v41  ;;  %v23266_v34 = vunpack.i.h.bf16 %v18306_v31  ;;  %v23316_v45 = vunpack.i.h.bf16 %v23315_v36 }
 0x248   : > { %v19056_v63 = vpack.c.bf16 %v1512_v50, %v1511_v25  ;;  %23265 = vst [vmem:[#allocation181_spill] sm:$0xff] %v19062_v28  ;;  %14731 = vrot.lane.b32.xlu0 %v19032_v18, %s16601_s13  ;;  %v14464_v25 = vunpack.i.h.bf16 %v19020_v55  ;;  %v23267_v50 = vunpack.i.l.bf16 %v18327_v47  ;;  %2277 = vmatprep.subr.bf16.mxu1 %v19062_v28  ;;  %v986_v60 = vsel %vm973_vm4, %v14454_v39, %v22864_v38  ;;  %v23270_v38 = vld [vmem:[#allocation153_spill] sm:$0xff] }
 0x249   : > { %v993_v33 = vsel %vm973_vm4, %v23266_v34, %v14454_v39  ;;  %14736 = vrot.lane.b32.xlu1 %v14735_v26, %s16599_s4  ;;  %v19083_v31 = vpop.permute.xlu0 %14476  ;;  %v987_v47 = vsel %vm973_vm4, %v14468_v2, %v22868_v42  ;;  %v14384_v59 = vunpack.i.h.bf16 %v23270_v38  ;;  %v14064_v28 = vunpack.i.h.bf16 %v23283_v24 }
 0x24a   : > { %23264 = vst [vmem:[#allocation180_spill] sm:$0xff] %v19056_v63  ;;  %v994_v3 = vsel %vm973_vm4, %v23267_v50, %v14468_v2  ;;  %2278 = vmatpush1.bf16.msra.mxu1 %v19056_v63  ;;  %v19091_v34 = vpop.permute.xlu1 %14481  ;;  %v22870_v26 = vunpack.i.h.bf16 %v19083_v31  ;;  %v14478_v50 = vunpack.i.l.bf16 %v19083_v31  ;;  %v19095_v19 = vpack.c.bf16 %v987_v47, %v986_v60 }
 0x24b   : > { %v19089_v21 = vpack.c.bf16 %v994_v3, %v993_v33  ;;  %v22872_v39 = vunpack.i.l.bf16 %v19091_v34  ;;  %v23272_v63 = vunpack.i.l.bf16 %v23271_v37  ;;  %v23273_v2 = vunpack.i.h.bf16 %v23271_v37 }
 0x24c   : > { %23269 = vst [vmem:[#allocation183_spill] sm:$0xff] %v19095_v19  ;;  %1140 = vrot.lane.b32.xlu0 %v18747_v46, %s16601_s13  ;;  %2361 = vmatprep.subr.bf16.mxu0 %v19095_v19  ;;  %v1506_v60 = vsel %vm1480_vm1, %v14464_v25, %v22870_v26 }
 0x24d   : > { %23268 = vst [vmem:[#allocation182_spill] sm:$0xff] %v19089_v21  ;;  %v1513_v3 = vsel %vm1480_vm1, %v23272_v63, %v14464_v25  ;;  %v1514_v33 = vsel %vm1480_vm1, %v23273_v2, %v14478_v50  ;;  %1297 = vrot.lane.b32.xlu1 %v18913_v43, %s16602_s30  ;;  %2362 = vmatpush1.bf16.msra.mxu0 %v19089_v21  ;;  %v19117_v47 = vpop.permute.xlu0 %14486  ;;  %v23276_v21 = vld [vmem:[#allocation155_spill] sm:$0xff] }
 0x24e   : > { %v1507_v37 = vsel %vm1480_vm1, %v14478_v50, %v22872_v39  ;;  %2280 = vmatmul.mubr.bf16.vlgmr.msra.gmra.mrb[8].mxu1 %v18685_v13  ;;  %v19124_v63 = vpack.c.bf16 %v1514_v33, %v1513_v3  ;;  %v19126_v2 = vpop.permute.xlu1 %14491  ;;  %v14488_v19 = vunpack.i.l.bf16 %v19117_v47  ;;  %v23277_v50 = vld [vmem:[#allocation130_spill] sm:$0xff]  ;;  %v14484_v3 = vunpack.i.h.bf16 %v19091_v34  ;;  %v23279_v33 = vld [vmem:[#allocation132_spill] sm:$0xff] }
 0x24f   : > { %v19130_v25 = vpack.c.bf16 %v1507_v37, %v1506_v60  ;;  %2289 = vmatprep.mubr.bf16.mxu1 %v18761_v23  ;;  %v22879_v26 = vunpack.i.l.bf16 %v19126_v2  ;;  %v23278_v39 = vunpack.i.h.bf16 %v23277_v50  ;;  %v23280_v42 = vunpack.i.l.bf16 %v23279_v33 }
 0x250   : > { %23274 = vst [vmem:[#allocation153_spill] sm:$0xff] %v19124_v63  ;;  %14741 = vrot.lane.b32.xlu0 %v23276_v21, %s16602_s30  ;;  %v23281_v37 = vunpack.i.h.bf16 %v19117_v47 }
 0x251   : > { %23275 = vst [vmem:[#allocation41_spill] sm:$0xff] %v19130_v25  ;;  %v1157_v13 = vsel %vm1142_vm6, %v23278_v39, %v14384_v59  ;;  %v1158_v60 = vsel %vm1142_vm6, %v23280_v42, %v14488_v19  ;;  %14746 = vrot.lane.b32.xlu1 %v18741_v14, %s16602_s30  ;;  %2298 = vmatprep.subr.bf16.mxu1 %v19130_v25  ;;  %v19153_v39 = vpop.permute.xlu0 %14496 }
 0x252   : > { %v1150_v50 = vsel %vm1142_vm6, %v14384_v59, %v23281_v37  ;;  %2299 = vmatpush1.bf16.msra.mxu1 %v19124_v63  ;;  %v1151_v33 = vsel %vm1142_vm6, %v14488_v19, %v22879_v26  ;;  %v19159_v42 = vpack.c.bf16 %v1158_v60, %v1157_v13  ;;  %v19162_v6 = vpop.permute.xlu1 %14501  ;;  %v22881_v25 = vunpack.i.l.bf16 %v19153_v39  ;;  %v23285_v37 = vld [vmem:[#allocation42_spill] sm:$0xff] }
 0x253   : > { %v19165_v5 = vpack.c.bf16 %v1151_v33, %v1150_v50  ;;  %v22884_v59 = vunpack.i.l.bf16 %v19162_v6  ;;  %v23286_v63 = vunpack.i.h.bf16 %v23285_v37  ;;  %v14494_v13 = vunpack.i.h.bf16 %v19126_v2  ;;  %v23287_v33 = vld [vmem:[#allocation43_spill] sm:$0xff] }
 0x254   : > { %23282 = vst [vmem:[#allocation155_spill] sm:$0xff] %v19159_v42  ;;  %14751 = vrot.lane.b32.xlu0 %v18803_v52, %s16602_s30  ;;  %v1508_v60 = vsel %vm1480_vm1, %v14484_v3, %v22881_v25  ;;  %v23288_v37 = vunpack.i.h.bf16 %v23287_v33  ;;  %s23800_s30 = sld [smem:[#allocation233_spill]] }
 0x255   : > { %23284 = vst [vmem:[#allocation130_spill] sm:$0xff] %v19165_v5  ;;  %v1515_v19 = vsel %vm1480_vm1, %v23286_v63, %v14484_v3  ;;  %14756 = vrot.lane.b32.xlu1 %v18917_v54, %s16597_s20  ;;  %2363 = vmatprep.subr.bf16.mxu0 %v19165_v5  ;;  %v19183_v50 = vpop.permute.xlu0 %14506  ;;  %v1671_v63 = vsel %vm1649_vm2, %v14064_v28, %v22884_v59 }
 0x256   : > { %2364 = vmatpush1.bf16.msra.mxu0 %v19159_v42  ;;  %2290 = vmatmul.mubr.bf16.gmra.mrb[12].mxu1 %v18810_v35  ;;  %v1678_v26 = vsel %vm1649_vm2, %v23288_v37, %v14064_v28  ;;  %v19194_v5 = vpop.permute.xlu1 %14511  ;;  %v14508_v25 = vunpack.i.l.bf16 %v19183_v50  ;;  %v19198_v42 = vpack.c.bf16 %v1671_v63, %v1508_v60  ;;  %v23291_v28 = vld [vmem:[#allocation137_spill] sm:$0xff]  ;;  %v14504_v60 = vunpack.i.h.bf16 %v19162_v6  ;;  %v23293_v63 = vld [vmem:[#allocation139_spill] sm:$0xff] }
 0x257   : > { %12341 = vmatprep.mubr.msk.bf16.mxu1 %vm2113_vm0, %v19200_v56  ;;  %v22891_v59 = vunpack.i.l.bf16 %v19194_v5  ;;  %v19207_v33 = vpack.c.bf16 %v1678_v26, %v1515_v19  ;;  %v23292_v37 = vunpack.i.h.bf16 %v23291_v28  ;;  %v23294_v8 = vunpack.i.l.bf16 %v23293_v63 }
 0x258   : > { %23289 = vst [vmem:[#allocation132_spill] sm:$0xff] %v19198_v42  ;;  %14761 = vrot.lane.b32.xlu0 %v18955_v16, %s16597_s20  ;;  %2300 = vmatprep.subr.bf16.mxu1 %v19198_v42  ;;  %v23295_v26 = vunpack.i.h.bf16 %v19183_v50 }
 0x259   : > { %23290 = vst [vmem:[#allocation42_spill] sm:$0xff] %v19207_v33  ;;  %v1159_v3 = vsel %vm1142_vm6, %v23292_v37, %v14494_v13  ;;  %v1160_v10 = vsel %vm1142_vm6, %v23294_v8, %v14508_v25  ;;  %14766 = vrot.lane.b32.xlu1 %v19032_v18, %s16597_s20  ;;  %2301 = vmatpush1.bf16.msra.mxu1 %v19207_v33  ;;  %v19226_v28 = vpop.permute.xlu0 %14516 }
 0x25a   : > { %v1152_v19 = vsel %vm1142_vm6, %v14494_v13, %v23295_v26  ;;  %v1153_v37 = vsel %vm1142_vm6, %v14508_v25, %v22891_v59  ;;  %v19232_v8 = vpack.c.bf16 %v1160_v10, %v1159_v3  ;;  %v19234_v63 = vpop.permute.xlu1 %14521  ;;  %v14518_v62 = vunpack.i.l.bf16 %v19226_v28  ;;  %v23298_v26 = vld [vmem:[#allocation49_spill] sm:$0xff]  ;;  %v23300_v3 = vld [vmem:[#allocation50_spill] sm:$0xff] }
 0x25b   : > { %v19238_v32 = vpack.c.bf16 %v1153_v37, %v1152_v19  ;;  %v22897_v13 = vunpack.i.l.bf16 %v19234_v63  ;;  %v23299_v33 = vunpack.i.h.bf16 %v23298_v26  ;;  %v14514_v10 = vunpack.i.h.bf16 %v19194_v5 }
 0x25c   : > { %23296 = vst [vmem:[#allocation43_spill] sm:$0xff] %v19232_v8  ;;  %1478 = vrot.lane.b32.xlu0 %v18747_v46, %s16597_s20  ;;  %v23301_v59 = vunpack.i.l.bf16 %v23300_v3  ;;  %v23302_v19 = vunpack.i.h.bf16 %v19226_v28  ;;  %v14424_v26 = vunpack.i.h.bf16 %v18848_v40  ;;  %v23305_v3 = vld [vmem:[#allocation145_spill] sm:$0xff] }
 0x25d   : > { %23297 = vst [vmem:[#allocation137_spill] sm:$0xff] %v19238_v32  ;;  %v1679_v25 = vsel %vm1649_vm2, %v23299_v33, %v14504_v60  ;;  %1635 = vrot.lane.b32.xlu1 %v18913_v43, %s16598_s3  ;;  %2365 = vmatprep.subr.bf16.mxu0 %v19238_v32  ;;  %v19261_v33 = vpop.permute.xlu0 %14526  ;;  %v23306_v61 = vunpack.i.h.bf16 %v23305_v3  ;;  %v23309_v3 = vld [vmem:[#allocation157_spill] sm:$0xff] }
 0x25e   : > { %v1680_v42 = vsel %vm1649_vm2, %v23301_v59, %v14518_v62  ;;  %v1672_v37 = vsel %vm1649_vm2, %v14504_v60, %v23302_v19  ;;  %2366 = vmatpush1.bf16.msra.mxu0 %v19232_v8  ;;  %v1673_v59 = vsel %vm1649_vm2, %v14518_v62, %v22897_v13  ;;  %v19269_v44 = vpop.permute.xlu1 %14531  ;;  %v22899_v32 = vunpack.i.h.bf16 %v19261_v33 }
 0x25f   : > { %v19267_v49 = vpack.c.bf16 %v1680_v42, %v1679_v25  ;;  %v14528_v24 = vunpack.i.l.bf16 %v19261_v33  ;;  %v19273_v60 = vpack.c.bf16 %v1673_v59, %v1672_v37  ;;  %v14534_v19 = vunpack.i.h.bf16 %v19269_v44  ;;  %v23307_v25 = vld [vmem:[#allocation147_spill] sm:$0xff] }
 0x260   : > { %v22903_v8 = vunpack.i.l.bf16 %v19269_v44  ;;  %14771 = vrot.lane.b32.xlu0 %v23276_v21, %s16598_s3  ;;  %v1161_v62 = vsel %vm1142_vm6, %v23306_v61, %v14514_v10  ;;  %v14524_v42 = vunpack.i.h.bf16 %v19234_v63  ;;  %v23308_v13 = vunpack.i.l.bf16 %v23307_v25 }
 0x261   : > { %23303 = vst [vmem:[#allocation139_spill] sm:$0xff] %v19267_v49  ;;  %23304 = vst [vmem:[#allocation49_spill] sm:$0xff] %v19273_v60  ;;  %14776 = vrot.lane.b32.xlu1 %v18741_v14, %s16598_s3  ;;  %2302 = vmatprep.subr.bf16.mxu1 %v19273_v60  ;;  %v1154_v21 = vsel %vm1142_vm6, %v14514_v10, %v22899_v32  ;;  %v23310_v59 = vunpack.i.l.bf16 %v23309_v3  ;;  %v23311_v25 = vunpack.i.l.bf16 %v23270_v38  ;;  %v19304_v14 = vpop.permute.xlu0 %14536 }
 0x262   : > { %v1162_v37 = vsel %vm1142_vm6, %v23308_v13, %v14528_v24  ;;  %2303 = vmatpush1.bf16.msra.mxu1 %v19267_v49  ;;  %v1155_v60 = vsel %vm1142_vm6, %v14528_v24, %v22903_v8  ;;  %v19312_v3 = vpop.permute.xlu1 %14541  ;;  %v14538_v38 = vunpack.i.l.bf16 %v19304_v14  ;;  %v1681_v24 = vsel %vm1649_vm2, %v23316_v45, %v14524_v42 }
 0x263   : > { %v1326_v61 = vsel %vm1311_vm7, %v23310_v59, %v14424_v26  ;;  %v1163_v13 = vsel %vm1142_vm6, %v23311_v25, %v14534_v19  ;;  %v19310_v10 = vpack.c.bf16 %v1162_v37, %v1161_v62  ;;  %v22906_v59 = vunpack.i.h.bf16 %v19304_v14  ;;  %v23317_v62 = vld [vmem:[#allocation55_spill] sm:$0xff] }
 0x264   : > { %v19316_v32 = vpack.c.bf16 %v1155_v60, %v1154_v21  ;;  %v19318_v25 = vpack.c.bf16 %v1326_v61, %v1163_v13  ;;  %v22904_v49 = vunpack.i.l.bf16 %v19312_v3  ;;  %14781 = vrot.lane.b32.xlu0 %v18803_v52, %s16598_s3  ;;  %v23318_v37 = vunpack.i.l.bf16 %v23317_v62 }
 0x265   : > { %23312 = vst [vmem:[#allocation145_spill] sm:$0xff] %v19310_v10  ;;  %14786 = vrot.lane.b32.xlu1 %v18917_v54, %s16599_s4  ;;  %v1674_v52 = vsel %vm1649_vm2, %v14524_v42, %v22906_v59  ;;  %v19339_v36 = vpop.permute.xlu0 %1126  ;;  %v14544_v42 = vunpack.i.h.bf16 %v19312_v3 }
 0x266   : > { %23313 = vst [vmem:[#allocation147_spill] sm:$0xff] %v19316_v32  ;;  %23314 = vst [vmem:[#allocation157_spill] sm:$0xff] %v19318_v25  ;;  %v1682_v8 = vsel %vm1649_vm2, %v23318_v37, %v14538_v38  ;;  %2367 = vmatprep.subr.bf16.mxu0 %v19316_v32  ;;  %v1675_v45 = vsel %vm1649_vm2, %v14538_v38, %v22904_v49  ;;  %v19347_v21 = vpop.permute.xlu1 %14546  ;;  %v23330_v32 = vunpack.i.h.bf16 %v18698_v4 }
 0x267   : > { %2368 = vmatpush1.bf16.msra.mxu0 %v19310_v10  ;;  %v19345_v60 = vpack.c.bf16 %v1682_v8, %v1681_v24  ;;  %v19349_v54 = vpack.c.bf16 %v1675_v45, %v1674_v52  ;;  %v22905_v61 = vunpack.i.l.bf16 %v19347_v21  ;;  %v1156_v8 = vsel %vm1142_vm6, %v14534_v19, %v19339_v36  ;;  %v23322_v19 = vld [vmem:[#allocation58_spill] sm:$0xff] }
 0x268   : > { %14791 = vrot.lane.b32.xlu0 %v18955_v16, %s16599_s4  ;;  %v23323_v45 = vunpack.i.h.bf16 %v23322_v19 }
 0x269   : > { %23319 = vst [vmem:[#allocation53_spill] sm:$0xff] %v19345_v60  ;;  %23320 = vst [vmem:[#allocation184_spill] sm:$0xff] %v19349_v54  ;;  %14796 = vrot.lane.b32.xlu1 %v19032_v18, %s16599_s4  ;;  %2304 = vmatprep.subr.bf16.mxu1 %v19349_v54  ;;  %v19362_v13 = vpop.permute.xlu0 %14551  ;;  %v1319_v16 = vsel %vm1311_vm7, %v14424_v26, %v22905_v61  ;;  %v14549_v26 = vunpack.i.h.bf16 %v19347_v21  ;;  %v23324_v61 = vld [vmem:[#allocation60_spill] sm:$0xff] }
 0x26a   : > { %2305 = vmatpush1.bf16.msra.mxu1 %v19345_v60  ;;  %v19368_v38 = vpop.permute.xlu1 %14556  ;;  %v14553_v18 = vunpack.i.l.bf16 %v19362_v13  ;;  %v19372_v37 = vpack.c.bf16 %v1319_v16, %v1156_v8  ;;  %v1683_v49 = vsel %vm1649_vm2, %v23323_v45, %v14544_v42  ;;  %v23325_v59 = vunpack.i.l.bf16 %v23324_v61 }
 0x26b   : > { %v22913_v52 = vunpack.i.l.bf16 %v19368_v38  ;;  %v23326_v8 = vunpack.i.h.bf16 %v19362_v13  ;;  %v1327_v54 = vsel %vm1311_vm7, %v23330_v32, %v14549_v26 }
 0x26c   : > { %23321 = vst [vmem:[#allocation185_spill] sm:$0xff] %v19372_v37  ;;  %1816 = vrot.lane.b32.xlu0 %v18747_v46, %s16599_s4  ;;  %v1684_v24 = vsel %vm1649_vm2, %v23325_v59, %v14553_v18  ;;  %2369 = vmatprep.subr.bf16.mxu0 %v19372_v37 }
 0x26d   : > { %v1676_v16 = vsel %vm1649_vm2, %v14544_v42, %v23326_v8  ;;  %2370 = vmatpush1.bf16.msra.mxu0 %v19318_v25  ;;  %v19392_v46 = vpop.permute.xlu0 %14561  ;;  %v1677_v19 = vsel %vm1649_vm2, %v14553_v18, %v22913_v52  ;;  %v19398_v45 = vpack.c.bf16 %v1684_v24, %v1683_v49  ;;  %v23329_v8 = vld [vmem:[#allocation86_spill] sm:$0xff]  ;;  %v23331_v49 = vunpack.i.l.bf16 %v18729_v9 }
 0x26e   : > { %v19400_v10 = vpop.permute.xlu1 %14566  ;;  %v22914_v59 = vunpack.i.h.bf16 %v19392_v46  ;;  %v14563_v37 = vunpack.i.l.bf16 %v19392_v46  ;;  %v19404_v60 = vpack.c.bf16 %v1677_v19, %v1676_v16  ;;  %v14154_v25 = vunpack.i.h.bf16 %v23329_v8 }
 0x26f   : > { %23327 = vst [vmem:[#allocation58_spill] sm:$0xff] %v19398_v45  ;;  %v22917_v42 = vunpack.i.l.bf16 %v19400_v10  ;;  %v14569_v61 = vunpack.i.h.bf16 %v19400_v10 }
 0x270   : > { %23328 = vst [vmem:[#allocation186_spill] sm:$0xff] %v19404_v60  ;;  %v1328_v24 = vsel %vm1311_vm7, %v23331_v49, %v14563_v37  ;;  %2306 = vmatprep.subr.bf16.mxu1 %v19404_v60  ;;  %v1320_v18 = vsel %vm1311_vm7, %v14549_v26, %v22914_v59  ;;  %v23334_v59 = vld [vmem:[#allocation64_spill] sm:$0xff] }
 0x271   : > { %2307 = vmatpush1.bf16.msra.mxu1 %v19398_v45  ;;  %v19422_v16 = vpop.permute.xlu0 %14571  ;;  %v1321_v4 = vsel %vm1311_vm7, %v14563_v37, %v22917_v42  ;;  %v19428_v9 = vpack.c.bf16 %v1328_v24, %v1327_v54  ;;  %v23335_v45 = vunpack.i.l.bf16 %v23334_v59  ;;  %v23336_v54 = vunpack.i.h.bf16 %v23334_v59 }
 0x272   : > { %v19430_v32 = vpop.permute.xlu1 %14576  ;;  %v22919_v19 = vunpack.i.h.bf16 %v19422_v16  ;;  %v14573_v49 = vunpack.i.l.bf16 %v19422_v16  ;;  %v19434_v52 = vpack.c.bf16 %v1321_v4, %v1320_v18 }
 0x273   : > { %23332 = vst [vmem:[#allocation86_spill] sm:$0xff] %v19428_v9  ;;  %v22921_v26 = vunpack.i.l.bf16 %v19430_v32  ;;  %v1847_v60 = vsel %vm1818_vm3, %v23335_v45, %v14154_v25  ;;  %v14579_v62 = vunpack.i.h.bf16 %v19430_v32 }
 0x274   : > { %23333 = vst [vmem:[#allocation187_spill] sm:$0xff] %v19434_v52  ;;  %v1848_v37 = vsel %vm1818_vm3, %v23336_v54, %v14573_v49  ;;  %2371 = vmatprep.subr.bf16.mxu0 %v19434_v52  ;;  %v1840_v24 = vsel %vm1818_vm3, %v14154_v25, %v22919_v19  ;;  %v23341_v19 = vunpack.i.h.bf16 %v18753_v20 }
 0x275   : > { %2372 = vmatpush1.bf16.msra.mxu0 %v19428_v9  ;;  %v19452_v18 = vpop.permute.xlu0 %14581  ;;  %v1841_v45 = vsel %vm1818_vm3, %v14573_v49, %v22921_v26  ;;  %v19458_v59 = vpack.c.bf16 %v1848_v37, %v1847_v60  ;;  %v23342_v60 = vunpack.i.l.bf16 %v18789_v1 }
 0x276   : > { %23337 = vst [vmem:[#allocation64_spill] sm:$0xff] %v19452_v18  ;;  %v19460_v4 = vpop.permute.xlu1 %14586  ;;  %v22922_v54 = vunpack.i.h.bf16 %v19452_v18  ;;  %v14583_v42 = vunpack.i.l.bf16 %v19452_v18  ;;  %v19464_v52 = vpack.c.bf16 %v1841_v45, %v1840_v24  ;;  %v1329_v9 = vsel %vm1311_vm7, %v23341_v19, %v14569_v61 }
 0x277   : > { %23338 = vst [vmem:[#allocation188_spill] sm:$0xff] %v19458_v59  ;;  %23339 = vst [vmem:[#allocation189_spill] sm:$0xff] %v19460_v4  ;;  %v22926_v25 = vunpack.i.l.bf16 %v19460_v4 }
 0x278   : > { %23340 = vst [vmem:[#allocation190_spill] sm:$0xff] %v19464_v52  ;;  %v1330_v49 = vsel %vm1311_vm7, %v23342_v60, %v14583_v42  ;;  %2308 = vmatprep.subr.bf16.mxu1 %v19464_v52  ;;  %v1322_v37 = vsel %vm1311_vm7, %v14569_v61, %v22922_v54  ;;  %v14589_v61 = vunpack.i.h.bf16 %v19460_v4  ;;  %v23353_v4 = vunpack.i.l.bf16 %v18848_v40 }
 0x279   : > { %2309 = vmatpush1.bf16.msra.mxu1 %v19458_v59  ;;  %v19482_v20 = vpop.permute.xlu0 %14591  ;;  %v1323_v19 = vsel %vm1311_vm7, %v14583_v42, %v22926_v25  ;;  %v19488_v1 = vpack.c.bf16 %v1330_v49, %v1329_v9  ;;  %v23345_v59 = vld [vmem:[#allocation69_spill] sm:$0xff] }
 0x27a   : > { %v19490_v24 = vpop.permute.xlu1 %14596  ;;  %v22928_v45 = vunpack.i.h.bf16 %v19482_v20  ;;  %v14593_v60 = vunpack.i.l.bf16 %v19482_v20  ;;  %v19494_v26 = vpack.c.bf16 %v1323_v19, %v1322_v37  ;;  %v23346_v52 = vunpack.i.l.bf16 %v23345_v59 }
 0x27b   : > { %23343 = vst [vmem:[#allocation191_spill] sm:$0xff] %v19488_v1  ;;  %v22932_v54 = vunpack.i.l.bf16 %v19490_v24  ;;  %v23347_v42 = vunpack.i.h.bf16 %v23345_v59 }
 0x27c   : > { %23344 = vst [vmem:[#allocation192_spill] sm:$0xff] %v19494_v26  ;;  %v1849_v29 = vsel %vm1818_vm3, %v23346_v52, %v14579_v62  ;;  %2373 = vmatprep.subr.bf16.mxu0 %v19494_v26  ;;  %v1842_v49 = vsel %vm1818_vm3, %v14579_v62, %v22928_v45  ;;  %v23352_v62 = vunpack.i.h.bf16 %v18839_v53 }
 0x27d   : > { %v1850_v9 = vsel %vm1818_vm3, %v23347_v42, %v14593_v60  ;;  %2374 = vmatpush1.bf16.msra.mxu0 %v19488_v1  ;;  %v19512_v37 = vpop.permute.xlu0 %14601  ;;  %v1843_v52 = vsel %vm1818_vm3, %v14593_v60, %v22932_v54  ;;  %v14599_v1 = vunpack.i.h.bf16 %v19490_v24  ;;  %v23356_v54 = vld [vmem:[#allocation77_spill] sm:$0xff] }
 0x27e   : > { %23348 = vst [vmem:[#allocation69_spill] sm:$0xff] %v19512_v37  ;;  %v19518_v59 = vpack.c.bf16 %v1850_v9, %v1849_v29  ;;  %v19520_v19 = vpop.permute.xlu1 %1295  ;;  %v22931_v42 = vunpack.i.h.bf16 %v19512_v37  ;;  %v14603_v25 = vunpack.i.l.bf16 %v19512_v37  ;;  %v19524_v26 = vpack.c.bf16 %v1843_v52, %v1842_v49 }
 0x27f   : > { %23350 = vst [vmem:[#allocation194_spill] sm:$0xff] %v19520_v19  ;;  %v1331_v45 = vsel %vm1311_vm7, %v23352_v62, %v14589_v61 }
 0x280   : > { %23349 = vst [vmem:[#allocation193_spill] sm:$0xff] %v19518_v59  ;;  %23351 = vst [vmem:[#allocation195_spill] sm:$0xff] %v19524_v26  ;;  %v1332_v29 = vsel %vm1311_vm7, %v23353_v4, %v14603_v25  ;;  %2310 = vmatprep.subr.bf16.mxu1 %v19524_v26  ;;  %v1324_v60 = vsel %vm1311_vm7, %v14589_v61, %v22931_v42  ;;  %v1325_v53 = vsel %vm1311_vm7, %v14603_v25, %v19520_v19 }
 0x281   : > { %2311 = vmatpush1.bf16.msra.mxu1 %v19518_v59  ;;  %v19544_v9 = vpop.permute.xlu0 %14606  ;;  %v19546_v49 = vpack.c.bf16 %v1325_v53, %v1324_v60  ;;  %v19548_v40 = vpack.c.bf16 %v1332_v29, %v1331_v45  ;;  %v14499_v25 = vunpack.i.h.bf16 %v19153_v39  ;;  %v23357_v59 = vunpack.i.l.bf16 %v23356_v54 }
 0x282   : > { %v19550_v4 = vpop.permute.xlu1 %14611  ;;  %v22939_v52 = vunpack.i.h.bf16 %v19544_v9  ;;  %v14608_v62 = vunpack.i.l.bf16 %v19544_v9  ;;  %v23358_v29 = vunpack.i.h.bf16 %v23356_v54  ;;  %v23364_v19 = vunpack.i.l.bf16 %v23329_v8 }
 0x283   : > { %23354 = vst [vmem:[#allocation196_spill] sm:$0xff] %v19546_v49  ;;  %23355 = vst [vmem:[#allocation197_spill] sm:$0xff] %v19548_v40  ;;  %v14614_v61 = vunpack.i.h.bf16 %v19550_v4  ;;  %2375 = vmatprep.subr.bf16.mxu0 %v19546_v49  ;;  %v1851_v45 = vsel %vm1818_vm3, %v23357_v59, %v14599_v1  ;;  %v23360_v49 = vunpack.i.l.bf16 %v19550_v4 }
 0x284   : > { %v1852_v60 = vsel %vm1818_vm3, %v23358_v29, %v14608_v62  ;;  %2376 = vmatpush1.bf16.msra.mxu0 %v19548_v40  ;;  %v1844_v53 = vsel %vm1818_vm3, %v14599_v1, %v22939_v52 }
 0x285   : > { %v19571_v42 = vpop.permute.xlu0 %14616  ;;  %v1845_v26 = vsel %vm1818_vm3, %v14608_v62, %v23360_v49  ;;  %v19577_v59 = vpack.c.bf16 %v1852_v60, %v1851_v45  ;;  %v1853_v1 = vsel %vm1818_vm3, %v23364_v19, %v14614_v61  ;;  %v23365_v49 = vunpack.i.h.bf16 %v18936_v48 }
 0x286   : > { %23359 = vst [vmem:[#allocation77_spill] sm:$0xff] %v19571_v42  ;;  %v19579_v54 = vpop.permute.xlu1 %14621  ;;  %v22940_v29 = vunpack.i.h.bf16 %v19571_v42  ;;  %v14618_v40 = vunpack.i.l.bf16 %v19571_v42  ;;  %v19583_v37 = vpack.c.bf16 %v1845_v26, %v1844_v53  ;;  %v23366_v45 = vunpack.i.l.bf16 %v18944_v11  ;;  %v16265_v42 = vld [vmem:[%s17011_s22 + $0xf0] sm:$0xff] }
 0x287   : > { %23361 = vst [vmem:[#allocation198_spill] sm:$0xff] %v19577_v59  ;;  %23362 = vst [vmem:[#allocation199_spill] sm:$0xff] %v19579_v54  ;;  %v22942_v52 = vunpack.i.l.bf16 %v19579_v54  ;;  %v1495_v62 = vsel %vm1480_vm1, %v23365_v49, %v14499_v25  ;;  %v2069_v19 = vpack.c.bf16 %v1853_v1, %v1853_v1 }
 0x288   : > { %23363 = vst [vmem:[#allocation200_spill] sm:$0xff] %v19583_v37  ;;  %v1496_v60 = vsel %vm1480_vm1, %v23366_v45, %v14618_v40  ;;  %2312 = vmatprep.subr.bf16.mxu1 %v19583_v37  ;;  %v1488_v8 = vsel %vm1480_vm1, %v14499_v25, %v22940_v29 }
 0x289   : > { %2313 = vmatpush1.bf16.msra.mxu1 %v19577_v59  ;;  %v19604_v26 = vpop.permute.xlu0 %1774  ;;  %v1489_v48 = vsel %vm1480_vm1, %v14618_v40, %v22942_v52  ;;  %v19610_v11 = vpack.c.bf16 %v1496_v60, %v1495_v62  ;;  %v16258_v59 = vld [vmem:[%s17011_s22 + $0x78] sm:$0xff]  ;;  %v14624_v62 = vunpack.i.h.bf16 %v19579_v54  ;;  %v19635_v60 = vsel %vm2120_vm5, %v2069_v19, 0 }
 0x28a   : > { %v19612_v53 = vpop.permute.xlu1 %14626  ;;  %v1846_v49 = vsel %vm1818_vm3, %v14614_v61, %v19604_v26  ;;  %v19617_v25 = vpack.c.bf16 %v1489_v48, %v1488_v8  ;;  %v19624_v40 = vpack.c.bf16 %v16258_v59, %v18913_v43  ;;  %23373 = vst [vmem:[#allocation207_spill] sm:$0xff] %v19635_v60  ;;  %v16259_v8 = vld [vmem:[%s17011_s22 + $0x30] sm:$0xff]  ;;  %v23376_v52 = vunpack.i.l.bf16 %v19020_v55  ;;  %v16261_v59 = vld [vmem:[%s17011_s22 + $0xb8] sm:$0xff] }
 0x28b   : > { %23367 = vst [vmem:[#allocation201_spill] sm:$0xff] %v19610_v11  ;;  %23368 = vst [vmem:[#allocation202_spill] sm:$0xff] %v19612_v53  ;;  %v14628_v45 = vunpack.i.l.bf16 %v19612_v53  ;;  %v19620_v29 = vpack.c.bf16 %v1846_v49, %v1846_v49  ;;  %v16260_v48 = vld [vmem:[%s17011_s22 + $0x70] sm:$0xff]  ;;  %v23378_v55 = vunpack.i.h.bf16 %v19612_v53  ;;  %v19672_v54 = vld [vmem:[#allocation4 + $0x8] ss:$16 sps:$4 sm:$0xff]  }
 0x28c   : > { %23369 = vst [vmem:[#allocation203_spill] sm:$0xff] %v19617_v25  ;;  %23371 = vst [vmem:[#allocation205_spill] sm:$0xff] %v19624_v40  ;;  %2377 = vmatprep.subr.bf16.mxu0 %v19617_v25  ;;  %v19643_v49 = vpack.c.bf16 %v16260_v48, %v16259_v8  ;;  %v16262_v25 = vld [vmem:[%s17011_s22 + $0xf8] sm:$0xff]  ;;  %v14559_v8 = vunpack.i.h.bf16 %v19368_v38 }
 0x28d   : > { %23370 = vst [vmem:[#allocation204_spill] sm:$0xff] %v19620_v29  ;;  %2378 = vmatpush1.bf16.msra.mxu0 %v19610_v11  ;;  %v19630_v61 = vpop.permute.xlu0 %14631  ;;  %12340 = vmatprep.subr.msk.bf16.mxu1 %vm2120_vm5, %v19620_v29  ;;  %v1498_v1 = vsel %vm1480_vm1, %v23376_v52, %v14628_v45  ;;  %v1490_v52 = vsel %vm1480_vm1, %v14624_v62, %v23378_v55  ;;  %v16264_v55 = vld [vmem:[%s17011_s22 + $0xb0] sm:$0xff]  ;;  %v23384_v53 = vld [vmem:[#allocation95_spill] sm:$0xff] }
 0x28e   : > { %23372 = vst [vmem:[#allocation206_spill] sm:$0xff] %v19630_v61  ;;  %v19637_v43 = vpop.permute.xlu1 %14636  ;;  %2315 = vmatpush1.bf16.msra.mxu1 %v19635_v60  ;;  %23375 = vst [vmem:[#allocation209_spill] sm:$0xff] %v19643_v49  ;;  %v14634_v19 = vunpack.i.h.bf16 %v19630_v61  ;;  %v19654_v60 = vpack.c.bf16 %v16262_v25, %v16261_v59  ;;  %v23379_v29 = vunpack.i.l.bf16 %v19630_v61  ;;  %v19679_v61 = vpack.c.bf16 %v16265_v42, %v16264_v55 }
 0x28f   : > { %23374 = vst [vmem:[#allocation208_spill] sm:$0xff] %v19637_v43  ;;  %v14638_v11 = vunpack.i.l.bf16 %v19637_v43  ;;  %2451 = vmatprep.subr.bf16.mxu1 %v19624_v40  ;;  %v23380_v40 = vunpack.i.h.bf16 %v19012_v12 }
 0x290   : > { %23377 = vst [vmem:[#allocation210_spill] sm:$0xff] %v19654_v60  ;;  %v1491_v37 = vsel %vm1480_vm1, %v14628_v45, %v23379_v29  ;;  %23382 = vst [vmem:[#allocation212_spill] sm:$0xff] %v19679_v61  ;;  %v14474_v29 = vunpack.i.h.bf16 %v19058_v41 }
 0x291   : > { %v1497_v25 = vsel %vm1480_vm1, %v23380_v40, %v14624_v62  ;;  %v19670_v59 = vpop.permute.xlu0 %14641  ;;  %2331 = vmatmul.mubr.bf16.vlgmr.msra.gmra.mrb[8].mxu1 %v19672_v54  ;;  %v19675_v48 = vpack.c.bf16 %v1491_v37, %v1490_v52  ;;  %v23385_v37 = vunpack.i.l.bf16 %v19091_v34  ;;  %v23386_v52 = vunpack.i.h.bf16 %v19083_v31 }
 0x292   : > { %v19682_v12 = vpop.permute.xlu1 %1464  ;;  %v14644_v45 = vunpack.i.h.bf16 %v19670_v59  ;;  %2452 = vmatpush1.bf16.msra.mxu1 %v19643_v49  ;;  %v19687_v62 = vpack.c.bf16 %v1498_v1, %v1497_v25  ;;  %12342 = vmatprep.mubr.msk.bf16.mxu1 %vm2113_vm0, %v23384_v53  ;;  %v16266_v1 = vld [vmem:[%s17011_s22 + $0x138] sm:$0xff]  ;;  %v23388_v49 = vunpack.i.l.bf16 %v19162_v6 }
 0x293   : > { %23381 = vst [vmem:[#allocation211_spill] sm:$0xff] %v19675_v48  ;;  %v1500_v42 = vsel %vm1480_vm1, %v23385_v37, %v14638_v11  ;;  %v1499_v55 = vsel %vm1480_vm1, %v23386_v52, %v14634_v19  ;;  %2379 = vmatprep.subr.bf16.mxu0 %v19675_v48  ;;  %2453 = vmatprep.subr.bf16.mxu1 %v19654_v60  ;;  %v16267_v25 = vld [vmem:[%s17011_s22 + $0x178] sm:$0xff]  ;;  %v23389_v37 = vunpack.i.l.bf16 %v19153_v39  ;;  %v23390_v52 = vunpack.i.h.bf16 %v19637_v43  ;;  %v16268_v39 = vld [vmem:[%s17011_s22 + $0x130] sm:$0xff] }
 0x294   : > { %23383 = vst [vmem:[#allocation213_spill] sm:$0xff] %v19687_v62  ;;  %v19703_v40 = vpack.c.bf16 %v16267_v25, %v16266_v1  ;;  %v1664_v34 = vsel %vm1649_vm2, %v23388_v49, %v14559_v8  ;;  %2380 = vmatpush1.bf16.msra.mxu0 %v19687_v62  ;;  %v23391_v1 = vunpack.i.l.bf16 %v19670_v59  ;;  %v16269_v48 = vld [vmem:[%s17011_s22 + $0x170] sm:$0xff] }
 0x295   : > { %v1501_v31 = vsel %vm1480_vm1, %v23389_v37, %v14644_v45  ;;  %v1492_v60 = vsel %vm1480_vm1, %v14634_v19, %v23390_v52  ;;  %v19722_v25 = vpop.permute.xlu0 %14646  ;;  %v19728_v18 = vpack.c.bf16 %v16269_v48, %v16268_v39  ;;  %v19737_v52 = vpack.c.bf16 %v1500_v42, %v1499_v55  ;;  %v16271_v42 = vld [vmem:[%s17011_s22 + $0x1b8] sm:$0xff] }
 0x296   : > { %23387 = vst [vmem:[#allocation95_spill] sm:$0xff] %v19703_v40  ;;  %v1493_v6 = vsel %vm1480_vm1, %v14638_v11, %v23391_v1  ;;  %v19730_v37 = vpack.c.bf16 %v1664_v34, %v1501_v31  ;;  %v19732_v62 = vpop.permute.xlu1 %14651  ;;  %v14649_v43 = vunpack.i.h.bf16 %v19722_v25  ;;  %v22960_v19 = vunpack.i.l.bf16 %v19722_v25  ;;  %2454 = vmatpush1.bf16.msra.mxu1 %v19679_v61  ;;  %v23393_v11 = vld [vmem:[#allocation71_spill] sm:$0xff] }
 0x297   : > { %v19724_v49 = vpack.c.bf16 %v1493_v6, %v1492_v60  ;;  %23392 = vst [vmem:[#allocation214_spill] sm:$0xff] %v19728_v18  ;;  %v23394_v1 = vunpack.i.l.bf16 %v23393_v11  ;;  %v23395_v48 = vunpack.i.l.bf16 %v18798_v0  ;;  %v14653_v31 = vunpack.i.l.bf16 %v19732_v62  ;;  %v19749_v6 = vld [vmem:[#allocation4] ss:$16 sps:$4 sm:$0xff]   ;;  %2455 = vmatprep.subr.bf16.mxu1 %v19703_v40 }
 0x298   : > { %2382 = vmatmul.mubr.bf16.vlgmr.msra.gmra.mrb[8].mxu0 %v19749_v6  ;;  %v23396_v55 = vunpack.i.h.bf16 %v19226_v28  ;;  %v1494_v0 = vsel %vm1480_vm1, %v14644_v45, %v19682_v12  ;;  %v23397_v11 = vunpack.i.l.bf16 %v19234_v63 }
 0x299   : > { %v1023_v60 = vsel %vm973_vm4, %v14474_v29, %v23394_v1  ;;  %v974_v34 = vsel %vm973_vm4, %v23395_v48, %v14474_v29  ;;  %2400 = vmatprep.subr.bf16.mxu0 %v19724_v49  ;;  %v1657_v29 = vsel %vm1649_vm2, %v14559_v8, %v22960_v19  ;;  %v19770_v1 = vpop.permute.xlu0 %14656  ;;  %v23398_v48 = vld [vmem:[#allocation106_spill] sm:$0xff]  ;;  %2391 = vmatprep.mubr.bf16.mxu0 %v18761_v23 }
 0x29a   : > { %v1665_v39 = vsel %vm1649_vm2, %v23396_v55, %v14649_v43  ;;  %2401 = vmatpush1.bf16.msra.mxu0 %v19737_v52  ;;  %v1666_v28 = vsel %vm1649_vm2, %v23397_v11, %v14653_v31  ;;  %2341 = vmatmul.mubr.bf16.gmra.mrb[12].mxu1 %v23398_v48  ;;  %v19773_v55 = vpack.c.bf16 %v1657_v29, %v1494_v0  ;;  %v14662_v45 = vpop.permute.xlu1 %14661  ;;  %v22964_v8 = vunpack.i.l.bf16 %v19770_v1 }
 0x29b   : > { %v19776_v40 = vpack.c.bf16 %v1023_v60, %v16271_v42  ;;  %2456 = vmatpush1.bf16.msra.mxu1 %v19728_v18  ;;  %v19781_v63 = vpack.c.bf16 %v1666_v28, %v1665_v39  ;;  %2483 = vmatprep.mubr.bf16.mxu1 %v18902_v22  ;;  %v14664_v11 = vunpack.i.h.bf16 %v14662_v45  ;;  %v14663_v19 = vunpack.i.l.bf16 %v14662_v45  ;;  %v16272_v60 = vld [vmem:[%s17011_s22 + $0x1b0] sm:$0xff] }
 0x29c   : > { %v14659_v61 = vunpack.i.h.bf16 %v19770_v1  ;;  %2402 = vmatprep.subr.bf16.mxu0 %v19773_v55  ;;  %v19789_v42 = vpack.c.bf16 %v974_v34, %v16272_v60  ;;  %v23400_v0 = vunpack.i.h.bf16 %v19732_v62  ;;  %v1659_v22 = vsel %vm1649_vm2, %v14653_v31, %v22964_v8 }
 0x29d   : > { %23399 = vst [vmem:[#allocation71_spill] sm:$0xff] %v19776_v40  ;;  %2457 = vmatprep.subr.bf16.mxu1 %v19776_v40  ;;  %v23401_v29 = vunpack.i.h.bf16 %v18888_v51  ;;  %v23402_v45 = vunpack.i.l.bf16 %v18896_v58  ;;  %v19807_v60 = vpop.permute.xlu0 %14666  ;;  %v23405_v58 = vld [vmem:[#allocation79_spill] sm:$0xff] }
 0x29e   : > { %2403 = vmatpush1.bf16.msra.mxu0 %v19730_v37  ;;  %v1658_v39 = vsel %vm1649_vm2, %v14649_v43, %v23400_v0  ;;  %v23403_v43 = vld [vmem:[#allocation75_spill] sm:$0xff]  ;;  %v19815_v31 = vpop.permute.xlu1 %14671  ;;  %v22965_v51 = vunpack.i.h.bf16 %v19807_v60  ;;  %v23406_v8 = vunpack.i.l.bf16 %v23405_v58 }
 0x29f   : > { %v975_v28 = vsel %vm973_vm4, %v23401_v29, %v14663_v19  ;;  %v976_v34 = vsel %vm973_vm4, %v23402_v45, %v14664_v11  ;;  %v19809_v40 = vpack.c.bf16 %v1659_v22, %v1658_v39  ;;  %v23404_v0 = vunpack.i.h.bf16 %v23403_v43  ;;  %2458 = vmatpush1.bf16.msra.mxu1 %v19789_v42 }
 0x2a0   : > { %v14668_v29 = vunpack.i.l.bf16 %v19807_v60  ;;  %v1025_v45 = vsel %vm973_vm4, %v14664_v11, %v23406_v8  ;;  %v23407_v39 = vunpack.i.h.bf16 %v19304_v14  ;;  %2392 = vmatmul.mubr.bf16.gmra.mrb[12].mxu0 %v18810_v35  ;;  %v19838_v8 = vpack.c.bf16 %v976_v34, %v975_v28 }
 0x2a1   : > { %v1024_v18 = vsel %vm973_vm4, %v14663_v19, %v23404_v0  ;;  %v22966_v19 = vunpack.i.l.bf16 %v19815_v31  ;;  %2404 = vmatprep.subr.bf16.mxu0 %v19809_v40  ;;  %v23409_v0 = vunpack.i.l.bf16 %v19312_v3  ;;  %v1660_v14 = vsel %vm1649_vm2, %v14659_v61, %v22965_v51  ;;  %12344 = vmatprep.mubr.msk.bf16.mxu0 %vm2113_vm0, %v19200_v56 }
 0x2a2   : > { %v1667_v22 = vsel %vm1649_vm2, %v23407_v39, %v14659_v61  ;;  %v19830_v43 = vpack.c.bf16 %v1025_v45, %v1024_v18  ;;  %2405 = vmatpush1.bf16.msra.mxu0 %v19781_v63  ;;  %23410 = vst [vmem:[#allocation75_spill] sm:$0xff] %v19838_v8  ;;  %v14677_v18 = vpop.permute.xlu0 %14676  ;;  %v19853_v28 = vpop.permute.xlu1 %14681  ;;  %v14674_v56 = vunpack.i.h.bf16 %v19815_v31  ;;  %v23417_v39 = vld [vmem:[#allocation88_spill] sm:$0xff] }
 0x2a3   : > { %v1668_v58 = vsel %vm1649_vm2, %v23409_v0, %v14668_v29  ;;  %v1661_v3 = vsel %vm1649_vm2, %v14668_v29, %v22966_v19  ;;  %v14679_v34 = vunpack.i.h.bf16 %v14677_v18  ;;  %v14678_v45 = vunpack.i.l.bf16 %v14677_v18  ;;  %v19861_v51 = vpop.f32.mrb[0].mxu1 }
 0x2a4   : > { %23408 = vst [vmem:[#allocation106_spill] sm:$0xff] %v19830_v43  ;;  %2459 = vmatprep.subr.bf16.mxu1 %v19830_v43  ;;  %v19851_v11 = vpack.c.bf16 %v1668_v58, %v1667_v22  ;;  %v19856_v61 = vpack.c.bf16 %v1661_v3, %v1660_v14  ;;  %v14683_v0 = vunpack.i.l.bf16 %v19853_v28  ;;  %v23413_v29 = vunpack.i.l.bf16 %v18983_v7  ;;  %v23415_v14 = vld [vmem:[#allocation83_spill] sm:$0xff]  ;;  %v19880_v43 = vpop.f32.mrb[1].mxu1 }
 0x2a5   : > { %2460 = vmatpush1.bf16.msra.mxu1 %v19838_v8  ;;  %v23414_v58 = vunpack.i.h.bf16 %v18975_v57  ;;  %v23416_v3 = vunpack.i.h.bf16 %v23415_v14  ;;  %v23418_v8 = vunpack.i.l.bf16 %v23417_v39 }
 0x2a6   : > { %23411 = vst [vmem:[#allocation79_spill] sm:$0xff] %v19851_v11  ;;  %23412 = vst [vmem:[#allocation215_spill] sm:$0xff] %v19856_v61  ;;  %v978_v22 = vsel %vm973_vm4, %v23413_v29, %v14679_v34  ;;  %2406 = vmatprep.subr.bf16.mxu0 %v19856_v61  ;;  %v23419_v29 = vunpack.i.l.bf16 %v19368_v38  ;;  %v14687_v39 = vpop.permute.xlu1 %14686  ;;  %v23422_v38 = vunpack.i.h.bf16 %v19853_v28 }
 0x2a7   : > { %v977_v18 = vsel %vm973_vm4, %v23414_v58, %v14678_v45  ;;  %v1026_v19 = vsel %vm973_vm4, %v14678_v45, %v23416_v3  ;;  %v1027_v7 = vsel %vm973_vm4, %v14679_v34, %v23418_v8  ;;  %2407 = vmatpush1.bf16.msra.mxu0 %v19851_v11  ;;  %v19887_v58 = vpop.permute.xlu0 %1633  ;;  %v19893_v45 = vpop.f32.mrb[2].mxu1  ;;  %v23425_v11 = vunpack.i.h.bf16 %v19050_v30 }
 0x2a8   : > { %v1670_v57 = vsel %vm1649_vm2, %v23419_v29, %v14683_v0  ;;  %v19889_v14 = vpack.c.bf16 %v1027_v7, %v1026_v19  ;;  %v19891_v61 = vpack.c.bf16 %v978_v22, %v977_v18  ;;  %v1663_v8 = vsel %vm1649_vm2, %v14683_v0, %v19887_v58  ;;  %v19902_v3 = vpop.f32.mrb[3].mxu1 }
 0x2a9   : > { %v1662_v34 = vsel %vm1649_vm2, %v14674_v56, %v23422_v38  ;;  %v23423_v29 = vunpack.i.h.bf16 %v19362_v13  ;;  %v14689_v22 = vunpack.i.h.bf16 %v14687_v39  ;;  %v14688_v18 = vunpack.i.l.bf16 %v14687_v39  ;;  %v23427_v39 = vld [vmem:[#allocation92_spill] sm:$0xff] }
 0x2aa   : > { %23420 = vst [vmem:[#allocation83_spill] sm:$0xff] %v19889_v14  ;;  %23421 = vst [vmem:[#allocation88_spill] sm:$0xff] %v19891_v61  ;;  %2461 = vmatprep.subr.bf16.mxu1 %v19889_v14  ;;  %v19909_v7 = vpack.c.bf16 %v1663_v8, %v1662_v34  ;;  %v23426_v13 = vunpack.i.l.bf16 %v19058_v41  ;;  %v23428_v8 = vunpack.i.h.bf16 %v23427_v39 }
 0x2ab   : > { %v1669_v19 = vsel %vm1649_vm2, %v23423_v29, %v14674_v56  ;;  %2462 = vmatpush1.bf16.msra.mxu1 %v19891_v61  ;;  %v979_v38 = vsel %vm973_vm4, %v23425_v11, %v14688_v18  ;;  %v14692_v29 = vpop.permute.xlu0 %14691  ;;  %v19931_v61 = vpop.permute.xlu1 %14696 }
 0x2ac   : > { %23424 = vst [vmem:[#allocation216_spill] sm:$0xff] %v19909_v7  ;;  %v19912_v0 = vpack.c.bf16 %v1670_v57, %v1669_v19  ;;  %v980_v56 = vsel %vm973_vm4, %v23426_v13, %v14689_v22  ;;  %2408 = vmatprep.subr.bf16.mxu0 %v19909_v7  ;;  %v1028_v34 = vsel %vm973_vm4, %v14688_v18, %v23428_v8  ;;  %v23429_v57 = vld [vmem:[#allocation96_spill] sm:$0xff]  ;;  %v14694_v11 = vunpack.i.h.bf16 %v14692_v29 }
 0x2ad   : > { %v23430_v19 = vunpack.i.l.bf16 %v23429_v57  ;;  %v14693_v41 = vunpack.i.l.bf16 %v14692_v29  ;;  %v19936_v14 = vpack.c.bf16 %v980_v56, %v979_v38  ;;  %v22977_v39 = vunpack.i.h.bf16 %v19931_v61 }
 0x2ae   : > { %2409 = vmatpush1.bf16.msra.mxu0 %v19912_v0  ;;  %v22976_v7 = vunpack.i.l.bf16 %v19931_v61  ;;  %v23433_v18 = vunpack.i.l.bf16 %v19430_v32 }
 0x2af   : > { %v1029_v30 = vsel %vm973_vm4, %v14689_v22, %v23430_v19  ;;  %23432 = vst [vmem:[#allocation96_spill] sm:$0xff] %v19936_v14  ;;  %v23434_v22 = vunpack.i.h.bf16 %v19422_v16  ;;  %v14702_v38 = vpop.permute.xlu0 %14701  ;;  %v1827_v32 = vsel %vm1818_vm3, %v14694_v11, %v22977_v39  ;;  %v14707_v16 = vpop.permute.xlu1 %14706 }
 0x2b0   : > { %v19934_v13 = vpack.c.bf16 %v1029_v30, %v1028_v34  ;;  %v1834_v8 = vsel %vm1818_vm3, %v23433_v18, %v14694_v11  ;;  %v1826_v56 = vsel %vm1818_vm3, %v14693_v41, %v22976_v7  ;;  %v14704_v57 = vunpack.i.h.bf16 %v14702_v38  ;;  %v23437_v11 = vld [vmem:[#allocation103_spill] sm:$0xff] }
 0x2b1   : > { %v1833_v29 = vsel %vm1818_vm3, %v23434_v22, %v14693_v41  ;;  %v14703_v19 = vunpack.i.l.bf16 %v14702_v38  ;;  %v19960_v30 = vpack.c.bf16 %v1827_v32, %v1826_v56  ;;  %v14709_v18 = vunpack.i.h.bf16 %v14707_v16 }
 0x2b2   : > { %23431 = vst [vmem:[#allocation92_spill] sm:$0xff] %v19934_v13  ;;  %2463 = vmatprep.subr.bf16.mxu1 %v19934_v13  ;;  %v19958_v34 = vpack.c.bf16 %v1834_v8, %v1833_v29  ;;  %v14708_v22 = vunpack.i.l.bf16 %v14707_v16  ;;  %v23436_v41 = vunpack.i.h.bf16 %v19117_v47  ;;  %v23438_v8 = vunpack.i.l.bf16 %v23437_v11 }
 0x2b3   : > { %2464 = vmatpush1.bf16.msra.mxu1 %v19936_v14  ;;  %v23435_v14 = vunpack.i.l.bf16 %v19126_v2  ;;  %2410 = vmatprep.subr.bf16.mxu0 %v19960_v30  ;;  %v23439_v38 = vunpack.i.h.bf16 %v23437_v11  ;;  %v23440_v56 = vunpack.i.h.bf16 %v19482_v20  ;;  %v19988_v16 = vpop.permute.xlu0 %14711  ;;  %v14717_v11 = vpop.permute.xlu1 %14716 }
 0x2b4   : > { %v1143_v7 = vsel %vm1142_vm6, %v23436_v41, %v14703_v19  ;;  %v1192_v29 = vsel %vm1142_vm6, %v14703_v19, %v23438_v8  ;;  %2411 = vmatpush1.bf16.msra.mxu0 %v19958_v34  ;;  %v22978_v20 = vunpack.i.l.bf16 %v19988_v16  ;;  %v14719_v8 = vunpack.i.h.bf16 %v14717_v11 }
 0x2b5   : > { %v1144_v13 = vsel %vm1142_vm6, %v23435_v14, %v14704_v57  ;;  %v1193_v2 = vsel %vm1142_vm6, %v14704_v57, %v23439_v38  ;;  %v1835_v47 = vsel %vm1818_vm3, %v23440_v56, %v14708_v22  ;;  %v23441_v14 = vunpack.i.l.bf16 %v19490_v24 }
 0x2b6   : > { %v19990_v19 = vpack.c.bf16 %v1193_v2, %v1192_v29  ;;  %v19992_v41 = vpack.c.bf16 %v1144_v13, %v1143_v7  ;;  %v22979_v57 = vunpack.i.h.bf16 %v19988_v16  ;;  %v14718_v38 = vunpack.i.l.bf16 %v14717_v11 }
 0x2b7   : > { %v1836_v32 = vsel %vm1818_vm3, %v23441_v14, %v14709_v18  ;;  %v1828_v24 = vsel %vm1818_vm3, %v14708_v22, %v22978_v20  ;;  %v23445_v29 = vunpack.i.h.bf16 %v19183_v50  ;;  %v23446_v56 = vunpack.i.l.bf16 %v19194_v5  ;;  %v14722_v11 = vpop.permute.xlu0 %14721  ;;  %v23447_v22 = vld [vmem:[#allocation108_spill] sm:$0xff] }
 0x2b8   : > { %23442 = vst [vmem:[#allocation103_spill] sm:$0xff] %v19990_v19  ;;  %23443 = vst [vmem:[#allocation217_spill] sm:$0xff] %v19992_v41  ;;  %2465 = vmatprep.subr.bf16.mxu1 %v19990_v19  ;;  %v1829_v7 = vsel %vm1818_vm3, %v14709_v18, %v22979_v57  ;;  %v20006_v13 = vpack.c.bf16 %v1836_v32, %v1835_v47  ;;  %v23448_v20 = vunpack.i.l.bf16 %v23447_v22  ;;  %v20022_v47 = vpop.permute.xlu1 %14726  ;;  %v14724_v32 = vunpack.i.h.bf16 %v14722_v11 }
 0x2b9   : > { %2466 = vmatpush1.bf16.msra.mxu1 %v19992_v41  ;;  %v1145_v2 = vsel %vm1142_vm6, %v23445_v29, %v14718_v38  ;;  %v1146_v14 = vsel %vm1142_vm6, %v23446_v56, %v14719_v8  ;;  %v20016_v39 = vpack.c.bf16 %v1829_v7, %v1828_v24  ;;  %v14723_v50 = vunpack.i.l.bf16 %v14722_v11 }
 0x2ba   : > { %23444 = vst [vmem:[#allocation218_spill] sm:$0xff] %v20006_v13  ;;  %v1194_v18 = vsel %vm1142_vm6, %v14718_v38, %v23448_v20  ;;  %v23449_v57 = vunpack.i.h.bf16 %v23447_v22  ;;  %v20028_v29 = vpack.c.bf16 %v1146_v14, %v1145_v2  ;;  %v22981_v56 = vunpack.i.h.bf16 %v20022_v47 }
 0x2bb   : > { %v22980_v24 = vunpack.i.l.bf16 %v20022_v47  ;;  %2412 = vmatprep.subr.bf16.mxu0 %v20016_v39  ;;  %v23452_v20 = vunpack.i.l.bf16 %v19550_v4  ;;  %v23453_v11 = vunpack.i.h.bf16 %v19544_v9 }
 0x2bc   : > { %v1195_v5 = vsel %vm1142_vm6, %v14719_v8, %v23449_v57  ;;  %23450 = vst [vmem:[#allocation108_spill] sm:$0xff] %v20028_v29  ;;  %2413 = vmatpush1.bf16.msra.mxu0 %v20006_v13  ;;  %v14732_v8 = vpop.permute.xlu0 %14731  ;;  %v1831_v4 = vsel %vm1818_vm3, %v14724_v32, %v22981_v56  ;;  %v20056_v9 = vpop.permute.xlu1 %14736 }
 0x2bd   : > { %v20033_v7 = vpack.c.bf16 %v1195_v5, %v1194_v18  ;;  %v1838_v38 = vsel %vm1818_vm3, %v23452_v20, %v14724_v32  ;;  %v1837_v57 = vsel %vm1818_vm3, %v23453_v11, %v14723_v50  ;;  %v1830_v2 = vsel %vm1818_vm3, %v14723_v50, %v22980_v24 }
 0x2be   : > { %v20053_v14 = vpack.c.bf16 %v1838_v38, %v1837_v57  ;;  %v14734_v22 = vunpack.i.h.bf16 %v14732_v8  ;;  %v14733_v18 = vunpack.i.l.bf16 %v14732_v8  ;;  %v20058_v5 = vpack.c.bf16 %v1831_v4, %v1830_v2  ;;  %v23458_v57 = vld [vmem:[#allocation113_spill] sm:$0xff] }
 0x2bf   : > { %23451 = vst [vmem:[#allocation219_spill] sm:$0xff] %v20033_v7  ;;  %2467 = vmatprep.subr.bf16.mxu1 %v20033_v7  ;;  %v22985_v20 = vunpack.i.h.bf16 %v20056_v9  ;;  %v14738_v11 = vunpack.i.l.bf16 %v20056_v9  ;;  %v23456_v50 = vunpack.i.l.bf16 %v19269_v44  ;;  %v23457_v32 = vunpack.i.h.bf16 %v19261_v33 }
 0x2c0   : > { %23454 = vst [vmem:[#allocation220_spill] sm:$0xff] %v20053_v14  ;;  %2468 = vmatpush1.bf16.msra.mxu1 %v20028_v29  ;;  %23455 = vst [vmem:[#allocation221_spill] sm:$0xff] %v20058_v5  ;;  %2414 = vmatprep.subr.bf16.mxu0 %v20058_v5  ;;  %v23459_v8 = vunpack.i.l.bf16 %v23458_v57  ;;  %v23460_v4 = vunpack.i.h.bf16 %v23458_v57  ;;  %v1298_v57 = vpop.permute.xlu1 %1297  ;;  %v23466_v7 = vunpack.i.l.bf16 %v19347_v21 }
 0x2c1   : > { %v1148_v24 = vsel %vm1142_vm6, %v23456_v50, %v14734_v22  ;;  %v1147_v38 = vsel %vm1142_vm6, %v23457_v32, %v14733_v18  ;;  %2415 = vmatpush1.bf16.msra.mxu0 %v20053_v14  ;;  %v1141_v50 = vpop.permute.xlu0 %1140  ;;  %v1832_v33 = vsel %vm1818_vm3, %v14738_v11, %v22985_v20  ;;  %v1839_v56 = vsel %vm1818_vm3, %v19604_v26, %v14738_v11 }
 0x2c2   : > { %v1196_v2 = vsel %vm1142_vm6, %v14733_v18, %v23459_v8  ;;  %v1197_v44 = vsel %vm1142_vm6, %v14734_v22, %v23460_v4  ;;  %v20089_v18 = vpack.c.bf16 %v1148_v24, %v1147_v38  ;;  %v23463_v8 = vld [vmem:[#allocation118_spill] sm:$0xff]  ;;  %v20095_v4 = vpack.c.bf16 %v1832_v33, %v1832_v33  ;;  %v23472_v38 = vld [vmem:[#allocation33_spill] sm:$0xff] }
 0x2c3   : > { %v20084_v32 = vpack.c.bf16 %v1197_v44, %v1196_v2  ;;  %v23464_v29 = vunpack.i.l.bf16 %v23463_v8  ;;  %v2071_v14 = vpack.c.bf16 %v1839_v56, %v1839_v56  ;;  %v1312_v2 = vsel %vm1311_vm7, %v23466_v7, %v1298_v57  ;;  %v23467_v44 = vld [vmem:[#allocation119_spill] sm:$0xff] }
 0x2c4   : > { %23462 = vst [vmem:[#allocation222_spill] sm:$0xff] %v20089_v18  ;;  %23465 = vst [vmem:[#allocation118_spill] sm:$0xff] %v20095_v4  ;;  %v23468_v20 = vunpack.i.l.bf16 %v23467_v44  ;;  %v1149_v24 = vsel %vm1142_vm6, %v19339_v36, %v1141_v50  ;;  %12343 = vmatprep.subr.msk.bf16.mxu0 %vm2120_vm5, %v20095_v4  ;;  %v23473_v8 = vunpack.i.l.bf16 %v19400_v10  ;;  %v20192_v4 = vld [vmem:[#allocation7 + $0x4] ss:$16 sps:$4 sm:$0xff]  }
 0x2c5   : > { %23461 = vst [vmem:[#allocation113_spill] sm:$0xff] %v20084_v32  ;;  %v1198_v22 = vsel %vm1142_vm6, %v1141_v50, %v23464_v29  ;;  %2469 = vmatprep.subr.bf16.mxu1 %v20084_v32  ;;  %v20112_v29 = vsel %vm2120_vm5, %v2071_v14, 0  ;;  %v14742_v56 = vpop.permute.xlu0 %14741  ;;  %v20118_v7 = vpack.c.bf16 %v1312_v2, %v1149_v24  ;;  %v20122_v50 = vpop.f32.mrb[4].mxu1  ;;  %v23474_v2 = vunpack.i.h.bf16 %v19392_v46 }
 0x2c6   : > { %v1361_v26 = vsel %vm1311_vm7, %v1298_v57, %v23468_v20  ;;  %23469 = vst [vmem:[#allocation119_spill] sm:$0xff] %v20112_v29  ;;  %2470 = vmatpush1.bf16.msra.mxu1 %v20089_v18  ;;  %2417 = vmatpush1.bf16.msra.mxu0 %v20112_v29  ;;  %v14747_v20 = vpop.permute.xlu1 %14746  ;;  %v14744_v11 = vunpack.i.h.bf16 %v14742_v56  ;;  %v14743_v36 = vunpack.i.l.bf16 %v14742_v56  ;;  %v20124_v57 = vpop.f32.mrb[5].mxu1 }
 0x2c7   : > { %v20115_v21 = vpack.c.bf16 %v1361_v26, %v1198_v22  ;;  %23471 = vst [vmem:[#allocation224_spill] sm:$0xff] %v20118_v7  ;;  %2597 = vmatprep.subr.bf16.mxu0 %v23472_v38  ;;  %v14749_v14 = vunpack.i.h.bf16 %v14747_v20  ;;  %v14748_v33 = vunpack.i.l.bf16 %v14747_v20  ;;  %v23475_v26 = vunpack.i.h.bf16 %v18283_v27  ;;  %v2244_v56 = vpop.f32.mrb[6].mxu1  ;;  %v23476_v20 = vld [vmem:[#allocation34_spill] sm:$0xff]  ;;  %v23477_v38 = vld [vmem:[#allocation124_spill] sm:$0xff]  ;;  %v23481_v27 = vld [vmem:[#allocation35_spill] sm:$0xff] }
 0x2c8   : > { %v1314_v22 = vsel %vm1311_vm7, %v23473_v8, %v14744_v11  ;;  %v1313_v44 = vsel %vm1311_vm7, %v23474_v2, %v14743_v36  ;;  %v23478_v8 = vunpack.i.l.bf16 %v23477_v38  ;;  %v2245_v2 = vpop.f32.mrb[7].mxu1  ;;  %v23483_v56 = vld [vmem:[#allocation64_spill] sm:$0xff] }
 0x2c9   : > { %23470 = vst [vmem:[#allocation223_spill] sm:$0xff] %v20115_v21  ;;  %2471 = vmatprep.subr.bf16.mxu1 %v20115_v21  ;;  %2433 = vmatmul.mubr.bf16.vlgmr.msra.gmra.mrb[8].mxu0 %v19672_v54  ;;  %v1362_v24 = vsel %vm1311_vm7, %v14743_v36, %v23475_v26  ;;  %v14752_v10 = vpop.permute.xlu0 %14751  ;;  %v20145_v21 = vpack.c.bf16 %v1314_v22, %v1313_v44  ;;  %v23482_v36 = vunpack.i.h.bf16 %v18357_v17  ;;  %v23485_v44 = vld [vmem:[#allocation189_spill] sm:$0xff] }
 0x2ca   : > { %2472 = vmatpush1.bf16.msra.mxu1 %v20118_v7  ;;  %2598 = vmatpush1.bf16.msra.mxu0 %v23476_v20  ;;  %v1363_v46 = vsel %vm1311_vm7, %v14744_v11, %v23478_v8  ;;  %v14757_v18 = vpop.permute.xlu1 %14756  ;;  %v14754_v29 = vunpack.i.h.bf16 %v14752_v10  ;;  %v14753_v7 = vunpack.i.l.bf16 %v14752_v10  ;;  %v23484_v11 = vunpack.i.h.bf16 %v23483_v56  ;;  %v23487_v10 = vld [vmem:[#allocation128_spill] sm:$0xff] }
 0x2cb   : > { %23479 = vst [vmem:[#allocation33_spill] sm:$0xff] %v20145_v21  ;;  %v20147_v32 = vpack.c.bf16 %v1363_v46, %v1362_v24  ;;  %2599 = vmatprep.subr.bf16.mxu0 %v23481_v27  ;;  %v1364_v26 = vsel %vm1311_vm7, %v14748_v33, %v23482_v36  ;;  %12345 = vmatprep.mubr.msk.bf16.mxu0 %vm2113_vm0, %v23384_v53  ;;  %v23486_v20 = vunpack.i.l.bf16 %v23485_v44  ;;  %v23488_v38 = vunpack.i.l.bf16 %v23487_v10  ;;  %v23490_v27 = vld [vmem:[#allocation36_spill] sm:$0xff]  ;;  %v23491_v36 = vld [vmem:[#allocation135_spill] sm:$0xff]  ;;  %v23493_v44 = vld [vmem:[#allocation98_spill] sm:$0xff] }
 0x2cc   : > { %v1315_v22 = vsel %vm1311_vm7, %v23484_v11, %v14748_v33  ;;  %v14758_v8 = vunpack.i.l.bf16 %v14757_v18  ;;  %v14759_v2 = vunpack.i.h.bf16 %v14757_v18  ;;  %v23492_v56 = vunpack.i.h.bf16 %v23491_v36  ;;  %v23495_v18 = vld [vmem:[#allocation37_spill] sm:$0xff] }
 0x2cd   : > { %23480 = vst [vmem:[#allocation34_spill] sm:$0xff] %v20147_v32  ;;  %v1316_v24 = vsel %vm1311_vm7, %v23486_v20, %v14749_v14  ;;  %v1365_v17 = vsel %vm1311_vm7, %v14749_v14, %v23488_v38  ;;  %2473 = vmatprep.subr.bf16.mxu1 %v20147_v32  ;;  %v14762_v33 = vpop.permute.xlu0 %14761  ;;  %v23494_v20 = vunpack.i.l.bf16 %v23493_v44 }
 0x2ce   : > { %v20169_v46 = vpack.c.bf16 %v1365_v17, %v1364_v26  ;;  %2474 = vmatpush1.bf16.msra.mxu1 %v20145_v21  ;;  %2600 = vmatpush1.bf16.msra.mxu0 %v23490_v27  ;;  %v1366_v11 = vsel %vm1311_vm7, %v14753_v7, %v23492_v56  ;;  %v14767_v10 = vpop.permute.xlu1 %14766  ;;  %v14764_v38 = vunpack.i.h.bf16 %v14762_v33  ;;  %v14763_v26 = vunpack.i.l.bf16 %v14762_v33  ;;  %v23497_v27 = vld [vmem:[#allocation194_spill] sm:$0xff]  ;;  %v23498_v21 = vld [vmem:[#allocation69_spill] sm:$0xff] }
 0x2cf   : > { %v1367_v14 = vsel %vm1311_vm7, %v14754_v29, %v23494_v20  ;;  %2601 = vmatprep.subr.bf16.mxu0 %v23495_v18  ;;  %v20183_v17 = vpack.c.bf16 %v1316_v24, %v1315_v22  ;;  %v1318_v36 = vsel %vm1311_vm7, %v23497_v27, %v14754_v29  ;;  %v23499_v56 = vunpack.i.h.bf16 %v23498_v21  ;;  %v23500_v33 = vld [vmem:[#allocation202_spill] sm:$0xff]  ;;  %v23505_v21 = vld [vmem:[#allocation141_spill] sm:$0xff]  ;;  %v23507_v27 = vld [vmem:[#allocation208_spill] sm:$0xff] }
 0x2d0   : > { %23489 = vst [vmem:[#allocation124_spill] sm:$0xff] %v20169_v46  ;;  %2475 = vmatprep.subr.bf16.mxu1 %v20169_v46  ;;  %v14769_v32 = vunpack.i.h.bf16 %v14767_v10  ;;  %v14768_v20 = vunpack.i.l.bf16 %v14767_v10  ;;  %v23501_v5 = vunpack.i.h.bf16 %v23500_v33  ;;  %v23502_v22 = vld [vmem:[#allocation206_spill] sm:$0xff]  ;;  %v20203_v29 = vpack.c.bf16 %v1367_v14, %v1366_v11  ;;  %v23511_v14 = vld [vmem:[#allocation143_spill] sm:$0xff] }
 0x2d1   : > { %23496 = vst [vmem:[#allocation35_spill] sm:$0xff] %v20183_v17  ;;  %v1317_v44 = vsel %vm1311_vm7, %v23499_v56, %v14753_v7  ;;  %v23503_v24 = vunpack.i.l.bf16 %v23502_v22  ;;  %2443 = vmatmul.mubr.bf16.gmra.mrb[12].mxu0 %v23398_v48  ;;  %v23506_v7 = vunpack.i.h.bf16 %v23505_v21  ;;  %v23508_v56 = vunpack.i.h.bf16 %v23507_v27  ;;  %v1479_v11 = vpop.permute.xlu0 %1478  ;;  %v23513_v27 = vld [vmem:[#allocation70_spill] sm:$0xff] }
 0x2d2   : > { %v1483_v18 = vsel %vm1480_vm1, %v23501_v5, %v14763_v26  ;;  %23504 = vst [vmem:[#allocation64_spill] sm:$0xff] %v20203_v29  ;;  %v23509_v5 = vunpack.i.l.bf16 %v19670_v59  ;;  %2476 = vmatpush1.bf16.msra.mxu1 %v20183_v17  ;;  %v23512_v21 = vunpack.i.l.bf16 %v23511_v14  ;;  %v1636_v41 = vpop.permute.xlu1 %1635  ;;  %2629 = vmatprep.mubr.bf16.mxu0 %v20192_v4  ;;  %v23516_v14 = vld [vmem:[#allocation199_spill] sm:$0xff] }
 0x2d3   : > { %v1484_v46 = vsel %vm1480_vm1, %v23503_v24, %v14764_v38  ;;  %v1530_v10 = vsel %vm1480_vm1, %v14758_v8, %v23506_v7  ;;  %v1485_v33 = vsel %vm1480_vm1, %v23508_v56, %v14768_v20  ;;  %v23510_v24 = vld [vmem:[#allocation38_spill] sm:$0xff]  ;;  %2477 = vmatprep.subr.bf16.mxu1 %v20203_v29  ;;  %v20225_v56 = vpack.c.bf16 %v1318_v36, %v1317_v44 }
 0x2d4   : > { %v1486_v22 = vsel %vm1480_vm1, %v23509_v5, %v14769_v32  ;;  %2602 = vmatpush1.bf16.msra.mxu0 %v23510_v24  ;;  %v1531_v7 = vsel %vm1480_vm1, %v14759_v2, %v23512_v21  ;;  %v20227_v59 = vpack.c.bf16 %v1484_v46, %v1483_v18  ;;  %v23514_v5 = vld [vmem:[#allocation77_spill] sm:$0xff]  ;;  %v23517_v13 = vunpack.i.l.bf16 %v23516_v14  ;;  %v23518_v46 = vld [vmem:[#allocation74_spill] sm:$0xff] }
 0x2d5   : > { %2603 = vmatprep.subr.bf16.mxu0 %v23513_v27  ;;  %v23515_v17 = vunpack.i.h.bf16 %v23514_v5  ;;  %v20238_v19 = vpack.c.bf16 %v1531_v7, %v1530_v10  ;;  %v20240_v29 = vpack.c.bf16 %v1486_v22, %v1485_v33  ;;  %v14772_v36 = vpop.permute.xlu0 %14771  ;;  %v23519_v44 = vld [vmem:[#allocation150_spill] sm:$0xff] }
 0x2d6   : > { %v1482_v21 = vsel %vm1480_vm1, %v23517_v13, %v14759_v2  ;;  %2478 = vmatpush1.bf16.msra.mxu1 %v20225_v56  ;;  %v23520_v18 = vunpack.i.h.bf16 %v23519_v44  ;;  %v14777_v13 = vpop.permute.xlu1 %14776  ;;  %v14774_v2 = vunpack.i.h.bf16 %v14772_v36  ;;  %v14773_v10 = vunpack.i.l.bf16 %v14772_v36  ;;  %v23523_v33 = vld [vmem:[#allocation78_spill] sm:$0xff]  ;;  %v23526_v36 = vld [vmem:[#allocation40_spill] sm:$0xff] }
 0x2d7   : > { %v1481_v24 = vsel %vm1480_vm1, %v23515_v17, %v14758_v8  ;;  %v23521_v8 = vld [vmem:[#allocation152_spill] sm:$0xff]  ;;  %2479 = vmatprep.subr.bf16.mxu1 %v20238_v19  ;;  %v14779_v22 = vunpack.i.h.bf16 %v14777_v13  ;;  %v14778_v7 = vunpack.i.l.bf16 %v14777_v13  ;;  %v23525_v44 = vunpack.i.l.bf16 %v19770_v1  ;;  %v23530_v13 = vld [vmem:[#allocation82_spill] sm:$0xff] }
 0x2d8   : > { %2604 = vmatpush1.bf16.msra.mxu0 %v23518_v46  ;;  %v1532_v27 = vsel %vm1480_vm1, %v14763_v26, %v23520_v18  ;;  %v23522_v17 = vunpack.i.l.bf16 %v23521_v8  ;;  %v20254_v14 = vpack.c.bf16 %v1482_v21, %v1481_v24  ;;  %v23524_v46 = vunpack.i.h.bf16 %v19732_v62 }
 0x2d9   : > { %2605 = vmatprep.subr.bf16.mxu0 %v23523_v33  ;;  %v23527_v8 = vunpack.i.l.bf16 %v23526_v36  ;;  %v23528_v24 = vunpack.i.h.bf16 %v19807_v60  ;;  %v23529_v21 = vunpack.i.l.bf16 %v19815_v31  ;;  %v23532_v60 = vld [vmem:[#allocation87_spill] sm:$0xff] }
 0x2da   : > { %v1533_v5 = vsel %vm1480_vm1, %v14764_v38, %v23522_v17  ;;  %v1651_v26 = vsel %vm1649_vm2, %v23524_v46, %v14773_v10  ;;  %v1652_v38 = vsel %vm1649_vm2, %v23525_v44, %v14774_v2  ;;  %2480 = vmatpush1.bf16.msra.mxu1 %v20254_v14 }
 0x2db   : > { %v20264_v18 = vpack.c.bf16 %v1533_v5, %v1532_v27  ;;  %v1534_v17 = vsel %vm1480_vm1, %v14768_v20, %v23527_v8  ;;  %v1653_v62 = vsel %vm1649_vm2, %v23528_v24, %v14778_v7  ;;  %v1654_v1 = vsel %vm1649_vm2, %v23529_v21, %v14779_v22  ;;  %v14787_v20 = vpop.permute.xlu1 %14786  ;;  %v23533_v8 = vld [vmem:[#allocation45_spill] sm:$0xff] }
 0x2dc   : > { %2606 = vmatpush1.bf16.msra.mxu0 %v23530_v13  ;;  %v23531_v27 = vunpack.i.h.bf16 %v23526_v36  ;;  %v20286_v33 = vpack.c.bf16 %v1652_v38, %v1651_v26  ;;  %v14789_v31 = vunpack.i.h.bf16 %v14787_v20  ;;  %v14788_v46 = vunpack.i.l.bf16 %v14787_v20  ;;  %v23535_v13 = vld [vmem:[#allocation47_spill] sm:$0xff] }
 0x2dd   : > { %2481 = vmatprep.subr.bf16.mxu1 %v20264_v18  ;;  %2607 = vmatprep.subr.bf16.mxu0 %v23532_v60  ;;  %v20288_v44 = vpack.c.bf16 %v1654_v1, %v1653_v62  ;;  %v23534_v24 = vunpack.i.l.bf16 %v23533_v8  ;;  %v23537_v60 = vunpack.i.l.bf16 %v19931_v61  ;;  %v23538_v38 = vunpack.i.h.bf16 %v19931_v61  ;;  %v23539_v1 = vld [vmem:[#allocation93_spill] sm:$0xff] }
 0x2de   : > { %v1535_v5 = vsel %vm1480_vm1, %v14769_v32, %v23531_v27  ;;  %v23536_v32 = vunpack.i.l.bf16 %v23535_v13  ;;  %2482 = vmatpush1.bf16.msra.mxu1 %v20227_v59  ;;  %v1487_v61 = vsel %vm1480_vm1, %v19682_v12, %v1479_v11  ;;  %v23542_v13 = vld [vmem:[#allocation101_spill] sm:$0xff] }
 0x2df   : > { %v1536_v21 = vsel %vm1480_vm1, %v1479_v11, %v23534_v24  ;;  %v20294_v36 = vpack.c.bf16 %v1535_v5, %v1534_v17  ;;  %v1819_v26 = vsel %vm1818_vm3, %v23537_v60, %v14788_v46  ;;  %v1820_v62 = vsel %vm1818_vm3, %v23538_v38, %v14789_v31  ;;  %v23540_v17 = vld [vmem:[#allocation99_spill] sm:$0xff]  ;;  %v14782_v11 = vpop.permute.xlu0 %14781 }
 0x2e0   : > { %v1699_v27 = vsel %vm1649_vm2, %v1636_v41, %v23536_v32  ;;  %2608 = vmatpush1.bf16.msra.mxu0 %v23539_v1  ;;  %v23541_v5 = vunpack.i.l.bf16 %v19722_v25  ;;  %v20322_v24 = vpack.c.bf16 %v1820_v62, %v1819_v26  ;;  %v23543_v32 = vld [vmem:[#allocation50_spill] sm:$0xff]  ;;  %v14784_v26 = vunpack.i.h.bf16 %v14782_v11  ;;  %v23549_v1 = vld [vmem:[#allocation55_spill] sm:$0xff] }
 0x2e1   : > { %2502 = vmatprep.subr.bf16.mxu1 %v20294_v36  ;;  %2609 = vmatprep.subr.bf16.mxu0 %v23540_v17  ;;  %v20320_v8 = vpack.c.bf16 %v1699_v27, %v1536_v21  ;;  %v23544_v60 = vunpack.i.h.bf16 %v23543_v32  ;;  %v14783_v62 = vunpack.i.l.bf16 %v14782_v11  ;;  %v23550_v17 = vunpack.i.h.bf16 %v23549_v1  ;;  %v23554_v32 = vld [vmem:[#allocation110_spill] sm:$0xff] }
 0x2e2   : > { %v1650_v20 = vsel %vm1649_vm2, %v23541_v5, %v1636_v41  ;;  %2484 = vmatmul.mubr.bf16.vlgmr.msra.gmra.mrb[16].mxu1 %v19749_v6  ;;  %v23545_v41 = vld [vmem:[#allocation52_spill] sm:$0xff]  ;;  %v23547_v6 = vld [vmem:[#allocation105_spill] sm:$0xff]  ;;  %v23559_v11 = vld [vmem:[#allocation114_spill] sm:$0xff] }
 0x2e3   : > { %2503 = vmatpush1.bf16.msra.mxu1 %v20240_v29  ;;  %v1700_v25 = vsel %vm1649_vm2, %v14773_v10, %v23544_v60  ;;  %v23546_v38 = vunpack.i.l.bf16 %v23545_v41  ;;  %v20336_v21 = vpack.c.bf16 %v1650_v20, %v1487_v61  ;;  %2493 = vmatprep.mubr.bf16.mxu1 %v18761_v23  ;;  %v23548_v10 = vld [vmem:[#allocation107_spill] sm:$0xff]  ;;  %v23551_v5 = vld [vmem:[#allocation57_spill] sm:$0xff]  ;;  %v23555_v60 = vld [vmem:[#allocation60_spill] sm:$0xff] }
 0x2e4   : > { %2610 = vmatpush1.bf16.msra.mxu0 %v23542_v13  ;;  %2504 = vmatprep.subr.bf16.mxu1 %v20320_v8  ;;  %v23552_v13 = vunpack.i.l.bf16 %v23551_v5  ;;  %v23553_v23 = vld [vmem:[#allocation109_spill] sm:$0xff]  ;;  %v23557_v41 = vld [vmem:[#allocation62_spill] sm:$0xff] }
 0x2e5   : > { %v1701_v12 = vsel %vm1649_vm2, %v14774_v2, %v23546_v38  ;;  %2611 = vmatprep.subr.bf16.mxu0 %v23547_v6  ;;  %v1702_v2 = vsel %vm1649_vm2, %v14778_v7, %v23550_v17  ;;  %v23558_v38 = vunpack.i.l.bf16 %v23557_v41  ;;  %v1656_v6 = vsel %vm1649_vm2, %v19887_v58, %v14784_v26 }
 0x2e6   : > { %v20339_v27 = vpack.c.bf16 %v1701_v12, %v1700_v25  ;;  %v1703_v20 = vsel %vm1649_vm2, %v14779_v22, %v23552_v13  ;;  %v23556_v25 = vunpack.i.h.bf16 %v23555_v60  ;;  %v14792_v12 = vpop.permute.xlu0 %14791  ;;  %v23561_v13 = vld [vmem:[#allocation115_spill] sm:$0xff] }
 0x2e7   : > { %2505 = vmatpush1.bf16.msra.mxu1 %v20336_v21  ;;  %v20353_v61 = vpack.c.bf16 %v1703_v20, %v1702_v2  ;;  %v1705_v22 = vsel %vm1649_vm2, %v14784_v26, %v23558_v38  ;;  %v14794_v2 = vunpack.i.h.bf16 %v14792_v12  ;;  %v14793_v5 = vunpack.i.l.bf16 %v14792_v12  ;;  %v23562_v20 = vld [vmem:[#allocation66_spill] sm:$0xff]  ;;  %v14797_v26 = vpop.permute.xlu1 %14796  ;;  %v23566_v38 = vld [vmem:[#allocation121_spill] sm:$0xff] }
 0x2e8   : > { %2612 = vmatpush1.bf16.msra.mxu0 %v23548_v10  ;;  %2506 = vmatprep.subr.bf16.mxu1 %v20339_v27  ;;  %v1704_v7 = vsel %vm1649_vm2, %v14783_v62, %v23556_v25  ;;  %v23560_v10 = vunpack.i.h.bf16 %v19853_v28  ;;  %v23564_v58 = vunpack.i.h.bf16 %v23562_v20  ;;  %v14798_v41 = vunpack.i.l.bf16 %v14797_v26 }
 0x2e9   : > { %2613 = vmatprep.subr.bf16.mxu0 %v23553_v23  ;;  %v20376_v17 = vpack.c.bf16 %v1705_v22, %v1704_v7  ;;  %v23563_v23 = vunpack.i.l.bf16 %v23562_v20  ;;  %v14799_v7 = vunpack.i.h.bf16 %v14797_v26 }
 0x2ea   : > { %2494 = vmatmul.mubr.bf16.gmra.mrb[20].mxu1 %v18810_v35  ;;  %v16273_v35 = vld [vmem:[#allocation4 + $0xc] ss:$16 sps:$4 sm:$0xff]   ;;  %v1655_v1 = vsel %vm1649_vm2, %v23560_v10, %v14783_v62  ;;  %v1869_v28 = vsel %vm1818_vm3, %v14789_v31, %v23564_v58  ;;  %v23565_v62 = vld [vmem:[#allocation120_spill] sm:$0xff] }
 0x2eb   : > { %2507 = vmatpush1.bf16.msra.mxu1 %v20286_v33  ;;  %12347 = vmatprep.mubr.msk.bf16.mxu1 %vm2113_vm0, %v16273_v35  ;;  %v20390_v60 = vpack.c.bf16 %v1656_v6, %v1655_v1  ;;  %v23570_v35 = vld [vmem:[#allocation125_spill] sm:$0xff]  ;;  %v23571_v6 = vunpack.i.l.bf16 %v19988_v16  ;;  %v23572_v1 = vunpack.i.h.bf16 %v19988_v16  ;;  %v1817_v16 = vpop.permute.xlu0 %1816 }
 0x2ec   : > { %2614 = vmatpush1.bf16.msra.mxu0 %v23554_v32  ;;  %2508 = vmatprep.subr.bf16.mxu1 %v20353_v61  ;;  %v1868_v32 = vsel %vm1818_vm3, %v14788_v46, %v23563_v23  ;;  %v23567_v46 = vld [vmem:[#allocation72_spill] sm:$0xff]  ;;  %v23573_v23 = vld [vmem:[#allocation126_spill] sm:$0xff] }
 0x2ed   : > { %2615 = vmatprep.subr.bf16.mxu0 %v23559_v11  ;;  %v20392_v25 = vpack.c.bf16 %v1869_v28, %v1868_v32  ;;  %v23568_v22 = vunpack.i.l.bf16 %v23567_v46  ;;  %v23569_v12 = vunpack.i.h.bf16 %v23567_v46  ;;  %v1821_v10 = vsel %vm1818_vm3, %v23571_v6, %v14793_v5  ;;  %v23574_v32 = vld [vmem:[#allocation80_spill] sm:$0xff]  ;;  %v23581_v6 = vld [vmem:[#allocation85_spill] sm:$0xff] }
 0x2ee   : > { %v23575_v58 = vunpack.i.l.bf16 %v23574_v32  ;;  %v23576_v26 = vunpack.i.h.bf16 %v23574_v32  ;;  %v23586_v32 = vld [vmem:[#allocation146_spill] sm:$0xff] }
 0x2ef   : > { %2509 = vmatpush1.bf16.msra.mxu1 %v20288_v44  ;;  %v1870_v31 = vsel %vm1818_vm3, %v14793_v5, %v23568_v22  ;;  %v1871_v11 = vsel %vm1818_vm3, %v14794_v2, %v23569_v12  ;;  %v23579_v22 = vunpack.i.h.bf16 %v20022_v47 }
 0x2f0   : > { %2616 = vmatpush1.bf16.msra.mxu0 %v23561_v13  ;;  %2510 = vmatprep.subr.bf16.mxu1 %v20376_v17  ;;  %v1822_v13 = vsel %vm1818_vm3, %v23572_v1, %v14794_v2  ;;  %v20414_v20 = vpack.c.bf16 %v1871_v11, %v1870_v31  ;;  %v1872_v28 = vsel %vm1818_vm3, %v14798_v41, %v23575_v58  ;;  %v23577_v2 = vld [vmem:[#allocation131_spill] sm:$0xff]  ;;  %v23580_v11 = vunpack.i.h.bf16 %v20056_v9 }
 0x2f1   : > { %2617 = vmatprep.subr.bf16.mxu0 %v23565_v62  ;;  %v1873_v5 = vsel %vm1818_vm3, %v14799_v7, %v23576_v26  ;;  %v20428_v62 = vpack.c.bf16 %v1822_v13, %v1821_v10  ;;  %v1824_v31 = vsel %vm1818_vm3, %v23579_v22, %v14799_v7  ;;  %v23582_v10 = vunpack.i.l.bf16 %v23581_v6  ;;  %v23587_v26 = vld [vmem:[#allocation148_spill] sm:$0xff] }
 0x2f2   : > { %v20438_v12 = vpack.c.bf16 %v1873_v5, %v1872_v28  ;;  %v16603_v58 = vmov 0  }
 0x2f3   : > { %2511 = vmatpush1.bf16.msra.mxu1 %v20390_v60  ;;  %v1874_v1 = vsel %vm1818_vm3, %v1817_v16, %v23582_v10  ;;  %14800 = vset.pattern.permute.xlu1 %v16603_v58 }
 0x2f4   : > { %2618 = vmatpush1.bf16.msra.mxu0 %v23566_v38  ;;  %2512 = vmatprep.subr.bf16.mxu1 %v20392_v25  ;;  %v23578_v38 = vunpack.i.l.bf16 %v20022_v47  ;;  %v23584_v47 = vld [vmem:[#allocation138_spill] sm:$0xff]  ;;  %v20454_v9 = vpack.c.bf16 %v1874_v1, %v1874_v1 }
 0x2f5   : > { %2619 = vmatprep.subr.bf16.mxu0 %v23570_v35  ;;  %v1825_v35 = vsel %vm1818_vm3, %v23580_v11, %v1817_v16  ;;  %14851 = vset.pattern.permute.xlu0 %v16603_v58  ;;  %v12369_v16 = vld [vmem:[#allocation2] ss:$0 sm:$0xff]  ;;  %v2557_v1 = vld [vmem:[#allocation7 + $0x20] sm:$0xff] }
 0x2f6   : > { %v1823_v46 = vsel %vm1818_vm3, %v23578_v38, %v14798_v41  ;;  %v23583_v41 = vld [vmem:[#allocation133_spill] sm:$0xff]  ;;  %v2073_v13 = vpack.c.bf16 %v1825_v35, %v1825_v35  ;;  %v23589_v38 = vld [vmem:[#allocation90_spill] sm:$0xff]  ;;  %3036 = vperm.xlu1 %14800, %v12369_v16  }
 0x2f7   : > { %2513 = vmatpush1.bf16.msra.mxu1 %v20322_v24  ;;  %v20452_v7 = vpack.c.bf16 %v1824_v31, %v1823_v46  ;;  %v20477_v35 = vld [vmem:[#allocation7] ss:$16 sps:$4 sm:$0xff]  }
 0x2f8   : > { %2620 = vmatpush1.bf16.msra.mxu0 %v23573_v23  ;;  %2514 = vmatprep.subr.bf16.mxu1 %v20414_v20  ;;  %v23585_v23 = vld [vmem:[#allocation140_spill] sm:$0xff]  ;;  %v20464_v28 = vsel %vm2120_vm5, %v2073_v13, 0  ;;  %v23593_v13 = vld [vmem:[#allocation97_spill] sm:$0xff] }
 0x2f9   : > { %2621 = vmatprep.subr.bf16.mxu0 %v23577_v2  ;;  %v23588_v2 = vld [vmem:[#allocation154_spill] sm:$0xff] }
 0x2fb   : > { %2515 = vmatpush1.bf16.msra.mxu1 %v20428_v62 }
 0x2fc   : > { %2622 = vmatpush1.bf16.msra.mxu0 %v23583_v41  ;;  %2516 = vmatprep.subr.bf16.mxu1 %v20438_v12  ;;  %v23590_v41 = vld [vmem:[#allocation158_spill] sm:$0xff] }
 0x2fd   : > { %2623 = vmatprep.subr.bf16.mxu0 %v23584_v47  ;;  %v2179_v5 = vpop.f32.mrb[0].mxu0  ;;  %v23591_v47 = vld [vmem:[#allocation94_spill] sm:$0xff] }
 0x2fe   : > { %v20471_v46 = vadd.f32 %v19861_v51, %v2179_v5  ;;  %v2181_v22 = vpop.f32.mrb[1].mxu0 }
 0x2ff   : > { %2517 = vmatpush1.bf16.msra.mxu1 %v20452_v7  ;;  %v20474_v31 = vadd.f32 %v19880_v43, %v2181_v22  ;;  %v2183_v11 = vpop.f32.mrb[2].mxu0  ;;  %v23592_v43 = vld [vmem:[#allocation44_spill] sm:$0xff] }
 0x300   : > { %2624 = vmatpush1.bf16.msra.mxu0 %v23585_v23  ;;  %12346 = vmatprep.subr.msk.bf16.mxu1 %vm2120_vm5, %v20454_v9  ;;  %v20480_v6 = vadd.f32 %v19893_v45, %v2183_v11  ;;  %v2185_v10 = vpop.f32.mrb[3].mxu0  ;;  %v23594_v45 = vld [vmem:[#allocation46_spill] sm:$0xff]  ;;  %v23595_v23 = vld [vmem:[#allocation100_spill] sm:$0xff]  ;;  %v23598_v11 = vld [vmem:[#allocation51_spill] sm:$0xff] }
 0x301   : > { %2625 = vmatprep.subr.bf16.mxu0 %v23586_v32  ;;  %v20485_v51 = vadd.f32 %v19902_v3, %v2185_v10  ;;  %v23597_v3 = vld [vmem:[#allocation102_spill] sm:$0xff]  ;;  %v23599_v10 = vld [vmem:[#allocation104_spill] sm:$0xff] }
 0x303   : > { %2519 = vmatpush1.bf16.msra.mxu1 %v20464_v28 }
 0x304   : > { %2626 = vmatpush1.bf16.msra.mxu0 %v23587_v26  ;;  %2699 = vmatprep.subr.bf16.mxu1 %v23589_v38  ;;  %v23596_v26 = vld [vmem:[#allocation48_spill] sm:$0xff]  ;;  %v20506_v38 = vcombine.low %v2557_v1, %v2557_v1 }
 0x305   : > { %2627 = vmatprep.subr.bf16.mxu0 %v23588_v2 }
 0x306   : > { %2535 = vmatmul.mubr.bf16.vlgmr.msra.gmra.mrb[16].mxu1 %v19672_v54  ;;  %v20491_v54 = vcombine.high %v2557_v1, %v2557_v1  ;;  %v2189_v32 = vpop.f32.mrb[4].mxu0  ;;  %v23604_v1 = vld [vmem:[#allocation59_spill] sm:$0xff] }
 0x307   : > { %2700 = vmatpush1.bf16.msra.mxu1 %v23591_v47  ;;  %12348 = vmatprep.mubr.msk.bf16.mxu1 %vm2113_vm0, %v23384_v53  ;;  %v2191_v5 = vpop.f32.mrb[5].mxu0  ;;  %v20499_v16 = vadd.f32 %v20122_v50, %v2189_v32  ;;  %v23601_v47 = vld [vmem:[#allocation111_spill] sm:$0xff] }
 0x308   : > { %2628 = vmatpush1.bf16.msra.mxu0 %v23590_v41  ;;  %2701 = vmatprep.subr.bf16.mxu1 %v23593_v13  ;;  %v2193_v53 = vpop.f32.mrb[6].mxu0  ;;  %v20503_v2 = vadd.f32 %v20124_v57, %v2191_v5  ;;  %v23600_v41 = vld [vmem:[#allocation54_spill] sm:$0xff]  ;;  %v20512_v50 = vld [vmem:[#allocation7 + $0xc] ss:$16 sps:$4 sm:$0xff]   ;;  %v23602_v57 = vld [vmem:[#allocation56_spill] sm:$0xff] }
 0x309   : > { %2648 = vmatprep.subr.bf16.mxu0 %v23592_v43  ;;  %v2194_v22 = vpop.f32.mrb[7].mxu0  ;;  %v23605_v43 = vld [vmem:[#allocation117_spill] sm:$0xff]  ;;  %v23609_v32 = vld [vmem:[#allocation123_spill] sm:$0xff] }
 0x30a   : > { %v23606_v13 = vld [vmem:[#allocation61_spill] sm:$0xff]  ;;  %v23612_v5 = vld [vmem:[#allocation67_spill] sm:$0xff]  ;;  %v23614_v22 = vld [vmem:[#allocation68_spill] sm:$0xff] }
 0x30b   : > { %2630 = vmatmul.mubr.bf16.vlgmr.msra.gmra.mrb[16].mxu0 %v20477_v35  ;;  %2702 = vmatpush1.bf16.msra.mxu1 %v23595_v23  ;;  %v23608_v23 = vld [vmem:[#allocation63_spill] sm:$0xff] }
 0x30c   : > { %2649 = vmatpush1.bf16.msra.mxu0 %v23594_v45  ;;  %2703 = vmatprep.subr.bf16.mxu1 %v23597_v3  ;;  %v23607_v45 = vld [vmem:[#allocation116_spill] sm:$0xff]  ;;  %v23611_v3 = vld [vmem:[#allocation122_spill] sm:$0xff]  ;;  %v23613_v53 = vld [vmem:[#allocation127_spill] sm:$0xff] }
 0x30d   : > { %2650 = vmatprep.subr.bf16.mxu0 %v23596_v26  ;;  %2639 = vmatprep.mubr.bf16.mxu0 %v20491_v54  ;;  %v23610_v26 = vld [vmem:[#allocation65_spill] sm:$0xff] }
 0x30e   : > { %2545 = vmatmul.mubr.bf16.gmra.mrb[20].mxu1 %v23398_v48  ;;  %v23603_v48 = vld [vmem:[#allocation112_spill] sm:$0xff] }
 0x30f   : > { %2704 = vmatpush1.bf16.msra.mxu1 %v23599_v10  ;;  %2731 = vmatprep.mubr.bf16.mxu1 %v20192_v4  ;;  %v23616_v10 = vld [vmem:[#allocation73_spill] sm:$0xff] }
 0x310   : > { %2651 = vmatpush1.bf16.msra.mxu0 %v23598_v11  ;;  %2705 = vmatprep.subr.bf16.mxu1 %v23601_v47  ;;  %v23615_v11 = vld [vmem:[#allocation129_spill] sm:$0xff]  ;;  %v23618_v47 = vld [vmem:[#allocation76_spill] sm:$0xff] }
 0x311   : > { %2652 = vmatprep.subr.bf16.mxu0 %v23600_v41  ;;  %v23617_v41 = vld [vmem:[#allocation136_spill] sm:$0xff] }
 0x313   : > { %2640 = vmatmul.mubr.bf16.gmra.mrb[20].mxu0 %v20506_v38  ;;  %2706 = vmatpush1.bf16.msra.mxu1 %v23603_v48  ;;  %v23620_v48 = vld [vmem:[#allocation81_spill] sm:$0xff] }
 0x314   : > { %2653 = vmatpush1.bf16.msra.mxu0 %v23602_v57  ;;  %2707 = vmatprep.subr.bf16.mxu1 %v23605_v43  ;;  %v23619_v57 = vld [vmem:[#allocation134_spill] sm:$0xff]  ;;  %v23622_v43 = vld [vmem:[#allocation84_spill] sm:$0xff] }
 0x315   : > { %2654 = vmatprep.subr.bf16.mxu0 %v23604_v1  ;;  %12358 = vmatprep.mubr.msk.bf16.mxu0 %vm2113_vm0, %v20512_v50  ;;  %v23621_v1 = vld [vmem:[#allocation142_spill] sm:$0xff] }
 0x317   : > { %2708 = vmatpush1.bf16.msra.mxu1 %v23607_v45  ;;  %v23624_v45 = vld [vmem:[#allocation89_spill] sm:$0xff] }
 0x318   : > { %2655 = vmatpush1.bf16.msra.mxu0 %v23606_v13  ;;  %2709 = vmatprep.subr.bf16.mxu1 %v23609_v32  ;;  %v23623_v13 = vld [vmem:[#allocation144_spill] sm:$0xff] }
 0x319   : > { %2656 = vmatprep.subr.bf16.mxu0 %v23608_v23  ;;  %v23625_v23 = vld [vmem:[#allocation151_spill] sm:$0xff]  ;;  %v20543_v32 = vld [vmem:[#allocation7 + $0x8] ss:$16 sps:$4 sm:$0xff]  }
 0x31b   : > { %2710 = vmatpush1.bf16.msra.mxu1 %v23611_v3  ;;  %v23626_v3 = vld [vmem:[#allocation91_spill] sm:$0xff] }
 0x31c   : > { %2657 = vmatpush1.bf16.msra.mxu0 %v23610_v26  ;;  %2711 = vmatprep.subr.bf16.mxu1 %v23613_v53  ;;  %v2558_v26 = vld [vmem:[#allocation7 + $0x28] sm:$0xff]  ;;  %v23628_v53 = vld [vmem:[#allocation160_spill] sm:$0xff] }
 0x31d   : > { %2658 = vmatprep.subr.bf16.mxu0 %v23612_v5  ;;  %v23627_v5 = vld [vmem:[#allocation149_spill] sm:$0xff] }
 0x31f   : > { %2712 = vmatpush1.bf16.msra.mxu1 %v23615_v11  ;;  %v20549_v11 = vcombine.high %v2558_v26, %v2558_v26 }
 0x320   : > { %2659 = vmatpush1.bf16.msra.mxu0 %v23614_v22  ;;  %2713 = vmatprep.subr.bf16.mxu1 %v23617_v41  ;;  %v23629_v22 = vld [vmem:[#allocation156_spill] sm:$0xff]  ;;  %v23631_v41 = vld [vmem:[#allocation159_spill] sm:$0xff] }
 0x321   : > { %2660 = vmatprep.subr.bf16.mxu0 %v23616_v10  ;;  %v23630_v10 = vld [vmem:[#allocation163_spill] sm:$0xff] }
 0x323   : > { %2714 = vmatpush1.bf16.msra.mxu1 %v23619_v57  ;;  %v23633_v57 = vld [vmem:[#allocation161_spill] sm:$0xff] }
 0x324   : > { %2661 = vmatpush1.bf16.msra.mxu0 %v23618_v47  ;;  %2715 = vmatprep.subr.bf16.mxu1 %v23621_v1  ;;  %v23632_v47 = vld [vmem:[#allocation164_spill] sm:$0xff]  ;;  %v23634_v1 = vld [vmem:[#allocation167_spill] sm:$0xff] }
 0x325   : > { %2662 = vmatprep.subr.bf16.mxu0 %v23620_v48  ;;  %v20558_v48 = vcombine.low %v2558_v26, %v2558_v26  ;;  %v23642_v26 = vld [vmem:[#allocation171_spill] sm:$0xff] }
 0x327   : > { %2716 = vmatpush1.bf16.msra.mxu1 %v23623_v13  ;;  %v23636_v13 = vld [vmem:[#allocation168_spill] sm:$0xff] }
 0x328   : > { %2663 = vmatpush1.bf16.msra.mxu0 %v23622_v43  ;;  %2717 = vmatprep.subr.bf16.mxu1 %v23625_v23  ;;  %v23635_v43 = vld [vmem:[#allocation162_spill] sm:$0xff] }
 0x329   : > { %12357 = vmatprep.subr.msk.bf16.mxu0 %vm2120_vm5, %v23624_v45  ;;  %v23637_v45 = vld [vmem:[#allocation165_spill] sm:$0xff]  ;;  %v23638_v23 = vld [vmem:[#allocation170_spill] sm:$0xff] }
 0x32b   : > { %2718 = vmatpush1.bf16.msra.mxu1 %v23627_v5  ;;  %v23640_v5 = vld [vmem:[#allocation172_spill] sm:$0xff] }
 0x32c   : > { %2665 = vmatpush1.bf16.msra.mxu0 %v23626_v3  ;;  %2719 = vmatprep.subr.bf16.mxu1 %v23628_v53  ;;  %v23639_v3 = vld [vmem:[#allocation166_spill] sm:$0xff]  ;;  %v23641_v53 = vld [vmem:[#allocation169_spill] sm:$0xff] }
 0x32d   : > { %2801 = vmatprep.subr.bf16.mxu0 %v23629_v22  ;;  %v23643_v22 = vld [vmem:[#allocation173_spill] sm:$0xff] }
 0x32f   : > { %2681 = vmatmul.mubr.bf16.vlgmr.msra.gmra.mrb[16].mxu0 %v20543_v32  ;;  %2720 = vmatpush1.bf16.msra.mxu1 %v23630_v10  ;;  %v23644_v10 = vld [vmem:[#allocation177_spill] sm:$0xff] }
 0x330   : > { %2802 = vmatpush1.bf16.msra.mxu0 %v23631_v41  ;;  %2721 = vmatprep.subr.bf16.mxu1 %v23632_v47  ;;  %v23645_v41 = vld [vmem:[#allocation175_spill] sm:$0xff]  ;;  %v23646_v47 = vld [vmem:[#allocation176_spill] sm:$0xff] }
 0x331   : > { %2803 = vmatprep.subr.bf16.mxu0 %v23633_v57  ;;  %12359 = vmatprep.mubr.msk.bf16.mxu0 %vm2113_vm0, %v20549_v11  ;;  %v23647_v57 = vld [vmem:[#allocation174_spill] sm:$0xff] }
 0x333   : > { %2722 = vmatpush1.bf16.msra.mxu1 %v23634_v1  ;;  %v23648_v1 = vld [vmem:[#allocation181_spill] sm:$0xff] }
 0x334   : > { %2804 = vmatpush1.bf16.msra.mxu0 %v23635_v43  ;;  %2723 = vmatprep.subr.bf16.mxu1 %v23636_v13  ;;  %v23649_v43 = vld [vmem:[#allocation179_spill] sm:$0xff]  ;;  %v23650_v13 = vld [vmem:[#allocation180_spill] sm:$0xff] }
 0x335   : > { %2805 = vmatprep.subr.bf16.mxu0 %v23637_v45  ;;  %v23651_v45 = vld [vmem:[#allocation178_spill] sm:$0xff] }
 0x337   : > { %2691 = vmatmul.mubr.bf16.gmra.mrb[20].mxu0 %v20558_v48  ;;  %2724 = vmatpush1.bf16.msra.mxu1 %v23638_v23  ;;  %v23652_v23 = vld [vmem:[#allocation41_spill] sm:$0xff] }
 0x338   : > { %2806 = vmatpush1.bf16.msra.mxu0 %v23639_v3  ;;  %2725 = vmatprep.subr.bf16.mxu1 %v23640_v5  ;;  %v23653_v3 = vld [vmem:[#allocation183_spill] sm:$0xff]  ;;  %v23654_v5 = vld [vmem:[#allocation153_spill] sm:$0xff] }
 0x339   : > { %2807 = vmatprep.subr.bf16.mxu0 %v23641_v53  ;;  %2833 = vmatprep.mubr.bf16.mxu0 %v20192_v4  ;;  %v23655_v53 = vld [vmem:[#allocation182_spill] sm:$0xff] }
 0x33b   : > { %2726 = vmatpush1.bf16.msra.mxu1 %v23642_v26  ;;  %v23656_v26 = vld [vmem:[#allocation132_spill] sm:$0xff] }
 0x33c   : > { %2808 = vmatpush1.bf16.msra.mxu0 %v23643_v22  ;;  %2727 = vmatprep.subr.bf16.mxu1 %v23644_v10  ;;  %v23657_v22 = vld [vmem:[#allocation130_spill] sm:$0xff] }
 0x33d   : > { %2809 = vmatprep.subr.bf16.mxu0 %v23645_v41  ;;  %v23658_v10 = vld [vmem:[#allocation42_spill] sm:$0xff]  ;;  %v23659_v41 = vld [vmem:[#allocation155_spill] sm:$0xff] }
 0x33f   : > { %2728 = vmatpush1.bf16.msra.mxu1 %v23646_v47  ;;  %v23660_v47 = vld [vmem:[#allocation49_spill] sm:$0xff] }
 0x340   : > { %2810 = vmatpush1.bf16.msra.mxu0 %v23647_v57  ;;  %2729 = vmatprep.subr.bf16.mxu1 %v23648_v1  ;;  %v23661_v57 = vld [vmem:[#allocation137_spill] sm:$0xff]  ;;  %v23662_v1 = vld [vmem:[#allocation139_spill] sm:$0xff] }
 0x341   : > { %2811 = vmatprep.subr.bf16.mxu0 %v23649_v43  ;;  %v23663_v43 = vld [vmem:[#allocation43_spill] sm:$0xff] }
 0x343   : > { %2730 = vmatpush1.bf16.msra.mxu1 %v23650_v13  ;;  %v23664_v13 = vld [vmem:[#allocation184_spill] sm:$0xff] }
 0x344   : > { %2812 = vmatpush1.bf16.msra.mxu0 %v23651_v45  ;;  %2750 = vmatprep.subr.bf16.mxu1 %v23652_v23  ;;  %v23665_v45 = vld [vmem:[#allocation147_spill] sm:$0xff]  ;;  %v23666_v23 = vld [vmem:[#allocation53_spill] sm:$0xff] }
 0x345   : > { %2813 = vmatprep.subr.bf16.mxu0 %v23653_v3  ;;  %v23667_v3 = vld [vmem:[#allocation145_spill] sm:$0xff] }
 0x346   : > { %2732 = vmatmul.mubr.bf16.vlgmr.msra.gmra.mrb[24].mxu1 %v20477_v35 }
 0x347   : > { %2751 = vmatpush1.bf16.msra.mxu1 %v23654_v5  ;;  %2741 = vmatprep.mubr.bf16.mxu1 %v20491_v54  ;;  %v23668_v5 = vld [vmem:[#allocation186_spill] sm:$0xff] }
 0x348   : > { %2814 = vmatpush1.bf16.msra.mxu0 %v23655_v53  ;;  %2752 = vmatprep.subr.bf16.mxu1 %v23656_v26  ;;  %v23669_v53 = vld [vmem:[#allocation185_spill] sm:$0xff]  ;;  %v23670_v26 = vld [vmem:[#allocation58_spill] sm:$0xff] }
 0x349   : > { %2815 = vmatprep.subr.bf16.mxu0 %v23657_v22  ;;  %v23671_v22 = vld [vmem:[#allocation157_spill] sm:$0xff] }
 0x34b   : > { %2753 = vmatpush1.bf16.msra.mxu1 %v23658_v10  ;;  %v23672_v10 = vld [vmem:[#allocation190_spill] sm:$0xff] }
 0x34c   : > { %2816 = vmatpush1.bf16.msra.mxu0 %v23659_v41  ;;  %2754 = vmatprep.subr.bf16.mxu1 %v23660_v47  ;;  %v23673_v41 = vld [vmem:[#allocation187_spill] sm:$0xff]  ;;  %v23674_v47 = vld [vmem:[#allocation188_spill] sm:$0xff] }
 0x34d   : > { %2817 = vmatprep.subr.bf16.mxu0 %v23661_v57  ;;  %v23675_v57 = vld [vmem:[#allocation86_spill] sm:$0xff] }
 0x34e   : > { %2742 = vmatmul.mubr.bf16.gmra.mrb[28].mxu1 %v20506_v38 }
 0x34f   : > { %2755 = vmatpush1.bf16.msra.mxu1 %v23662_v1  ;;  %12361 = vmatprep.mubr.msk.bf16.mxu1 %vm2113_vm0, %v20512_v50  ;;  %v23676_v1 = vld [vmem:[#allocation195_spill] sm:$0xff] }
 0x350   : > { %2818 = vmatpush1.bf16.msra.mxu0 %v23663_v43  ;;  %2756 = vmatprep.subr.bf16.mxu1 %v23664_v13  ;;  %v23677_v43 = vld [vmem:[#allocation192_spill] sm:$0xff]  ;;  %v23678_v13 = vld [vmem:[#allocation193_spill] sm:$0xff] }
 0x351   : > { %2819 = vmatprep.subr.bf16.mxu0 %v23665_v45  ;;  %v23679_v45 = vld [vmem:[#allocation191_spill] sm:$0xff] }
 0x353   : > { %2757 = vmatpush1.bf16.msra.mxu1 %v23666_v23  ;;  %v23680_v23 = vld [vmem:[#allocation200_spill] sm:$0xff] }
 0x354   : > { %2820 = vmatpush1.bf16.msra.mxu0 %v23667_v3  ;;  %2758 = vmatprep.subr.bf16.mxu1 %v23668_v5  ;;  %v23681_v3 = vld [vmem:[#allocation196_spill] sm:$0xff]  ;;  %v23682_v5 = vld [vmem:[#allocation198_spill] sm:$0xff] }
 0x355   : > { %2821 = vmatprep.subr.bf16.mxu0 %v23669_v53  ;;  %v23683_v53 = vld [vmem:[#allocation197_spill] sm:$0xff] }
 0x357   : > { %2759 = vmatpush1.bf16.msra.mxu1 %v23670_v26  ;;  %v23684_v26 = vld [vmem:[#allocation204_spill] sm:$0xff] }
 0x358   : > { %2822 = vmatpush1.bf16.msra.mxu0 %v23671_v22  ;;  %2760 = vmatprep.subr.bf16.mxu1 %v23672_v10  ;;  %v23685_v22 = vld [vmem:[#allocation203_spill] sm:$0xff] }
 0x359   : > { %2823 = vmatprep.subr.bf16.mxu0 %v23673_v41  ;;  %v23686_v10 = vld [vmem:[#allocation207_spill] sm:$0xff]  ;;  %v23687_v41 = vld [vmem:[#allocation201_spill] sm:$0xff] }
 0x35b   : > { %2761 = vmatpush1.bf16.msra.mxu1 %v23674_v47  ;;  %v23688_v47 = vld [vmem:[#allocation211_spill] sm:$0xff] }
 0x35c   : > { %2824 = vmatpush1.bf16.msra.mxu0 %v23675_v57  ;;  %2762 = vmatprep.subr.bf16.mxu1 %v23676_v1  ;;  %v23689_v57 = vld [vmem:[#allocation205_spill] sm:$0xff] }
 0x35d   : > { %2825 = vmatprep.subr.bf16.mxu0 %v23677_v43  ;;  %v23690_v43 = vld [vmem:[#allocation213_spill] sm:$0xff] }
 0x35f   : > { %2763 = vmatpush1.bf16.msra.mxu1 %v23678_v13  ;;  %v23691_v13 = vld [vmem:[#allocation209_spill] sm:$0xff] }
 0x360   : > { %2826 = vmatpush1.bf16.msra.mxu0 %v23679_v45  ;;  %2764 = vmatprep.subr.bf16.mxu1 %v23680_v23 }
 0x361   : > { %2827 = vmatprep.subr.bf16.mxu0 %v23681_v3  ;;  %v23692_v3 = vld [vmem:[#allocation210_spill] sm:$0xff] }
 0x363   : > { %2765 = vmatpush1.bf16.msra.mxu1 %v23682_v5 }
 0x364   : > { %2828 = vmatpush1.bf16.msra.mxu0 %v23683_v53  ;;  %12360 = vmatprep.subr.msk.bf16.mxu1 %vm2120_vm5, %v23684_v26  ;;  %v20625_v1 = vpop.f32.mrb[8].mxu1  ;;  %v23693_v53 = vld [vmem:[#allocation212_spill] sm:$0xff]  ;;  %v23694_v26 = vld [vmem:[#allocation95_spill] sm:$0xff] }
 0x365   : > { %2829 = vmatprep.subr.bf16.mxu0 %v23685_v22  ;;  %v20629_v45 = vpop.f32.mrb[9].mxu1  ;;  %v23695_v22 = vld [vmem:[#allocation214_spill] sm:$0xff] }
 0x366   : > { %v20632_v23 = vpop.f32.mrb[10].mxu1 }
 0x367   : > { %2767 = vmatpush1.bf16.msra.mxu1 %v23686_v10  ;;  %v20635_v5 = vpop.f32.mrb[11].mxu1 }
 0x368   : > { %2830 = vmatpush1.bf16.msra.mxu0 %v23687_v41  ;;  %2903 = vmatprep.subr.bf16.mxu1 %v23689_v57  ;;  %v23700_v57 = vld [vmem:[#allocation75_spill] sm:$0xff] }
 0x369   : > { %2831 = vmatprep.subr.bf16.mxu0 %v23688_v47  ;;  %v23697_v47 = vld [vmem:[#allocation215_spill] sm:$0xff] }
 0x36a   : > { %2783 = vmatmul.mubr.bf16.vlgmr.msra.gmra.mrb[24].mxu1 %v20543_v32 }
 0x36b   : > { %2904 = vmatpush1.bf16.msra.mxu1 %v23691_v13  ;;  %12362 = vmatprep.mubr.msk.bf16.mxu1 %vm2113_vm0, %v20549_v11  ;;  %v23705_v13 = vld [vmem:[#allocation96_spill] sm:$0xff] }
 0x36c   : > { %2832 = vmatpush1.bf16.msra.mxu0 %v23690_v43  ;;  %2905 = vmatprep.subr.bf16.mxu1 %v23692_v3  ;;  %v23701_v43 = vld [vmem:[#allocation216_spill] sm:$0xff]  ;;  %v23706_v3 = vld [vmem:[#allocation103_spill] sm:$0xff] }
 0x36d   : > { %2852 = vmatprep.subr.bf16.mxu0 %v19724_v49  ;;  %v20646_v49 = vpop.f32.mrb[12].mxu1 }
 0x36e   : > { %v20650_v10 = vpop.f32.mrb[13].mxu1 }
 0x36f   : > { %2834 = vmatmul.mubr.bf16.vlgmr.msra.gmra.mrb[24].mxu0 %v20477_v35  ;;  %2906 = vmatpush1.bf16.msra.mxu1 %v23693_v53  ;;  %v2346_v41 = vpop.f32.mrb[14].mxu1  ;;  %v23707_v53 = vld [vmem:[#allocation218_spill] sm:$0xff] }
 0x370   : > { %2853 = vmatpush1.bf16.msra.mxu0 %v19737_v52  ;;  %2907 = vmatprep.subr.bf16.mxu1 %v23694_v26  ;;  %v23696_v52 = vld [vmem:[#allocation71_spill] sm:$0xff]  ;;  %v23708_v26 = vld [vmem:[#allocation217_spill] sm:$0xff]  ;;  %v23713_v41 = vld [vmem:[#allocation118_spill] sm:$0xff] }
 0x371   : > { %2854 = vmatprep.subr.bf16.mxu0 %v19773_v55  ;;  %2843 = vmatprep.mubr.bf16.mxu0 %v20491_v54  ;;  %v2347_v55 = vpop.f32.mrb[15].mxu1 }
 0x372   : > { %2793 = vmatmul.mubr.bf16.gmra.mrb[28].mxu1 %v20558_v48  ;;  %v23715_v55 = vld [vmem:[#allocation119_spill] sm:$0xff] }
 0x373   : > { %2908 = vmatpush1.bf16.msra.mxu1 %v23695_v22  ;;  %2935 = vmatprep.mubr.bf16.mxu1 %v20192_v4  ;;  %v23702_v4 = vld [vmem:[#allocation83_spill] sm:$0xff]  ;;  %v23709_v22 = vld [vmem:[#allocation221_spill] sm:$0xff] }
 0x374   : > { %2855 = vmatpush1.bf16.msra.mxu0 %v19730_v37  ;;  %2909 = vmatprep.subr.bf16.mxu1 %v23696_v52  ;;  %v23698_v37 = vld [vmem:[#allocation106_spill] sm:$0xff]  ;;  %v23711_v52 = vld [vmem:[#allocation220_spill] sm:$0xff] }
 0x375   : > { %2856 = vmatprep.subr.bf16.mxu0 %v19809_v40  ;;  %v23699_v40 = vld [vmem:[#allocation79_spill] sm:$0xff] }
 0x377   : > { %2844 = vmatmul.mubr.bf16.gmra.mrb[28].mxu0 %v20506_v38  ;;  %2910 = vmatpush1.bf16.msra.mxu1 %v19789_v42  ;;  %v23704_v42 = vld [vmem:[#allocation92_spill] sm:$0xff] }
 0x378   : > { %2857 = vmatpush1.bf16.msra.mxu0 %v19781_v63  ;;  %2911 = vmatprep.subr.bf16.mxu1 %v23698_v37  ;;  %v23703_v63 = vld [vmem:[#allocation88_spill] sm:$0xff]  ;;  %v23717_v37 = vld [vmem:[#allocation223_spill] sm:$0xff] }
 0x379   : > { %2858 = vmatprep.subr.bf16.mxu0 %v23697_v47  ;;  %12364 = vmatprep.mubr.msk.bf16.mxu0 %vm2113_vm0, %v20512_v50  ;;  %v23716_v47 = vld [vmem:[#allocation222_spill] sm:$0xff] }
 0x37b   : > { %2912 = vmatpush1.bf16.msra.mxu1 %v23700_v57  ;;  %v15080_v57 = vld [vmem:[#allocation9 + $0x24] ss:$16 sps:$4 sm:$0xff]  }
 0x37c   : > { %2859 = vmatpush1.bf16.msra.mxu0 %v23699_v40  ;;  %2913 = vmatprep.subr.bf16.mxu1 %v23702_v4  ;;  %v15072_v40 = vld [vmem:[#allocation9] ss:$16 sps:$4 sm:$0xff]   ;;  %v23719_v4 = vld [vmem:[#allocation34_spill] sm:$0xff] }
 0x37d   : > { %2860 = vmatprep.subr.bf16.mxu0 %v23701_v43  ;;  %v23718_v43 = vld [vmem:[#allocation224_spill] sm:$0xff] }
 0x37f   : > { %2914 = vmatpush1.bf16.msra.mxu1 %v23703_v63  ;;  %v15078_v63 = vld [vmem:[#allocation9 + $0x20] ss:$16 sps:$4 sm:$0xff]  }
 0x380   : > { %2861 = vmatpush1.bf16.msra.mxu0 %v19912_v0  ;;  %2915 = vmatprep.subr.bf16.mxu1 %v23704_v42  ;;  %v23710_v0 = vld [vmem:[#allocation219_spill] sm:$0xff]  ;;  %v15086_v42 = vld [vmem:[#allocation9 + $0x44] ss:$16 sps:$4 sm:$0xff]  }
 0x381   : > { %2862 = vmatprep.subr.bf16.mxu0 %v19960_v30  ;;  %v23712_v30 = vld [vmem:[#allocation108_spill] sm:$0xff] }
 0x383   : > { %2916 = vmatpush1.bf16.msra.mxu1 %v23705_v13  ;;  %v23720_v13 = vld [vmem:[#allocation33_spill] sm:$0xff] }
 0x384   : > { %2863 = vmatpush1.bf16.msra.mxu0 %v19958_v34  ;;  %2917 = vmatprep.subr.bf16.mxu1 %v23706_v3  ;;  %v23714_v34 = vld [vmem:[#allocation113_spill] sm:$0xff]  ;;  %v23721_v3 = vld [vmem:[#allocation124_spill] sm:$0xff] }
 0x385   : > { %2864 = vmatprep.subr.bf16.mxu0 %v20016_v39  ;;  %v15074_v39 = vld [vmem:[#allocation9 + $0x4] ss:$16 sps:$4 sm:$0xff]  }
 0x387   : > { %2918 = vmatpush1.bf16.msra.mxu1 %v23708_v26  ;;  %v15092_v26 = vld [vmem:[#allocation9 + $0x64] ss:$16 sps:$4 sm:$0xff]  }
 0x388   : > { %2865 = vmatpush1.bf16.msra.mxu0 %v23707_v53  ;;  %2919 = vmatprep.subr.bf16.mxu1 %v23710_v0  ;;  %v15084_v53 = vld [vmem:[#allocation9 + $0x40] ss:$16 sps:$4 sm:$0xff]   ;;  %v23723_v0 = vld [vmem:[#allocation64_spill] sm:$0xff] }
 0x389   : > { %2866 = vmatprep.subr.bf16.mxu0 %v23709_v22  ;;  %v23722_v22 = vld [vmem:[#allocation35_spill] sm:$0xff] }
 0x38b   : > { %2920 = vmatpush1.bf16.msra.mxu1 %v23712_v30 }
 0x38c   : > { %2867 = vmatpush1.bf16.msra.mxu0 %v23711_v52  ;;  %2921 = vmatprep.subr.bf16.mxu1 %v23714_v34  ;;  %v15090_v52 = vld [vmem:[#allocation9 + $0x60] ss:$16 sps:$4 sm:$0xff]  }
 0x38d   : > { %12363 = vmatprep.subr.msk.bf16.mxu0 %vm2120_vm5, %v23713_v41  ;;  %v15098_v41 = vld [vmem:[#allocation9 + $0x84] ss:$16 sps:$4 sm:$0xff]  }
 0x38f   : > { %2922 = vmatpush1.bf16.msra.mxu1 %v23716_v47  ;;  %v15096_v47 = vld [vmem:[#allocation9 + $0x80] ss:$16 sps:$4 sm:$0xff]  }
 0x390   : > { %2869 = vmatpush1.bf16.msra.mxu0 %v23715_v55  ;;  %2923 = vmatprep.subr.bf16.mxu1 %v23717_v37  ;;  %v15104_v37 = vld [vmem:[#allocation9 + $0xa4] ss:$16 sps:$4 sm:$0xff]  }
 0x391   : > { %4639 = vmatprep.subr.bf16.mxu0 %v15074_v39 }
 0x393   : > { %2885 = vmatmul.mubr.bf16.vlgmr.msra.gmra.mrb[24].mxu0 %v20543_v32  ;;  %2924 = vmatpush1.bf16.msra.mxu1 %v23718_v43  ;;  %v15110_v43 = vld [vmem:[#allocation9 + $0xc4] ss:$16 sps:$4 sm:$0xff]  }
 0x394   : > { %12365 = vmatprep.mubr.msk.bf16.mxu0 %vm2113_vm0, %v20549_v11  ;;  %2925 = vmatprep.subr.bf16.mxu1 %v23719_v4 }
 0x395   : > { %4640 = vmatpush1.bf16.msra.mxu0 %v15072_v40  ;;  %v15102_v40 = vld [vmem:[#allocation9 + $0xa0] ss:$16 sps:$4 sm:$0xff]  }
 0x396   : > { %4641 = vmatprep.subr.bf16.mxu0 %v15080_v57 }
 0x397   : > { %2926 = vmatpush1.bf16.msra.mxu1 %v23720_v13  ;;  %v15093_v13 = vld [vmem:[#allocation9 + $0x68] ss:$16 sps:$4 sm:$0xff]  }
 0x398   : > { %2927 = vmatprep.subr.bf16.mxu1 %v23721_v3  ;;  %v15101_v3 = vld [vmem:[#allocation9 + $0x8c] ss:$16 sps:$4 sm:$0xff]  }
 0x399   : > { %4642 = vmatpush1.bf16.msra.mxu0 %v15078_v63  ;;  %v15108_v63 = vld [vmem:[#allocation9 + $0xc0] ss:$16 sps:$4 sm:$0xff]  }
 0x39a   : > { %4643 = vmatprep.subr.bf16.mxu0 %v15086_v42  ;;  %v15122_v42 = vld [vmem:[#allocation9 + $0x104] ss:$16 sps:$4 sm:$0xff]  }
 0x39b   : > { %2895 = vmatmul.mubr.bf16.gmra.mrb[28].mxu0 %v20558_v48  ;;  %2928 = vmatpush1.bf16.msra.mxu1 %v23722_v22 }
 0x39c   : > { %2929 = vmatprep.subr.bf16.mxu1 %v23723_v0  ;;  %v20696_v30 = vpop.f32.mrb[8].mxu0  ;;  %v15107_v0 = vld [vmem:[#allocation9 + $0xac] ss:$16 sps:$4 sm:$0xff]  }
 0x39d   : > { %4644 = vmatpush1.bf16.msra.mxu0 %v15084_v53  ;;  %v20698_v34 = vpop.f32.mrb[9].mxu0 }
 0x39e   : > { %4645 = vmatprep.subr.bf16.mxu0 %v15092_v26  ;;  %v20700_v39 = vpop.f32.mrb[10].mxu0 }
 0x39f   : > { %2930 = vmatpush1.bf16.msra.mxu1 %v20225_v56  ;;  %v20703_v55 = vpop.f32.mrb[11].mxu0 }
 0x3a0   : > { %2931 = vmatprep.subr.bf16.mxu1 %v20238_v19 }
 0x3a1   : > { %4646 = vmatpush1.bf16.msra.mxu0 %v15090_v52  ;;  %v15105_v52 = vld [vmem:[#allocation9 + $0xa8] ss:$16 sps:$4 sm:$0xff]  }
 0x3a2   : > { %4647 = vmatprep.subr.bf16.mxu0 %v15098_v41 }
 0x3a3   : > { %2932 = vmatpush1.bf16.msra.mxu1 %v20254_v14  ;;  %v15116_v14 = vld [vmem:[#allocation9 + $0xe4] ss:$16 sps:$4 sm:$0xff]  }
 0x3a4   : > { %2933 = vmatprep.subr.bf16.mxu1 %v20264_v18  ;;  %v20708_v57 = vpop.f32.mrb[12].mxu0  ;;  %v15114_v18 = vld [vmem:[#allocation9 + $0xe0] ss:$16 sps:$4 sm:$0xff]  }
 0x3a5   : > { %4648 = vmatpush1.bf16.msra.mxu0 %v15096_v47  ;;  %v20710_v4 = vpop.f32.mrb[13].mxu0 }
 0x3a6   : > { %4649 = vmatprep.subr.bf16.mxu0 %v15104_v37  ;;  %v2448_v56 = vpop.f32.mrb[14].mxu0 }
 0x3a7   : > { %2934 = vmatpush1.bf16.msra.mxu1 %v20227_v59  ;;  %v2449_v19 = vpop.f32.mrb[15].mxu0  ;;  %v15120_v59 = vld [vmem:[#allocation9 + $0x100] ss:$16 sps:$4 sm:$0xff]   ;;  %v15119_v56 = vld [vmem:[#allocation9 + $0xec] ss:$16 sps:$4 sm:$0xff]  }
 0x3a8   : > { %2954 = vmatprep.subr.bf16.mxu1 %v20294_v36  ;;  %v15128_v36 = vld [vmem:[#allocation9 + $0x124] ss:$16 sps:$4 sm:$0xff]   ;;  %v15117_v19 = vld [vmem:[#allocation9 + $0xe8] ss:$16 sps:$4 sm:$0xff]  }
 0x3a9   : > { %4650 = vmatpush1.bf16.msra.mxu0 %v15102_v40  ;;  %v15111_v40 = vld [vmem:[#allocation9 + $0xc8] ss:$16 sps:$4 sm:$0xff]  }
 0x3aa   : > { %4651 = vmatprep.subr.bf16.mxu0 %v15110_v43  ;;  %2936 = vmatmul.mubr.bf16.vlgmr.msra.gmra.mrb[32].mxu1 %v20477_v35  ;;  %v15164_v35 = vld [vmem:[#allocation9 + $0x1e4] ss:$16 sps:$4 sm:$0xff]  }
 0x3ab   : > { %2955 = vmatpush1.bf16.msra.mxu1 %v20240_v29  ;;  %2945 = vmatprep.mubr.bf16.mxu1 %v20491_v54  ;;  %v15126_v29 = vld [vmem:[#allocation9 + $0x120] ss:$16 sps:$4 sm:$0xff]   ;;  %v15075_v54 = vld [vmem:[#allocation9 + $0x8] ss:$16 sps:$4 sm:$0xff]  }
 0x3ac   : > { %2956 = vmatprep.subr.bf16.mxu1 %v20320_v8  ;;  %v15134_v8 = vld [vmem:[#allocation9 + $0x144] ss:$16 sps:$4 sm:$0xff]  }
 0x3ad   : > { %4652 = vmatpush1.bf16.msra.mxu0 %v15108_v63  ;;  %v15125_v63 = vld [vmem:[#allocation9 + $0x10c] ss:$16 sps:$4 sm:$0xff]  }
 0x3ae   : > { %4653 = vmatprep.subr.bf16.mxu0 %v15116_v14  ;;  %v15123_v14 = vld [vmem:[#allocation9 + $0x108] ss:$16 sps:$4 sm:$0xff]  }
 0x3af   : > { %2957 = vmatpush1.bf16.msra.mxu1 %v20336_v21  ;;  %v15132_v21 = vld [vmem:[#allocation9 + $0x140] ss:$16 sps:$4 sm:$0xff]  }
 0x3b0   : > { %2958 = vmatprep.subr.bf16.mxu1 %v20339_v27  ;;  %v15140_v27 = vld [vmem:[#allocation9 + $0x164] ss:$16 sps:$4 sm:$0xff]  }
 0x3b1   : > { %4654 = vmatpush1.bf16.msra.mxu0 %v15114_v18  ;;  %v15131_v18 = vld [vmem:[#allocation9 + $0x12c] ss:$16 sps:$4 sm:$0xff]  }
 0x3b2   : > { %4655 = vmatprep.subr.bf16.mxu0 %v15122_v42  ;;  %2946 = vmatmul.mubr.bf16.gmra.mrb[36].mxu1 %v20506_v38  ;;  %v15170_v38 = vld [vmem:[#allocation9 + $0x204] ss:$16 sps:$4 sm:$0xff]   ;;  %v15129_v42 = vld [vmem:[#allocation9 + $0x128] ss:$16 sps:$4 sm:$0xff]  }
 0x3b3   : > { %2959 = vmatpush1.bf16.msra.mxu1 %v20286_v33  ;;  %12367 = vmatprep.mubr.msk.bf16.mxu1 %vm2113_vm0, %v20512_v50  ;;  %v15138_v33 = vld [vmem:[#allocation9 + $0x160] ss:$16 sps:$4 sm:$0xff]   ;;  %v15095_v50 = vld [vmem:[#allocation9 + $0x6c] ss:$16 sps:$4 sm:$0xff]  }
 0x3b4   : > { %2960 = vmatprep.subr.bf16.mxu1 %v20353_v61  ;;  %v15146_v61 = vld [vmem:[#allocation9 + $0x184] ss:$16 sps:$4 sm:$0xff]  }
 0x3b5   : > { %4656 = vmatpush1.bf16.msra.mxu0 %v15120_v59  ;;  %v15137_v59 = vld [vmem:[#allocation9 + $0x14c] ss:$16 sps:$4 sm:$0xff]  }
 0x3b6   : > { %4657 = vmatprep.subr.bf16.mxu0 %v15128_v36  ;;  %v15135_v36 = vld [vmem:[#allocation9 + $0x148] ss:$16 sps:$4 sm:$0xff]  }
 0x3b7   : > { %2961 = vmatpush1.bf16.msra.mxu1 %v20288_v44  ;;  %v15144_v44 = vld [vmem:[#allocation9 + $0x180] ss:$16 sps:$4 sm:$0xff]  }
 0x3b8   : > { %2962 = vmatprep.subr.bf16.mxu1 %v20376_v17  ;;  %v15152_v17 = vld [vmem:[#allocation9 + $0x1a4] ss:$16 sps:$4 sm:$0xff]  }
 0x3b9   : > { %4658 = vmatpush1.bf16.msra.mxu0 %v15126_v29  ;;  %v15143_v29 = vld [vmem:[#allocation9 + $0x16c] ss:$16 sps:$4 sm:$0xff]  }
 0x3ba   : > { %4659 = vmatprep.subr.bf16.mxu0 %v15134_v8  ;;  %v15141_v8 = vld [vmem:[#allocation9 + $0x168] ss:$16 sps:$4 sm:$0xff]  }
 0x3bb   : > { %2963 = vmatpush1.bf16.msra.mxu1 %v20390_v60  ;;  %v15150_v60 = vld [vmem:[#allocation9 + $0x1a0] ss:$16 sps:$4 sm:$0xff]  }
 0x3bc   : > { %2964 = vmatprep.subr.bf16.mxu1 %v20392_v25  ;;  %v15158_v25 = vld [vmem:[#allocation9 + $0x1c4] ss:$16 sps:$4 sm:$0xff]  }
 0x3bd   : > { %4660 = vmatpush1.bf16.msra.mxu0 %v15132_v21  ;;  %v15149_v21 = vld [vmem:[#allocation9 + $0x18c] ss:$16 sps:$4 sm:$0xff]  }
 0x3be   : > { %4661 = vmatprep.subr.bf16.mxu0 %v15140_v27  ;;  %v15147_v27 = vld [vmem:[#allocation9 + $0x188] ss:$16 sps:$4 sm:$0xff]  }
 0x3bf   : > { %2965 = vmatpush1.bf16.msra.mxu1 %v20322_v24  ;;  %v15077_v24 = vld [vmem:[#allocation9 + $0xc] ss:$16 sps:$4 sm:$0xff]  }
 0x3c0   : > { %2966 = vmatprep.subr.bf16.mxu1 %v20414_v20  ;;  %v15156_v20 = vld [vmem:[#allocation9 + $0x1c0] ss:$16 sps:$4 sm:$0xff]  }
 0x3c1   : > { %4662 = vmatpush1.bf16.msra.mxu0 %v15138_v33  ;;  %v15155_v33 = vld [vmem:[#allocation9 + $0x1ac] ss:$16 sps:$4 sm:$0xff]  }
 0x3c2   : > { %4663 = vmatprep.subr.bf16.mxu0 %v15146_v61  ;;  %v15153_v61 = vld [vmem:[#allocation9 + $0x1a8] ss:$16 sps:$4 sm:$0xff]  }
 0x3c3   : > { %2967 = vmatpush1.bf16.msra.mxu1 %v20428_v62  ;;  %v15083_v62 = vld [vmem:[#allocation9 + $0x2c] ss:$16 sps:$4 sm:$0xff]  }
 0x3c4   : > { %2968 = vmatprep.subr.bf16.mxu1 %v20438_v12  ;;  %v15162_v12 = vld [vmem:[#allocation9 + $0x1e0] ss:$16 sps:$4 sm:$0xff]  }
 0x3c5   : > { %4664 = vmatpush1.bf16.msra.mxu0 %v15144_v44  ;;  %v15161_v44 = vld [vmem:[#allocation9 + $0x1cc] ss:$16 sps:$4 sm:$0xff]  }
 0x3c6   : > { %4665 = vmatprep.subr.bf16.mxu0 %v15152_v17 }
 0x3c7   : > { %2969 = vmatpush1.bf16.msra.mxu1 %v20452_v7  ;;  %v15081_v7 = vld [vmem:[#allocation9 + $0x28] ss:$16 sps:$4 sm:$0xff]  }
 0x3c8   : > { %12366 = vmatprep.subr.msk.bf16.mxu1 %vm2120_vm5, %v20454_v9  ;;  %v15089_v9 = vld [vmem:[#allocation9 + $0x4c] ss:$16 sps:$4 sm:$0xff]  }
 0x3c9   : > { %4666 = vmatpush1.bf16.msra.mxu0 %v15150_v60  ;;  %v20753_v60 = vpop.permute.xlu1 %3036 }
 0x3ca   : > { %4667 = vmatprep.subr.bf16.mxu0 %v15158_v25 }
 0x3cb   : > { %2971 = vmatpush1.bf16.msra.mxu1 %v20464_v28  ;;  %v15087_v28 = vld [vmem:[#allocation9 + $0x48] ss:$16 sps:$4 sm:$0xff]  }
 0x3cc   : > { %4843 = vmatprep.subr.bf16.mxu1 %v15077_v24 }
 0x3cd   : > { %4668 = vmatpush1.bf16.msra.mxu0 %v15156_v20 }
 0x3ce   : > { %4669 = vmatprep.subr.bf16.mxu0 %v15164_v35  ;;  %2987 = vmatmul.mubr.bf16.vlgmr.msra.gmra.mrb[32].mxu1 %v20543_v32 }
 0x3cf   : > { %4844 = vmatpush1.bf16.msra.mxu1 %v15075_v54  ;;  %12368 = vmatprep.mubr.msk.bf16.mxu1 %vm2113_vm0, %v20549_v11  ;;  %v15099_v11 = vld [vmem:[#allocation9 + $0x88] ss:$16 sps:$4 sm:$0xff]  }
 0x3d0   : > { %4845 = vmatprep.subr.bf16.mxu1 %v15083_v62  ;;  %v15159_v54 = vld [vmem:[#allocation9 + $0x1c8] ss:$16 sps:$4 sm:$0xff]  }
 0x3d1   : > { %4670 = vmatpush1.bf16.msra.mxu0 %v15162_v12 }
 0x3d2   : > { %4690 = vmatprep.subr.bf16.mxu0 %v15170_v38 }
 0x3d3   : > { %4846 = vmatpush1.bf16.msra.mxu1 %v15081_v7  ;;  %v15167_v7 = vld [vmem:[#allocation9 + $0x1ec] ss:$16 sps:$4 sm:$0xff]  }
 0x3d4   : > { %4847 = vmatprep.subr.bf16.mxu1 %v15089_v9 }
 0x3d6   : > { %2997 = vmatmul.mubr.bf16.gmra.mrb[36].mxu1 %v20558_v48  ;;  %v15113_v48 = vld [vmem:[#allocation9 + $0xcc] ss:$16 sps:$4 sm:$0xff]  }
 0x3d7   : > { %4848 = vmatpush1.bf16.msra.mxu1 %v15087_v28 }
 0x3d8   : > { %4849 = vmatprep.subr.bf16.mxu1 %v15095_v50 }
 0x3d9   : > { %v20741_v32 = vpop.f32.mrb[16].mxu1 }
 0x3da   : > { %v20743_v53 = vpop.f32.mrb[17].mxu1 }
 0x3db   : > { %v20745_v26 = vpop.f32.mrb[18].mxu1  ;;  %4850 = vmatpush1.bf16.msra.mxu1 %v15093_v13 }
 0x3dc   : > { %v20747_v22 = vpop.f32.mrb[19].mxu1  ;;  %4851 = vmatprep.subr.bf16.mxu1 %v15101_v3 }
 0x3df   : > { %4852 = vmatpush1.bf16.msra.mxu1 %v15099_v11  ;;  %v15173_v11 = vld [vmem:[#allocation9 + $0x20c] ss:$16 sps:$4 sm:$0xff]  }
 0x3e0   : > { %4853 = vmatprep.subr.bf16.mxu1 %v15107_v0 }
 0x3e1   : > { %v20749_v41 = vpop.f32.mrb[20].mxu1 }
 0x3e2   : > { %v20751_v47 = vpop.f32.mrb[21].mxu1 }
 0x3e3   : > { %v2550_v37 = vpop.f32.mrb[22].mxu1  ;;  %4854 = vmatpush1.bf16.msra.mxu1 %v15105_v52 }
 0x3e4   : > { %v2551_v43 = vpop.f32.mrb[23].mxu1  ;;  %4855 = vmatprep.subr.bf16.mxu1 %v15113_v48 }
 0x3e7   : > { %4856 = vmatpush1.bf16.msra.mxu1 %v15111_v40 }
 0x3e8   : > { %4857 = vmatprep.subr.bf16.mxu1 %v15119_v56 }
 0x3eb   : > { %4858 = vmatpush1.bf16.msra.mxu1 %v15117_v19  ;;  %v15168_v19 = vld [vmem:[#allocation9 + $0x200] ss:$16 sps:$4 sm:$0xff]  }
 0x3ec   : > { %4859 = vmatprep.subr.bf16.mxu1 %v15125_v63  ;;  %v15171_v63 = vld [vmem:[#allocation9 + $0x208] ss:$16 sps:$4 sm:$0xff]  }
 0x3ef   : > { %4860 = vmatpush1.bf16.msra.mxu1 %v15123_v14 }
 0x3f0   : > { %4861 = vmatprep.subr.bf16.mxu1 %v15131_v18 }
 0x3f3   : > { %4862 = vmatpush1.bf16.msra.mxu1 %v15129_v42  ;;  %v15176_v42 = vld [vmem:[#allocation9 + $0x224] ss:$16 sps:$4 sm:$0xff]  }
 0x3f4   : > { %4863 = vmatprep.subr.bf16.mxu1 %v15137_v59  ;;  %v15179_v59 = vld [vmem:[#allocation9 + $0x22c] ss:$16 sps:$4 sm:$0xff]  }
 0x3f7   : > { %4864 = vmatpush1.bf16.msra.mxu1 %v15135_v36 }
 0x3f8   : > { %4865 = vmatprep.subr.bf16.mxu1 %v15143_v29 }
 0x3fb   : > { %4866 = vmatpush1.bf16.msra.mxu1 %v15141_v8  ;;  %v15177_v8 = vld [vmem:[#allocation9 + $0x228] ss:$16 sps:$4 sm:$0xff]  }
 0x3fc   : > { %4867 = vmatprep.subr.bf16.mxu1 %v15149_v21 }
 0x3ff   : > { %4868 = vmatpush1.bf16.msra.mxu1 %v15147_v27  ;;  %v15182_v27 = vld [vmem:[#allocation9 + $0x244] ss:$16 sps:$4 sm:$0xff]  }
 0x400   : > { %4869 = vmatprep.subr.bf16.mxu1 %v15155_v33  ;;  %v15185_v33 = vld [vmem:[#allocation9 + $0x24c] ss:$16 sps:$4 sm:$0xff]  }
 0x402   : > { %v2682_v17 = vpop.f32.mrb[16].mxu0 }
 0x403   : > { %v3005_v25 = vmax.f32 %v20471_v46, %v2682_v17  ;;  %v2684_v24 = vpop.f32.mrb[17].mxu0  ;;  %4870 = vmatpush1.bf16.msra.mxu1 %v15153_v61  ;;  %v15180_v61 = vld [vmem:[#allocation9 + $0x240] ss:$16 sps:$4 sm:$0xff]   ;;  %v15183_v17 = vld [vmem:[#allocation9 + $0x248] ss:$16 sps:$4 sm:$0xff]  }
 0x404   : > { %v3006_v20 = vmax.f32 %v20474_v31, %v2684_v24  ;;  %v2686_v35 = vpop.f32.mrb[18].mxu0  ;;  %4871 = vmatprep.subr.bf16.mxu1 %v15161_v44  ;;  %v15165_v31 = vld [vmem:[#allocation9 + $0x1e8] ss:$16 sps:$4 sm:$0xff]   ;;  %v15191_v24 = vld [vmem:[#allocation9 + $0x26c] ss:$16 sps:$4 sm:$0xff]  }
 0x405   : > { %v3013_v62 = vmax.f32 %v20480_v6, %v2686_v35  ;;  %v3039_v12 = vadd.f32 %v20753_v60, %v3005_v25  ;;  %v2688_v38 = vpop.f32.mrb[19].mxu0  ;;  %v15188_v25 = vld [vmem:[#allocation9 + $0x264] ss:$16 sps:$4 sm:$0xff]   ;;  %v15189_v35 = vld [vmem:[#allocation9 + $0x268] ss:$16 sps:$4 sm:$0xff]  }
 0x406   : > { %v3014_v9 = vmax.f32 %v20485_v51, %v2688_v38  ;;  %v3040_v28 = vadd.f32 %v20753_v60, %v3006_v20  ;;  %v15186_v20 = vld [vmem:[#allocation9 + $0x260] ss:$16 sps:$4 sm:$0xff]   ;;  %v15195_v38 = vld [vmem:[#allocation9 + $0x288] ss:$16 sps:$4 sm:$0xff]  }
 0x407   : > { %v3047_v50 = vadd.f32 %v20753_v60, %v3013_v62  ;;  %4872 = vmatpush1.bf16.msra.mxu1 %v15159_v54  ;;  %v3063_v13 = vmax.f32 %v3039_v12, 0.0  ;;  %v15194_v54 = vld [vmem:[#allocation9 + $0x284] ss:$16 sps:$4 sm:$0xff]   ;;  %v15197_v62 = vld [vmem:[#allocation9 + $0x28c] ss:$16 sps:$4 sm:$0xff]  }
 0x408   : > { %v3048_v46 = vadd.f32 %v20753_v60, %v3014_v9  ;;  %4873 = vmatprep.subr.bf16.mxu1 %v15167_v7  ;;  %v3064_v6 = vmax.f32 %v3040_v28, 0.0  ;;  %v15192_v12 = vld [vmem:[#allocation9 + $0x280] ss:$16 sps:$4 sm:$0xff]   ;;  %v15200_v7 = vld [vmem:[#allocation9 + $0x2a4] ss:$16 sps:$4 sm:$0xff]  }
 0x409   : > { %v3071_v3 = vmax.f32 %v3047_v50, 0.0  ;;  %v15203_v9 = vld [vmem:[#allocation9 + $0x2ac] ss:$16 sps:$4 sm:$0xff]   ;;  %v15198_v28 = vld [vmem:[#allocation9 + $0x2a0] ss:$16 sps:$4 sm:$0xff]  }
 0x40a   : > { %v3072_v0 = vmax.f32 %v3048_v46, 0.0  ;;  %v2692_v52 = vpop.f32.mrb[20].mxu0  ;;  %v15201_v50 = vld [vmem:[#allocation9 + $0x2a8] ss:$16 sps:$4 sm:$0xff]   ;;  %v15206_v46 = vld [vmem:[#allocation9 + $0x2c4] ss:$16 sps:$4 sm:$0xff]  }
 0x40b   : > { %v20763_v48 = vpack.c.bf16 %v3071_v3, %v3063_v13  ;;  %v3021_v37 = vmax.f32 %v20499_v16, %v2692_v52  ;;  %v2694_v51 = vpop.f32.mrb[21].mxu0  ;;  %4874 = vmatpush1.bf16.msra.mxu1 %v15165_v31  ;;  %v15209_v31 = vld [vmem:[#allocation9 + $0x2cc] ss:$16 sps:$4 sm:$0xff]   ;;  %v15204_v13 = vld [vmem:[#allocation9 + $0x2c0] ss:$16 sps:$4 sm:$0xff]  }
 0x40c   : > { %v20766_v40 = vpack.c.bf16 %v3072_v0, %v3064_v6  ;;  %v3022_v43 = vmax.f32 %v20503_v2, %v2694_v51  ;;  %v2696_v56 = vpop.f32.mrb[22].mxu0  ;;  %4894 = vmatprep.subr.bf16.mxu1 %v15173_v11  ;;  %v15174_v2 = vld [vmem:[#allocation9 + $0x220] ss:$16 sps:$4 sm:$0xff]   ;;  %v15207_v3 = vld [vmem:[#allocation9 + $0x2c8] ss:$16 sps:$4 sm:$0xff]  }
 0x40d   : > { %v3055_v14 = vadd.f32 %v20753_v60, %v3021_v37  ;;  %v2697_v18 = vpop.f32.mrb[23].mxu0  ;;  %v15212_v11 = vld [vmem:[#allocation9 + $0x2e4] ss:$16 sps:$4 sm:$0xff]   ;;  %v15215_v6 = vld [vmem:[#allocation9 + $0x2ec] ss:$16 sps:$4 sm:$0xff]  }
 0x40e   : > { %v3056_v36 = vadd.f32 %v20753_v60, %v3022_v43  ;;  %4671 = vmatprep.mubr.bf16.mxu0 %v20766_v40  ;;  %4875 = vmatprep.mubr.bf16.mxu1 %v20766_v40  ;;  %v15210_v0 = vld [vmem:[#allocation9 + $0x2e0] ss:$16 sps:$4 sm:$0xff]   ;;  %v15213_v52 = vld [vmem:[#allocation9 + $0x2e8] ss:$16 sps:$4 sm:$0xff]   ;;  %v15218_v37 = vld [vmem:[#allocation9 + $0x304] ss:$16 sps:$4 sm:$0xff]  }
 0x40f   : > { %4672 = vmatmul.mubr.bf16.vlgmr.msra.gmra.mrb[32].mxu0 %v20763_v48  ;;  %4876 = vmatmul.mubr.bf16.vlgmr.msra.gmra.mrb[40].mxu1 %v20763_v48  ;;  %v3079_v29 = vmax.f32 %v3055_v14, 0.0  ;;  %v15221_v51 = vld [vmem:[#allocation9 + $0x30c] ss:$16 sps:$4 sm:$0xff]   ;;  %v15216_v43 = vld [vmem:[#allocation9 + $0x300] ss:$16 sps:$4 sm:$0xff]  }
 0x410   : > { %v3080_v16 = vmax.f32 %v3056_v36, 0.0  ;;  %4691 = vmatpush1.bf16.msra.mxu0 %v15168_v19  ;;  %4895 = vmatpush1.bf16.msra.mxu1 %v15171_v63  ;;  %v15219_v56 = vld [vmem:[#allocation9 + $0x308] ss:$16 sps:$4 sm:$0xff]   ;;  %v15224_v19 = vld [vmem:[#allocation9 + $0x324] ss:$16 sps:$4 sm:$0xff]  }
 0x411   : > { %4692 = vmatprep.subr.bf16.mxu0 %v15176_v42  ;;  %4896 = vmatprep.subr.bf16.mxu1 %v15179_v59  ;;  %v20778_v44 = vpack.c.bf16 %v3079_v29, %v3079_v29  ;;  %v15227_v63 = vld [vmem:[#allocation9 + $0x32c] ss:$16 sps:$4 sm:$0xff]   ;;  %v15222_v14 = vld [vmem:[#allocation9 + $0x320] ss:$16 sps:$4 sm:$0xff]   ;;  %v15225_v18 = vld [vmem:[#allocation9 + $0x328] ss:$16 sps:$4 sm:$0xff]  }
 0x412   : > { %v20775_v21 = vpack.c.bf16 %v3080_v16, %v3080_v16  ;;  %v15230_v42 = vld [vmem:[#allocation9 + $0x344] ss:$16 sps:$4 sm:$0xff]   ;;  %v15233_v59 = vld [vmem:[#allocation9 + $0x34c] ss:$16 sps:$4 sm:$0xff]   ;;  %v15228_v36 = vld [vmem:[#allocation9 + $0x340] ss:$16 sps:$4 sm:$0xff]  }
 0x413   : > { %v15231_v16 = vld [vmem:[#allocation9 + $0x348] ss:$16 sps:$4 sm:$0xff]   ;;  %v15239_v29 = vld [vmem:[#allocation9 + $0x36c] ss:$16 sps:$4 sm:$0xff]  }
 0x414   : > { %4693 = vmatpush1.bf16.msra.mxu0 %v15174_v2  ;;  %4681 = vmatprep.mubr.bf16.mxu0 %v20775_v21  ;;  %v15236_v2 = vld [vmem:[#allocation9 + $0x364] ss:$16 sps:$4 sm:$0xff]  }
 0x415   : > { %4885 = vmatprep.mubr.bf16.mxu1 %v20775_v21  ;;  %4897 = vmatpush1.bf16.msra.mxu1 %v15177_v8  ;;  %v15234_v8 = vld [vmem:[#allocation9 + $0x360] ss:$16 sps:$4 sm:$0xff]  }
 0x416   : > { %4694 = vmatprep.subr.bf16.mxu0 %v15182_v27  ;;  %4898 = vmatprep.subr.bf16.mxu1 %v15185_v33  ;;  %v15237_v27 = vld [vmem:[#allocation9 + $0x368] ss:$16 sps:$4 sm:$0xff]   ;;  %v15242_v33 = vld [vmem:[#allocation9 + $0x384] ss:$16 sps:$4 sm:$0xff]  }
 0x417   : > { %4682 = vmatmul.mubr.bf16.gmra.mrb[36].mxu0 %v20778_v44  ;;  %4886 = vmatmul.mubr.bf16.gmra.mrb[44].mxu1 %v20778_v44 }
 0x418   : > { %4695 = vmatpush1.bf16.msra.mxu0 %v15180_v61  ;;  %v15245_v61 = vld [vmem:[#allocation9 + $0x38c] ss:$16 sps:$4 sm:$0xff]  }
 0x419   : > { %4899 = vmatpush1.bf16.msra.mxu1 %v15183_v17  ;;  %4696 = vmatprep.subr.bf16.mxu0 %v15188_v25  ;;  %v15240_v17 = vld [vmem:[#allocation9 + $0x380] ss:$16 sps:$4 sm:$0xff]   ;;  %v15243_v25 = vld [vmem:[#allocation9 + $0x388] ss:$16 sps:$4 sm:$0xff]  }
 0x41a   : > { %4900 = vmatprep.subr.bf16.mxu1 %v15191_v24  ;;  %v15248_v24 = vld [vmem:[#allocation9 + $0x3a4] ss:$16 sps:$4 sm:$0xff]  }
 0x41c   : > { %4697 = vmatpush1.bf16.msra.mxu0 %v15186_v20 }
 0x41d   : > { %4901 = vmatpush1.bf16.msra.mxu1 %v15189_v35  ;;  %4698 = vmatprep.subr.bf16.mxu0 %v15194_v54  ;;  %v15251_v35 = vld [vmem:[#allocation9 + $0x3ac] ss:$16 sps:$4 sm:$0xff]  }
 0x41e   : > { %4902 = vmatprep.subr.bf16.mxu1 %v15197_v62 }
 0x420   : > { %4699 = vmatpush1.bf16.msra.mxu0 %v15192_v12 }
 0x421   : > { %4903 = vmatpush1.bf16.msra.mxu1 %v15195_v38  ;;  %4700 = vmatprep.subr.bf16.mxu0 %v15200_v7  ;;  %v15246_v7 = vld [vmem:[#allocation9 + $0x3a0] ss:$16 sps:$4 sm:$0xff]  }
 0x422   : > { %4904 = vmatprep.subr.bf16.mxu1 %v15203_v9 }
 0x424   : > { %4701 = vmatpush1.bf16.msra.mxu0 %v15198_v28 }
 0x425   : > { %4905 = vmatpush1.bf16.msra.mxu1 %v15201_v50  ;;  %4702 = vmatprep.subr.bf16.mxu0 %v15206_v46  ;;  %v15249_v46 = vld [vmem:[#allocation9 + $0x3a8] ss:$16 sps:$4 sm:$0xff]  }
 0x426   : > { %4906 = vmatprep.subr.bf16.mxu1 %v15209_v31  ;;  %v15254_v31 = vld [vmem:[#allocation9 + $0x3c4] ss:$16 sps:$4 sm:$0xff]  }
 0x428   : > { %4703 = vmatpush1.bf16.msra.mxu0 %v15204_v13 }
 0x429   : > { %4907 = vmatpush1.bf16.msra.mxu1 %v15207_v3  ;;  %4704 = vmatprep.subr.bf16.mxu0 %v15212_v11 }
 0x42a   : > { %4908 = vmatprep.subr.bf16.mxu1 %v15215_v6  ;;  %v15252_v6 = vld [vmem:[#allocation9 + $0x3c0] ss:$16 sps:$4 sm:$0xff]  }
 0x42c   : > { %4705 = vmatpush1.bf16.msra.mxu0 %v15210_v0 }
 0x42d   : > { %4909 = vmatpush1.bf16.msra.mxu1 %v15213_v52  ;;  %4706 = vmatprep.subr.bf16.mxu0 %v15218_v37  ;;  %v15260_v37 = vld [vmem:[#allocation9 + $0x3e4] ss:$16 sps:$4 sm:$0xff]  }
 0x42e   : > { %4910 = vmatprep.subr.bf16.mxu1 %v15221_v51 }
 0x430   : > { %4707 = vmatpush1.bf16.msra.mxu0 %v15216_v43 }
 0x431   : > { %4911 = vmatpush1.bf16.msra.mxu1 %v15219_v56  ;;  %4708 = vmatprep.subr.bf16.mxu0 %v15224_v19 }
 0x432   : > { %4912 = vmatprep.subr.bf16.mxu1 %v15227_v63 }
 0x434   : > { %4709 = vmatpush1.bf16.msra.mxu0 %v15222_v14  ;;  %v15263_v14 = vld [vmem:[#allocation9 + $0x3ec] ss:$16 sps:$4 sm:$0xff]  }
 0x435   : > { %4913 = vmatpush1.bf16.msra.mxu1 %v15225_v18  ;;  %4710 = vmatprep.subr.bf16.mxu0 %v15230_v42 }
 0x436   : > { %4914 = vmatprep.subr.bf16.mxu1 %v15233_v59 }
 0x438   : > { %4711 = vmatpush1.bf16.msra.mxu0 %v15228_v36  ;;  %v15258_v36 = vld [vmem:[#allocation9 + $0x3e0] ss:$16 sps:$4 sm:$0xff]  }
 0x439   : > { %4915 = vmatpush1.bf16.msra.mxu1 %v15231_v16  ;;  %4712 = vmatprep.subr.bf16.mxu0 %v15236_v2  ;;  %v15261_v2 = vld [vmem:[#allocation9 + $0x3e8] ss:$16 sps:$4 sm:$0xff]  }
 0x43a   : > { %4916 = vmatprep.subr.bf16.mxu1 %v15239_v29  ;;  %v15266_v29 = vld [vmem:[#allocation9 + $0x404] ss:$16 sps:$4 sm:$0xff]  }
 0x43c   : > { %4713 = vmatpush1.bf16.msra.mxu0 %v15234_v8 }
 0x43d   : > { %4917 = vmatpush1.bf16.msra.mxu1 %v15237_v27  ;;  %4714 = vmatprep.subr.bf16.mxu0 %v15242_v33  ;;  %v2784_v20 = vpop.f32.mrb[24].mxu1  ;;  %v15264_v33 = vld [vmem:[#allocation9 + $0x400] ss:$16 sps:$4 sm:$0xff]  }
 0x43e   : > { %4918 = vmatprep.subr.bf16.mxu1 %v15245_v61  ;;  %v3007_v54 = vmax.f32 %v20625_v1, %v2784_v20  ;;  %v2786_v62 = vpop.f32.mrb[25].mxu1  ;;  %v15257_v1 = vld [vmem:[#allocation9 + $0x3cc] ss:$16 sps:$4 sm:$0xff]   ;;  %v15270_v20 = vld [vmem:[#allocation9 + $0x420] ss:$16 sps:$4 sm:$0xff]  }
 0x43f   : > { %v3008_v12 = vmax.f32 %v20629_v45, %v2786_v62  ;;  %v2788_v38 = vpop.f32.mrb[26].mxu1  ;;  %v15273_v62 = vld [vmem:[#allocation9 + $0x428] ss:$16 sps:$4 sm:$0xff]  }
 0x440   : > { %4715 = vmatpush1.bf16.msra.mxu0 %v15240_v17  ;;  %v3041_v9 = vadd.f32 %v20753_v60, %v3007_v54  ;;  %v3015_v28 = vmax.f32 %v20632_v23, %v2788_v38  ;;  %v2790_v50 = vpop.f32.mrb[27].mxu1  ;;  %v15255_v23 = vld [vmem:[#allocation9 + $0x3c8] ss:$16 sps:$4 sm:$0xff]   ;;  %v15278_v54 = vld [vmem:[#allocation9 + $0x444] ss:$16 sps:$4 sm:$0xff]  }
 0x441   : > { %4919 = vmatpush1.bf16.msra.mxu1 %v15243_v25  ;;  %4716 = vmatprep.subr.bf16.mxu0 %v15248_v24  ;;  %v3042_v13 = vadd.f32 %v20753_v60, %v3008_v12  ;;  %v3016_v3 = vmax.f32 %v20635_v5, %v2790_v50  ;;  %v15267_v17 = vld [vmem:[#allocation9 + $0x408] ss:$16 sps:$4 sm:$0xff]   ;;  %v15272_v25 = vld [vmem:[#allocation9 + $0x424] ss:$16 sps:$4 sm:$0xff]   ;;  %v15275_v24 = vld [vmem:[#allocation9 + $0x42c] ss:$16 sps:$4 sm:$0xff]  }
 0x442   : > { %4920 = vmatprep.subr.bf16.mxu1 %v15251_v35  ;;  %v3049_v45 = vadd.f32 %v20753_v60, %v3015_v28  ;;  %v3065_v0 = vmax.f32 %v3041_v9, 0.0  ;;  %v15281_v12 = vld [vmem:[#allocation9 + $0x44c] ss:$16 sps:$4 sm:$0xff]   ;;  %v15276_v38 = vld [vmem:[#allocation9 + $0x440] ss:$16 sps:$4 sm:$0xff]  }
 0x443   : > { %v3050_v11 = vadd.f32 %v20753_v60, %v3016_v3  ;;  %v3066_v51 = vmax.f32 %v3042_v13, 0.0  ;;  %v15284_v9 = vld [vmem:[#allocation9 + $0x464] ss:$16 sps:$4 sm:$0xff]   ;;  %v15279_v28 = vld [vmem:[#allocation9 + $0x448] ss:$16 sps:$4 sm:$0xff]  }
 0x444   : > { %4717 = vmatpush1.bf16.msra.mxu0 %v15246_v7  ;;  %v3073_v52 = vmax.f32 %v3049_v45, 0.0  ;;  %v15287_v50 = vld [vmem:[#allocation9 + $0x46c] ss:$16 sps:$4 sm:$0xff]   ;;  %v15285_v13 = vld [vmem:[#allocation9 + $0x468] ss:$16 sps:$4 sm:$0xff]  }
 0x445   : > { %4921 = vmatpush1.bf16.msra.mxu1 %v15249_v46  ;;  %4718 = vmatprep.subr.bf16.mxu0 %v15254_v31  ;;  %v3074_v43 = vmax.f32 %v3050_v11, 0.0  ;;  %v2794_v56 = vpop.f32.mrb[28].mxu1  ;;  %v15282_v46 = vld [vmem:[#allocation9 + $0x460] ss:$16 sps:$4 sm:$0xff]   ;;  %v15290_v31 = vld [vmem:[#allocation9 + $0x484] ss:$16 sps:$4 sm:$0xff]  }
 0x446   : > { %4922 = vmatprep.subr.bf16.mxu1 %v15257_v1  ;;  %v20791_v19 = vpack.c.bf16 %v3073_v52, %v3065_v0  ;;  %v3023_v5 = vmax.f32 %v20646_v49, %v2794_v56  ;;  %v2796_v63 = vpop.f32.mrb[29].mxu1  ;;  %v15269_v49 = vld [vmem:[#allocation9 + $0x40c] ss:$16 sps:$4 sm:$0xff]   ;;  %v15288_v1 = vld [vmem:[#allocation9 + $0x480] ss:$16 sps:$4 sm:$0xff]  }
 0x447   : > { %v20794_v18 = vpack.c.bf16 %v3074_v43, %v3066_v51  ;;  %v3024_v42 = vmax.f32 %v20650_v10, %v2796_v63  ;;  %v2798_v59 = vpop.f32.mrb[30].mxu1  ;;  %v15293_v3 = vld [vmem:[#allocation9 + $0x48c] ss:$16 sps:$4 sm:$0xff]   ;;  %v15296_v45 = vld [vmem:[#allocation9 + $0x4a4] ss:$16 sps:$4 sm:$0xff]  }
 0x448   : > { %4719 = vmatpush1.bf16.msra.mxu0 %v15252_v6  ;;  %v2799_v16 = vpop.f32.mrb[31].mxu1  ;;  %v3057_v10 = vadd.f32 %v20753_v60, %v3023_v5  ;;  %v15291_v11 = vld [vmem:[#allocation9 + $0x488] ss:$16 sps:$4 sm:$0xff]   ;;  %v15299_v6 = vld [vmem:[#allocation9 + $0x4ac] ss:$16 sps:$4 sm:$0xff]  }
 0x449   : > { %4923 = vmatpush1.bf16.msra.mxu1 %v15255_v23  ;;  %4720 = vmatprep.subr.bf16.mxu0 %v15260_v37  ;;  %v3058_v8 = vadd.f32 %v20753_v60, %v3024_v42  ;;  %v15294_v0 = vld [vmem:[#allocation9 + $0x4a0] ss:$16 sps:$4 sm:$0xff]   ;;  %v15302_v52 = vld [vmem:[#allocation9 + $0x4c4] ss:$16 sps:$4 sm:$0xff]   ;;  %v15297_v23 = vld [vmem:[#allocation9 + $0x4a8] ss:$16 sps:$4 sm:$0xff]  }
 0x44a   : > { %4722 = vmatprep.mubr.bf16.mxu0 %v20794_v18  ;;  %4926 = vmatprep.mubr.bf16.mxu1 %v20794_v18  ;;  %v3081_v35 = vmax.f32 %v3057_v10, 0.0  ;;  %v15305_v37 = vld [vmem:[#allocation9 + $0x4cc] ss:$16 sps:$4 sm:$0xff]   ;;  %v15300_v51 = vld [vmem:[#allocation9 + $0x4c0] ss:$16 sps:$4 sm:$0xff]  }
 0x44b   : > { %4924 = vmatprep.subr.bf16.mxu1 %v15263_v14  ;;  %v3082_v27 = vmax.f32 %v3058_v8, 0.0  ;;  %v15308_v43 = vld [vmem:[#allocation9 + $0x4e4] ss:$16 sps:$4 sm:$0xff]   ;;  %v15303_v5 = vld [vmem:[#allocation9 + $0x4c8] ss:$16 sps:$4 sm:$0xff]  }
 0x44c   : > { %4721 = vmatpush1.bf16.msra.mxu0 %v15258_v36  ;;  %v20807_v7 = vpack.c.bf16 %v3081_v35, %v3081_v35  ;;  %v15311_v42 = vld [vmem:[#allocation9 + $0x4ec] ss:$16 sps:$4 sm:$0xff]   ;;  %v15306_v16 = vld [vmem:[#allocation9 + $0x4e0] ss:$16 sps:$4 sm:$0xff]  }
 0x44d   : > { %4925 = vmatpush1.bf16.msra.mxu1 %v15261_v2  ;;  %4741 = vmatprep.subr.bf16.mxu0 %v15266_v29  ;;  %v20801_v61 = vpack.c.bf16 %v3082_v27, %v3082_v27 }
 0x44e   : > { %4945 = vmatprep.subr.bf16.mxu1 %v15269_v49  ;;  %v15314_v49 = vld [vmem:[#allocation9 + $0x504] ss:$16 sps:$4 sm:$0xff]  }
 0x44f   : > { %4723 = vmatmul.mubr.bf16.vlgmr.msra.gmra.mrb[32].mxu0 %v20791_v19 }
 0x450   : > { %4742 = vmatpush1.bf16.msra.mxu0 %v15264_v33  ;;  %4927 = vmatmul.mubr.bf16.vlgmr.msra.gmra.mrb[40].mxu1 %v20791_v19  ;;  %v15309_v33 = vld [vmem:[#allocation9 + $0x4e8] ss:$16 sps:$4 sm:$0xff]  }
 0x451   : > { %4732 = vmatprep.mubr.bf16.mxu0 %v20801_v61  ;;  %4936 = vmatprep.mubr.bf16.mxu1 %v20801_v61 }
 0x452   : > { %4946 = vmatpush1.bf16.msra.mxu1 %v15267_v17  ;;  %4743 = vmatprep.subr.bf16.mxu0 %v15272_v25  ;;  %v15312_v25 = vld [vmem:[#allocation9 + $0x500] ss:$16 sps:$4 sm:$0xff]  }
 0x453   : > { %4947 = vmatprep.subr.bf16.mxu1 %v15275_v24 }
 0x454   : > { %4744 = vmatpush1.bf16.msra.mxu0 %v15270_v20 }
 0x455   : > { %4745 = vmatprep.subr.bf16.mxu0 %v15278_v54 }
 0x456   : > { %4948 = vmatpush1.bf16.msra.mxu1 %v15273_v62 }
 0x457   : > { %4733 = vmatmul.mubr.bf16.gmra.mrb[36].mxu0 %v20807_v7  ;;  %4949 = vmatprep.subr.bf16.mxu1 %v15281_v12  ;;  %v15315_v12 = vld [vmem:[#allocation9 + $0x508] ss:$16 sps:$4 sm:$0xff]  }
 0x458   : > { %4746 = vmatpush1.bf16.msra.mxu0 %v15276_v38  ;;  %4937 = vmatmul.mubr.bf16.gmra.mrb[44].mxu1 %v20807_v7 }
 0x459   : > { %4747 = vmatprep.subr.bf16.mxu0 %v15284_v9 }
 0x45a   : > { %4950 = vmatpush1.bf16.msra.mxu1 %v15279_v28  ;;  %v15323_v28 = vld [vmem:[#allocation9 + $0x52c] ss:$16 sps:$4 sm:$0xff]  }
 0x45b   : > { %4951 = vmatprep.subr.bf16.mxu1 %v15287_v50 }
 0x45c   : > { %4748 = vmatpush1.bf16.msra.mxu0 %v15282_v46 }
 0x45d   : > { %4749 = vmatprep.subr.bf16.mxu0 %v15290_v31  ;;  %v15318_v31 = vld [vmem:[#allocation9 + $0x520] ss:$16 sps:$4 sm:$0xff]  }
 0x45e   : > { %4952 = vmatpush1.bf16.msra.mxu1 %v15285_v13 }
 0x45f   : > { %4953 = vmatprep.subr.bf16.mxu1 %v15293_v3  ;;  %v15326_v3 = vld [vmem:[#allocation9 + $0x544] ss:$16 sps:$4 sm:$0xff]  }
 0x460   : > { %4750 = vmatpush1.bf16.msra.mxu0 %v15288_v1 }
 0x461   : > { %4751 = vmatprep.subr.bf16.mxu0 %v15296_v45  ;;  %v15321_v45 = vld [vmem:[#allocation9 + $0x528] ss:$16 sps:$4 sm:$0xff]  }
 0x462   : > { %4954 = vmatpush1.bf16.msra.mxu1 %v15291_v11  ;;  %v15329_v11 = vld [vmem:[#allocation9 + $0x54c] ss:$16 sps:$4 sm:$0xff]  }
 0x463   : > { %4955 = vmatprep.subr.bf16.mxu1 %v15299_v6  ;;  %v15324_v6 = vld [vmem:[#allocation9 + $0x540] ss:$16 sps:$4 sm:$0xff]  }
 0x464   : > { %4752 = vmatpush1.bf16.msra.mxu0 %v15294_v0  ;;  %v15332_v0 = vld [vmem:[#allocation9 + $0x564] ss:$16 sps:$4 sm:$0xff]  }
 0x465   : > { %4753 = vmatprep.subr.bf16.mxu0 %v15302_v52  ;;  %v15335_v52 = vld [vmem:[#allocation9 + $0x56c] ss:$16 sps:$4 sm:$0xff]  }
 0x466   : > { %4956 = vmatpush1.bf16.msra.mxu1 %v15297_v23  ;;  %v2886_v56 = vpop.f32.mrb[24].mxu0  ;;  %v15330_v23 = vld [vmem:[#allocation9 + $0x560] ss:$16 sps:$4 sm:$0xff]  }
 0x467   : > { %v3009_v63 = vmax.f32 %v20696_v30, %v2886_v56  ;;  %v2888_v14 = vpop.f32.mrb[25].mxu0  ;;  %4957 = vmatprep.subr.bf16.mxu1 %v15305_v37  ;;  %v15338_v37 = vld [vmem:[#allocation9 + $0x584] ss:$16 sps:$4 sm:$0xff]   ;;  %v15336_v56 = vld [vmem:[#allocation9 + $0x580] ss:$16 sps:$4 sm:$0xff]  }
 0x468   : > { %v3010_v59 = vmax.f32 %v20698_v34, %v2888_v14  ;;  %4754 = vmatpush1.bf16.msra.mxu0 %v15300_v51  ;;  %v2890_v36 = vpop.f32.mrb[26].mxu0  ;;  %v15317_v34 = vld [vmem:[#allocation9 + $0x50c] ss:$16 sps:$4 sm:$0xff]   ;;  %v15333_v51 = vld [vmem:[#allocation9 + $0x568] ss:$16 sps:$4 sm:$0xff]  }
 0x469   : > { %v3043_v2 = vadd.f32 %v20753_v60, %v3009_v63  ;;  %v3017_v29 = vmax.f32 %v20700_v39, %v2890_v36  ;;  %v2892_v8 = vpop.f32.mrb[27].mxu0  ;;  %4755 = vmatprep.subr.bf16.mxu0 %v15308_v43  ;;  %v15320_v39 = vld [vmem:[#allocation9 + $0x524] ss:$16 sps:$4 sm:$0xff]   ;;  %v15341_v43 = vld [vmem:[#allocation9 + $0x58c] ss:$16 sps:$4 sm:$0xff]  }
 0x46a   : > { %v3044_v27 = vadd.f32 %v20753_v60, %v3010_v59  ;;  %4958 = vmatpush1.bf16.msra.mxu1 %v15303_v5  ;;  %v3018_v30 = vmax.f32 %v20703_v55, %v2892_v8  ;;  %v15344_v5 = vld [vmem:[#allocation9 + $0x5a4] ss:$16 sps:$4 sm:$0xff]   ;;  %v15339_v63 = vld [vmem:[#allocation9 + $0x588] ss:$16 sps:$4 sm:$0xff]   ;;  %v15347_v14 = vld [vmem:[#allocation9 + $0x5ac] ss:$16 sps:$4 sm:$0xff]  }
 0x46b   : > { %v3051_v10 = vadd.f32 %v20753_v60, %v3017_v29  ;;  %4959 = vmatprep.subr.bf16.mxu1 %v15311_v42  ;;  %v3067_v24 = vmax.f32 %v3043_v2, 0.0  ;;  %v15342_v42 = vld [vmem:[#allocation9 + $0x5a0] ss:$16 sps:$4 sm:$0xff]   ;;  %v15350_v59 = vld [vmem:[#allocation9 + $0x5c4] ss:$16 sps:$4 sm:$0xff]  }
 0x46c   : > { %v3052_v17 = vadd.f32 %v20753_v60, %v3018_v30  ;;  %4756 = vmatpush1.bf16.msra.mxu0 %v15306_v16  ;;  %v3068_v35 = vmax.f32 %v3044_v27, 0.0  ;;  %v15345_v36 = vld [vmem:[#allocation9 + $0x5a8] ss:$16 sps:$4 sm:$0xff]   ;;  %v15353_v16 = vld [vmem:[#allocation9 + $0x5cc] ss:$16 sps:$4 sm:$0xff]  }
 0x46d   : > { %v3075_v20 = vmax.f32 %v3051_v10, 0.0  ;;  %4757 = vmatprep.subr.bf16.mxu0 %v15314_v49  ;;  %v15348_v2 = vld [vmem:[#allocation9 + $0x5c0] ss:$16 sps:$4 sm:$0xff]   ;;  %v15356_v29 = vld [vmem:[#allocation9 + $0x5e4] ss:$16 sps:$4 sm:$0xff]  }
 0x46e   : > { %v3076_v54 = vmax.f32 %v3052_v17, 0.0  ;;  %4960 = vmatpush1.bf16.msra.mxu1 %v15309_v33  ;;  %v20819_v62 = vpop.f32.mrb[28].mxu0  ;;  %v15351_v49 = vld [vmem:[#allocation9 + $0x5c8] ss:$16 sps:$4 sm:$0xff]   ;;  %v15359_v27 = vld [vmem:[#allocation9 + $0x5ec] ss:$16 sps:$4 sm:$0xff]  }
 0x46f   : > { %v20821_v55 = vpack.c.bf16 %v3075_v20, %v3067_v24  ;;  %v3025_v38 = vmax.f32 %v20708_v57, %v20819_v62  ;;  %v2898_v9 = vpop.f32.mrb[29].mxu0  ;;  %4961 = vmatprep.subr.bf16.mxu1 %v15317_v34  ;;  %v15354_v30 = vld [vmem:[#allocation9 + $0x5e0] ss:$16 sps:$4 sm:$0xff]   ;;  %v15362_v33 = vld [vmem:[#allocation9 + $0x604] ss:$16 sps:$4 sm:$0xff]  }
 0x470   : > { %v20825_v50 = vpack.c.bf16 %v3076_v54, %v3068_v35  ;;  %v3026_v46 = vmax.f32 %v20710_v4, %v2898_v9  ;;  %4758 = vmatpush1.bf16.msra.mxu0 %v15312_v25  ;;  %v2900_v13 = vpop.f32.mrb[30].mxu0  ;;  %v15327_v4 = vld [vmem:[#allocation9 + $0x548] ss:$16 sps:$4 sm:$0xff]   ;;  %v15365_v17 = vld [vmem:[#allocation9 + $0x60c] ss:$16 sps:$4 sm:$0xff]  }
 0x471   : > { %4759 = vmatprep.subr.bf16.mxu0 %v15320_v39  ;;  %v2901_v1 = vpop.f32.mrb[31].mxu0  ;;  %v15357_v34 = vld [vmem:[#allocation9 + $0x5e8] ss:$16 sps:$4 sm:$0xff]   ;;  %v15360_v25 = vld [vmem:[#allocation9 + $0x600] ss:$16 sps:$4 sm:$0xff]   ;;  %v3059_v24 = vadd.f32 %v20753_v60, %v3025_v38 }
 0x472   : > { %4962 = vmatpush1.bf16.msra.mxu1 %v15315_v12  ;;  %4773 = vmatprep.mubr.bf16.mxu0 %v20825_v50  ;;  %v3060_v8 = vadd.f32 %v20753_v60, %v3026_v46  ;;  %v15368_v20 = vld [vmem:[#allocation9 + $0x624] ss:$16 sps:$4 sm:$0xff]   ;;  %v15363_v35 = vld [vmem:[#allocation9 + $0x608] ss:$16 sps:$4 sm:$0xff]   ;;  %v15371_v54 = vld [vmem:[#allocation9 + $0x62c] ss:$16 sps:$4 sm:$0xff]  }
 0x473   : > { %4977 = vmatprep.mubr.bf16.mxu1 %v20825_v50  ;;  %4963 = vmatprep.subr.bf16.mxu1 %v15323_v28  ;;  %v15366_v12 = vld [vmem:[#allocation9 + $0x620] ss:$16 sps:$4 sm:$0xff]   ;;  %v3083_v9 = vmax.f32 %v3059_v24, 0.0  ;;  %v15374_v57 = vld [vmem:[#allocation9 + $0x644] ss:$16 sps:$4 sm:$0xff]  }
 0x474   : > { %4760 = vmatpush1.bf16.msra.mxu0 %v15318_v31  ;;  %v3084_v10 = vmax.f32 %v3060_v8, 0.0  ;;  %v15369_v62 = vld [vmem:[#allocation9 + $0x628] ss:$16 sps:$4 sm:$0xff]   ;;  %v15377_v38 = vld [vmem:[#allocation9 + $0x64c] ss:$16 sps:$4 sm:$0xff]  }
 0x475   : > { %4761 = vmatprep.subr.bf16.mxu0 %v15326_v3  ;;  %v15372_v28 = vld [vmem:[#allocation9 + $0x640] ss:$16 sps:$4 sm:$0xff]   ;;  %v20841_v46 = vpack.c.bf16 %v3083_v9, %v3083_v9  ;;  %v15380_v31 = vld [vmem:[#allocation9 + $0x664] ss:$16 sps:$4 sm:$0xff]   ;;  %v15375_v13 = vld [vmem:[#allocation9 + $0x648] ss:$16 sps:$4 sm:$0xff]  }
 0x476   : > { %4964 = vmatpush1.bf16.msra.mxu1 %v15321_v45  ;;  %v20835_v39 = vpack.c.bf16 %v3084_v10, %v3084_v10  ;;  %v15383_v3 = vld [vmem:[#allocation9 + $0x66c] ss:$16 sps:$4 sm:$0xff]   ;;  %v15378_v1 = vld [vmem:[#allocation9 + $0x660] ss:$16 sps:$4 sm:$0xff]   ;;  %v15386_v45 = vld [vmem:[#allocation9 + $0x684] ss:$16 sps:$4 sm:$0xff]  }
 0x477   : > { %4965 = vmatprep.subr.bf16.mxu1 %v15329_v11  ;;  %v15381_v11 = vld [vmem:[#allocation9 + $0x668] ss:$16 sps:$4 sm:$0xff]   ;;  %v15404_v8 = vld [vmem:[#allocation9 + $0x6e4] ss:$16 sps:$4 sm:$0xff]   ;;  %v15402_v10 = vld [vmem:[#allocation9 + $0x6e0] ss:$16 sps:$4 sm:$0xff]  }
 0x478   : > { %4762 = vmatpush1.bf16.msra.mxu0 %v15324_v6  ;;  %v15389_v6 = vld [vmem:[#allocation9 + $0x68c] ss:$16 sps:$4 sm:$0xff]  }
 0x479   : > { %4763 = vmatprep.subr.bf16.mxu0 %v15332_v0  ;;  %v15384_v0 = vld [vmem:[#allocation9 + $0x680] ss:$16 sps:$4 sm:$0xff]   ;;  %v15413_v9 = vld [vmem:[#allocation9 + $0x70c] ss:$16 sps:$4 sm:$0xff]  }
 0x47a   : > { %4966 = vmatpush1.bf16.msra.mxu1 %v15327_v4  ;;  %v15392_v4 = vld [vmem:[#allocation9 + $0x6a4] ss:$16 sps:$4 sm:$0xff]  }
 0x47b   : > { %4967 = vmatprep.subr.bf16.mxu1 %v15335_v52  ;;  %v15387_v52 = vld [vmem:[#allocation9 + $0x688] ss:$16 sps:$4 sm:$0xff]  }
 0x47c   : > { %4764 = vmatpush1.bf16.msra.mxu0 %v15330_v23  ;;  %v15395_v23 = vld [vmem:[#allocation9 + $0x6ac] ss:$16 sps:$4 sm:$0xff]  }
 0x47d   : > { %4765 = vmatprep.subr.bf16.mxu0 %v15338_v37  ;;  %v15390_v37 = vld [vmem:[#allocation9 + $0x6a0] ss:$16 sps:$4 sm:$0xff]  }
 0x47e   : > { %4968 = vmatpush1.bf16.msra.mxu1 %v15333_v51  ;;  %v15398_v51 = vld [vmem:[#allocation9 + $0x6c4] ss:$16 sps:$4 sm:$0xff]  }
 0x47f   : > { %4969 = vmatprep.subr.bf16.mxu1 %v15341_v43 }
 0x480   : > { %4766 = vmatpush1.bf16.msra.mxu0 %v15336_v56  ;;  %v15393_v56 = vld [vmem:[#allocation9 + $0x6a8] ss:$16 sps:$4 sm:$0xff]  }
 0x481   : > { %4767 = vmatprep.subr.bf16.mxu0 %v15344_v5 }
 0x482   : > { %4970 = vmatpush1.bf16.msra.mxu1 %v15339_v63 }
 0x483   : > { %4971 = vmatprep.subr.bf16.mxu1 %v15347_v14  ;;  %v15401_v14 = vld [vmem:[#allocation9 + $0x6cc] ss:$16 sps:$4 sm:$0xff]  }
 0x484   : > { %4768 = vmatpush1.bf16.msra.mxu0 %v15342_v42 }
 0x485   : > { %4769 = vmatprep.subr.bf16.mxu0 %v15350_v59 }
 0x486   : > { %4972 = vmatpush1.bf16.msra.mxu1 %v15345_v36  ;;  %v15396_v36 = vld [vmem:[#allocation9 + $0x6c0] ss:$16 sps:$4 sm:$0xff]  }
 0x487   : > { %4973 = vmatprep.subr.bf16.mxu1 %v15353_v16 }
 0x488   : > { %4770 = vmatpush1.bf16.msra.mxu0 %v15348_v2 }
 0x489   : > { %4771 = vmatprep.subr.bf16.mxu0 %v15356_v29 }
 0x48a   : > { %4974 = vmatpush1.bf16.msra.mxu1 %v15351_v49 }
 0x48b   : > { %4975 = vmatprep.subr.bf16.mxu1 %v15359_v27  ;;  %v15399_v27 = vld [vmem:[#allocation9 + $0x6c8] ss:$16 sps:$4 sm:$0xff]  }
 0x48c   : > { %4772 = vmatpush1.bf16.msra.mxu0 %v15354_v30 }
 0x48d   : > { %4792 = vmatprep.subr.bf16.mxu0 %v15362_v33 }
 0x48e   : > { %4976 = vmatpush1.bf16.msra.mxu1 %v15357_v34 }
 0x48f   : > { %4774 = vmatmul.mubr.bf16.vlgmr.msra.gmra.mrb[32].mxu0 %v20821_v55  ;;  %4996 = vmatprep.subr.bf16.mxu1 %v15365_v17 }
 0x490   : > { %4783 = vmatprep.mubr.bf16.mxu0 %v20835_v39  ;;  %4793 = vmatpush1.bf16.msra.mxu0 %v15360_v25 }
 0x491   : > { %4978 = vmatmul.mubr.bf16.vlgmr.msra.gmra.mrb[40].mxu1 %v20821_v55  ;;  %4794 = vmatprep.subr.bf16.mxu0 %v15368_v20 }
 0x492   : > { %4987 = vmatprep.mubr.bf16.mxu1 %v20835_v39  ;;  %4997 = vmatpush1.bf16.msra.mxu1 %v15363_v35  ;;  %v15405_v35 = vld [vmem:[#allocation9 + $0x6e8] ss:$16 sps:$4 sm:$0xff]  }
 0x493   : > { %4998 = vmatprep.subr.bf16.mxu1 %v15371_v54 }
 0x494   : > { %4795 = vmatpush1.bf16.msra.mxu0 %v15366_v12 }
 0x495   : > { %4796 = vmatprep.subr.bf16.mxu0 %v15374_v57 }
 0x496   : > { %4999 = vmatpush1.bf16.msra.mxu1 %v15369_v62 }
 0x497   : > { %4784 = vmatmul.mubr.bf16.gmra.mrb[36].mxu0 %v20841_v46  ;;  %5000 = vmatprep.subr.bf16.mxu1 %v15377_v38 }
 0x498   : > { %4797 = vmatpush1.bf16.msra.mxu0 %v15372_v28  ;;  %v15408_v28 = vld [vmem:[#allocation9 + $0x700] ss:$16 sps:$4 sm:$0xff]  }
 0x499   : > { %4988 = vmatmul.mubr.bf16.gmra.mrb[44].mxu1 %v20841_v46  ;;  %4798 = vmatprep.subr.bf16.mxu0 %v15380_v31 }
 0x49a   : > { %5001 = vmatpush1.bf16.msra.mxu1 %v15375_v13  ;;  %v15416_v13 = vld [vmem:[#allocation9 + $0x724] ss:$16 sps:$4 sm:$0xff]  }
 0x49b   : > { %5002 = vmatprep.subr.bf16.mxu1 %v15383_v3  ;;  %v15411_v3 = vld [vmem:[#allocation9 + $0x708] ss:$16 sps:$4 sm:$0xff]  }
 0x49c   : > { %4799 = vmatpush1.bf16.msra.mxu0 %v15378_v1  ;;  %v15419_v1 = vld [vmem:[#allocation9 + $0x72c] ss:$16 sps:$4 sm:$0xff]  }
 0x49d   : > { %4800 = vmatprep.subr.bf16.mxu0 %v15386_v45  ;;  %v15414_v45 = vld [vmem:[#allocation9 + $0x720] ss:$16 sps:$4 sm:$0xff]  }
 0x49e   : > { %5003 = vmatpush1.bf16.msra.mxu1 %v15381_v11  ;;  %v15422_v11 = vld [vmem:[#allocation9 + $0x744] ss:$16 sps:$4 sm:$0xff]  }
 0x49f   : > { %5004 = vmatprep.subr.bf16.mxu1 %v15389_v6  ;;  %v15425_v6 = vld [vmem:[#allocation9 + $0x74c] ss:$16 sps:$4 sm:$0xff]  }
 0x4a0   : > { %4801 = vmatpush1.bf16.msra.mxu0 %v15384_v0  ;;  %v15420_v0 = vld [vmem:[#allocation9 + $0x740] ss:$16 sps:$4 sm:$0xff]  }
 0x4a1   : > { %4802 = vmatprep.subr.bf16.mxu0 %v15392_v4  ;;  %v2988_v43 = vpop.f32.mrb[32].mxu1  ;;  %v15428_v4 = vld [vmem:[#allocation9 + $0x764] ss:$16 sps:$4 sm:$0xff]  }
 0x4a2   : > { %5005 = vmatpush1.bf16.msra.mxu1 %v15387_v52  ;;  %v3011_v5 = vmax.f32 %v20741_v32, %v2988_v43  ;;  %v2990_v63 = vpop.f32.mrb[33].mxu1  ;;  %v15423_v52 = vld [vmem:[#allocation9 + $0x748] ss:$16 sps:$4 sm:$0xff]  }
 0x4a3   : > { %5006 = vmatprep.subr.bf16.mxu1 %v15395_v23  ;;  %v3012_v42 = vmax.f32 %v20743_v53, %v2990_v63  ;;  %v2992_v59 = vpop.f32.mrb[34].mxu1  ;;  %v15407_v53 = vld [vmem:[#allocation9 + $0x6ec] ss:$16 sps:$4 sm:$0xff]   ;;  %v15429_v43 = vld [vmem:[#allocation9 + $0x768] ss:$16 sps:$4 sm:$0xff]  }
 0x4a4   : > { %4803 = vmatpush1.bf16.msra.mxu0 %v15390_v37  ;;  %v3045_v16 = vadd.f32 %v20753_v60, %v3011_v5  ;;  %v3019_v2 = vmax.f32 %v20745_v26, %v2992_v59  ;;  %v2994_v29 = vpop.f32.mrb[35].mxu1  ;;  %v15410_v26 = vld [vmem:[#allocation9 + $0x704] ss:$16 sps:$4 sm:$0xff]   ;;  %v15431_v23 = vld [vmem:[#allocation9 + $0x76c] ss:$16 sps:$4 sm:$0xff]  }
 0x4a5   : > { %4804 = vmatprep.subr.bf16.mxu0 %v15398_v51  ;;  %v3046_v49 = vadd.f32 %v20753_v60, %v3012_v42  ;;  %v3020_v32 = vmax.f32 %v20747_v22, %v2994_v29  ;;  %v15426_v37 = vld [vmem:[#allocation9 + $0x760] ss:$16 sps:$4 sm:$0xff]   ;;  %v15434_v51 = vld [vmem:[#allocation9 + $0x784] ss:$16 sps:$4 sm:$0xff]   ;;  %v15443_v42 = vld [vmem:[#allocation9 + $0x7ac] ss:$16 sps:$4 sm:$0xff]  }
 0x4a6   : > { %5007 = vmatpush1.bf16.msra.mxu1 %v15393_v56  ;;  %v3053_v30 = vadd.f32 %v20753_v60, %v3019_v2  ;;  %v3069_v34 = vmax.f32 %v3045_v16, 0.0  ;;  %v15437_v56 = vld [vmem:[#allocation9 + $0x78c] ss:$16 sps:$4 sm:$0xff]   ;;  %v15432_v5 = vld [vmem:[#allocation9 + $0x780] ss:$16 sps:$4 sm:$0xff]  }
 0x4a7   : > { %5008 = vmatprep.subr.bf16.mxu1 %v15401_v14  ;;  %v3054_v33 = vadd.f32 %v20753_v60, %v3020_v32  ;;  %v3070_v25 = vmax.f32 %v3046_v49, 0.0  ;;  %v15440_v63 = vld [vmem:[#allocation9 + $0x7a4] ss:$16 sps:$4 sm:$0xff]   ;;  %v15435_v14 = vld [vmem:[#allocation9 + $0x788] ss:$16 sps:$4 sm:$0xff]  }
 0x4a8   : > { %4805 = vmatpush1.bf16.msra.mxu0 %v15396_v36  ;;  %v3077_v17 = vmax.f32 %v3053_v30, 0.0  ;;  %v15438_v59 = vld [vmem:[#allocation9 + $0x7a0] ss:$16 sps:$4 sm:$0xff]   ;;  %v15446_v36 = vld [vmem:[#allocation9 + $0x7c4] ss:$16 sps:$4 sm:$0xff]  }
 0x4a9   : > { %4806 = vmatprep.subr.bf16.mxu0 %v15404_v8  ;;  %v3078_v24 = vmax.f32 %v3054_v33, 0.0  ;;  %v20853_v20 = vpop.f32.mrb[36].mxu1  ;;  %v15441_v16 = vld [vmem:[#allocation9 + $0x7a8] ss:$16 sps:$4 sm:$0xff]   ;;  %v15449_v2 = vld [vmem:[#allocation9 + $0x7cc] ss:$16 sps:$4 sm:$0xff]  }
 0x4aa   : > { %5009 = vmatpush1.bf16.msra.mxu1 %v15399_v27  ;;  %v20855_v22 = vpack.c.bf16 %v3077_v17, %v3069_v34  ;;  %v3027_v54 = vmax.f32 %v20749_v41, %v20853_v20  ;;  %v3000_v12 = vpop.f32.mrb[37].mxu1  ;;  %v15444_v29 = vld [vmem:[#allocation9 + $0x7c0] ss:$16 sps:$4 sm:$0xff]   ;;  %v15452_v8 = vld [vmem:[#allocation9 + $0x7e4] ss:$16 sps:$4 sm:$0xff]  }
 0x4ab   : > { %5010 = vmatprep.subr.bf16.mxu1 %v15407_v53  ;;  %v20859_v57 = vpack.c.bf16 %v3078_v24, %v3070_v25  ;;  %v3028_v62 = vmax.f32 %v20751_v47, %v3000_v12  ;;  %v3002_v38 = vpop.f32.mrb[38].mxu1  ;;  %v15417_v47 = vld [vmem:[#allocation9 + $0x728] ss:$16 sps:$4 sm:$0xff]   ;;  %v15455_v27 = vld [vmem:[#allocation9 + $0x7ec] ss:$16 sps:$4 sm:$0xff]  }
 0x4ac   : > { %4807 = vmatpush1.bf16.msra.mxu0 %v15402_v10  ;;  %v3003_v31 = vpop.f32.mrb[39].mxu1  ;;  %v15447_v32 = vld [vmem:[#allocation9 + $0x7c8] ss:$16 sps:$4 sm:$0xff]   ;;  %v15450_v30 = vld [vmem:[#allocation9 + $0x7e0] ss:$16 sps:$4 sm:$0xff]  }
 0x4ad   : > { %4808 = vmatprep.subr.bf16.mxu0 %v15410_v26  ;;  %4824 = vmatprep.mubr.bf16.mxu0 %v20859_v57  ;;  %v3062_v49 = vadd.f32 %v20753_v60, %v3028_v62  ;;  %v15458_v53 = vld [vmem:[#allocation10 + $0x4] ss:$16 sps:$4 sm:$0xff]   ;;  %v15453_v10 = vld [vmem:[#allocation9 + $0x7e8] ss:$16 sps:$4 sm:$0xff]   ;;  %v15461_v34 = vld [vmem:[#allocation10 + $0xc] ss:$16 sps:$4 sm:$0xff]   ;;  %v3061_v26 = vadd.f32 %v20753_v60, %v3027_v54 }
 0x4ae   : > { %5011 = vmatpush1.bf16.msra.mxu1 %v15405_v35  ;;  %5028 = vmatprep.mubr.bf16.mxu1 %v20859_v57  ;;  %v15456_v17 = vld [vmem:[#allocation10] ss:$16 sps:$4 sm:$0xff]   ;;  %v15464_v25 = vld [vmem:[#allocation10 + $0x24] ss:$16 sps:$4 sm:$0xff]   ;;  %v15459_v35 = vld [vmem:[#allocation10 + $0x8] ss:$16 sps:$4 sm:$0xff]  }
 0x4af   : > { %5012 = vmatprep.subr.bf16.mxu1 %v15413_v9  ;;  %v3086_v33 = vmax.f32 %v3062_v49, 0.0  ;;  %v15467_v12 = vld [vmem:[#allocation10 + $0x2c] ss:$16 sps:$4 sm:$0xff]   ;;  %v15462_v9 = vld [vmem:[#allocation10 + $0x20] ss:$16 sps:$4 sm:$0xff]   ;;  %v3085_v62 = vmax.f32 %v3061_v26, 0.0 }
 0x4b0   : > { %4809 = vmatpush1.bf16.msra.mxu0 %v15408_v28  ;;  %v15470_v41 = vld [vmem:[#allocation10 + $0x44] ss:$16 sps:$4 sm:$0xff]   ;;  %v15465_v60 = vld [vmem:[#allocation10 + $0x28] ss:$16 sps:$4 sm:$0xff]   ;;  %v15473_v20 = vld [vmem:[#allocation10 + $0x4c] ss:$16 sps:$4 sm:$0xff]  }
 0x4b1   : > { %4810 = vmatprep.subr.bf16.mxu0 %v15416_v13  ;;  %v20869_v24 = vpack.c.bf16 %v3086_v33, %v3086_v33  ;;  %v15468_v54 = vld [vmem:[#allocation10 + $0x40] ss:$16 sps:$4 sm:$0xff]   ;;  %v20875_v38 = vpack.c.bf16 %v3085_v62, %v3085_v62  ;;  %v15476_v28 = vld [vmem:[#allocation10 + $0x64] ss:$16 sps:$4 sm:$0xff]   ;;  %v15471_v31 = vld [vmem:[#allocation10 + $0x48] ss:$16 sps:$4 sm:$0xff]  }
 0x4b2   : > { %5013 = vmatpush1.bf16.msra.mxu1 %v15411_v3  ;;  %v15479_v13 = vld [vmem:[#allocation10 + $0x6c] ss:$16 sps:$4 sm:$0xff]   ;;  %v15474_v3 = vld [vmem:[#allocation10 + $0x60] ss:$16 sps:$4 sm:$0xff]   ;;  %v15518_v49 = vld [vmem:[#allocation10 + $0x144] ss:$16 sps:$4 sm:$0xff]  }
 0x4b3   : > { %5014 = vmatprep.subr.bf16.mxu1 %v15419_v1  ;;  %v15482_v1 = vld [vmem:[#allocation10 + $0x84] ss:$16 sps:$4 sm:$0xff]   ;;  %v15519_v33 = vld [vmem:[#allocation10 + $0x148] ss:$16 sps:$4 sm:$0xff]   ;;  %v15539_v62 = vld [vmem:[#allocation10 + $0x1ac] ss:$16 sps:$4 sm:$0xff]  }
 0x4b4   : > { %4811 = vmatpush1.bf16.msra.mxu0 %v15414_v45  ;;  %v15477_v45 = vld [vmem:[#allocation10 + $0x68] ss:$16 sps:$4 sm:$0xff]  }
 0x4b5   : > { %4812 = vmatprep.subr.bf16.mxu0 %v15422_v11  ;;  %v15485_v11 = vld [vmem:[#allocation10 + $0x8c] ss:$16 sps:$4 sm:$0xff]   ;;  %v15525_v26 = vld [vmem:[#allocation10 + $0x168] ss:$16 sps:$4 sm:$0xff]  }
 0x4b6   : > { %5015 = vmatpush1.bf16.msra.mxu1 %v15417_v47  ;;  %v15480_v47 = vld [vmem:[#allocation10 + $0x80] ss:$16 sps:$4 sm:$0xff]  }
 0x4b7   : > { %5016 = vmatprep.subr.bf16.mxu1 %v15425_v6  ;;  %v15488_v6 = vld [vmem:[#allocation10 + $0xa4] ss:$16 sps:$4 sm:$0xff]  }
 0x4b8   : > { %4813 = vmatpush1.bf16.msra.mxu0 %v15420_v0  ;;  %v15483_v0 = vld [vmem:[#allocation10 + $0x88] ss:$16 sps:$4 sm:$0xff]  }
 0x4b9   : > { %4814 = vmatprep.subr.bf16.mxu0 %v15428_v4  ;;  %v15491_v4 = vld [vmem:[#allocation10 + $0xac] ss:$16 sps:$4 sm:$0xff]  }
 0x4ba   : > { %5017 = vmatpush1.bf16.msra.mxu1 %v15423_v52  ;;  %v15486_v52 = vld [vmem:[#allocation10 + $0xa0] ss:$16 sps:$4 sm:$0xff]  }
 0x4bb   : > { %5018 = vmatprep.subr.bf16.mxu1 %v15431_v23  ;;  %v15494_v23 = vld [vmem:[#allocation10 + $0xc4] ss:$16 sps:$4 sm:$0xff]  }
 0x4bc   : > { %4815 = vmatpush1.bf16.msra.mxu0 %v15426_v37  ;;  %v15489_v37 = vld [vmem:[#allocation10 + $0xa8] ss:$16 sps:$4 sm:$0xff]  }
 0x4bd   : > { %4816 = vmatprep.subr.bf16.mxu0 %v15434_v51  ;;  %v15497_v51 = vld [vmem:[#allocation10 + $0xcc] ss:$16 sps:$4 sm:$0xff]  }
 0x4be   : > { %5019 = vmatpush1.bf16.msra.mxu1 %v15429_v43  ;;  %v15500_v43 = vld [vmem:[#allocation10 + $0xe4] ss:$16 sps:$4 sm:$0xff]  }
 0x4bf   : > { %5020 = vmatprep.subr.bf16.mxu1 %v15437_v56  ;;  %v15495_v56 = vld [vmem:[#allocation10 + $0xc8] ss:$16 sps:$4 sm:$0xff]  }
 0x4c0   : > { %4817 = vmatpush1.bf16.msra.mxu0 %v15432_v5  ;;  %v15503_v5 = vld [vmem:[#allocation10 + $0xec] ss:$16 sps:$4 sm:$0xff]  }
 0x4c1   : > { %4818 = vmatprep.subr.bf16.mxu0 %v15440_v63  ;;  %v15498_v63 = vld [vmem:[#allocation10 + $0xe0] ss:$16 sps:$4 sm:$0xff]  }
 0x4c2   : > { %5021 = vmatpush1.bf16.msra.mxu1 %v15435_v14  ;;  %v15506_v14 = vld [vmem:[#allocation10 + $0x104] ss:$16 sps:$4 sm:$0xff]  }
 0x4c3   : > { %5022 = vmatprep.subr.bf16.mxu1 %v15443_v42  ;;  %v15501_v42 = vld [vmem:[#allocation10 + $0xe8] ss:$16 sps:$4 sm:$0xff]  }
 0x4c4   : > { %4819 = vmatpush1.bf16.msra.mxu0 %v15438_v59  ;;  %v15509_v59 = vld [vmem:[#allocation10 + $0x10c] ss:$16 sps:$4 sm:$0xff]  }
 0x4c5   : > { %4820 = vmatprep.subr.bf16.mxu0 %v15446_v36  ;;  %v15504_v36 = vld [vmem:[#allocation10 + $0x100] ss:$16 sps:$4 sm:$0xff]  }
 0x4c6   : > { %5023 = vmatpush1.bf16.msra.mxu1 %v15441_v16  ;;  %v15512_v16 = vld [vmem:[#allocation10 + $0x124] ss:$16 sps:$4 sm:$0xff]  }
 0x4c7   : > { %5024 = vmatprep.subr.bf16.mxu1 %v15449_v2  ;;  %v15507_v2 = vld [vmem:[#allocation10 + $0x108] ss:$16 sps:$4 sm:$0xff]  }
 0x4c8   : > { %4821 = vmatpush1.bf16.msra.mxu0 %v15444_v29  ;;  %v15515_v29 = vld [vmem:[#allocation10 + $0x12c] ss:$16 sps:$4 sm:$0xff]  }
 0x4c9   : > { %4822 = vmatprep.subr.bf16.mxu0 %v15452_v8  ;;  %v15510_v8 = vld [vmem:[#allocation10 + $0x120] ss:$16 sps:$4 sm:$0xff]  }
 0x4ca   : > { %5025 = vmatpush1.bf16.msra.mxu1 %v15447_v32  ;;  %v15513_v32 = vld [vmem:[#allocation10 + $0x128] ss:$16 sps:$4 sm:$0xff]  }
 0x4cb   : > { %5026 = vmatprep.subr.bf16.mxu1 %v15455_v27  ;;  %v15521_v27 = vld [vmem:[#allocation10 + $0x14c] ss:$16 sps:$4 sm:$0xff]  }
 0x4cc   : > { %4823 = vmatpush1.bf16.msra.mxu0 %v15450_v30  ;;  %v15516_v30 = vld [vmem:[#allocation10 + $0x140] ss:$16 sps:$4 sm:$0xff]  }
 0x4cd   : > { %6583 = vmatprep.subr.bf16.mxu0 %v15458_v53  ;;  %v15524_v53 = vld [vmem:[#allocation10 + $0x164] ss:$16 sps:$4 sm:$0xff]  }
 0x4ce   : > { %5027 = vmatpush1.bf16.msra.mxu1 %v15453_v10  ;;  %v15527_v10 = vld [vmem:[#allocation10 + $0x16c] ss:$16 sps:$4 sm:$0xff]  }
 0x4cf   : > { %4825 = vmatmul.mubr.bf16.vlgmr.msra.gmra.mrb[32].mxu0 %v20855_v22  ;;  %6787 = vmatprep.subr.bf16.mxu1 %v15461_v34  ;;  %v15522_v34 = vld [vmem:[#allocation10 + $0x160] ss:$16 sps:$4 sm:$0xff]  }
 0x4d0   : > { %4834 = vmatprep.mubr.bf16.mxu0 %v20869_v24  ;;  %6584 = vmatpush1.bf16.msra.mxu0 %v15456_v17  ;;  %v15530_v17 = vld [vmem:[#allocation10 + $0x184] ss:$16 sps:$4 sm:$0xff]  }
 0x4d1   : > { %5029 = vmatmul.mubr.bf16.vlgmr.msra.gmra.mrb[40].mxu1 %v20855_v22  ;;  %6585 = vmatprep.subr.bf16.mxu0 %v15464_v25  ;;  %v15533_v25 = vld [vmem:[#allocation10 + $0x18c] ss:$16 sps:$4 sm:$0xff]  }
 0x4d2   : > { %5038 = vmatprep.mubr.bf16.mxu1 %v20869_v24  ;;  %6788 = vmatpush1.bf16.msra.mxu1 %v15459_v35  ;;  %v15528_v35 = vld [vmem:[#allocation10 + $0x180] ss:$16 sps:$4 sm:$0xff]  }
 0x4d3   : > { %6789 = vmatprep.subr.bf16.mxu1 %v15467_v12  ;;  %v15536_v12 = vld [vmem:[#allocation10 + $0x1a4] ss:$16 sps:$4 sm:$0xff]  }
 0x4d4   : > { %6586 = vmatpush1.bf16.msra.mxu0 %v15462_v9  ;;  %v15531_v9 = vld [vmem:[#allocation10 + $0x188] ss:$16 sps:$4 sm:$0xff]  }
 0x4d5   : > { %6587 = vmatprep.subr.bf16.mxu0 %v15470_v41  ;;  %v15534_v41 = vld [vmem:[#allocation10 + $0x1a0] ss:$16 sps:$4 sm:$0xff]  }
 0x4d6   : > { %6790 = vmatpush1.bf16.msra.mxu1 %v15465_v60  ;;  %v15542_v60 = vld [vmem:[#allocation10 + $0x1c4] ss:$16 sps:$4 sm:$0xff]  }
 0x4d7   : > { %4835 = vmatmul.mubr.bf16.gmra.mrb[36].mxu0 %v20875_v38  ;;  %6791 = vmatprep.subr.bf16.mxu1 %v15473_v20  ;;  %v15537_v20 = vld [vmem:[#allocation10 + $0x1a8] ss:$16 sps:$4 sm:$0xff]  }
 0x4d8   : > { %6588 = vmatpush1.bf16.msra.mxu0 %v15468_v54  ;;  %6615 = vmatprep.mubr.bf16.mxu0 %v20766_v40  ;;  %v15545_v54 = vld [vmem:[#allocation10 + $0x1cc] ss:$16 sps:$4 sm:$0xff]  }
 0x4d9   : > { %5039 = vmatmul.mubr.bf16.gmra.mrb[44].mxu1 %v20875_v38  ;;  %6589 = vmatprep.subr.bf16.mxu0 %v15476_v28  ;;  %v15540_v28 = vld [vmem:[#allocation10 + $0x1c0] ss:$16 sps:$4 sm:$0xff]  }
 0x4da   : > { %6792 = vmatpush1.bf16.msra.mxu1 %v15471_v31  ;;  %6819 = vmatprep.mubr.bf16.mxu1 %v20766_v40  ;;  %v15492_v40 = vld [vmem:[#allocation10 + $0xc0] ss:$16 sps:$4 sm:$0xff]   ;;  %v15548_v31 = vld [vmem:[#allocation10 + $0x1e4] ss:$16 sps:$4 sm:$0xff]  }
 0x4db   : > { %6793 = vmatprep.subr.bf16.mxu1 %v15479_v13  ;;  %v15543_v13 = vld [vmem:[#allocation10 + $0x1c8] ss:$16 sps:$4 sm:$0xff]  }
 0x4dc   : > { %6590 = vmatpush1.bf16.msra.mxu0 %v15474_v3  ;;  %v15551_v3 = vld [vmem:[#allocation10 + $0x1ec] ss:$16 sps:$4 sm:$0xff]  }
 0x4dd   : > { %6591 = vmatprep.subr.bf16.mxu0 %v15482_v1  ;;  %v15546_v1 = vld [vmem:[#allocation10 + $0x1e0] ss:$16 sps:$4 sm:$0xff]  }
 0x4de   : > { %6794 = vmatpush1.bf16.msra.mxu1 %v15477_v45  ;;  %v15554_v45 = vld [vmem:[#allocation10 + $0x204] ss:$16 sps:$4 sm:$0xff]  }
 0x4df   : > { %6795 = vmatprep.subr.bf16.mxu1 %v15485_v11  ;;  %v15549_v11 = vld [vmem:[#allocation10 + $0x1e8] ss:$16 sps:$4 sm:$0xff]  }
 0x4e0   : > { %6592 = vmatpush1.bf16.msra.mxu0 %v15480_v47  ;;  %v15557_v47 = vld [vmem:[#allocation10 + $0x20c] ss:$16 sps:$4 sm:$0xff]  }
 0x4e1   : > { %6593 = vmatprep.subr.bf16.mxu0 %v15488_v6  ;;  %v15552_v6 = vld [vmem:[#allocation10 + $0x200] ss:$16 sps:$4 sm:$0xff]  }
 0x4e2   : > { %6796 = vmatpush1.bf16.msra.mxu1 %v15483_v0  ;;  %v15560_v0 = vld [vmem:[#allocation10 + $0x224] ss:$16 sps:$4 sm:$0xff]  }
 0x4e3   : > { %6797 = vmatprep.subr.bf16.mxu1 %v15491_v4  ;;  %v15555_v4 = vld [vmem:[#allocation10 + $0x208] ss:$16 sps:$4 sm:$0xff]  }
 0x4e4   : > { %6594 = vmatpush1.bf16.msra.mxu0 %v15486_v52  ;;  %v15563_v52 = vld [vmem:[#allocation10 + $0x22c] ss:$16 sps:$4 sm:$0xff]  }
 0x4e5   : > { %6595 = vmatprep.subr.bf16.mxu0 %v15494_v23  ;;  %v15558_v23 = vld [vmem:[#allocation10 + $0x220] ss:$16 sps:$4 sm:$0xff]  }
 0x4e6   : > { %6798 = vmatpush1.bf16.msra.mxu1 %v15489_v37  ;;  %v15566_v37 = vld [vmem:[#allocation10 + $0x244] ss:$16 sps:$4 sm:$0xff]  }
 0x4e7   : > { %6799 = vmatprep.subr.bf16.mxu1 %v15497_v51  ;;  %v15561_v51 = vld [vmem:[#allocation10 + $0x228] ss:$16 sps:$4 sm:$0xff]  }
 0x4e8   : > { %6596 = vmatpush1.bf16.msra.mxu0 %v15492_v40  ;;  %v15569_v40 = vld [vmem:[#allocation10 + $0x24c] ss:$16 sps:$4 sm:$0xff]  }
 0x4e9   : > { %6597 = vmatprep.subr.bf16.mxu0 %v15500_v43  ;;  %v15564_v43 = vld [vmem:[#allocation10 + $0x240] ss:$16 sps:$4 sm:$0xff]  }
 0x4ea   : > { %6800 = vmatpush1.bf16.msra.mxu1 %v15495_v56  ;;  %v15572_v56 = vld [vmem:[#allocation10 + $0x264] ss:$16 sps:$4 sm:$0xff]  }
 0x4eb   : > { %6801 = vmatprep.subr.bf16.mxu1 %v15503_v5  ;;  %v15567_v5 = vld [vmem:[#allocation10 + $0x248] ss:$16 sps:$4 sm:$0xff]  }
 0x4ec   : > { %6598 = vmatpush1.bf16.msra.mxu0 %v15498_v63  ;;  %v15575_v63 = vld [vmem:[#allocation10 + $0x26c] ss:$16 sps:$4 sm:$0xff]  }
 0x4ed   : > { %6599 = vmatprep.subr.bf16.mxu0 %v15506_v14  ;;  %v15573_v14 = vld [vmem:[#allocation10 + $0x268] ss:$16 sps:$4 sm:$0xff]  }
 0x4ee   : > { %6802 = vmatpush1.bf16.msra.mxu1 %v15501_v42  ;;  %v15581_v42 = vld [vmem:[#allocation10 + $0x28c] ss:$16 sps:$4 sm:$0xff]  }
 0x4ef   : > { %6803 = vmatprep.subr.bf16.mxu1 %v15509_v59  ;;  %v15576_v59 = vld [vmem:[#allocation10 + $0x280] ss:$16 sps:$4 sm:$0xff]  }
 0x4f0   : > { %6600 = vmatpush1.bf16.msra.mxu0 %v15504_v36  ;;  %v15584_v36 = vld [vmem:[#allocation10 + $0x2a4] ss:$16 sps:$4 sm:$0xff]  }
 0x4f1   : > { %6601 = vmatprep.subr.bf16.mxu0 %v15512_v16  ;;  %v15579_v16 = vld [vmem:[#allocation10 + $0x288] ss:$16 sps:$4 sm:$0xff]  }
 0x4f2   : > { %6804 = vmatpush1.bf16.msra.mxu1 %v15507_v2  ;;  %v15587_v2 = vld [vmem:[#allocation10 + $0x2ac] ss:$16 sps:$4 sm:$0xff]  }
 0x4f3   : > { %6805 = vmatprep.subr.bf16.mxu1 %v15515_v29  ;;  %v15582_v29 = vld [vmem:[#allocation10 + $0x2a0] ss:$16 sps:$4 sm:$0xff]  }
 0x4f4   : > { %6602 = vmatpush1.bf16.msra.mxu0 %v15510_v8  ;;  %v15585_v8 = vld [vmem:[#allocation10 + $0x2a8] ss:$16 sps:$4 sm:$0xff]  }
 0x4f5   : > { %6603 = vmatprep.subr.bf16.mxu0 %v15518_v49  ;;  %v15593_v49 = vld [vmem:[#allocation10 + $0x2cc] ss:$16 sps:$4 sm:$0xff]  }
 0x4f6   : > { %6806 = vmatpush1.bf16.msra.mxu1 %v15513_v32  ;;  %v15596_v32 = vld [vmem:[#allocation10 + $0x2e4] ss:$16 sps:$4 sm:$0xff]  }
 0x4f7   : > { %6807 = vmatprep.subr.bf16.mxu1 %v15521_v27  ;;  %v15591_v27 = vld [vmem:[#allocation10 + $0x2c8] ss:$16 sps:$4 sm:$0xff]  }
 0x4f8   : > { %6604 = vmatpush1.bf16.msra.mxu0 %v15516_v30  ;;  %v15599_v30 = vld [vmem:[#allocation10 + $0x2ec] ss:$16 sps:$4 sm:$0xff]  }
 0x4f9   : > { %6605 = vmatprep.subr.bf16.mxu0 %v15524_v53  ;;  %v15594_v53 = vld [vmem:[#allocation10 + $0x2e0] ss:$16 sps:$4 sm:$0xff]  }
 0x4fa   : > { %6808 = vmatpush1.bf16.msra.mxu1 %v15519_v33  ;;  %v15602_v33 = vld [vmem:[#allocation10 + $0x304] ss:$16 sps:$4 sm:$0xff]  }
 0x4fb   : > { %6809 = vmatprep.subr.bf16.mxu1 %v15527_v10  ;;  %v15597_v10 = vld [vmem:[#allocation10 + $0x2e8] ss:$16 sps:$4 sm:$0xff]  }
 0x4fc   : > { %6606 = vmatpush1.bf16.msra.mxu0 %v15522_v34  ;;  %v15605_v34 = vld [vmem:[#allocation10 + $0x30c] ss:$16 sps:$4 sm:$0xff]  }
 0x4fd   : > { %6607 = vmatprep.subr.bf16.mxu0 %v15530_v17  ;;  %v15600_v17 = vld [vmem:[#allocation10 + $0x300] ss:$16 sps:$4 sm:$0xff]  }
 0x4fe   : > { %6810 = vmatpush1.bf16.msra.mxu1 %v15525_v26  ;;  %v15608_v26 = vld [vmem:[#allocation10 + $0x324] ss:$16 sps:$4 sm:$0xff]  }
 0x4ff   : > { %6811 = vmatprep.subr.bf16.mxu1 %v15533_v25  ;;  %v15603_v25 = vld [vmem:[#allocation10 + $0x308] ss:$16 sps:$4 sm:$0xff]  }
 0x500   : > { %6608 = vmatpush1.bf16.msra.mxu0 %v15528_v35  ;;  %v15611_v35 = vld [vmem:[#allocation10 + $0x32c] ss:$16 sps:$4 sm:$0xff]  }
 0x501   : > { %6609 = vmatprep.subr.bf16.mxu0 %v15536_v12  ;;  %v15606_v12 = vld [vmem:[#allocation10 + $0x320] ss:$16 sps:$4 sm:$0xff]  }
 0x502   : > { %6812 = vmatpush1.bf16.msra.mxu1 %v15531_v9  ;;  %v15614_v9 = vld [vmem:[#allocation10 + $0x344] ss:$16 sps:$4 sm:$0xff]  }
 0x503   : > { %6813 = vmatprep.subr.bf16.mxu1 %v15539_v62  ;;  %v15609_v62 = vld [vmem:[#allocation10 + $0x328] ss:$16 sps:$4 sm:$0xff]  }
 0x504   : > { %6610 = vmatpush1.bf16.msra.mxu0 %v15534_v41  ;;  %v15617_v41 = vld [vmem:[#allocation10 + $0x34c] ss:$16 sps:$4 sm:$0xff]  }
 0x505   : > { %6611 = vmatprep.subr.bf16.mxu0 %v15542_v60  ;;  %v15612_v60 = vld [vmem:[#allocation10 + $0x340] ss:$16 sps:$4 sm:$0xff]  }
 0x506   : > { %6814 = vmatpush1.bf16.msra.mxu1 %v15537_v20  ;;  %v15620_v20 = vld [vmem:[#allocation10 + $0x364] ss:$16 sps:$4 sm:$0xff]  }
 0x507   : > { %6815 = vmatprep.subr.bf16.mxu1 %v15545_v54  ;;  %v15615_v54 = vld [vmem:[#allocation10 + $0x348] ss:$16 sps:$4 sm:$0xff]  }
 0x508   : > { %6612 = vmatpush1.bf16.msra.mxu0 %v15540_v28  ;;  %v15623_v28 = vld [vmem:[#allocation10 + $0x36c] ss:$16 sps:$4 sm:$0xff]  }
 0x509   : > { %6613 = vmatprep.subr.bf16.mxu0 %v15548_v31  ;;  %v15618_v31 = vld [vmem:[#allocation10 + $0x360] ss:$16 sps:$4 sm:$0xff]  }
 0x50a   : > { %6816 = vmatpush1.bf16.msra.mxu1 %v15543_v13  ;;  %v15626_v13 = vld [vmem:[#allocation10 + $0x384] ss:$16 sps:$4 sm:$0xff]  }
 0x50b   : > { %6817 = vmatprep.subr.bf16.mxu1 %v15551_v3  ;;  %v15621_v3 = vld [vmem:[#allocation10 + $0x368] ss:$16 sps:$4 sm:$0xff]  }
 0x50c   : > { %6614 = vmatpush1.bf16.msra.mxu0 %v15546_v1  ;;  %v15629_v1 = vld [vmem:[#allocation10 + $0x38c] ss:$16 sps:$4 sm:$0xff]  }
 0x50d   : > { %6634 = vmatprep.subr.bf16.mxu0 %v15554_v45  ;;  %v15624_v45 = vld [vmem:[#allocation10 + $0x380] ss:$16 sps:$4 sm:$0xff]  }
 0x50e   : > { %6818 = vmatpush1.bf16.msra.mxu1 %v15549_v11  ;;  %v15632_v11 = vld [vmem:[#allocation10 + $0x3a4] ss:$16 sps:$4 sm:$0xff]  }
 0x50f   : > { %6616 = vmatmul.mubr.bf16.vlgmr.msra.gmra.mrb[40].mxu0 %v20763_v48  ;;  %6838 = vmatprep.subr.bf16.mxu1 %v15557_v47  ;;  %v15627_v47 = vld [vmem:[#allocation10 + $0x388] ss:$16 sps:$4 sm:$0xff]  }
 0x510   : > { %6625 = vmatprep.mubr.bf16.mxu0 %v20775_v21  ;;  %6635 = vmatpush1.bf16.msra.mxu0 %v15552_v6  ;;  %v15635_v6 = vld [vmem:[#allocation10 + $0x3ac] ss:$16 sps:$4 sm:$0xff]  }
 0x511   : > { %6820 = vmatmul.mubr.bf16.vlgmr.msra.gmra.mrb[48].mxu1 %v20763_v48  ;;  %6636 = vmatprep.subr.bf16.mxu0 %v15560_v0  ;;  %v15570_v48 = vld [vmem:[#allocation10 + $0x260] ss:$16 sps:$4 sm:$0xff]  }
 0x512   : > { %6829 = vmatprep.mubr.bf16.mxu1 %v20775_v21  ;;  %6839 = vmatpush1.bf16.msra.mxu1 %v15555_v4  ;;  %v15578_v21 = vld [vmem:[#allocation10 + $0x284] ss:$16 sps:$4 sm:$0xff]   ;;  %v15630_v0 = vld [vmem:[#allocation10 + $0x3a0] ss:$16 sps:$4 sm:$0xff]  }
 0x513   : > { %6840 = vmatprep.subr.bf16.mxu1 %v15563_v52  ;;  %v15638_v4 = vld [vmem:[#allocation10 + $0x3c4] ss:$16 sps:$4 sm:$0xff]   ;;  %v15633_v52 = vld [vmem:[#allocation10 + $0x3a8] ss:$16 sps:$4 sm:$0xff]  }
 0x514   : > { %6637 = vmatpush1.bf16.msra.mxu0 %v15558_v23  ;;  %v15641_v23 = vld [vmem:[#allocation10 + $0x3cc] ss:$16 sps:$4 sm:$0xff]  }
 0x515   : > { %6638 = vmatprep.subr.bf16.mxu0 %v15566_v37  ;;  %v15636_v37 = vld [vmem:[#allocation10 + $0x3c0] ss:$16 sps:$4 sm:$0xff]  }
 0x516   : > { %6841 = vmatpush1.bf16.msra.mxu1 %v15561_v51  ;;  %v15644_v51 = vld [vmem:[#allocation10 + $0x3e4] ss:$16 sps:$4 sm:$0xff]  }
 0x517   : > { %6626 = vmatmul.mubr.bf16.gmra.mrb[44].mxu0 %v20778_v44  ;;  %6842 = vmatprep.subr.bf16.mxu1 %v15569_v40  ;;  %v15639_v40 = vld [vmem:[#allocation10 + $0x3c8] ss:$16 sps:$4 sm:$0xff]  }
 0x518   : > { %6639 = vmatpush1.bf16.msra.mxu0 %v15564_v43  ;;  %6666 = vmatprep.mubr.bf16.mxu0 %v20794_v18  ;;  %v15647_v43 = vld [vmem:[#allocation10 + $0x3ec] ss:$16 sps:$4 sm:$0xff]  }
 0x519   : > { %6830 = vmatmul.mubr.bf16.gmra.mrb[52].mxu1 %v20778_v44  ;;  %6640 = vmatprep.subr.bf16.mxu0 %v15572_v56  ;;  %v15590_v44 = vld [vmem:[#allocation10 + $0x2c4] ss:$16 sps:$4 sm:$0xff]   ;;  %v15642_v56 = vld [vmem:[#allocation10 + $0x3e0] ss:$16 sps:$4 sm:$0xff]  }
 0x51a   : > { %6843 = vmatpush1.bf16.msra.mxu1 %v15567_v5  ;;  %6870 = vmatprep.mubr.bf16.mxu1 %v20794_v18  ;;  %v15588_v18 = vld [vmem:[#allocation10 + $0x2c0] ss:$16 sps:$4 sm:$0xff]   ;;  %v15650_v5 = vld [vmem:[#allocation10 + $0x404] ss:$16 sps:$4 sm:$0xff]  }
 0x51b   : > { %6844 = vmatprep.subr.bf16.mxu1 %v15575_v63  ;;  %v15645_v63 = vld [vmem:[#allocation10 + $0x3e8] ss:$16 sps:$4 sm:$0xff]  }
 0x51c   : > { %6641 = vmatpush1.bf16.msra.mxu0 %v15570_v48  ;;  %v15653_v48 = vld [vmem:[#allocation10 + $0x40c] ss:$16 sps:$4 sm:$0xff]  }
 0x51d   : > { %6642 = vmatprep.subr.bf16.mxu0 %v15578_v21  ;;  %v15648_v21 = vld [vmem:[#allocation10 + $0x400] ss:$16 sps:$4 sm:$0xff]  }
 0x51e   : > { %6845 = vmatpush1.bf16.msra.mxu1 %v15573_v14  ;;  %v15656_v14 = vld [vmem:[#allocation10 + $0x424] ss:$16 sps:$4 sm:$0xff]  }
 0x51f   : > { %6846 = vmatprep.subr.bf16.mxu1 %v15581_v42  ;;  %v15651_v42 = vld [vmem:[#allocation10 + $0x408] ss:$16 sps:$4 sm:$0xff]  }
 0x520   : > { %6643 = vmatpush1.bf16.msra.mxu0 %v15576_v59  ;;  %v15659_v59 = vld [vmem:[#allocation10 + $0x42c] ss:$16 sps:$4 sm:$0xff]  }
 0x521   : > { %6644 = vmatprep.subr.bf16.mxu0 %v15584_v36  ;;  %v15654_v36 = vld [vmem:[#allocation10 + $0x420] ss:$16 sps:$4 sm:$0xff]  }
 0x522   : > { %6847 = vmatpush1.bf16.msra.mxu1 %v15579_v16  ;;  %v15662_v16 = vld [vmem:[#allocation10 + $0x444] ss:$16 sps:$4 sm:$0xff]  }
 0x523   : > { %6848 = vmatprep.subr.bf16.mxu1 %v15587_v2  ;;  %v15657_v2 = vld [vmem:[#allocation10 + $0x428] ss:$16 sps:$4 sm:$0xff]  }
 0x524   : > { %6645 = vmatpush1.bf16.msra.mxu0 %v15582_v29  ;;  %v15665_v29 = vld [vmem:[#allocation10 + $0x44c] ss:$16 sps:$4 sm:$0xff]  }
 0x525   : > { %6646 = vmatprep.subr.bf16.mxu0 %v15590_v44  ;;  %v15660_v44 = vld [vmem:[#allocation10 + $0x440] ss:$16 sps:$4 sm:$0xff]  }
 0x526   : > { %6849 = vmatpush1.bf16.msra.mxu1 %v15585_v8  ;;  %v15668_v8 = vld [vmem:[#allocation10 + $0x464] ss:$16 sps:$4 sm:$0xff]  }
 0x527   : > { %6850 = vmatprep.subr.bf16.mxu1 %v15593_v49  ;;  %v15663_v49 = vld [vmem:[#allocation10 + $0x448] ss:$16 sps:$4 sm:$0xff]  }
 0x528   : > { %6647 = vmatpush1.bf16.msra.mxu0 %v15588_v18  ;;  %v15671_v18 = vld [vmem:[#allocation10 + $0x46c] ss:$16 sps:$4 sm:$0xff]  }
 0x529   : > { %6648 = vmatprep.subr.bf16.mxu0 %v15596_v32  ;;  %v15669_v32 = vld [vmem:[#allocation10 + $0x468] ss:$16 sps:$4 sm:$0xff]  }
 0x52a   : > { %6851 = vmatpush1.bf16.msra.mxu1 %v15591_v27  ;;  %v15677_v27 = vld [vmem:[#allocation10 + $0x48c] ss:$16 sps:$4 sm:$0xff]  }
 0x52b   : > { %6852 = vmatprep.subr.bf16.mxu1 %v15599_v30  ;;  %v15672_v30 = vld [vmem:[#allocation10 + $0x480] ss:$16 sps:$4 sm:$0xff]  }
 0x52c   : > { %6649 = vmatpush1.bf16.msra.mxu0 %v15594_v53  ;;  %v15680_v53 = vld [vmem:[#allocation10 + $0x4a4] ss:$16 sps:$4 sm:$0xff]  }
 0x52d   : > { %6650 = vmatprep.subr.bf16.mxu0 %v15602_v33  ;;  %v15675_v33 = vld [vmem:[#allocation10 + $0x488] ss:$16 sps:$4 sm:$0xff]  }
 0x52e   : > { %6853 = vmatpush1.bf16.msra.mxu1 %v15597_v10  ;;  %v15683_v10 = vld [vmem:[#allocation10 + $0x4ac] ss:$16 sps:$4 sm:$0xff]  }
 0x52f   : > { %6854 = vmatprep.subr.bf16.mxu1 %v15605_v34  ;;  %v15678_v34 = vld [vmem:[#allocation10 + $0x4a0] ss:$16 sps:$4 sm:$0xff]  }
 0x530   : > { %6651 = vmatpush1.bf16.msra.mxu0 %v15600_v17  ;;  %v15681_v17 = vld [vmem:[#allocation10 + $0x4a8] ss:$16 sps:$4 sm:$0xff]  }
 0x531   : > { %6652 = vmatprep.subr.bf16.mxu0 %v15608_v26  ;;  %v15689_v26 = vld [vmem:[#allocation10 + $0x4cc] ss:$16 sps:$4 sm:$0xff]  }
 0x532   : > { %6855 = vmatpush1.bf16.msra.mxu1 %v15603_v25  ;;  %v15692_v25 = vld [vmem:[#allocation10 + $0x4e4] ss:$16 sps:$4 sm:$0xff]  }
 0x533   : > { %6856 = vmatprep.subr.bf16.mxu1 %v15611_v35  ;;  %v15687_v35 = vld [vmem:[#allocation10 + $0x4c8] ss:$16 sps:$4 sm:$0xff]  }
 0x534   : > { %6653 = vmatpush1.bf16.msra.mxu0 %v15606_v12  ;;  %v15695_v12 = vld [vmem:[#allocation10 + $0x4ec] ss:$16 sps:$4 sm:$0xff]  }
 0x535   : > { %6654 = vmatprep.subr.bf16.mxu0 %v15614_v9  ;;  %v15690_v9 = vld [vmem:[#allocation10 + $0x4e0] ss:$16 sps:$4 sm:$0xff]  }
 0x536   : > { %6857 = vmatpush1.bf16.msra.mxu1 %v15609_v62  ;;  %v15698_v62 = vld [vmem:[#allocation10 + $0x504] ss:$16 sps:$4 sm:$0xff]  }
 0x537   : > { %6858 = vmatprep.subr.bf16.mxu1 %v15617_v41  ;;  %v15693_v41 = vld [vmem:[#allocation10 + $0x4e8] ss:$16 sps:$4 sm:$0xff]  }
 0x538   : > { %6655 = vmatpush1.bf16.msra.mxu0 %v15612_v60  ;;  %v15701_v60 = vld [vmem:[#allocation10 + $0x50c] ss:$16 sps:$4 sm:$0xff]  }
 0x539   : > { %6656 = vmatprep.subr.bf16.mxu0 %v15620_v20  ;;  %v15696_v20 = vld [vmem:[#allocation10 + $0x500] ss:$16 sps:$4 sm:$0xff]  }
 0x53a   : > { %6859 = vmatpush1.bf16.msra.mxu1 %v15615_v54  ;;  %v15704_v54 = vld [vmem:[#allocation10 + $0x524] ss:$16 sps:$4 sm:$0xff]  }
 0x53b   : > { %6860 = vmatprep.subr.bf16.mxu1 %v15623_v28  ;;  %v15699_v28 = vld [vmem:[#allocation10 + $0x508] ss:$16 sps:$4 sm:$0xff]  }
 0x53c   : > { %6657 = vmatpush1.bf16.msra.mxu0 %v15618_v31  ;;  %v15707_v31 = vld [vmem:[#allocation10 + $0x52c] ss:$16 sps:$4 sm:$0xff]  }
 0x53d   : > { %6658 = vmatprep.subr.bf16.mxu0 %v15626_v13  ;;  %v15702_v13 = vld [vmem:[#allocation10 + $0x520] ss:$16 sps:$4 sm:$0xff]  }
 0x53e   : > { %6861 = vmatpush1.bf16.msra.mxu1 %v15621_v3  ;;  %v15710_v3 = vld [vmem:[#allocation10 + $0x544] ss:$16 sps:$4 sm:$0xff]  }
 0x53f   : > { %6862 = vmatprep.subr.bf16.mxu1 %v15629_v1  ;;  %v15705_v1 = vld [vmem:[#allocation10 + $0x528] ss:$16 sps:$4 sm:$0xff]  }
 0x540   : > { %6659 = vmatpush1.bf16.msra.mxu0 %v15624_v45  ;;  %v15713_v45 = vld [vmem:[#allocation10 + $0x54c] ss:$16 sps:$4 sm:$0xff]  }
 0x541   : > { %6660 = vmatprep.subr.bf16.mxu0 %v15632_v11  ;;  %v15708_v11 = vld [vmem:[#allocation10 + $0x540] ss:$16 sps:$4 sm:$0xff]  }
 0x542   : > { %6863 = vmatpush1.bf16.msra.mxu1 %v15627_v47  ;;  %v15716_v47 = vld [vmem:[#allocation10 + $0x564] ss:$16 sps:$4 sm:$0xff]  }
 0x543   : > { %6864 = vmatprep.subr.bf16.mxu1 %v15635_v6  ;;  %v15711_v6 = vld [vmem:[#allocation10 + $0x548] ss:$16 sps:$4 sm:$0xff]  }
 0x544   : > { %6661 = vmatpush1.bf16.msra.mxu0 %v15630_v0  ;;  %v15719_v0 = vld [vmem:[#allocation10 + $0x56c] ss:$16 sps:$4 sm:$0xff]  }
 0x545   : > { %6662 = vmatprep.subr.bf16.mxu0 %v15638_v4  ;;  %v15714_v4 = vld [vmem:[#allocation10 + $0x560] ss:$16 sps:$4 sm:$0xff]  }
 0x546   : > { %6865 = vmatpush1.bf16.msra.mxu1 %v15633_v52  ;;  %v15722_v52 = vld [vmem:[#allocation10 + $0x584] ss:$16 sps:$4 sm:$0xff]  }
 0x547   : > { %6866 = vmatprep.subr.bf16.mxu1 %v15641_v23  ;;  %v15717_v23 = vld [vmem:[#allocation10 + $0x568] ss:$16 sps:$4 sm:$0xff]  }
 0x548   : > { %6663 = vmatpush1.bf16.msra.mxu0 %v15636_v37  ;;  %v15725_v37 = vld [vmem:[#allocation10 + $0x58c] ss:$16 sps:$4 sm:$0xff]  }
 0x549   : > { %6664 = vmatprep.subr.bf16.mxu0 %v15644_v51  ;;  %v15720_v51 = vld [vmem:[#allocation10 + $0x580] ss:$16 sps:$4 sm:$0xff]  }
 0x54a   : > { %6867 = vmatpush1.bf16.msra.mxu1 %v15639_v40  ;;  %v15728_v40 = vld [vmem:[#allocation10 + $0x5a4] ss:$16 sps:$4 sm:$0xff]  }
 0x54b   : > { %6868 = vmatprep.subr.bf16.mxu1 %v15647_v43  ;;  %v15723_v43 = vld [vmem:[#allocation10 + $0x588] ss:$16 sps:$4 sm:$0xff]  }
 0x54c   : > { %6665 = vmatpush1.bf16.msra.mxu0 %v15642_v56  ;;  %v15731_v56 = vld [vmem:[#allocation10 + $0x5ac] ss:$16 sps:$4 sm:$0xff]  }
 0x54d   : > { %6685 = vmatprep.subr.bf16.mxu0 %v15650_v5  ;;  %v15726_v5 = vld [vmem:[#allocation10 + $0x5a0] ss:$16 sps:$4 sm:$0xff]  }
 0x54e   : > { %6869 = vmatpush1.bf16.msra.mxu1 %v15645_v63  ;;  %v15734_v63 = vld [vmem:[#allocation10 + $0x5c4] ss:$16 sps:$4 sm:$0xff]  }
 0x54f   : > { %6667 = vmatmul.mubr.bf16.vlgmr.msra.gmra.mrb[40].mxu0 %v20791_v19  ;;  %6889 = vmatprep.subr.bf16.mxu1 %v15653_v48  ;;  %v15729_v48 = vld [vmem:[#allocation10 + $0x5a8] ss:$16 sps:$4 sm:$0xff]  }
 0x550   : > { %6676 = vmatprep.mubr.bf16.mxu0 %v20801_v61  ;;  %6686 = vmatpush1.bf16.msra.mxu0 %v15648_v21  ;;  %v15737_v21 = vld [vmem:[#allocation10 + $0x5cc] ss:$16 sps:$4 sm:$0xff]  }
 0x551   : > { %6871 = vmatmul.mubr.bf16.vlgmr.msra.gmra.mrb[48].mxu1 %v20791_v19  ;;  %6687 = vmatprep.subr.bf16.mxu0 %v15656_v14  ;;  %v15666_v19 = vld [vmem:[#allocation10 + $0x460] ss:$16 sps:$4 sm:$0xff]  }
 0x552   : > { %6880 = vmatprep.mubr.bf16.mxu1 %v20801_v61  ;;  %6890 = vmatpush1.bf16.msra.mxu1 %v15651_v42  ;;  %v15674_v61 = vld [vmem:[#allocation10 + $0x484] ss:$16 sps:$4 sm:$0xff]   ;;  %v15732_v14 = vld [vmem:[#allocation10 + $0x5c0] ss:$16 sps:$4 sm:$0xff]  }
 0x553   : > { %6891 = vmatprep.subr.bf16.mxu1 %v15659_v59  ;;  %v15740_v42 = vld [vmem:[#allocation10 + $0x5e4] ss:$16 sps:$4 sm:$0xff]   ;;  %v15735_v59 = vld [vmem:[#allocation10 + $0x5c8] ss:$16 sps:$4 sm:$0xff]  }
 0x554   : > { %6688 = vmatpush1.bf16.msra.mxu0 %v15654_v36  ;;  %v15743_v36 = vld [vmem:[#allocation10 + $0x5ec] ss:$16 sps:$4 sm:$0xff]  }
 0x555   : > { %6689 = vmatprep.subr.bf16.mxu0 %v15662_v16  ;;  %v15738_v16 = vld [vmem:[#allocation10 + $0x5e0] ss:$16 sps:$4 sm:$0xff]  }
 0x556   : > { %6892 = vmatpush1.bf16.msra.mxu1 %v15657_v2  ;;  %v15746_v2 = vld [vmem:[#allocation10 + $0x604] ss:$16 sps:$4 sm:$0xff]  }
 0x557   : > { %6677 = vmatmul.mubr.bf16.gmra.mrb[44].mxu0 %v20807_v7  ;;  %6893 = vmatprep.subr.bf16.mxu1 %v15665_v29  ;;  %v15741_v29 = vld [vmem:[#allocation10 + $0x5e8] ss:$16 sps:$4 sm:$0xff]  }
 0x558   : > { %6690 = vmatpush1.bf16.msra.mxu0 %v15660_v44  ;;  %6717 = vmatprep.mubr.bf16.mxu0 %v20825_v50  ;;  %v15749_v44 = vld [vmem:[#allocation10 + $0x60c] ss:$16 sps:$4 sm:$0xff]  }
 0x559   : > { %6881 = vmatmul.mubr.bf16.gmra.mrb[52].mxu1 %v20807_v7  ;;  %6691 = vmatprep.subr.bf16.mxu0 %v15668_v8  ;;  %v15686_v7 = vld [vmem:[#allocation10 + $0x4c4] ss:$16 sps:$4 sm:$0xff]   ;;  %v15744_v8 = vld [vmem:[#allocation10 + $0x600] ss:$16 sps:$4 sm:$0xff]  }
 0x55a   : > { %6894 = vmatpush1.bf16.msra.mxu1 %v15663_v49  ;;  %6921 = vmatprep.mubr.bf16.mxu1 %v20825_v50  ;;  %v15684_v50 = vld [vmem:[#allocation10 + $0x4c0] ss:$16 sps:$4 sm:$0xff]   ;;  %v15752_v49 = vld [vmem:[#allocation10 + $0x624] ss:$16 sps:$4 sm:$0xff]  }
 0x55b   : > { %6895 = vmatprep.subr.bf16.mxu1 %v15671_v18  ;;  %v15747_v18 = vld [vmem:[#allocation10 + $0x608] ss:$16 sps:$4 sm:$0xff]  }
 0x55c   : > { %6692 = vmatpush1.bf16.msra.mxu0 %v15666_v19  ;;  %v15755_v19 = vld [vmem:[#allocation10 + $0x62c] ss:$16 sps:$4 sm:$0xff]  }
 0x55d   : > { %6693 = vmatprep.subr.bf16.mxu0 %v15674_v61  ;;  %v15750_v61 = vld [vmem:[#allocation10 + $0x620] ss:$16 sps:$4 sm:$0xff]  }
 0x55e   : > { %6896 = vmatpush1.bf16.msra.mxu1 %v15669_v32  ;;  %v15758_v32 = vld [vmem:[#allocation10 + $0x644] ss:$16 sps:$4 sm:$0xff]  }
 0x55f   : > { %6897 = vmatprep.subr.bf16.mxu1 %v15677_v27  ;;  %v15753_v27 = vld [vmem:[#allocation10 + $0x628] ss:$16 sps:$4 sm:$0xff]  }
 0x560   : > { %6694 = vmatpush1.bf16.msra.mxu0 %v15672_v30  ;;  %v15761_v30 = vld [vmem:[#allocation10 + $0x64c] ss:$16 sps:$4 sm:$0xff]  }
 0x561   : > { %6695 = vmatprep.subr.bf16.mxu0 %v15680_v53  ;;  %v15756_v53 = vld [vmem:[#allocation10 + $0x640] ss:$16 sps:$4 sm:$0xff]  }
 0x562   : > { %6898 = vmatpush1.bf16.msra.mxu1 %v15675_v33  ;;  %v15764_v33 = vld [vmem:[#allocation10 + $0x664] ss:$16 sps:$4 sm:$0xff]  }
 0x563   : > { %6899 = vmatprep.subr.bf16.mxu1 %v15683_v10  ;;  %v15759_v10 = vld [vmem:[#allocation10 + $0x648] ss:$16 sps:$4 sm:$0xff]  }
 0x564   : > { %6696 = vmatpush1.bf16.msra.mxu0 %v15678_v34  ;;  %v15767_v34 = vld [vmem:[#allocation10 + $0x66c] ss:$16 sps:$4 sm:$0xff]  }
 0x565   : > { %6697 = vmatprep.subr.bf16.mxu0 %v15686_v7  ;;  %v15765_v7 = vld [vmem:[#allocation10 + $0x668] ss:$16 sps:$4 sm:$0xff]  }
 0x566   : > { %6900 = vmatpush1.bf16.msra.mxu1 %v15681_v17  ;;  %v15773_v17 = vld [vmem:[#allocation10 + $0x68c] ss:$16 sps:$4 sm:$0xff]  }
 0x567   : > { %6901 = vmatprep.subr.bf16.mxu1 %v15689_v26  ;;  %v15768_v26 = vld [vmem:[#allocation10 + $0x680] ss:$16 sps:$4 sm:$0xff]  }
 0x568   : > { %6698 = vmatpush1.bf16.msra.mxu0 %v15684_v50  ;;  %v15776_v50 = vld [vmem:[#allocation10 + $0x6a4] ss:$16 sps:$4 sm:$0xff]  }
 0x569   : > { %6699 = vmatprep.subr.bf16.mxu0 %v15692_v25  ;;  %v15771_v25 = vld [vmem:[#allocation10 + $0x688] ss:$16 sps:$4 sm:$0xff]  }
 0x56a   : > { %6902 = vmatpush1.bf16.msra.mxu1 %v15687_v35  ;;  %v15779_v35 = vld [vmem:[#allocation10 + $0x6ac] ss:$16 sps:$4 sm:$0xff]  }
 0x56b   : > { %6903 = vmatprep.subr.bf16.mxu1 %v15695_v12  ;;  %v15774_v12 = vld [vmem:[#allocation10 + $0x6a0] ss:$16 sps:$4 sm:$0xff]  }
 0x56c   : > { %6700 = vmatpush1.bf16.msra.mxu0 %v15690_v9 }
 0x56d   : > { %6701 = vmatprep.subr.bf16.mxu0 %v15698_v62  ;;  %v15777_v62 = vld [vmem:[#allocation10 + $0x6a8] ss:$16 sps:$4 sm:$0xff]  }
 0x56e   : > { %6904 = vmatpush1.bf16.msra.mxu1 %v15693_v41  ;;  %v15785_v41 = vld [vmem:[#allocation10 + $0x6cc] ss:$16 sps:$4 sm:$0xff]  }
 0x56f   : > { %6905 = vmatprep.subr.bf16.mxu1 %v15701_v60 }
 0x570   : > { %6702 = vmatpush1.bf16.msra.mxu0 %v15696_v20 }
 0x571   : > { %6703 = vmatprep.subr.bf16.mxu0 %v15704_v54  ;;  %v15780_v54 = vld [vmem:[#allocation10 + $0x6c0] ss:$16 sps:$4 sm:$0xff]  }
 0x572   : > { %6906 = vmatpush1.bf16.msra.mxu1 %v15699_v28 }
 0x573   : > { %6907 = vmatprep.subr.bf16.mxu1 %v15707_v31 }
 0x574   : > { %6704 = vmatpush1.bf16.msra.mxu0 %v15702_v13  ;;  %v15788_v13 = vld [vmem:[#allocation10 + $0x6e4] ss:$16 sps:$4 sm:$0xff]  }
 0x575   : > { %6705 = vmatprep.subr.bf16.mxu0 %v15710_v3 }
 0x576   : > { %6908 = vmatpush1.bf16.msra.mxu1 %v15705_v1  ;;  %v15783_v1 = vld [vmem:[#allocation10 + $0x6c8] ss:$16 sps:$4 sm:$0xff]  }
 0x577   : > { %6909 = vmatprep.subr.bf16.mxu1 %v15713_v45 }
 0x578   : > { %6706 = vmatpush1.bf16.msra.mxu0 %v15708_v11  ;;  %v15791_v11 = vld [vmem:[#allocation10 + $0x6ec] ss:$16 sps:$4 sm:$0xff]  }
 0x579   : > { %6707 = vmatprep.subr.bf16.mxu0 %v15716_v47  ;;  %v15786_v47 = vld [vmem:[#allocation10 + $0x6e0] ss:$16 sps:$4 sm:$0xff]  }
 0x57a   : > { %6910 = vmatpush1.bf16.msra.mxu1 %v15711_v6  ;;  %v15794_v6 = vld [vmem:[#allocation10 + $0x704] ss:$16 sps:$4 sm:$0xff]  }
 0x57b   : > { %6911 = vmatprep.subr.bf16.mxu1 %v15719_v0 }
 0x57c   : > { %6708 = vmatpush1.bf16.msra.mxu0 %v15714_v4  ;;  %v15789_v4 = vld [vmem:[#allocation10 + $0x6e8] ss:$16 sps:$4 sm:$0xff]  }
 0x57d   : > { %6709 = vmatprep.subr.bf16.mxu0 %v15722_v52 }
 0x57e   : > { %6912 = vmatpush1.bf16.msra.mxu1 %v15717_v23  ;;  %v15797_v23 = vld [vmem:[#allocation10 + $0x70c] ss:$16 sps:$4 sm:$0xff]  }
 0x57f   : > { %6913 = vmatprep.subr.bf16.mxu1 %v15725_v37 }
 0x580   : > { %6710 = vmatpush1.bf16.msra.mxu0 %v15720_v51 }
 0x581   : > { %6711 = vmatprep.subr.bf16.mxu0 %v15728_v40  ;;  %v15792_v40 = vld [vmem:[#allocation10 + $0x700] ss:$16 sps:$4 sm:$0xff]  }
 0x582   : > { %6914 = vmatpush1.bf16.msra.mxu1 %v15723_v43 }
 0x583   : > { %6915 = vmatprep.subr.bf16.mxu1 %v15731_v56 }
 0x584   : > { %6712 = vmatpush1.bf16.msra.mxu0 %v15726_v5  ;;  %v15800_v5 = vld [vmem:[#allocation10 + $0x724] ss:$16 sps:$4 sm:$0xff]  }
 0x585   : > { %6713 = vmatprep.subr.bf16.mxu0 %v15734_v63 }
 0x586   : > { %6916 = vmatpush1.bf16.msra.mxu1 %v15729_v48  ;;  %v15795_v48 = vld [vmem:[#allocation10 + $0x708] ss:$16 sps:$4 sm:$0xff]  }
 0x587   : > { %6917 = vmatprep.subr.bf16.mxu1 %v15737_v21 }
 0x588   : > { %6714 = vmatpush1.bf16.msra.mxu0 %v15732_v14  ;;  %v15803_v14 = vld [vmem:[#allocation10 + $0x72c] ss:$16 sps:$4 sm:$0xff]  }
 0x589   : > { %6715 = vmatprep.subr.bf16.mxu0 %v15740_v42  ;;  %v15798_v42 = vld [vmem:[#allocation10 + $0x720] ss:$16 sps:$4 sm:$0xff]  }
 0x58a   : > { %6918 = vmatpush1.bf16.msra.mxu1 %v15735_v59  ;;  %v15806_v59 = vld [vmem:[#allocation10 + $0x744] ss:$16 sps:$4 sm:$0xff]  }
 0x58b   : > { %6919 = vmatprep.subr.bf16.mxu1 %v15743_v36  ;;  %v15801_v36 = vld [vmem:[#allocation10 + $0x728] ss:$16 sps:$4 sm:$0xff]  }
 0x58c   : > { %6716 = vmatpush1.bf16.msra.mxu0 %v15738_v16  ;;  %v15809_v16 = vld [vmem:[#allocation10 + $0x74c] ss:$16 sps:$4 sm:$0xff]  }
 0x58d   : > { %6736 = vmatprep.subr.bf16.mxu0 %v15746_v2  ;;  %v15804_v2 = vld [vmem:[#allocation10 + $0x740] ss:$16 sps:$4 sm:$0xff]  }
 0x58e   : > { %6920 = vmatpush1.bf16.msra.mxu1 %v15741_v29  ;;  %v15812_v29 = vld [vmem:[#allocation10 + $0x764] ss:$16 sps:$4 sm:$0xff]  }
 0x58f   : > { %6718 = vmatmul.mubr.bf16.vlgmr.msra.gmra.mrb[40].mxu0 %v20821_v55  ;;  %6940 = vmatprep.subr.bf16.mxu1 %v15749_v44  ;;  %v15807_v44 = vld [vmem:[#allocation10 + $0x748] ss:$16 sps:$4 sm:$0xff]  }
 0x590   : > { %6727 = vmatprep.mubr.bf16.mxu0 %v20835_v39  ;;  %6737 = vmatpush1.bf16.msra.mxu0 %v15744_v8  ;;  %v15815_v8 = vld [vmem:[#allocation10 + $0x76c] ss:$16 sps:$4 sm:$0xff]  }
 0x591   : > { %6922 = vmatmul.mubr.bf16.vlgmr.msra.gmra.mrb[48].mxu1 %v20821_v55  ;;  %6738 = vmatprep.subr.bf16.mxu0 %v15752_v49  ;;  %v15762_v55 = vld [vmem:[#allocation10 + $0x660] ss:$16 sps:$4 sm:$0xff]  }
 0x592   : > { %6931 = vmatprep.mubr.bf16.mxu1 %v20835_v39  ;;  %6941 = vmatpush1.bf16.msra.mxu1 %v15747_v18  ;;  %v15770_v39 = vld [vmem:[#allocation10 + $0x684] ss:$16 sps:$4 sm:$0xff]   ;;  %v15810_v49 = vld [vmem:[#allocation10 + $0x760] ss:$16 sps:$4 sm:$0xff]  }
 0x593   : > { %6942 = vmatprep.subr.bf16.mxu1 %v15755_v19  ;;  %v15818_v18 = vld [vmem:[#allocation10 + $0x784] ss:$16 sps:$4 sm:$0xff]   ;;  %v15813_v19 = vld [vmem:[#allocation10 + $0x768] ss:$16 sps:$4 sm:$0xff]  }
 0x594   : > { %6739 = vmatpush1.bf16.msra.mxu0 %v15750_v61  ;;  %v15821_v61 = vld [vmem:[#allocation10 + $0x78c] ss:$16 sps:$4 sm:$0xff]  }
 0x595   : > { %6740 = vmatprep.subr.bf16.mxu0 %v15758_v32  ;;  %v15816_v32 = vld [vmem:[#allocation10 + $0x780] ss:$16 sps:$4 sm:$0xff]  }
 0x596   : > { %6943 = vmatpush1.bf16.msra.mxu1 %v15753_v27  ;;  %v15824_v27 = vld [vmem:[#allocation10 + $0x7a4] ss:$16 sps:$4 sm:$0xff]  }
 0x597   : > { %6728 = vmatmul.mubr.bf16.gmra.mrb[44].mxu0 %v20841_v46  ;;  %6944 = vmatprep.subr.bf16.mxu1 %v15761_v30  ;;  %v15819_v30 = vld [vmem:[#allocation10 + $0x788] ss:$16 sps:$4 sm:$0xff]  }
 0x598   : > { %6741 = vmatpush1.bf16.msra.mxu0 %v15756_v53  ;;  %6768 = vmatprep.mubr.bf16.mxu0 %v20859_v57  ;;  %v15827_v53 = vld [vmem:[#allocation10 + $0x7ac] ss:$16 sps:$4 sm:$0xff]  }
 0x599   : > { %6932 = vmatmul.mubr.bf16.gmra.mrb[52].mxu1 %v20841_v46  ;;  %6742 = vmatprep.subr.bf16.mxu0 %v15764_v33  ;;  %v15782_v46 = vld [vmem:[#allocation10 + $0x6c4] ss:$16 sps:$4 sm:$0xff]   ;;  %v15822_v33 = vld [vmem:[#allocation10 + $0x7a0] ss:$16 sps:$4 sm:$0xff]  }
 0x59a   : > { %6945 = vmatpush1.bf16.msra.mxu1 %v15759_v10  ;;  %6972 = vmatprep.mubr.bf16.mxu1 %v20859_v57  ;;  %v15830_v10 = vld [vmem:[#allocation10 + $0x7c4] ss:$16 sps:$4 sm:$0xff]  }
 0x59b   : > { %6946 = vmatprep.subr.bf16.mxu1 %v15767_v34  ;;  %v15825_v34 = vld [vmem:[#allocation10 + $0x7a8] ss:$16 sps:$4 sm:$0xff]  }
 0x59c   : > { %6743 = vmatpush1.bf16.msra.mxu0 %v15762_v55  ;;  %v15833_v55 = vld [vmem:[#allocation10 + $0x7cc] ss:$16 sps:$4 sm:$0xff]  }
 0x59d   : > { %6744 = vmatprep.subr.bf16.mxu0 %v15770_v39  ;;  %v15828_v39 = vld [vmem:[#allocation10 + $0x7c0] ss:$16 sps:$4 sm:$0xff]  }
 0x59e   : > { %6947 = vmatpush1.bf16.msra.mxu1 %v15765_v7  ;;  %v15836_v7 = vld [vmem:[#allocation10 + $0x7e4] ss:$16 sps:$4 sm:$0xff]  }
 0x59f   : > { %6948 = vmatprep.subr.bf16.mxu1 %v15773_v17  ;;  %v15831_v17 = vld [vmem:[#allocation10 + $0x7c8] ss:$16 sps:$4 sm:$0xff]  }
 0x5a0   : > { %6745 = vmatpush1.bf16.msra.mxu0 %v15768_v26  ;;  %v15839_v26 = vld [vmem:[#allocation10 + $0x7ec] ss:$16 sps:$4 sm:$0xff]  }
 0x5a1   : > { %6746 = vmatprep.subr.bf16.mxu0 %v15776_v50  ;;  %v15834_v50 = vld [vmem:[#allocation10 + $0x7e0] ss:$16 sps:$4 sm:$0xff]  }
 0x5a2   : > { %6949 = vmatpush1.bf16.msra.mxu1 %v15771_v25  ;;  %v20905_v9 = vpop.f32.mrb[32].mxu0  ;;  %v15837_v25 = vld [vmem:[#allocation10 + $0x7e8] ss:$16 sps:$4 sm:$0xff]  }
 0x5a3   : > { %v20907_v57 = vpop.f32.mrb[33].mxu0  ;;  %6950 = vmatprep.subr.bf16.mxu1 %v15779_v35 }
 0x5a4   : > { %v20909_v60 = vpop.f32.mrb[40].mxu1  ;;  %v20911_v20 = vpop.f32.mrb[34].mxu0  ;;  %6747 = vmatpush1.bf16.msra.mxu0 %v15774_v12 }
 0x5a5   : > { %v20913_v28 = vpop.f32.mrb[41].mxu1  ;;  %v20915_v31 = vpop.f32.mrb[35].mxu0  ;;  %6748 = vmatprep.subr.bf16.mxu0 %v15782_v46 }
 0x5a6   : > { %v20917_v3 = vpop.f32.mrb[42].mxu1  ;;  %6951 = vmatpush1.bf16.msra.mxu1 %v15777_v62 }
 0x5a7   : > { %v20919_v45 = vpop.f32.mrb[43].mxu1  ;;  %6952 = vmatprep.subr.bf16.mxu1 %v15785_v41 }
 0x5a8   : > { %6749 = vmatpush1.bf16.msra.mxu0 %v15780_v54 }
 0x5a9   : > { %6750 = vmatprep.subr.bf16.mxu0 %v15788_v13 }
 0x5aa   : > { %6953 = vmatpush1.bf16.msra.mxu1 %v15783_v1  ;;  %v20921_v0 = vpop.f32.mrb[36].mxu0 }
 0x5ab   : > { %v20923_v52 = vpop.f32.mrb[37].mxu0  ;;  %6954 = vmatprep.subr.bf16.mxu1 %v15791_v11 }
 0x5ac   : > { %v20925_v37 = vpop.f32.mrb[44].mxu1  ;;  %v4840_v51 = vpop.f32.mrb[38].mxu0  ;;  %6751 = vmatpush1.bf16.msra.mxu0 %v15786_v47 }
 0x5ad   : > { %v20927_v43 = vpop.f32.mrb[45].mxu1  ;;  %v4841_v56 = vpop.f32.mrb[39].mxu0  ;;  %6752 = vmatprep.subr.bf16.mxu0 %v15794_v6 }
 0x5ae   : > { %v5044_v63 = vpop.f32.mrb[46].mxu1  ;;  %6955 = vmatpush1.bf16.msra.mxu1 %v15789_v4 }
 0x5af   : > { %v5045_v21 = vpop.f32.mrb[47].mxu1  ;;  %6956 = vmatprep.subr.bf16.mxu1 %v15797_v23 }
 0x5b0   : > { %6753 = vmatpush1.bf16.msra.mxu0 %v15792_v40 }
 0x5b1   : > { %6754 = vmatprep.subr.bf16.mxu0 %v15800_v5 }
 0x5b2   : > { %6957 = vmatpush1.bf16.msra.mxu1 %v15795_v48 }
 0x5b3   : > { %6958 = vmatprep.subr.bf16.mxu1 %v15803_v14 }
 0x5b4   : > { %6755 = vmatpush1.bf16.msra.mxu0 %v15798_v42 }
 0x5b5   : > { %6756 = vmatprep.subr.bf16.mxu0 %v15806_v59 }
 0x5b6   : > { %6959 = vmatpush1.bf16.msra.mxu1 %v15801_v36 }
 0x5b7   : > { %6960 = vmatprep.subr.bf16.mxu1 %v15809_v16 }
 0x5b8   : > { %6757 = vmatpush1.bf16.msra.mxu0 %v15804_v2 }
 0x5b9   : > { %6758 = vmatprep.subr.bf16.mxu0 %v15812_v29 }
 0x5ba   : > { %6961 = vmatpush1.bf16.msra.mxu1 %v15807_v44  ;;  %v7921_v44 = vld [vmem:[%s22595_s17 + $0x8] sm:$0xff] }
 0x5bb   : > { %6962 = vmatprep.subr.bf16.mxu1 %v15815_v8  ;;  %v7922_v8 = vld [vmem:[%s22595_s17 + $0x10] sm:$0xff] }
 0x5bc   : > { %6759 = vmatpush1.bf16.msra.mxu0 %v15810_v49  ;;  %v7924_v49 = vld [vmem:[%s22595_s17 + $0x20] sm:$0xff] }
 0x5bd   : > { %6760 = vmatprep.subr.bf16.mxu0 %v15818_v18  ;;  %v7926_v18 = vld [vmem:[%s22595_s17 + $0x30] sm:$0xff] }
 0x5be   : > { %6963 = vmatpush1.bf16.msra.mxu1 %v15813_v19  ;;  %v7928_v19 = vld [vmem:[%s22595_s17 + $0x40] sm:$0xff] }
 0x5bf   : > { %6964 = vmatprep.subr.bf16.mxu1 %v15821_v61  ;;  %v7930_v61 = vld [vmem:[%s22595_s17 + $0x50] sm:$0xff] }
 0x5c0   : > { %6761 = vmatpush1.bf16.msra.mxu0 %v15816_v32  ;;  %v7932_v32 = vld [vmem:[%s22595_s17 + $0x60] sm:$0xff] }
 0x5c1   : > { %6762 = vmatprep.subr.bf16.mxu0 %v15824_v27  ;;  %v7934_v27 = vld [vmem:[%s22595_s17 + $0x70] sm:$0xff] }
 0x5c2   : > { %6965 = vmatpush1.bf16.msra.mxu1 %v15819_v30  ;;  %v7936_v30 = vld [vmem:[%s22595_s17 + $0x80] sm:$0xff] }
 0x5c3   : > { %6966 = vmatprep.subr.bf16.mxu1 %v15827_v53  ;;  %v7938_v53 = vld [vmem:[%s22595_s17 + $0x90] sm:$0xff] }
 0x5c4   : > { %6763 = vmatpush1.bf16.msra.mxu0 %v15822_v33 }
 0x5c5   : > { %6764 = vmatprep.subr.bf16.mxu0 %v15830_v10 }
 0x5c6   : > { %6967 = vmatpush1.bf16.msra.mxu1 %v15825_v34 }
 0x5c7   : > { %6968 = vmatprep.subr.bf16.mxu1 %v15833_v55 }
 0x5c8   : > { %6765 = vmatpush1.bf16.msra.mxu0 %v15828_v39 }
 0x5c9   : > { %6766 = vmatprep.subr.bf16.mxu0 %v15836_v7 }
 0x5ca   : > { %6969 = vmatpush1.bf16.msra.mxu1 %v15831_v17 }
 0x5cb   : > { %6970 = vmatprep.subr.bf16.mxu1 %v15839_v26 }
 0x5cc   : > { %6767 = vmatpush1.bf16.msra.mxu0 %v15834_v50 }
 0x5ce   : > { %6971 = vmatpush1.bf16.msra.mxu1 %v15837_v25 }
 0x5cf   : > { %6769 = vmatmul.mubr.bf16.vlgmr.msra.gmra.mrb[40].mxu0 %v20855_v22 }
 0x5d0   : > { %6778 = vmatprep.mubr.bf16.mxu0 %v20869_v24 }
 0x5d1   : > { %6973 = vmatmul.mubr.bf16.vlgmr.msra.gmra.mrb[48].mxu1 %v20855_v22 }
 0x5d2   : > { %6982 = vmatprep.mubr.bf16.mxu1 %v20869_v24 }
 0x5d7   : > { %6779 = vmatmul.mubr.bf16.gmra.mrb[44].mxu0 %v20875_v38 }
 0x5d8   : > { %7240 = vmatprep.mubr.bf16.mxu0 %v16603_v58 }
 0x5d9   : > { %6983 = vmatmul.mubr.bf16.gmra.mrb[52].mxu1 %v20875_v38 }
 0x5da   : > { %7373 = vmatprep.mubr.bf16.mxu1 %v16603_v58 }
 0x6a2   : > { %v6770_v35 = vpop.f32.mrb[40].mxu0 }
 0x6a3   : > { %v6991_v12 = vmax.f32 %v20905_v9, %v6770_v35  ;;  %v6772_v46 = vpop.f32.mrb[41].mxu0 }
 0x6a4   : > { %v6992_v62 = vmax.f32 %v20907_v57, %v6772_v46  ;;  %v6974_v41 = vpop.f32.mrb[48].mxu1  ;;  %v6774_v54 = vpop.f32.mrb[42].mxu0 }
 0x6a5   : > { %v6993_v22 = vmax.f32 %v20909_v60, %v6974_v41  ;;  %v6995_v24 = vmax.f32 %v20911_v20, %v6774_v54  ;;  %v6976_v13 = vpop.f32.mrb[49].mxu1  ;;  %v6776_v1 = vpop.f32.mrb[43].mxu0 }
 0x6a6   : > { %v6994_v11 = vmax.f32 %v20913_v28, %v6976_v13  ;;  %v6996_v38 = vmax.f32 %v20915_v31, %v6776_v1  ;;  %v6978_v47 = vpop.f32.mrb[50].mxu1 }
 0x6a7   : > { %v14811_v6 = vpack.i.bf16 %v6993_v22, %v6992_v62  ;;  %v14831_v4 = vpack.i.bf16 %v6995_v24, %v6991_v12  ;;  %v20943_v23 = vpack.c.bf16 %v6995_v24, %v6991_v12  ;;  %v6997_v9 = vmax.f32 %v20917_v3, %v6978_v47  ;;  %v6980_v57 = vpop.f32.mrb[51].mxu1 }
 0x6a8   : > { %v14806_v51 = vpack.i.bf16 %v6996_v38, %v6992_v62  ;;  %v14801_v40 = vpack.i.bf16 %v6996_v38, %v6991_v12  ;;  %v6998_v60 = vmax.f32 %v20919_v45, %v6980_v57  ;;  %v20947_v56 = vpack.c.bf16 %v6996_v38, %v6992_v62 }
 0x6a9   : > { %v14821_v20 = vpack.i.bf16 %v6997_v9, %v6993_v22  ;;  %v20949_v5 = vpack.c.bf16 %v6997_v9, %v6993_v22  ;;  %14812 = vrot.lane.b32.xlu0 %v14811_v6, %s16600_s6 }
 0x6aa   : > { %v14846_v28 = vpack.i.bf16 %v6998_v60, %v6994_v11  ;;  %14802 = vrot.lane.b32.xlu1 %v14801_v40, %s16600_s6  ;;  %v6780_v31 = vpop.f32.mrb[44].mxu0  ;;  %7208 = vmatprep.subr.bf16.mxu0 %v20947_v56  ;;  %v20954_v63 = vpack.c.bf16 %v6998_v60, %v6994_v11 }
 0x6ab   : > { %v6999_v3 = vmax.f32 %v20921_v0, %v6780_v31  ;;  %v6782_v48 = vpop.f32.mrb[45].mxu0  ;;  %7209 = vmatpush1.bf16.msra.mxu0 %v20943_v23 }
 0x6ac   : > { %v7000_v45 = vmax.f32 %v20923_v52, %v6782_v48  ;;  %v6984_v21 = vpop.f32.mrb[52].mxu1  ;;  %7341 = vmatprep.subr.bf16.mxu1 %v20954_v63  ;;  %v6784_v14 = vpop.f32.mrb[46].mxu0 }
 0x6ad   : > { %v20961_v42 = vmax.f32 %v20925_v37, %v6984_v21  ;;  %v6986_v59 = vpop.f32.mrb[53].mxu1  ;;  %7342 = vmatpush1.bf16.msra.mxu1 %v20949_v5  ;;  %7007 = vrot.lane.b32.xlu0 %v6999_v3, %s16600_s6  ;;  %v6785_v36 = vpop.f32.mrb[47].mxu0 }
 0x6ae   : > { %v14816_v16 = vpack.i.bf16 %v6997_v9, %v7000_v45  ;;  %v20966_v0 = vmax.f32 %v20927_v43, %v6986_v59  ;;  %v6988_v2 = vpop.f32.mrb[54].mxu1  ;;  %14807 = vrot.lane.b32.xlu1 %v14806_v51, %s16601_s13  ;;  %v14836_v37 = vpack.i.bf16 %v7000_v45, %v6999_v3 }
 0x6af   : > { %v6989_v52 = vpop.f32.mrb[55].mxu1  ;;  %v14826_v29 = vpack.i.bf16 %v6995_v24, %v20961_v42 }
 0x6b0   : > { %v14841_v43 = vpack.i.bf16 %v20966_v0, %v6998_v60 }
 0x6b1   : > { %14817 = vrot.lane.b32.xlu0 %v14816_v16, %s16600_s6 }
 0x6b2   : > { %14827 = vrot.lane.b32.xlu1 %v14826_v29, %s16600_s6 }
 0x6b5   : > { %14822 = vrot.lane.b32.xlu0 %v14821_v20, %s16601_s13 }
 0x6b6   : > { %14832 = vrot.lane.b32.xlu1 %v14831_v4, %s16601_s13 }
 0x6b9   : > { %14837 = vrot.lane.b32.xlu0 %v14836_v37, %s16601_s13 }
 0x6ba   : > { %7055 = vrot.lane.b32.xlu1 %v20961_v42, %s16601_s13 }
 0x6bd   : > { %7021 = vrot.lane.b32.xlu0 %v6994_v11, %s16600_s6 }
 0x6be   : > { %14842 = vrot.lane.b32.xlu1 %v14841_v43, %s16600_s6 }
 0x6c1   : > { %14847 = vrot.lane.b32.xlu0 %v14846_v28, %s16601_s13 }
 0x6c2   : > { %7061 = vrot.lane.b32.xlu1 %v20966_v0, %s16601_s13 }
 0x6c6   : > { %7947 = vperm.xlu1 %14800, %v7921_v44  }
 0x6ca   : > { %7952 = vperm.xlu1 %14800, %v7922_v8  }
 0x6ce   : > { %7962 = vperm.xlu1 %14800, %v7924_v49  }
 0x6d2   : > { %7972 = vperm.xlu1 %14800, %v7926_v18  }
 0x6d6   : > { %7982 = vperm.xlu1 %14800, %v7928_v19  }
 0x6da   : > { %7992 = vperm.xlu1 %14800, %v7930_v61  }
 0x6de   : > { %8002 = vperm.xlu1 %14800, %v7932_v32  }
 0x6e2   : > { %8012 = vperm.xlu1 %14800, %v7934_v27  }
 0x6e6   : > { %8022 = vperm.xlu1 %14800, %v7936_v30  }
 0x6ea   : > { %8032 = vperm.xlu1 %14800, %v7938_v53   ;;  %v15840_v53 = vld [vmem:[%s23724_s16] sm:$0xff]   ;;  %s23802_s16 = sld [smem:[#allocation26_spill]] }
 0x6f0   : > { %s795_s5 = sand.u32 1, %s23802_s16  }
 0x6f1   : > { %s796_s22 = scalar_lea.vmem [#allocation18], %s795_s5  ;;  %s12162_s23 = scalar_lea.sflag [#allocation6], %s795_s5 }
 0x6f2   : > { %s12174_s20 = sshll.u32 %s796_s22, 4  ;;  %s22538_s20 = int_to_ptr.vmem [resolvable:$true] %s12174_s20 }
 0x6f3   : > { %p16505_p10 = scmp.lt.s32.totalorder %s22538_s20, %s16503_s15 }
 0x71b   : > { %v14813_v33 = vpop.permute.xlu0 %14812 }
 0x71c   : > { %v14815_v10 = vunpack.i.h.bf16 %v14813_v33  ;;  %v14814_v34 = vunpack.i.l.bf16 %v14813_v33  ;;  %v14803_v55 = vpop.permute.xlu1 %14802 }
 0x71d   : > { %v14804_v39 = vunpack.i.l.bf16 %v14803_v55  ;;  %v14805_v46 = vunpack.i.h.bf16 %v14803_v55 }
 0x71e   : > { %v7030_v7 = vsel %vm973_vm4, %v14814_v34, %v14815_v10 }
 0x71f   : > { %v7033_v17 = vsel %vm973_vm4, %v14804_v39, %v14814_v34  ;;  %v21017_v26 = vpop.permute.xlu0 %7007  ;;  %v21019_v50 = vpack.c.bf16 %v7030_v7, %v7000_v45 }
 0x720   : > { %v21021_v25 = vpack.c.bf16 %v7033_v17, %v6999_v3  ;;  %v14808_v35 = vpop.permute.xlu1 %14807 }
 0x721   : > { %7210 = vmatprep.subr.bf16.mxu0 %v21019_v50  ;;  %v14810_v11 = vunpack.i.h.bf16 %v14808_v35  ;;  %v14809_v38 = vunpack.i.l.bf16 %v14808_v35 }
 0x722   : > { %7211 = vmatpush1.bf16.msra.mxu0 %v21021_v25 }
 0x723   : > { %v14818_v12 = vpop.permute.xlu0 %14817 }
 0x724   : > { %v14820_v62 = vunpack.i.h.bf16 %v14818_v12  ;;  %v14819_v41 = vunpack.i.l.bf16 %v14818_v12  ;;  %v14828_v54 = vpop.permute.xlu1 %14827 }
 0x725   : > { %v14830_v22 = vunpack.i.h.bf16 %v14828_v54  ;;  %v14829_v24 = vunpack.i.l.bf16 %v14828_v54 }
 0x726   : > { %v7035_v13 = vsel %vm973_vm4, %v21017_v26, %v14819_v41  ;;  %v7031_v1 = vsel %vm973_vm4, %v14805_v46, %v14820_v62 }
 0x727   : > { %v7034_v47 = vsel %vm973_vm4, %v14830_v22, %v14805_v46  ;;  %v14823_v6 = vpop.permute.xlu0 %14822  ;;  %v7032_v4 = vsel %vm973_vm4, %v14819_v41, %v14829_v24  ;;  %v7920_v46 = vld [vmem:[%s22595_s17] sm:$0xff] }
 0x728   : > { %v21034_v9 = vpack.c.bf16 %v7035_v13, %v7034_v47  ;;  %v14825_v57 = vunpack.i.h.bf16 %v14823_v6  ;;  %v14824_v51 = vunpack.i.l.bf16 %v14823_v6  ;;  %v14833_v40 = vpop.permute.xlu1 %14832  ;;  %v21036_v60 = vpack.c.bf16 %v7032_v4, %v7031_v1  ;;  %7942 = vperm.xlu0 %14851, %v7920_v46   ;;  %v7929_v47 = vld [vmem:[%s22595_s17 + $0x48] sm:$0xff]  ;;  %v7931_v6 = vld [vmem:[%s22595_s17 + $0x58] sm:$0xff]  ;;  %v15844_v4 = vld [vmem:[%s23725_s27 + $0x20] sm:$0xff]  }
 0x729   : > { %v14835_v20 = vunpack.i.h.bf16 %v14833_v40  ;;  %v14834_v28 = vunpack.i.l.bf16 %v14833_v40  ;;  %v7937_v40 = vld [vmem:[%s22595_s17 + $0x88] sm:$0xff] }
 0x72a   : > { %7212 = vmatprep.subr.bf16.mxu0 %v21036_v60  ;;  %v7066_v31 = vsel %vm1142_vm6, %v14809_v38, %v14824_v51  ;;  %v7067_v3 = vsel %vm1142_vm6, %v14810_v11, %v14825_v57  ;;  %v15898_v46 = vld [vmem:[%s22585_s7 + $0x64] ss:$8 sps:$4 sm:$0xff]  }
 0x72b   : > { %v7069_v48 = vsel %vm1142_vm6, %v14834_v28, %v14809_v38  ;;  %v7070_v45 = vsel %vm1142_vm6, %v14835_v20, %v14810_v11  ;;  %v14838_v21 = vpop.permute.xlu0 %14837  ;;  %7213 = vmatpush1.bf16.msra.mxu0 %v21034_v9  ;;  %v21048_v14 = vpack.c.bf16 %v7067_v3, %v7066_v31  ;;  %v7925_v38 = vld [vmem:[%s22595_s17 + $0x28] sm:$0xff]  ;;  %v15848_v31 = vld [vmem:[%s23725_s27 + $0x40] sm:$0xff]  }
 0x72c   : > { %v21050_v59 = vpack.c.bf16 %v7070_v45, %v7069_v48  ;;  %v14840_v36 = vunpack.i.h.bf16 %v14838_v21  ;;  %v14839_v16 = vunpack.i.l.bf16 %v14838_v21  ;;  %v7056_v2 = vpop.permute.xlu1 %7055  ;;  %v15849_v3 = vld [vmem:[%s23725_s27 + $0x48] sm:$0xff]   ;;  %v15850_v48 = vld [vmem:[%s23726_s0] sm:$0xff]   ;;  %v15852_v21 = vld [vmem:[%s23727_s25 + $0x10] sm:$0xff]   ;;  %s16498_s0 = scalar_lea.vmem %s22538_s20, 16 }
 0x72d   : > { %7214 = vmatprep.subr.bf16.mxu0 %v21048_v14  ;;  %v15851_v45 = vld [vmem:[%s23727_s25 + $0x8] sm:$0xff]   ;;  %p16499_p6 = scmp.ne.s32.totalorder %s22538_s20, %s16498_s0 }
 0x72e   : > { %v7068_v52 = vsel %vm1142_vm6, %v14840_v36, %v7056_v2  ;;  %v7071_v29 = vsel %vm1142_vm6, %v14839_v16, %v14840_v36  ;;  %v15862_v36 = vld [vmem:[%s22585_s7 + $0x4] ss:$8 sps:$4 sm:$0xff]  }
 0x72f   : > { %v21057_v37 = vpack.c.bf16 %v7068_v52, %v7068_v52  ;;  %v7022_v43 = vpop.permute.xlu0 %7021  ;;  %7215 = vmatpush1.bf16.msra.mxu0 %v21050_v59  ;;  %v7091_v44 = vpack.c.bf16 %v7071_v29, %v7071_v29  ;;  %v15866_v52 = vld [vmem:[%s22585_s7 + $0x10] ss:$8 sps:$4 sm:$0xff]   ;;  %v15868_v29 = vld [vmem:[%s22585_s7 + $0x14] ss:$8 sps:$4 sm:$0xff]   ;;  %p16500_p5 = pnand %p16499_p6, %p23806_p9 }
 0x730   : > { %v7027_v8 = vsel %vm973_vm4, %v14815_v10, %v7022_v43  ;;  %v7036_v49 = vsel %vm973_vm4, %v7022_v43, %v14804_v39  ;;  %v14843_v18 = vpop.permute.xlu1 %14842  ;;  %v15854_v43 = vld [vmem:[%s23727_s25 + $0x20] sm:$0xff]  }
 0x731   : > { %v21065_v19 = vpack.c.bf16 %v7027_v8, %v20961_v42  ;;  %v7082_v61 = vpack.c.bf16 %v7036_v49, %v20966_v0  ;;  %v14845_v32 = vunpack.i.h.bf16 %v14843_v18  ;;  %v14844_v27 = vunpack.i.l.bf16 %v14843_v18  ;;  %12892 = vmatprep.subr.msk.bf16.mxu0 %vm2120_vm5, %v21057_v37  ;;  %v15874_v8 = vld [vmem:[%s22585_s7 + $0x24] ss:$8 sps:$4 sm:$0xff]   ;;  %v15872_v49 = vld [vmem:[%s22585_s7 + $0x20] ss:$8 sps:$4 sm:$0xff]   ;;  %p16501_p0 = pneg %p16500_p5 }
 0x732   : > { %v7197_v30 = vsel %vm2120_vm5, %v7091_v44, 0  ;;  %v15871_v44 = vld [vmem:[#allocation12 + $0x14] ss:$8 sps:$4 sm:$0xff]   ;;  %v15875_v18 = vld [vmem:[#allocation12 + $0x20] ss:$8 sps:$4 sm:$0xff]  }
 0x733   : > { %v7028_v33 = vsel %vm973_vm4, %v14820_v62, %v14844_v27  ;;  %v7029_v42 = vsel %vm973_vm4, %v14829_v24, %v14845_v32  ;;  %7343 = vmatprep.subr.bf16.mxu1 %v7082_v61  ;;  %v14848_v10 = vpop.permute.xlu0 %14847  ;;  %7217 = vmatpush1.bf16.msra.mxu0 %v7197_v30  ;;  %v7037_v0 = vsel %vm973_vm4, %v14844_v27, %v14830_v22  ;;  %v15841_v24 = vld [vmem:[%s23725_s27 + $0x8] sm:$0xff]   ;;  %v15880_v27 = vld [vmem:[%s22585_s7 + $0x34] ss:$8 sps:$4 sm:$0xff]  }
 0x734   : > { %v14850_v34 = vunpack.i.h.bf16 %v14848_v10  ;;  %v14849_v55 = vunpack.i.l.bf16 %v14848_v10  ;;  %7344 = vmatpush1.bf16.msra.mxu1 %v21065_v19  ;;  %7574 = vmatprep.subr.bf16.mxu0 %v20947_v56  ;;  %v7038_v39 = vsel %vm973_vm4, %v14845_v32, %v21017_v26  ;;  %v7062_v7 = vpop.permute.xlu1 %7061  ;;  %v7085_v35 = vpack.c.bf16 %v7029_v42, %v7028_v33  ;;  %v15878_v32 = vld [vmem:[%s22585_s7 + $0x30] ss:$8 sps:$4 sm:$0xff]   ;;  %v15886_v33 = vld [vmem:[%s22585_s7 + $0x44] ss:$8 sps:$4 sm:$0xff]   ;;  %v15884_v10 = vld [vmem:[%s22585_s7 + $0x40] ss:$8 sps:$4 sm:$0xff]  }
 0x735   : > { %v7086_v17 = vpack.c.bf16 %v7038_v39, %v7037_v0  ;;  %v7065_v41 = vsel %vm1142_vm6, %v7056_v2, %v7062_v7  ;;  %v7074_v54 = vsel %vm1142_vm6, %v7062_v7, %v14839_v16  ;;  %v15863_v16 = vld [vmem:[#allocation12] ss:$8 sps:$4 sm:$0xff]   ;;  %v15865_v2 = vld [vmem:[#allocation12 + $0x4] ss:$8 sps:$4 sm:$0xff]   ;;  %v15892_v39 = vld [vmem:[%s22585_s7 + $0x54] ss:$8 sps:$4 sm:$0xff]  }
 0x736   : > { %v7063_v12 = vsel %vm1142_vm6, %v14824_v51, %v14849_v55  ;;  %12893 = vmatmul.mubr.msk.bf16.vlgmr.msra.gmra.mrb[48].mxu0 %vm7165_vm8, %v15840_v53  ;;  %v7064_v62 = vsel %vm1142_vm6, %v14825_v57, %v14850_v34  ;;  %v7072_v56 = vsel %vm1142_vm6, %v14849_v55, %v14834_v28  ;;  %v7073_v26 = vsel %vm1142_vm6, %v14850_v34, %v14835_v20  ;;  %v7935_v57 = vld [vmem:[%s22595_s17 + $0x78] sm:$0xff]  ;;  %v15845_v51 = vld [vmem:[%s23725_s27 + $0x28] sm:$0xff]   ;;  %v15846_v20 = vld [vmem:[%s23725_s27 + $0x30] sm:$0xff]  }
 0x737   : > { %7345 = vmatprep.subr.bf16.mxu1 %v7086_v17  ;;  %7575 = vmatpush1.bf16.msra.mxu0 %v20943_v23  ;;  %v7090_v22 = vpack.c.bf16 %v7073_v26, %v7072_v56  ;;  %v7089_v23 = vpack.c.bf16 %v7064_v62, %v7063_v12  ;;  %v7093_v13 = vpack.c.bf16 %v7065_v41, %v7065_v41  ;;  %v15847_v28 = vld [vmem:[%s23725_s27 + $0x38] sm:$0xff]   ;;  %v15889_v42 = vld [vmem:[#allocation12 + $0x44] ss:$8 sps:$4 sm:$0xff]   ;;  %v15887_v0 = vld [vmem:[#allocation12 + $0x40] ss:$8 sps:$4 sm:$0xff]  }
 0x738   : > { %7346 = vmatpush1.bf16.msra.mxu1 %v7085_v35  ;;  %7576 = vmatprep.subr.bf16.mxu0 %v21019_v50  ;;  %v7094_v1 = vpack.c.bf16 %v7074_v54, %v7074_v54  ;;  %v7923_v50 = vld [vmem:[%s22595_s17 + $0x18] sm:$0xff]  ;;  %v15856_v34 = vld [vmem:[%s23727_s25 + $0x30] sm:$0xff]   ;;  %v15896_v12 = vld [vmem:[%s22585_s7 + $0x60] ss:$8 sps:$4 sm:$0xff]  }
 0x739   : > { %7250 = vmatprep.mubr.bf16.mxu0 %v16603_v58  ;;  %7347 = vmatprep.subr.bf16.mxu1 %v7090_v22  ;;  %v7203_v11 = vsel %vm2120_vm5, %v7093_v13, 0  ;;  %v15890_v55 = vld [vmem:[%s22585_s7 + $0x50] ss:$8 sps:$4 sm:$0xff]   ;;  %v15899_v62 = vld [vmem:[#allocation12 + $0x60] ss:$8 sps:$4 sm:$0xff]  }
 0x73a   : > { %7957 = vperm.xlu0 %14851, %v7923_v50   ;;  %v15893_v7 = vld [vmem:[#allocation12 + $0x50] ss:$8 sps:$4 sm:$0xff]   ;;  %v15901_v56 = vld [vmem:[#allocation12 + $0x64] ss:$8 sps:$4 sm:$0xff]   ;;  %v15907_v54 = vld [vmem:[#allocation12 + $0x74] ss:$8 sps:$4 sm:$0xff]  }
 0x73b   : > { %7577 = vmatpush1.bf16.msra.mxu0 %v21021_v25  ;;  %v15842_v25 = vld [vmem:[%s23725_s27 + $0x10] sm:$0xff]   ;;  %v15910_v13 = vld [vmem:[%s22585_s7 + $0x84] ss:$8 sps:$4 sm:$0xff]  }
 0x73c   : > { %7348 = vmatpush1.bf16.msra.mxu1 %v7089_v23  ;;  %7578 = vmatprep.subr.bf16.mxu0 %v21036_v60  ;;  %v7939_v60 = vld [vmem:[%s22595_s17 + $0x98] sm:$0xff]  ;;  %v15913_v50 = vld [vmem:[#allocation12 + $0x84] ss:$8 sps:$4 sm:$0xff]  }
 0x73d   : > { %12903 = vmatprep.subr.msk.bf16.mxu1 %vm2120_vm5, %v7094_v1  ;;  %v15904_v26 = vld [vmem:[%s22585_s7 + $0x74] ss:$8 sps:$4 sm:$0xff]   ;;  %v15902_v41 = vld [vmem:[%s22585_s7 + $0x70] ss:$8 sps:$4 sm:$0xff]  }
 0x73e   : > { %12894 = vmatmul.mubr.msk.bf16.gmra.mrb[52].mxu0 %vm7165_vm8, %v15841_v24  ;;  %7967 = vperm.xlu0 %14851, %v7925_v38   ;;  %v15917_v38 = vld [vmem:[#allocation12 + $0x90] ss:$8 sps:$4 sm:$0xff]  }
 0x73f   : > { %7579 = vmatpush1.bf16.msra.mxu0 %v21034_v9  ;;  %7260 = vmatprep.mubr.bf16.mxu0 %v16603_v58  ;;  %v7933_v9 = vld [vmem:[%s22595_s17 + $0x68] sm:$0xff] }
 0x740   : > { %7350 = vmatpush1.bf16.msra.mxu1 %v7203_v11  ;;  %7580 = vmatprep.subr.bf16.mxu0 %v21048_v14  ;;  %v15853_v14 = vld [vmem:[%s23727_s25 + $0x18] sm:$0xff]  }
 0x741   : > { %7707 = vmatprep.subr.bf16.mxu1 %v20954_v63  ;;  %v7927_v63 = vld [vmem:[%s22595_s17 + $0x38] sm:$0xff] }
 0x742   : > { %7977 = vperm.xlu0 %14851, %v7927_v63   ;;  %v15859_v63 = vld [vmem:[%s23727_s25 + $0x48] sm:$0xff]  }
 0x743   : > { %12904 = vmatmul.mubr.msk.bf16.vlgmr.msra.gmra.mrb[56].mxu1 %vm7165_vm8, %v15840_v53  ;;  %7581 = vmatpush1.bf16.msra.mxu0 %v21050_v59  ;;  %v15860_v59 = vld [vmem:[%s22585_s7] ss:$8 sps:$4 sm:$0xff]  }
 0x744   : > { %12924 = vmatprep.subr.msk.bf16.mxu0 %vm2120_vm5, %v21057_v37  ;;  %7708 = vmatpush1.bf16.msra.mxu1 %v20949_v5  ;;  %v15843_v5 = vld [vmem:[%s23725_s27 + $0x18] sm:$0xff]  }
 0x745   : > { %7709 = vmatprep.subr.bf16.mxu1 %v7082_v61  ;;  %7383 = vmatprep.mubr.bf16.mxu1 %v16603_v58  ;;  %v15869_v37 = vld [vmem:[#allocation12 + $0x10] ss:$8 sps:$4 sm:$0xff]   ;;  %v15855_v61 = vld [vmem:[%s23727_s25 + $0x28] sm:$0xff]   ;;  %v15883_v53 = vld [vmem:[#allocation12 + $0x34] ss:$8 sps:$4 sm:$0xff]  }
 0x746   : > { %12895 = vmatmul.mubr.msk.bf16.gmra.mrb[56].mxu0 %vm7165_vm8, %v15842_v25  ;;  %7987 = vperm.xlu0 %14851, %v7929_v47   ;;  %v15922_v47 = vld [vmem:[%s22585_s7 + $0xa4] ss:$8 sps:$4 sm:$0xff]  }
 0x747   : > { %7583 = vmatpush1.bf16.msra.mxu0 %v7197_v30  ;;  %7270 = vmatprep.mubr.bf16.mxu0 %v16603_v58  ;;  %v15881_v30 = vld [vmem:[#allocation12 + $0x30] ss:$8 sps:$4 sm:$0xff]  }
 0x748   : > { %7710 = vmatpush1.bf16.msra.mxu1 %v21065_v19  ;;  %8624 = vmatprep.subr.bf16.mxu0 %v15862_v36  ;;  %v15877_v19 = vld [vmem:[#allocation12 + $0x24] ss:$8 sps:$4 sm:$0xff]  }
 0x749   : > { %7711 = vmatprep.subr.bf16.mxu1 %v7086_v17  ;;  %v15895_v17 = vld [vmem:[#allocation12 + $0x54] ss:$8 sps:$4 sm:$0xff]  }
 0x74a   : > { %7997 = vperm.xlu0 %14851, %v7931_v6   ;;  %v15920_v6 = vld [vmem:[%s22585_s7 + $0xa0] ss:$8 sps:$4 sm:$0xff]  }
 0x74b   : > { %12905 = vmatmul.mubr.msk.bf16.gmra.mrb[60].mxu1 %vm7165_vm8, %v15841_v24  ;;  %v15908_v24 = vld [vmem:[%s22585_s7 + $0x80] ss:$8 sps:$4 sm:$0xff]  }
 0x74c   : > { %7712 = vmatpush1.bf16.msra.mxu1 %v7085_v35  ;;  %7393 = vmatprep.mubr.bf16.mxu1 %v16603_v58  ;;  %v15857_v35 = vld [vmem:[%s23727_s25 + $0x38] sm:$0xff]   ;;  %v15944_v36 = vld [vmem:[%s22585_s7 + $0xe0] ss:$8 sps:$4 sm:$0xff]  }
 0x74d   : > { %7713 = vmatprep.subr.bf16.mxu1 %v7090_v22  ;;  %v15905_v22 = vld [vmem:[#allocation12 + $0x70] ss:$8 sps:$4 sm:$0xff]  }
 0x74e   : > { %12896 = vmatmul.mubr.msk.bf16.gmra.mrb[60].mxu0 %vm7165_vm8, %v15843_v5  ;;  %8007 = vperm.xlu0 %14851, %v7933_v9   ;;  %v15925_v9 = vld [vmem:[#allocation12 + $0xa4] ss:$8 sps:$4 sm:$0xff]  }
 0x74f   : > { %7280 = vmatprep.mubr.bf16.mxu0 %v16603_v58 }
 0x750   : > { %7714 = vmatpush1.bf16.msra.mxu1 %v7089_v23  ;;  %v15858_v23 = vld [vmem:[%s23727_s25 + $0x40] sm:$0xff]  }
 0x751   : > { %12935 = vmatprep.subr.msk.bf16.mxu1 %vm2120_vm5, %v7094_v1  ;;  %v15911_v1 = vld [vmem:[#allocation12 + $0x80] ss:$8 sps:$4 sm:$0xff]  }
 0x752   : > { %8017 = vperm.xlu0 %14851, %v7935_v57   ;;  %v15926_v57 = vld [vmem:[%s22585_s7 + $0xb0] ss:$8 sps:$4 sm:$0xff]  }
 0x753   : > { %12906 = vmatmul.mubr.msk.bf16.gmra.mrb[64].mxu1 %vm7165_vm8, %v15842_v25  ;;  %v15916_v25 = vld [vmem:[%s22585_s7 + $0x94] ss:$8 sps:$4 sm:$0xff]  }
 0x754   : > { %7716 = vmatpush1.bf16.msra.mxu1 %v7203_v11  ;;  %7403 = vmatprep.mubr.bf16.mxu1 %v16603_v58  ;;  %v15914_v11 = vld [vmem:[%s22585_s7 + $0x90] ss:$8 sps:$4 sm:$0xff]  }
 0x755   : > { %9274 = vmatprep.subr.bf16.mxu1 %v15865_v2  ;;  %v15952_v2 = vld [vmem:[%s22585_s7 + $0xf4] ss:$8 sps:$4 sm:$0xff]  }
 0x756   : > { %12897 = vmatmul.mubr.msk.bf16.gmra.mrb[64].mxu0 %vm7165_vm8, %v15844_v4  ;;  %8027 = vperm.xlu0 %14851, %v7937_v40   ;;  %v15929_v40 = vld [vmem:[#allocation12 + $0xb0] ss:$8 sps:$4 sm:$0xff]  }
 0x757   : > { %7290 = vmatprep.mubr.bf16.mxu0 %v16603_v58 }
 0x75a   : > { %8037 = vperm.xlu0 %14851, %v7939_v60   ;;  %v15931_v60 = vld [vmem:[#allocation12 + $0xb4] ss:$8 sps:$4 sm:$0xff]  }
 0x75b   : > { %12907 = vmatmul.mubr.msk.bf16.gmra.mrb[68].mxu1 %vm7165_vm8, %v15843_v5  ;;  %v15919_v5 = vld [vmem:[#allocation12 + $0x94] ss:$8 sps:$4 sm:$0xff]  }
 0x75c   : > { %7413 = vmatprep.mubr.bf16.mxu1 %v16603_v58 }
 0x75e   : > { %12898 = vmatmul.mubr.msk.bf16.gmra.mrb[68].mxu0 %vm7165_vm8, %v15845_v51 }
 0x75f   : > { %7300 = vmatprep.mubr.bf16.mxu0 %v16603_v58 }
 0x763   : > { %12908 = vmatmul.mubr.msk.bf16.gmra.mrb[72].mxu1 %vm7165_vm8, %v15844_v4  ;;  %v15923_v4 = vld [vmem:[#allocation12 + $0xa0] ss:$8 sps:$4 sm:$0xff]  }
 0x764   : > { %7423 = vmatprep.mubr.bf16.mxu1 %v16603_v58 }
 0x766   : > { %12899 = vmatmul.mubr.msk.bf16.gmra.mrb[72].mxu0 %vm7165_vm8, %v15846_v20 }
 0x767   : > { %7310 = vmatprep.mubr.bf16.mxu0 %v16603_v58 }
 0x76b   : > { %12909 = vmatmul.mubr.msk.bf16.gmra.mrb[76].mxu1 %vm7165_vm8, %v15845_v51  ;;  %v15928_v51 = vld [vmem:[%s22585_s7 + $0xb4] ss:$8 sps:$4 sm:$0xff]  }
 0x76c   : > { %7433 = vmatprep.mubr.bf16.mxu1 %v16603_v58 }
 0x76e   : > { %12900 = vmatmul.mubr.msk.bf16.gmra.mrb[76].mxu0 %vm7165_vm8, %v15847_v28 }
 0x76f   : > { %7320 = vmatprep.mubr.bf16.mxu0 %v16603_v58 }
 0x773   : > { %12910 = vmatmul.mubr.msk.bf16.gmra.mrb[80].mxu1 %vm7165_vm8, %v15846_v20  ;;  %v15934_v20 = vld [vmem:[%s22585_s7 + $0xc4] ss:$8 sps:$4 sm:$0xff]  }
 0x774   : > { %7443 = vmatprep.mubr.bf16.mxu1 %v16603_v58 }
 0x776   : > { %12901 = vmatmul.mubr.msk.bf16.gmra.mrb[80].mxu0 %vm7165_vm8, %v15848_v31 }
 0x777   : > { %7330 = vmatprep.mubr.bf16.mxu0 %v16603_v58 }
 0x77b   : > { %12911 = vmatmul.mubr.msk.bf16.gmra.mrb[84].mxu1 %vm7165_vm8, %v15847_v28  ;;  %v15932_v28 = vld [vmem:[%s22585_s7 + $0xc0] ss:$8 sps:$4 sm:$0xff]  }
 0x77c   : > { %7453 = vmatprep.mubr.bf16.mxu1 %v16603_v58 }
 0x77e   : > { %12902 = vmatmul.mubr.msk.bf16.gmra.mrb[84].mxu0 %vm7165_vm8, %v15849_v3 }
 0x77f   : > { %7606 = vmatprep.mubr.bf16.mxu0 %v16603_v58 }
 0x783   : > { %12912 = vmatmul.mubr.msk.bf16.gmra.mrb[88].mxu1 %vm7165_vm8, %v15848_v31  ;;  %v15937_v31 = vld [vmem:[#allocation12 + $0xc4] ss:$8 sps:$4 sm:$0xff]  }
 0x784   : > { %7463 = vmatprep.mubr.bf16.mxu1 %v16603_v58 }
 0x786   : > { %12925 = vmatmul.mubr.msk.bf16.vlgmr.msra.gmra.mrb[88].mxu0 %vm7165_vm8, %v15850_v48 }
 0x787   : > { %7616 = vmatprep.mubr.bf16.mxu0 %v16603_v58  ;;  %8625 = vmatpush1.bf16.msra.mxu0 %v15860_v59  ;;  %v15949_v59 = vld [vmem:[#allocation12 + $0xe4] ss:$8 sps:$4 sm:$0xff]  }
 0x788   : > { %8626 = vmatprep.subr.bf16.mxu0 %v15868_v29  ;;  %v15950_v29 = vld [vmem:[%s22585_s7 + $0xf0] ss:$8 sps:$4 sm:$0xff]  }
 0x78b   : > { %12913 = vmatmul.mubr.msk.bf16.gmra.mrb[92].mxu1 %vm7165_vm8, %v15849_v3  ;;  %8627 = vmatpush1.bf16.msra.mxu0 %v15866_v52  ;;  %v15935_v3 = vld [vmem:[#allocation12 + $0xc0] ss:$8 sps:$4 sm:$0xff]   ;;  %v15955_v52 = vld [vmem:[#allocation12 + $0xf4] ss:$8 sps:$4 sm:$0xff]  }
 0x78c   : > { %7739 = vmatprep.mubr.bf16.mxu1 %v16603_v58  ;;  %8628 = vmatprep.subr.bf16.mxu0 %v15874_v8 }
 0x78e   : > { %12926 = vmatmul.mubr.msk.bf16.gmra.mrb[92].mxu0 %vm7165_vm8, %v15851_v45 }
 0x78f   : > { %7626 = vmatprep.mubr.bf16.mxu0 %v16603_v58  ;;  %8629 = vmatpush1.bf16.msra.mxu0 %v15872_v49 }
 0x790   : > { %8630 = vmatprep.subr.bf16.mxu0 %v15880_v27 }
 0x793   : > { %12936 = vmatmul.mubr.msk.bf16.vlgmr.msra.gmra.mrb[96].mxu1 %vm7165_vm8, %v15850_v48  ;;  %8631 = vmatpush1.bf16.msra.mxu0 %v15878_v32  ;;  %v15943_v48 = vld [vmem:[#allocation12 + $0xd4] ss:$8 sps:$4 sm:$0xff]  }
 0x794   : > { %7749 = vmatprep.mubr.bf16.mxu1 %v16603_v58  ;;  %9275 = vmatpush1.bf16.msra.mxu1 %v15863_v16  ;;  %v15947_v16 = vld [vmem:[#allocation12 + $0xe0] ss:$8 sps:$4 sm:$0xff]  }
 0x795   : > { %9276 = vmatprep.subr.bf16.mxu1 %v15871_v44  ;;  %8632 = vmatprep.subr.bf16.mxu0 %v15886_v33  ;;  %v15961_v44 = vld [vmem:[#allocation12 + $0x104] ss:$8 sps:$4 sm:$0xff]  }
 0x796   : > { %12927 = vmatmul.mubr.msk.bf16.gmra.mrb[96].mxu0 %vm7165_vm8, %v15852_v21 }
 0x797   : > { %7636 = vmatprep.mubr.bf16.mxu0 %v16603_v58  ;;  %8633 = vmatpush1.bf16.msra.mxu0 %v15884_v10 }
 0x798   : > { %9277 = vmatpush1.bf16.msra.mxu1 %v15869_v37  ;;  %8634 = vmatprep.subr.bf16.mxu0 %v15892_v39  ;;  %v15953_v37 = vld [vmem:[#allocation12 + $0xf0] ss:$8 sps:$4 sm:$0xff]  }
 0x799   : > { %9278 = vmatprep.subr.bf16.mxu1 %v15877_v19 }
 0x79b   : > { %12937 = vmatmul.mubr.msk.bf16.gmra.mrb[100].mxu1 %vm7165_vm8, %v15851_v45  ;;  %8635 = vmatpush1.bf16.msra.mxu0 %v15890_v55  ;;  %v15938_v45 = vld [vmem:[%s22585_s7 + $0xd0] ss:$8 sps:$4 sm:$0xff]  }
 0x79c   : > { %7759 = vmatprep.mubr.bf16.mxu1 %v16603_v58  ;;  %9279 = vmatpush1.bf16.msra.mxu1 %v15875_v18 }
 0x79d   : > { %9280 = vmatprep.subr.bf16.mxu1 %v15883_v53  ;;  %8636 = vmatprep.subr.bf16.mxu0 %v15898_v46 }
 0x79e   : > { %12928 = vmatmul.mubr.msk.bf16.gmra.mrb[100].mxu0 %vm7165_vm8, %v15853_v14 }
 0x79f   : > { %7646 = vmatprep.mubr.bf16.mxu0 %v16603_v58  ;;  %8637 = vmatpush1.bf16.msra.mxu0 %v15896_v12 }
 0x7a0   : > { %9281 = vmatpush1.bf16.msra.mxu1 %v15881_v30  ;;  %8638 = vmatprep.subr.bf16.mxu0 %v15904_v26 }
 0x7a1   : > { %9282 = vmatprep.subr.bf16.mxu1 %v15889_v42 }
 0x7a3   : > { %12938 = vmatmul.mubr.msk.bf16.gmra.mrb[104].mxu1 %vm7165_vm8, %v15852_v21  ;;  %8639 = vmatpush1.bf16.msra.mxu0 %v15902_v41  ;;  %v15941_v21 = vld [vmem:[#allocation12 + $0xd0] ss:$8 sps:$4 sm:$0xff]  }
 0x7a4   : > { %7769 = vmatprep.mubr.bf16.mxu1 %v16603_v58  ;;  %9283 = vmatpush1.bf16.msra.mxu1 %v15887_v0 }
 0x7a5   : > { %9284 = vmatprep.subr.bf16.mxu1 %v15895_v17  ;;  %8640 = vmatprep.subr.bf16.mxu0 %v15910_v13 }
 0x7a6   : > { %12929 = vmatmul.mubr.msk.bf16.gmra.mrb[104].mxu0 %vm7165_vm8, %v15854_v43 }
 0x7a7   : > { %7656 = vmatprep.mubr.bf16.mxu0 %v16603_v58  ;;  %8641 = vmatpush1.bf16.msra.mxu0 %v15908_v24 }
 0x7a8   : > { %9285 = vmatpush1.bf16.msra.mxu1 %v15893_v7  ;;  %8642 = vmatprep.subr.bf16.mxu0 %v15916_v25 }
 0x7a9   : > { %9286 = vmatprep.subr.bf16.mxu1 %v15901_v56 }
 0x7ab   : > { %12939 = vmatmul.mubr.msk.bf16.gmra.mrb[108].mxu1 %vm7165_vm8, %v15853_v14  ;;  %8643 = vmatpush1.bf16.msra.mxu0 %v15914_v11  ;;  %v15946_v14 = vld [vmem:[%s22585_s7 + $0xe4] ss:$8 sps:$4 sm:$0xff]  }
 0x7ac   : > { %7779 = vmatprep.mubr.bf16.mxu1 %v16603_v58  ;;  %9287 = vmatpush1.bf16.msra.mxu1 %v15899_v62 }
 0x7ad   : > { %9288 = vmatprep.subr.bf16.mxu1 %v15907_v54  ;;  %8644 = vmatprep.subr.bf16.mxu0 %v15922_v47 }
 0x7ae   : > { %12930 = vmatmul.mubr.msk.bf16.gmra.mrb[108].mxu0 %vm7165_vm8, %v15855_v61 }
 0x7af   : > { %7666 = vmatprep.mubr.bf16.mxu0 %v16603_v58  ;;  %8645 = vmatpush1.bf16.msra.mxu0 %v15920_v6 }
 0x7b0   : > { %9289 = vmatpush1.bf16.msra.mxu1 %v15905_v22  ;;  %8646 = vmatprep.subr.bf16.mxu0 %v15928_v51 }
 0x7b1   : > { %9290 = vmatprep.subr.bf16.mxu1 %v15913_v50 }
 0x7b3   : > { %12940 = vmatmul.mubr.msk.bf16.gmra.mrb[112].mxu1 %vm7165_vm8, %v15854_v43  ;;  %8647 = vmatpush1.bf16.msra.mxu0 %v15926_v57  ;;  %v15958_v43 = vld [vmem:[%s22585_s7 + $0x104] ss:$8 sps:$4 sm:$0xff]  }
 0x7b4   : > { %7789 = vmatprep.mubr.bf16.mxu1 %v16603_v58  ;;  %9291 = vmatpush1.bf16.msra.mxu1 %v15911_v1 }
 0x7b5   : > { %9292 = vmatprep.subr.bf16.mxu1 %v15919_v5  ;;  %8648 = vmatprep.subr.bf16.mxu0 %v15934_v20 }
 0x7b6   : > { %12931 = vmatmul.mubr.msk.bf16.gmra.mrb[112].mxu0 %vm7165_vm8, %v15856_v34 }
 0x7b7   : > { %7676 = vmatprep.mubr.bf16.mxu0 %v16603_v58  ;;  %8649 = vmatpush1.bf16.msra.mxu0 %v15932_v28 }
 0x7b8   : > { %9293 = vmatpush1.bf16.msra.mxu1 %v15917_v38 }
 0x7b9   : > { %9294 = vmatprep.subr.bf16.mxu1 %v15925_v9 }
 0x7bb   : > { %12941 = vmatmul.mubr.msk.bf16.gmra.mrb[116].mxu1 %vm7165_vm8, %v15855_v61 }
 0x7bc   : > { %7799 = vmatprep.mubr.bf16.mxu1 %v16603_v58  ;;  %9295 = vmatpush1.bf16.msra.mxu1 %v15923_v4 }
 0x7bd   : > { %9296 = vmatprep.subr.bf16.mxu1 %v15931_v60 }
 0x7be   : > { %12932 = vmatmul.mubr.msk.bf16.gmra.mrb[116].mxu0 %vm7165_vm8, %v15857_v35 }
 0x7bf   : > { %7686 = vmatprep.mubr.bf16.mxu0 %v16603_v58 }
 0x7c0   : > { %9297 = vmatpush1.bf16.msra.mxu1 %v15929_v40 }
 0x7c1   : > { %9298 = vmatprep.subr.bf16.mxu1 %v15937_v31 }
 0x7c3   : > { %12942 = vmatmul.mubr.msk.bf16.gmra.mrb[120].mxu1 %vm7165_vm8, %v15856_v34 }
 0x7c4   : > { %7809 = vmatprep.mubr.bf16.mxu1 %v16603_v58  ;;  %9299 = vmatpush1.bf16.msra.mxu1 %v15935_v3 }
 0x7c5   : > { %9300 = vmatprep.subr.bf16.mxu1 %v15943_v48 }
 0x7c6   : > { %12933 = vmatmul.mubr.msk.bf16.gmra.mrb[120].mxu0 %vm7165_vm8, %v15858_v23 }
 0x7c7   : > { %7696 = vmatprep.mubr.bf16.mxu0 %v16603_v58 }
 0x7c8   : > { %9301 = vmatpush1.bf16.msra.mxu1 %v15941_v21 }
 0x7c9   : > { %9302 = vmatprep.subr.bf16.mxu1 %v15949_v59 }
 0x7cb   : > { %12943 = vmatmul.mubr.msk.bf16.gmra.mrb[124].mxu1 %vm7165_vm8, %v15857_v35 }
 0x7cc   : > { %7819 = vmatprep.mubr.bf16.mxu1 %v16603_v58  ;;  %9303 = vmatpush1.bf16.msra.mxu1 %v15947_v16 }
 0x7cd   : > { %9304 = vmatprep.subr.bf16.mxu1 %v15955_v52 }
 0x7ce   : > { %12934 = vmatmul.mubr.msk.bf16.gmra.mrb[124].mxu0 %vm7165_vm8, %v15859_v63 }
 0x7d0   : > { %9305 = vmatpush1.bf16.msra.mxu1 %v15953_v37 }
 0x7d1   : > { %9407 = vmatprep.subr.bf16.mxu1 %v15961_v44 }
 0x7d3   : > { %12944 = vmatmul.mubr.msk.bf16.gmra.mrb[128].mxu1 %vm7165_vm8, %v15858_v23 }
 0x7d4   : > { %7829 = vmatprep.mubr.bf16.mxu1 %v16603_v58  ;;  %v15940_v58 = vld [vmem:[%s22585_s7 + $0xd4] ss:$8 sps:$4 sm:$0xff]  }
 0x7d5   : > { %8650 = vmatprep.subr.bf16.mxu0 %v15940_v58 }
 0x7d6   : > { %8651 = vmatpush1.bf16.msra.mxu0 %v15938_v45 }
 0x7d7   : > { %8652 = vmatprep.subr.bf16.mxu0 %v15946_v14 }
 0x7da   : > { %8653 = vmatpush1.bf16.msra.mxu0 %v15944_v36 }
 0x7db   : > { %12945 = vmatmul.mubr.msk.bf16.gmra.mrb[132].mxu1 %vm7165_vm8, %v15859_v63  ;;  %8654 = vmatprep.subr.bf16.mxu0 %v15952_v2 }
 0x7de   : > { %8655 = vmatpush1.bf16.msra.mxu0 %v15950_v29 }
 0x7df   : > { %8757 = vmatprep.subr.bf16.mxu0 %v15958_v43 }
 0x809   : > { %v21376_v8 = vpop.f32.mrb[48].mxu0 }
 0x80a   : > { %v21378_v49 = vpop.f32.mrb[49].mxu0 }
 0x80b   : > { %v21380_v18 = vpop.f32.mrb[50].mxu0 }
 0x80c   : > { %v21382_v19 = vpop.f32.mrb[51].mxu0 }
 0x811   : > { %v21384_v61 = vpop.f32.mrb[52].mxu0 }
 0x812   : > { %v21386_v32 = vpop.f32.mrb[53].mxu0 }
 0x813   : > { %v21388_v27 = vpop.f32.mrb[54].mxu0 }
 0x814   : > { %v21390_v30 = vpop.f32.mrb[55].mxu0 }
 0x816   : > { %v21392_v53 = vpop.f32.mrb[56].mxu1 }
 0x817   : > { %v21394_v33 = vpop.f32.mrb[57].mxu1 }
 0x818   : > { %v21396_v42 = vpop.f32.mrb[58].mxu1 }
 0x819   : > { %v21398_v10 = vpop.f32.mrb[56].mxu0  ;;  %v21400_v0 = vpop.f32.mrb[59].mxu1 }
 0x81a   : > { %v21402_v34 = vpop.f32.mrb[57].mxu0 }
 0x81b   : > { %v21404_v55 = vpop.f32.mrb[58].mxu0 }
 0x81c   : > { %v21406_v39 = vpop.f32.mrb[59].mxu0 }
 0x81e   : > { %v21408_v7 = vpop.f32.mrb[60].mxu1 }
 0x81f   : > { %v21410_v17 = vpop.f32.mrb[61].mxu1 }
 0x820   : > { %v21412_v35 = vpop.f32.mrb[62].mxu1 }
 0x821   : > { %v21414_v12 = vpop.f32.mrb[60].mxu0  ;;  %v21416_v46 = vpop.f32.mrb[63].mxu1 }
 0x822   : > { %v21418_v62 = vpop.f32.mrb[61].mxu0 }
 0x823   : > { %v21420_v56 = vpop.f32.mrb[62].mxu0 }
 0x824   : > { %v21422_v26 = vpop.f32.mrb[63].mxu0 }
 0x826   : > { %v21424_v41 = vpop.f32.mrb[64].mxu1 }
 0x827   : > { %v21426_v54 = vpop.f32.mrb[65].mxu1 }
 0x828   : > { %v21428_v22 = vpop.f32.mrb[66].mxu1 }
 0x829   : > { %v21430_v23 = vpop.f32.mrb[64].mxu0  ;;  %v21432_v24 = vpop.f32.mrb[67].mxu1 }
 0x82a   : > { %v21434_v13 = vpop.f32.mrb[65].mxu0 }
 0x82b   : > { %v21436_v1 = vpop.f32.mrb[66].mxu0 }
 0x82c   : > { %v21438_v50 = vpop.f32.mrb[67].mxu0 }
 0x82e   : > { %v21440_v11 = vpop.f32.mrb[68].mxu1 }
 0x82f   : > { %v21442_v25 = vpop.f32.mrb[69].mxu1 }
 0x830   : > { %v21444_v38 = vpop.f32.mrb[70].mxu1 }
 0x831   : > { %v21446_v63 = vpop.f32.mrb[68].mxu0  ;;  %v21448_v5 = vpop.f32.mrb[71].mxu1 }
 0x832   : > { %v21450_v47 = vpop.f32.mrb[69].mxu0 }
 0x833   : > { %v21452_v6 = vpop.f32.mrb[70].mxu0 }
 0x834   : > { %v21454_v4 = vpop.f32.mrb[71].mxu0 }
 0x836   : > { %v21456_v9 = vpop.f32.mrb[72].mxu1 }
 0x837   : > { %v21458_v57 = vpop.f32.mrb[73].mxu1 }
 0x838   : > { %v21460_v51 = vpop.f32.mrb[74].mxu1 }
 0x839   : > { %v21462_v40 = vpop.f32.mrb[72].mxu0  ;;  %v21464_v60 = vpop.f32.mrb[75].mxu1 }
 0x83a   : > { %v21466_v20 = vpop.f32.mrb[73].mxu0 }
 0x83b   : > { %23728 = vst [vmem:[#allocation189_spill] sm:$0xff] %v21466_v20  ;;  %v21468_v28 = vpop.f32.mrb[74].mxu0 }
 0x83c   : > { %23729 = vst [vmem:[#allocation128_spill] sm:$0xff] %v21468_v28  ;;  %v21470_v31 = vpop.f32.mrb[75].mxu0 }
 0x83d   : > { %23730 = vst [vmem:[#allocation36_spill] sm:$0xff] %v21470_v31 }
 0x83e   : > { %v21472_v3 = vpop.f32.mrb[76].mxu1 }
 0x83f   : > { %23731 = vst [vmem:[#allocation135_spill] sm:$0xff] %v21472_v3  ;;  %v21474_v58 = vpop.f32.mrb[77].mxu1 }
 0x840   : > { %23732 = vst [vmem:[#allocation98_spill] sm:$0xff] %v21474_v58  ;;  %v21476_v48 = vpop.f32.mrb[78].mxu1 }
 0x841   : > { %23733 = vst [vmem:[#allocation37_spill] sm:$0xff] %v21476_v48  ;;  %v21478_v45 = vpop.f32.mrb[76].mxu0  ;;  %v21480_v21 = vpop.f32.mrb[79].mxu1 }
 0x842   : > { %23734 = vst [vmem:[#allocation194_spill] sm:$0xff] %v21478_v45  ;;  %23735 = vst [vmem:[#allocation69_spill] sm:$0xff] %v21480_v21  ;;  %v21482_v14 = vpop.f32.mrb[77].mxu0  ;;  %v21529_v21 = vpop.permute.xlu0 %7942 }
 0x843   : > { %23736 = vst [vmem:[#allocation202_spill] sm:$0xff] %v21482_v14  ;;  %v21484_v59 = vpop.f32.mrb[78].mxu0  ;;  %v21534_v45 = vpop.permute.xlu1 %7947 }
 0x844   : > { %23737 = vst [vmem:[#allocation206_spill] sm:$0xff] %v21484_v59  ;;  %v21486_v36 = vpop.f32.mrb[79].mxu0 }
 0x845   : > { %23738 = vst [vmem:[#allocation141_spill] sm:$0xff] %v21486_v36 }
 0x846   : > { %v21488_v16 = vpop.f32.mrb[80].mxu1 }
 0x847   : > { %23739 = vst [vmem:[#allocation208_spill] sm:$0xff] %v21488_v16  ;;  %v21490_v2 = vpop.f32.mrb[81].mxu1 }
 0x848   : > { %23740 = vst [vmem:[#allocation38_spill] sm:$0xff] %v21490_v2  ;;  %v21492_v52 = vpop.f32.mrb[82].mxu1 }
 0x849   : > { %23741 = vst [vmem:[#allocation143_spill] sm:$0xff] %v21492_v52  ;;  %v21494_v29 = vpop.f32.mrb[80].mxu0  ;;  %v21496_v37 = vpop.f32.mrb[83].mxu1 }
 0x84a   : > { %23742 = vst [vmem:[#allocation70_spill] sm:$0xff] %v21494_v29  ;;  %23743 = vst [vmem:[#allocation77_spill] sm:$0xff] %v21496_v37  ;;  %v21498_v43 = vpop.f32.mrb[81].mxu0 }
 0x84b   : > { %23744 = vst [vmem:[#allocation199_spill] sm:$0xff] %v21498_v43  ;;  %v21500_v44 = vpop.f32.mrb[82].mxu0 }
 0x84c   : > { %23745 = vst [vmem:[#allocation74_spill] sm:$0xff] %v21500_v44  ;;  %v21502_v15 = vpop.f32.mrb[83].mxu0 }
 0x84d   : > { %23746 = vst [vmem:[#allocation150_spill] sm:$0xff] %v21502_v15 }
 0x84e   : > { %v21504_v14 = vpop.f32.mrb[84].mxu1 }
 0x84f   : > { %23747 = vst [vmem:[#allocation152_spill] sm:$0xff] %v21504_v14  ;;  %v21506_v59 = vpop.f32.mrb[85].mxu1 }
 0x850   : > { %23748 = vst [vmem:[#allocation78_spill] sm:$0xff] %v21506_v59  ;;  %v21508_v36 = vpop.f32.mrb[86].mxu1 }
 0x851   : > { %23749 = vst [vmem:[#allocation40_spill] sm:$0xff] %v21508_v36  ;;  %v21510_v16 = vpop.f32.mrb[84].mxu0  ;;  %v21512_v2 = vpop.f32.mrb[87].mxu1 }
 0x852   : > { %23750 = vst [vmem:[#allocation82_spill] sm:$0xff] %v21510_v16  ;;  %23751 = vst [vmem:[#allocation87_spill] sm:$0xff] %v21512_v2  ;;  %v21514_v52 = vpop.f32.mrb[85].mxu0 }
 0x853   : > { %23752 = vst [vmem:[#allocation45_spill] sm:$0xff] %v21514_v52  ;;  %v21516_v29 = vpop.f32.mrb[86].mxu0 }
 0x854   : > { %23753 = vst [vmem:[#allocation47_spill] sm:$0xff] %v21516_v29  ;;  %v21518_v37 = vpop.f32.mrb[87].mxu0 }
 0x855   : > { %23754 = vst [vmem:[#allocation93_spill] sm:$0xff] %v21518_v37 }
 0x856   : > { %v21520_v43 = vpop.f32.mrb[88].mxu1 }
 0x857   : > { %23755 = vst [vmem:[#allocation99_spill] sm:$0xff] %v21520_v43  ;;  %v21522_v44 = vpop.f32.mrb[89].mxu1 }
 0x858   : > { %23756 = vst [vmem:[#allocation101_spill] sm:$0xff] %v21522_v44  ;;  %v21524_v15 = vpop.f32.mrb[90].mxu1 }
 0x859   : > { %23757 = vst [vmem:[#allocation50_spill] sm:$0xff] %v21524_v15  ;;  %v7608_v14 = vpop.f32.mrb[88].mxu0  ;;  %v21526_v59 = vpop.f32.mrb[91].mxu1 }
 0x85a   : > { %23758 = vst [vmem:[#allocation52_spill] sm:$0xff] %v21526_v59  ;;  %v7840_v36 = vmax.f32 %v21376_v8, %v7608_v14  ;;  %v7610_v16 = vpop.f32.mrb[89].mxu0 }
 0x85b   : > { %v7841_v52 = vmax.f32 %v21378_v49, %v7610_v16  ;;  %v7612_v2 = vpop.f32.mrb[90].mxu0 }
 0x85c   : > { %v8040_v29 = vadd.f32 %v21529_v21, %v7840_v36  ;;  %v7844_v37 = vmax.f32 %v21380_v18, %v7612_v2  ;;  %v7614_v43 = vpop.f32.mrb[91].mxu0 }
 0x85d   : > { %v8041_v15 = vadd.f32 %v21529_v21, %v7841_v52  ;;  %v7845_v44 = vmax.f32 %v21382_v19, %v7614_v43 }
 0x85e   : > { %v8044_v59 = vadd.f32 %v21534_v45, %v7844_v37  ;;  %v21539_v8 = vpop.f32.mrb[92].mxu1  ;;  %v8120_v49 = vmax.f32 %v8040_v29, 0.0  ;;  %v21549_v37 = vpop.permute.xlu1 %7952  ;;  %v15959_v29 = vld [vmem:[#allocation12 + $0x100] ss:$8 sps:$4 sm:$0xff]  }
 0x85f   : > { %23759 = vst [vmem:[#allocation105_spill] sm:$0xff] %v21539_v8  ;;  %v8045_v14 = vadd.f32 %v21534_v45, %v7845_v44  ;;  %v21542_v48 = vpop.f32.mrb[93].mxu1  ;;  %v8121_v18 = vmax.f32 %v8041_v15, 0.0 }
 0x860   : > { %23760 = vst [vmem:[#allocation107_spill] sm:$0xff] %v21542_v48  ;;  %v8124_v16 = vmax.f32 %v8044_v59, 0.0  ;;  %v21544_v36 = vpop.f32.mrb[94].mxu1  ;;  %v15956_v59 = vld [vmem:[%s22585_s7 + $0x100] ss:$8 sps:$4 sm:$0xff]  }
 0x861   : > { %23761 = vst [vmem:[#allocation55_spill] sm:$0xff] %v21544_v36  ;;  %v8125_v2 = vmax.f32 %v8045_v14, 0.0  ;;  %v7618_v58 = vpop.f32.mrb[92].mxu0  ;;  %v21546_v3 = vpop.f32.mrb[95].mxu1  ;;  %v15973_v36 = vld [vmem:[#allocation12 + $0x124] ss:$8 sps:$4 sm:$0xff]  }
 0x862   : > { %23762 = vst [vmem:[#allocation57_spill] sm:$0xff] %v21546_v3  ;;  %v8200_v52 = vpack.c.bf16 %v8124_v16, %v8120_v49  ;;  %v7848_v19 = vmax.f32 %v21384_v61, %v7618_v58  ;;  %v7620_v43 = vpop.f32.mrb[93].mxu0  ;;  %v15964_v61 = vld [vmem:[%s22585_s7 + $0x114] ss:$8 sps:$4 sm:$0xff]   ;;  %v21560_v49 = vpop.permute.xlu0 %7957 }
 0x863   : > { %v7849_v8 = vmax.f32 %v21386_v32, %v7620_v43  ;;  %v7622_v44 = vpop.f32.mrb[94].mxu0  ;;  %v8201_v31 = vpack.c.bf16 %v8125_v2, %v8121_v18  ;;  %v15967_v58 = vld [vmem:[#allocation12 + $0x114] ss:$8 sps:$4 sm:$0xff]  }
 0x864   : > { %v8048_v15 = vadd.f32 %v21549_v37, %v7848_v19  ;;  %v7852_v14 = vmax.f32 %v21388_v27, %v7622_v44  ;;  %v7624_v3 = vpop.f32.mrb[95].mxu0  ;;  %v15962_v27 = vld [vmem:[%s22585_s7 + $0x110] ss:$8 sps:$4 sm:$0xff]  }
 0x865   : > { %v8049_v32 = vadd.f32 %v21549_v37, %v7849_v8  ;;  %v7853_v16 = vmax.f32 %v21390_v30, %v7624_v3  ;;  %8656 = vmatprep.mubr.bf16.mxu0 %v8201_v31  ;;  %9306 = vmatprep.mubr.bf16.mxu1 %v8201_v31  ;;  %v15965_v8 = vld [vmem:[#allocation12 + $0x110] ss:$8 sps:$4 sm:$0xff]   ;;  %v15970_v30 = vld [vmem:[%s22585_s7 + $0x124] ss:$8 sps:$4 sm:$0xff]  }
 0x866   : > { %v8052_v18 = vadd.f32 %v21560_v49, %v7852_v14  ;;  %v7741_v2 = vpop.f32.mrb[96].mxu1  ;;  %8657 = vmatmul.mubr.bf16.vlgmr.msra.gmra.mrb[128].mxu0 %v8200_v52  ;;  %9307 = vmatmul.mubr.bf16.vlgmr.msra.gmra.mrb[136].mxu1 %v8200_v52  ;;  %v8128_v31 = vmax.f32 %v8048_v15, 0.0 }
 0x867   : > { %v8053_v19 = vadd.f32 %v21560_v49, %v7853_v16  ;;  %v7842_v43 = vmax.f32 %v21392_v53, %v7741_v2  ;;  %v7743_v44 = vpop.f32.mrb[97].mxu1  ;;  %8758 = vmatpush1.bf16.msra.mxu0 %v15956_v59  ;;  %9408 = vmatpush1.bf16.msra.mxu1 %v15959_v29  ;;  %v8129_v48 = vmax.f32 %v8049_v32, 0.0 }
 0x868   : > { %v8132_v3 = vmax.f32 %v8052_v18, 0.0  ;;  %v7843_v52 = vmax.f32 %v21394_v33, %v7743_v44  ;;  %v7745_v14 = vpop.f32.mrb[98].mxu1  ;;  %8759 = vmatprep.subr.bf16.mxu0 %v15964_v61  ;;  %9409 = vmatprep.subr.bf16.mxu1 %v15967_v58  ;;  %v21579_v44 = vpop.permute.xlu1 %7962 }
 0x869   : > { %v8133_v16 = vmax.f32 %v8053_v19, 0.0  ;;  %v8042_v53 = vadd.f32 %v21529_v21, %v7842_v43  ;;  %v7846_v59 = vmax.f32 %v21396_v42, %v7745_v14  ;;  %v7628_v29 = vpop.f32.mrb[96].mxu0  ;;  %v7747_v2 = vpop.f32.mrb[99].mxu1  ;;  %v15968_v42 = vld [vmem:[%s22585_s7 + $0x120] ss:$8 sps:$4 sm:$0xff]  }
 0x86a   : > { %v8043_v28 = vadd.f32 %v21529_v21, %v7843_v52  ;;  %v7856_v20 = vmax.f32 %v21398_v10, %v7628_v29  ;;  %v7847_v15 = vmax.f32 %v21400_v0, %v7747_v2  ;;  %v7630_v18 = vpop.f32.mrb[97].mxu0  ;;  %v8204_v33 = vpack.c.bf16 %v8132_v3, %v8128_v31  ;;  %v15971_v21 = vld [vmem:[#allocation12 + $0x120] ss:$8 sps:$4 sm:$0xff]   ;;  %v15974_v14 = vld [vmem:[%s22585_s7 + $0x130] ss:$8 sps:$4 sm:$0xff]  }
 0x86b   : > { %v8046_v61 = vadd.f32 %v21534_v45, %v7846_v59  ;;  %v7857_v58 = vmax.f32 %v21402_v34, %v7630_v18  ;;  %v7632_v32 = vpop.f32.mrb[98].mxu0  ;;  %v8205_v19 = vpack.c.bf16 %v8133_v16, %v8129_v48  ;;  %8760 = vmatpush1.bf16.msra.mxu0 %v15962_v27  ;;  %9410 = vmatpush1.bf16.msra.mxu1 %v15965_v8  ;;  %v15976_v34 = vld [vmem:[%s22585_s7 + $0x134] ss:$8 sps:$4 sm:$0xff]   ;;  %v21592_v27 = vpop.permute.xlu0 %7967  ;;  %v8122_v8 = vmax.f32 %v8042_v53, 0.0  ;;  %v15982_v29 = vld [vmem:[%s22585_s7 + $0x144] ss:$8 sps:$4 sm:$0xff]  }
 0x86c   : > { %v8056_v10 = vadd.f32 %v21579_v44, %v7856_v20  ;;  %v8047_v0 = vadd.f32 %v21534_v45, %v7847_v15  ;;  %v7860_v43 = vmax.f32 %v21404_v55, %v7632_v32  ;;  %v7634_v31 = vpop.f32.mrb[99].mxu0  ;;  %8761 = vmatprep.subr.bf16.mxu0 %v15970_v30  ;;  %9411 = vmatprep.subr.bf16.mxu1 %v15973_v36  ;;  %v15979_v48 = vld [vmem:[#allocation12 + $0x134] ss:$8 sps:$4 sm:$0xff]   ;;  %v8123_v45 = vmax.f32 %v8043_v28, 0.0  ;;  %v15977_v28 = vld [vmem:[#allocation12 + $0x130] ss:$8 sps:$4 sm:$0xff]  }
 0x86d   : > { %v8126_v3 = vmax.f32 %v8046_v61, 0.0  ;;  %v8057_v52 = vadd.f32 %v21579_v44, %v7857_v58  ;;  %v7861_v20 = vmax.f32 %v21406_v39, %v7634_v31  ;;  %8666 = vmatprep.mubr.bf16.mxu0 %v8205_v19  ;;  %9316 = vmatprep.mubr.bf16.mxu1 %v8205_v19  ;;  %v15985_v61 = vld [vmem:[#allocation12 + $0x144] ss:$8 sps:$4 sm:$0xff]  }
 0x86e   : > { %v8127_v55 = vmax.f32 %v8047_v0, 0.0  ;;  %v8060_v30 = vadd.f32 %v21592_v27, %v7860_v43  ;;  %v7751_v36 = vpop.f32.mrb[100].mxu1  ;;  %8667 = vmatmul.mubr.bf16.gmra.mrb[132].mxu0 %v8204_v33  ;;  %9317 = vmatmul.mubr.bf16.gmra.mrb[140].mxu1 %v8204_v33  ;;  %v8136_v2 = vmax.f32 %v8056_v10, 0.0 }
 0x86f   : > { %v21600_v16 = vpack.c.bf16 %v8126_v3, %v8122_v8  ;;  %v8061_v53 = vadd.f32 %v21592_v27, %v7861_v20  ;;  %v7850_v59 = vmax.f32 %v21408_v7, %v7751_v36  ;;  %v7753_v39 = vpop.f32.mrb[101].mxu1  ;;  %8762 = vmatpush1.bf16.msra.mxu0 %v15968_v42  ;;  %9412 = vmatpush1.bf16.msra.mxu1 %v15971_v21  ;;  %v8137_v32 = vmax.f32 %v8057_v52, 0.0  ;;  %v21628_v36 = vpop.permute.xlu0 %7977 }
 0x870   : > { %v8140_v15 = vmax.f32 %v8060_v30, 0.0  ;;  %v7851_v18 = vmax.f32 %v21410_v17, %v7753_v39  ;;  %v7755_v33 = vpop.f32.mrb[102].mxu1  ;;  %8763 = vmatprep.subr.bf16.mxu0 %v15976_v34  ;;  %9413 = vmatprep.subr.bf16.mxu1 %v15979_v48  ;;  %v21608_v58 = vpack.c.bf16 %v8127_v55, %v8123_v45  ;;  %v21615_v48 = vpop.permute.xlu1 %7972  ;;  %v15991_v30 = vld [vmem:[#allocation12 + $0x154] ss:$8 sps:$4 sm:$0xff]  }
 0x871   : > { %v8141_v7 = vmax.f32 %v8061_v53, 0.0  ;;  %v8050_v19 = vadd.f32 %v21549_v37, %v7850_v59  ;;  %v7854_v42 = vmax.f32 %v21412_v35, %v7755_v33  ;;  %v7638_v21 = vpop.f32.mrb[100].mxu0  ;;  %v7757_v0 = vpop.f32.mrb[103].mxu1  ;;  %v15980_v35 = vld [vmem:[%s22585_s7 + $0x140] ss:$8 sps:$4 sm:$0xff]  }
 0x872   : > { %v8051_v43 = vadd.f32 %v21549_v37, %v7851_v18  ;;  %v7864_v10 = vmax.f32 %v21414_v12, %v7638_v21  ;;  %v7855_v17 = vmax.f32 %v21416_v46, %v7757_v0  ;;  %v7640_v31 = vpop.f32.mrb[101].mxu0  ;;  %v8208_v34 = vpack.c.bf16 %v8140_v15, %v8136_v2  ;;  %v15983_v37 = vld [vmem:[#allocation12 + $0x140] ss:$8 sps:$4 sm:$0xff]   ;;  %v15986_v2 = vld [vmem:[%s22585_s7 + $0x150] ss:$8 sps:$4 sm:$0xff]  }
 0x873   : > { %v8054_v8 = vadd.f32 %v21560_v49, %v7854_v42  ;;  %v7865_v3 = vmax.f32 %v21418_v62, %v7640_v31  ;;  %v7642_v52 = vpop.f32.mrb[102].mxu0  ;;  %v8209_v20 = vpack.c.bf16 %v8141_v7, %v8137_v32  ;;  %8764 = vmatpush1.bf16.msra.mxu0 %v15974_v14  ;;  %9414 = vmatpush1.bf16.msra.mxu1 %v15977_v28  ;;  %v15988_v62 = vld [vmem:[%s22585_s7 + $0x154] ss:$8 sps:$4 sm:$0xff]   ;;  %v8130_v14 = vmax.f32 %v8050_v19, 0.0  ;;  %v15997_v0 = vld [vmem:[#allocation12 + $0x164] ss:$8 sps:$4 sm:$0xff]  }
 0x874   : > { %v8064_v12 = vadd.f32 %v21615_v48, %v7864_v10  ;;  %v8055_v46 = vadd.f32 %v21560_v49, %v7855_v17  ;;  %v7868_v45 = vmax.f32 %v21420_v56, %v7642_v52  ;;  %v7644_v55 = vpop.f32.mrb[103].mxu0  ;;  %8765 = vmatprep.subr.bf16.mxu0 %v15982_v29  ;;  %9415 = vmatprep.subr.bf16.mxu1 %v15985_v61  ;;  %v8131_v49 = vmax.f32 %v8051_v43, 0.0  ;;  %v15994_v61 = vld [vmem:[%s22585_s7 + $0x164] ss:$8 sps:$4 sm:$0xff]  }
 0x875   : > { %v8134_v53 = vmax.f32 %v8054_v8, 0.0  ;;  %v8065_v59 = vadd.f32 %v21615_v48, %v7865_v3  ;;  %v7869_v39 = vmax.f32 %v21422_v26, %v7644_v55  ;;  %8676 = vmatprep.mubr.bf16.mxu0 %v8209_v20  ;;  %9326 = vmatprep.mubr.bf16.mxu1 %v8209_v20  ;;  %v15989_v26 = vld [vmem:[#allocation12 + $0x150] ss:$8 sps:$4 sm:$0xff]  }
 0x876   : > { %v8135_v56 = vmax.f32 %v8055_v46, 0.0  ;;  %v8068_v28 = vadd.f32 %v21628_v36, %v7868_v45  ;;  %v7761_v29 = vpop.f32.mrb[104].mxu1  ;;  %8677 = vmatmul.mubr.bf16.gmra.mrb[136].mxu0 %v8208_v34  ;;  %9327 = vmatmul.mubr.bf16.gmra.mrb[144].mxu1 %v8208_v34  ;;  %v8144_v7 = vmax.f32 %v8064_v12, 0.0 }
 0x877   : > { %v8069_v15 = vadd.f32 %v21628_v36, %v7869_v39  ;;  %v7858_v18 = vmax.f32 %v21424_v41, %v7761_v29  ;;  %v7763_v33 = vpop.f32.mrb[105].mxu1  ;;  %8766 = vmatpush1.bf16.msra.mxu0 %v15980_v35  ;;  %9416 = vmatpush1.bf16.msra.mxu1 %v15983_v37  ;;  %v21641_v32 = vpack.c.bf16 %v8134_v53, %v8130_v14  ;;  %v8145_v41 = vmax.f32 %v8065_v59, 0.0  ;;  %v21651_v37 = vpop.permute.xlu1 %7982  ;;  %v16003_v14 = vld [vmem:[#allocation12 + $0x174] ss:$8 sps:$4 sm:$0xff]  }
 0x878   : > { %v8148_v19 = vmax.f32 %v8068_v28, 0.0  ;;  %v7859_v42 = vmax.f32 %v21426_v54, %v7763_v33  ;;  %v7765_v21 = vpop.f32.mrb[106].mxu1  ;;  %8767 = vmatprep.subr.bf16.mxu0 %v15988_v62  ;;  %9417 = vmatprep.subr.bf16.mxu1 %v15991_v30  ;;  %v21644_v43 = vpack.c.bf16 %v8135_v56, %v8131_v49  ;;  %v21664_v53 = vpop.permute.xlu0 %7987 }
 0x879   : > { %v8149_v10 = vmax.f32 %v8069_v15, 0.0  ;;  %v8058_v17 = vadd.f32 %v21579_v44, %v7858_v18  ;;  %v7862_v31 = vmax.f32 %v21428_v22, %v7765_v21  ;;  %v7648_v34 = vpop.f32.mrb[104].mxu0  ;;  %v7767_v8 = vpop.f32.mrb[107].mxu1  ;;  %v15992_v22 = vld [vmem:[%s22585_s7 + $0x160] ss:$8 sps:$4 sm:$0xff]  }
 0x87a   : > { %v8059_v3 = vadd.f32 %v21579_v44, %v7859_v42  ;;  %v7872_v52 = vmax.f32 %v21430_v23, %v7648_v34  ;;  %v7863_v54 = vmax.f32 %v21432_v24, %v7767_v8  ;;  %v7650_v20 = vpop.f32.mrb[105].mxu0  ;;  %v8212_v35 = vpack.c.bf16 %v8148_v19, %v8144_v7  ;;  %v15995_v44 = vld [vmem:[#allocation12 + $0x160] ss:$8 sps:$4 sm:$0xff]  }
 0x87b   : > { %v8062_v12 = vadd.f32 %v21592_v27, %v7862_v31  ;;  %v7873_v46 = vmax.f32 %v21434_v13, %v7650_v20  ;;  %v7652_v45 = vpop.f32.mrb[106].mxu0  ;;  %v8213_v55 = vpack.c.bf16 %v8149_v10, %v8145_v41  ;;  %8768 = vmatpush1.bf16.msra.mxu0 %v15986_v2  ;;  %9418 = vmatpush1.bf16.msra.mxu1 %v15989_v26  ;;  %v16000_v13 = vld [vmem:[%s22585_s7 + $0x174] ss:$8 sps:$4 sm:$0xff]   ;;  %v8138_v59 = vmax.f32 %v8058_v17, 0.0  ;;  %v15998_v2 = vld [vmem:[%s22585_s7 + $0x170] ss:$8 sps:$4 sm:$0xff]  }
 0x87c   : > { %v8072_v23 = vadd.f32 %v21651_v37, %v7872_v52  ;;  %v8063_v24 = vadd.f32 %v21592_v27, %v7863_v54  ;;  %v7876_v62 = vmax.f32 %v21436_v1, %v7652_v45  ;;  %v7654_v30 = vpop.f32.mrb[107].mxu0  ;;  %8769 = vmatprep.subr.bf16.mxu0 %v15994_v61  ;;  %9419 = vmatprep.subr.bf16.mxu1 %v15997_v0  ;;  %v8139_v27 = vmax.f32 %v8059_v3, 0.0  ;;  %v16006_v26 = vld [vmem:[%s22585_s7 + $0x184] ss:$8 sps:$4 sm:$0xff]  }
 0x87d   : > { %v8142_v39 = vmax.f32 %v8062_v12, 0.0  ;;  %v8073_v49 = vadd.f32 %v21651_v37, %v7873_v46  ;;  %v7877_v56 = vmax.f32 %v21438_v50, %v7654_v30  ;;  %8686 = vmatprep.mubr.bf16.mxu0 %v8213_v55  ;;  %9336 = vmatprep.mubr.bf16.mxu1 %v8213_v55  ;;  %v16001_v50 = vld [vmem:[#allocation12 + $0x170] ss:$8 sps:$4 sm:$0xff]   ;;  %v16009_v0 = vld [vmem:[#allocation12 + $0x184] ss:$8 sps:$4 sm:$0xff]  }
 0x87e   : > { %v8143_v1 = vmax.f32 %v8063_v24, 0.0  ;;  %v8076_v28 = vadd.f32 %v21664_v53, %v7876_v62  ;;  %v7771_v29 = vpop.f32.mrb[108].mxu1  ;;  %8687 = vmatmul.mubr.bf16.gmra.mrb[140].mxu0 %v8212_v35  ;;  %9337 = vmatmul.mubr.bf16.gmra.mrb[148].mxu1 %v8212_v35  ;;  %v8152_v7 = vmax.f32 %v8072_v23, 0.0  ;;  %v21687_v35 = vpop.permute.xlu1 %7992  ;;  %v16015_v23 = vld [vmem:[#allocation12 + $0x194] ss:$8 sps:$4 sm:$0xff]  }
 0x87f   : > { %v8077_v15 = vadd.f32 %v21664_v53, %v7877_v56  ;;  %v7866_v18 = vmax.f32 %v21440_v11, %v7771_v29  ;;  %v7773_v33 = vpop.f32.mrb[109].mxu1  ;;  %8770 = vmatpush1.bf16.msra.mxu0 %v15992_v22  ;;  %9420 = vmatpush1.bf16.msra.mxu1 %v15995_v44  ;;  %v21677_v61 = vpack.c.bf16 %v8142_v39, %v8138_v59  ;;  %v8153_v11 = vmax.f32 %v8073_v49, 0.0  ;;  %v21700_v24 = vpop.permute.xlu0 %7997  ;;  %v16010_v49 = vld [vmem:[%s22585_s7 + $0x190] ss:$8 sps:$4 sm:$0xff]  }
 0x880   : > { %v8156_v19 = vmax.f32 %v8076_v28, 0.0  ;;  %v7867_v42 = vmax.f32 %v21442_v25, %v7773_v33  ;;  %v7775_v21 = vpop.f32.mrb[110].mxu1  ;;  %8771 = vmatprep.subr.bf16.mxu0 %v16000_v13  ;;  %9421 = vmatprep.subr.bf16.mxu1 %v16003_v14  ;;  %v21680_v41 = vpack.c.bf16 %v8143_v1, %v8139_v27  ;;  %v16018_v28 = vld [vmem:[%s22585_s7 + $0x1a4] ss:$8 sps:$4 sm:$0xff]  }
 0x881   : > { %v8157_v10 = vmax.f32 %v8077_v15, 0.0  ;;  %v8066_v17 = vadd.f32 %v21615_v48, %v7866_v18  ;;  %v7870_v31 = vmax.f32 %v21444_v38, %v7775_v21  ;;  %v7658_v34 = vpop.f32.mrb[108].mxu0  ;;  %v7777_v8 = vpop.f32.mrb[111].mxu1  ;;  %v16004_v38 = vld [vmem:[%s22585_s7 + $0x180] ss:$8 sps:$4 sm:$0xff]  }
 0x882   : > { %v8067_v3 = vadd.f32 %v21615_v48, %v7867_v42  ;;  %v7880_v52 = vmax.f32 %v21446_v63, %v7658_v34  ;;  %v7871_v25 = vmax.f32 %v21448_v5, %v7777_v8  ;;  %v7660_v54 = vpop.f32.mrb[109].mxu0  ;;  %v8216_v20 = vpack.c.bf16 %v8156_v19, %v8152_v7  ;;  %v16007_v48 = vld [vmem:[#allocation12 + $0x180] ss:$8 sps:$4 sm:$0xff]   ;;  %v21723_v34 = vpop.permute.xlu1 %8002 }
 0x883   : > { %v8070_v12 = vadd.f32 %v21628_v36, %v7870_v31  ;;  %v7881_v46 = vmax.f32 %v21450_v47, %v7660_v54  ;;  %v7662_v45 = vpop.f32.mrb[110].mxu0  ;;  %v8217_v55 = vpack.c.bf16 %v8157_v10, %v8153_v11  ;;  %8772 = vmatpush1.bf16.msra.mxu0 %v15998_v2  ;;  %9422 = vmatpush1.bf16.msra.mxu1 %v16001_v50  ;;  %v16012_v47 = vld [vmem:[%s22585_s7 + $0x194] ss:$8 sps:$4 sm:$0xff]   ;;  %v8146_v62 = vmax.f32 %v8066_v17, 0.0  ;;  %v16021_v50 = vld [vmem:[#allocation12 + $0x1a4] ss:$8 sps:$4 sm:$0xff]  }
 0x884   : > { %v8080_v63 = vadd.f32 %v21687_v35, %v7880_v52  ;;  %v8071_v5 = vadd.f32 %v21628_v36, %v7871_v25  ;;  %v7884_v22 = vmax.f32 %v21452_v6, %v7662_v45  ;;  %v7664_v44 = vpop.f32.mrb[111].mxu0  ;;  %8773 = vmatprep.subr.bf16.mxu0 %v16006_v26  ;;  %9423 = vmatprep.subr.bf16.mxu1 %v16009_v0  ;;  %v8147_v36 = vmax.f32 %v8067_v3, 0.0  ;;  %v23763_v3 = vld [vmem:[#allocation189_spill] sm:$0xff] }
 0x885   : > { %v8150_v30 = vmax.f32 %v8070_v12, 0.0  ;;  %v8081_v13 = vadd.f32 %v21687_v35, %v7881_v46  ;;  %v7885_v14 = vmax.f32 %v21454_v4, %v7664_v44  ;;  %8696 = vmatprep.mubr.bf16.mxu0 %v8217_v55  ;;  %9346 = vmatprep.mubr.bf16.mxu1 %v8217_v55  ;;  %v16013_v4 = vld [vmem:[#allocation12 + $0x190] ss:$8 sps:$4 sm:$0xff]   ;;  %v16027_v55 = vld [vmem:[#allocation12 + $0x1b4] ss:$8 sps:$4 sm:$0xff]  }
 0x886   : > { %v8151_v6 = vmax.f32 %v8071_v5, 0.0  ;;  %v8084_v59 = vadd.f32 %v21700_v24, %v7884_v22  ;;  %v7781_v39 = vpop.f32.mrb[112].mxu1  ;;  %8697 = vmatmul.mubr.bf16.gmra.mrb[144].mxu0 %v8216_v20  ;;  %9347 = vmatmul.mubr.bf16.gmra.mrb[152].mxu1 %v8216_v20  ;;  %v8160_v2 = vmax.f32 %v8080_v63, 0.0  ;;  %v23764_v20 = vld [vmem:[#allocation128_spill] sm:$0xff]  ;;  %v16024_v45 = vld [vmem:[%s22585_s7 + $0x1b4] ss:$8 sps:$4 sm:$0xff]  }
 0x887   : > { %v8085_v56 = vadd.f32 %v21700_v24, %v7885_v14  ;;  %v7874_v27 = vmax.f32 %v21456_v9, %v7781_v39  ;;  %v7783_v1 = vpop.f32.mrb[113].mxu1  ;;  %8774 = vmatpush1.bf16.msra.mxu0 %v16004_v38  ;;  %9424 = vmatpush1.bf16.msra.mxu1 %v16007_v48  ;;  %v21713_v29 = vpack.c.bf16 %v8150_v30, %v8146_v62  ;;  %v8161_v9 = vmax.f32 %v8081_v13, 0.0  ;;  %v21736_v38 = vpop.permute.xlu0 %8007  ;;  %v23765_v22 = vld [vmem:[#allocation36_spill] sm:$0xff]  ;;  %v16022_v30 = vld [vmem:[%s22585_s7 + $0x1b0] ss:$8 sps:$4 sm:$0xff]   ;;  %v23766_v14 = vld [vmem:[#allocation135_spill] sm:$0xff] }
 0x888   : > { %v8164_v15 = vmax.f32 %v8084_v59, 0.0  ;;  %v7875_v18 = vmax.f32 %v21458_v57, %v7783_v1  ;;  %v7785_v33 = vpop.f32.mrb[114].mxu1  ;;  %8775 = vmatprep.subr.bf16.mxu0 %v16012_v47  ;;  %9425 = vmatprep.subr.bf16.mxu1 %v16015_v23  ;;  %v21716_v26 = vpack.c.bf16 %v8151_v6, %v8147_v36  ;;  %v16025_v59 = vld [vmem:[#allocation12 + $0x1b0] ss:$8 sps:$4 sm:$0xff]   ;;  %v16030_v39 = vld [vmem:[%s22585_s7 + $0x1c4] ss:$8 sps:$4 sm:$0xff]  }
 0x889   : > { %v8165_v7 = vmax.f32 %v8085_v56, 0.0  ;;  %v8074_v19 = vadd.f32 %v21651_v37, %v7874_v27  ;;  %v7878_v42 = vmax.f32 %v21460_v51, %v7785_v33  ;;  %v7668_v21 = vpop.f32.mrb[112].mxu0  ;;  %v7787_v0 = vpop.f32.mrb[115].mxu1  ;;  %v16016_v51 = vld [vmem:[%s22585_s7 + $0x1a0] ss:$8 sps:$4 sm:$0xff]   ;;  %v23767_v1 = vld [vmem:[#allocation98_spill] sm:$0xff] }
 0x88a   : > { %v8075_v11 = vadd.f32 %v21651_v37, %v7875_v18  ;;  %v7888_v10 = vmax.f32 %v21462_v40, %v7668_v21  ;;  %v7879_v57 = vmax.f32 %v21464_v60, %v7787_v0  ;;  %v7670_v17 = vpop.f32.mrb[113].mxu0  ;;  %v8220_v31 = vpack.c.bf16 %v8164_v15, %v8160_v2  ;;  %v16019_v37 = vld [vmem:[#allocation12 + $0x1a0] ss:$8 sps:$4 sm:$0xff]   ;;  %v16033_v2 = vld [vmem:[#allocation12 + $0x1c4] ss:$8 sps:$4 sm:$0xff]   ;;  %v23769_v0 = vld [vmem:[#allocation194_spill] sm:$0xff] }
 0x88b   : > { %v8078_v8 = vadd.f32 %v21664_v53, %v7878_v42  ;;  %v7889_v52 = vmax.f32 %v23763_v3, %v7670_v17  ;;  %v7672_v25 = vpop.f32.mrb[114].mxu0  ;;  %v8221_v54 = vpack.c.bf16 %v8165_v7, %v8161_v9  ;;  %8776 = vmatpush1.bf16.msra.mxu0 %v16010_v49  ;;  %9426 = vmatpush1.bf16.msra.mxu1 %v16013_v4  ;;  %v8154_v48 = vmax.f32 %v8074_v19, 0.0  ;;  %v23768_v9 = vld [vmem:[#allocation37_spill] sm:$0xff] }
 0x88c   : > { %v8088_v40 = vadd.f32 %v21723_v34, %v7888_v10  ;;  %v8079_v60 = vadd.f32 %v21664_v53, %v7879_v57  ;;  %v7892_v12 = vmax.f32 %v23764_v20, %v7672_v25  ;;  %v7674_v46 = vpop.f32.mrb[115].mxu0  ;;  %8777 = vmatprep.subr.bf16.mxu0 %v16018_v28  ;;  %9427 = vmatprep.subr.bf16.mxu1 %v16021_v50  ;;  %v8155_v53 = vmax.f32 %v8075_v11, 0.0  ;;  %v23770_v10 = vld [vmem:[#allocation69_spill] sm:$0xff]  ;;  %v23772_v20 = vld [vmem:[#allocation206_spill] sm:$0xff] }
 0x88d   : > { %v8158_v63 = vmax.f32 %v8078_v8, 0.0  ;;  %v8089_v5 = vadd.f32 %v21723_v34, %v7889_v52  ;;  %v7893_v44 = vmax.f32 %v23765_v22, %v7674_v46  ;;  %8706 = vmatprep.mubr.bf16.mxu0 %v8221_v54  ;;  %9356 = vmatprep.mubr.bf16.mxu1 %v8221_v54  ;;  %v21759_v8 = vpop.permute.xlu1 %8012  ;;  %v23771_v52 = vld [vmem:[#allocation202_spill] sm:$0xff] }
 0x88e   : > { %v8159_v47 = vmax.f32 %v8079_v60, 0.0  ;;  %v8092_v23 = vadd.f32 %v21736_v38, %v7892_v12  ;;  %v7791_v62 = vpop.f32.mrb[116].mxu1  ;;  %8707 = vmatmul.mubr.bf16.gmra.mrb[148].mxu0 %v8220_v31  ;;  %9357 = vmatmul.mubr.bf16.gmra.mrb[156].mxu1 %v8220_v31  ;;  %v8168_v56 = vmax.f32 %v8088_v40, 0.0 }
 0x88f   : > { %v8093_v13 = vadd.f32 %v21736_v38, %v7893_v44  ;;  %v7882_v36 = vmax.f32 %v23766_v14, %v7791_v62  ;;  %v7793_v6 = vpop.f32.mrb[117].mxu1  ;;  %8778 = vmatpush1.bf16.msra.mxu0 %v16016_v51  ;;  %9428 = vmatpush1.bf16.msra.mxu1 %v16019_v37  ;;  %v21749_v49 = vpack.c.bf16 %v8158_v63, %v8154_v48  ;;  %v8169_v18 = vmax.f32 %v8089_v5, 0.0  ;;  %v16031_v37 = vld [vmem:[#allocation12 + $0x1c0] ss:$8 sps:$4 sm:$0xff]   ;;  %v21772_v48 = vpop.permute.xlu0 %8017  ;;  %v23773_v44 = vld [vmem:[#allocation141_spill] sm:$0xff] }
 0x890   : > { %v8172_v27 = vmax.f32 %v8092_v23, 0.0  ;;  %v7883_v4 = vmax.f32 %v23767_v1, %v7793_v6  ;;  %v7795_v28 = vpop.f32.mrb[118].mxu1  ;;  %8779 = vmatprep.subr.bf16.mxu0 %v16024_v45  ;;  %9429 = vmatprep.subr.bf16.mxu1 %v16027_v55  ;;  %v21752_v15 = vpack.c.bf16 %v8159_v47, %v8155_v53  ;;  %v16036_v45 = vld [vmem:[%s22585_s7 + $0x1d4] ss:$8 sps:$4 sm:$0xff]   ;;  %v23774_v14 = vld [vmem:[#allocation208_spill] sm:$0xff] }
 0x891   : > { %v8173_v33 = vmax.f32 %v8093_v13, 0.0  ;;  %v8082_v50 = vadd.f32 %v21687_v35, %v7882_v36  ;;  %v7886_v7 = vmax.f32 %v23768_v9, %v7795_v28  ;;  %v7678_v19 = vpop.f32.mrb[116].mxu0  ;;  %v7797_v42 = vpop.f32.mrb[119].mxu1  ;;  %v16039_v55 = vld [vmem:[#allocation12 + $0x1d4] ss:$8 sps:$4 sm:$0xff]  }
 0x892   : > { %v8083_v21 = vadd.f32 %v21687_v35, %v7883_v4  ;;  %v7896_v11 = vmax.f32 %v23769_v0, %v7678_v19  ;;  %v7887_v57 = vmax.f32 %v23770_v10, %v7797_v42  ;;  %v7680_v17 = vpop.f32.mrb[117].mxu0  ;;  %v8224_v31 = vpack.c.bf16 %v8172_v27, %v8168_v56  ;;  %v16028_v35 = vld [vmem:[%s22585_s7 + $0x1c0] ss:$8 sps:$4 sm:$0xff]   ;;  %v23775_v4 = vld [vmem:[#allocation38_spill] sm:$0xff] }
 0x893   : > { %v8086_v3 = vadd.f32 %v21700_v24, %v7886_v7  ;;  %v7897_v25 = vmax.f32 %v23771_v52, %v7680_v17  ;;  %v7682_v54 = vpop.f32.mrb[118].mxu0  ;;  %v8225_v51 = vpack.c.bf16 %v8173_v33, %v8169_v18  ;;  %8780 = vmatpush1.bf16.msra.mxu0 %v16022_v30  ;;  %9430 = vmatpush1.bf16.msra.mxu1 %v16025_v59  ;;  %v8162_v63 = vmax.f32 %v8082_v50, 0.0  ;;  %v16034_v30 = vld [vmem:[%s22585_s7 + $0x1d0] ss:$8 sps:$4 sm:$0xff]   ;;  %v23776_v19 = vld [vmem:[#allocation143_spill] sm:$0xff] }
 0x894   : > { %v8096_v40 = vadd.f32 %v21759_v8, %v7896_v11  ;;  %v8087_v60 = vadd.f32 %v21700_v24, %v7887_v57  ;;  %v7900_v12 = vmax.f32 %v23772_v20, %v7682_v54  ;;  %v7684_v46 = vpop.f32.mrb[119].mxu0  ;;  %8781 = vmatprep.subr.bf16.mxu0 %v16030_v39  ;;  %9431 = vmatprep.subr.bf16.mxu1 %v16033_v2  ;;  %v8163_v24 = vmax.f32 %v8083_v21, 0.0  ;;  %v16037_v59 = vld [vmem:[#allocation12 + $0x1d0] ss:$8 sps:$4 sm:$0xff]   ;;  %v16042_v39 = vld [vmem:[%s22585_s7 + $0x1e4] ss:$8 sps:$4 sm:$0xff]  }
 0x895   : > { %v8166_v5 = vmax.f32 %v8086_v3, 0.0  ;;  %v8097_v22 = vadd.f32 %v21759_v8, %v7897_v25  ;;  %v7901_v53 = vmax.f32 %v23773_v44, %v7684_v46  ;;  %8716 = vmatprep.mubr.bf16.mxu0 %v8225_v51  ;;  %9366 = vmatprep.mubr.bf16.mxu1 %v8225_v51  ;;  %v16045_v18 = vld [vmem:[#allocation12 + $0x1e4] ss:$8 sps:$4 sm:$0xff]   ;;  %v23777_v10 = vld [vmem:[#allocation70_spill] sm:$0xff]  ;;  %v21795_v25 = vpop.permute.xlu1 %8022  ;;  %v23779_v51 = vld [vmem:[#allocation199_spill] sm:$0xff] }
 0x896   : > { %v8167_v47 = vmax.f32 %v8087_v60, 0.0  ;;  %v8100_v23 = vadd.f32 %v21772_v48, %v7900_v12  ;;  %v7801_v62 = vpop.f32.mrb[120].mxu1  ;;  %8717 = vmatmul.mubr.bf16.gmra.mrb[152].mxu0 %v8224_v31  ;;  %9367 = vmatmul.mubr.bf16.gmra.mrb[160].mxu1 %v8224_v31  ;;  %v8176_v27 = vmax.f32 %v8096_v40, 0.0  ;;  %v23778_v17 = vld [vmem:[#allocation77_spill] sm:$0xff]  ;;  %v16043_v60 = vld [vmem:[#allocation12 + $0x1e0] ss:$8 sps:$4 sm:$0xff]  }
 0x897   : > { %v8101_v13 = vadd.f32 %v21772_v48, %v7901_v53  ;;  %v7890_v36 = vmax.f32 %v23774_v14, %v7801_v62  ;;  %v7803_v6 = vpop.f32.mrb[121].mxu1  ;;  %8782 = vmatpush1.bf16.msra.mxu0 %v16028_v35  ;;  %9432 = vmatpush1.bf16.msra.mxu1 %v16031_v37  ;;  %v21785_v56 = vpack.c.bf16 %v8166_v5, %v8162_v63  ;;  %v8177_v50 = vmax.f32 %v8097_v22, 0.0  ;;  %v23780_v46 = vld [vmem:[#allocation74_spill] sm:$0xff]  ;;  %v21808_v22 = vpop.permute.xlu0 %8027 }
 0x898   : > { %v8180_v1 = vmax.f32 %v8100_v23, 0.0  ;;  %v7891_v28 = vmax.f32 %v23775_v4, %v7803_v6  ;;  %v7805_v2 = vpop.f32.mrb[122].mxu1  ;;  %8783 = vmatprep.subr.bf16.mxu0 %v16036_v45  ;;  %9433 = vmatprep.subr.bf16.mxu1 %v16039_v55  ;;  %v21788_v33 = vpack.c.bf16 %v8167_v47, %v8163_v24  ;;  %v16048_v63 = vld [vmem:[%s22585_s7 + $0x1f4] ss:$8 sps:$4 sm:$0xff]  }
 0x899   : > { %v8181_v9 = vmax.f32 %v8101_v13, 0.0  ;;  %v8090_v7 = vadd.f32 %v21723_v34, %v7890_v36  ;;  %v7894_v42 = vmax.f32 %v23776_v19, %v7805_v2  ;;  %v7688_v21 = vpop.f32.mrb[120].mxu0  ;;  %v7807_v0 = vpop.f32.mrb[123].mxu1  ;;  %v16051_v5 = vld [vmem:[#allocation12 + $0x1f4] ss:$8 sps:$4 sm:$0xff]   ;;  %v23782_v36 = vld [vmem:[#allocation152_spill] sm:$0xff] }
 0x89a   : > { %v8091_v11 = vadd.f32 %v21723_v34, %v7891_v28  ;;  %v7904_v57 = vmax.f32 %v23777_v10, %v7688_v21  ;;  %v7895_v31 = vmax.f32 %v23778_v17, %v7807_v0  ;;  %v7690_v3 = vpop.f32.mrb[121].mxu0  ;;  %v8228_v52 = vpack.c.bf16 %v8180_v1, %v8176_v27  ;;  %v16040_v34 = vld [vmem:[%s22585_s7 + $0x1e0] ss:$8 sps:$4 sm:$0xff]   ;;  %v23781_v47 = vld [vmem:[#allocation150_spill] sm:$0xff] }
 0x89b   : > { %v8094_v54 = vadd.f32 %v21736_v38, %v7894_v42  ;;  %v7905_v35 = vmax.f32 %v23779_v51, %v7690_v3  ;;  %v7692_v37 = vpop.f32.mrb[122].mxu0  ;;  %v8229_v40 = vpack.c.bf16 %v8181_v9, %v8177_v50  ;;  %8784 = vmatpush1.bf16.msra.mxu0 %v16034_v30  ;;  %9434 = vmatpush1.bf16.msra.mxu1 %v16037_v59  ;;  %v8170_v44 = vmax.f32 %v8090_v7, 0.0  ;;  %v16049_v27 = vld [vmem:[#allocation12 + $0x1f0] ss:$8 sps:$4 sm:$0xff]   ;;  %v23784_v21 = vld [vmem:[#allocation40_spill] sm:$0xff]  ;;  %v23786_v3 = vld [vmem:[#allocation87_spill] sm:$0xff] }
 0x89c   : > { %v8104_v20 = vadd.f32 %v21795_v25, %v7904_v57  ;;  %v8095_v12 = vadd.f32 %v21736_v38, %v7895_v31  ;;  %v7908_v45 = vmax.f32 %v23780_v46, %v7692_v37  ;;  %v7694_v55 = vpop.f32.mrb[123].mxu0  ;;  %8785 = vmatprep.subr.bf16.mxu0 %v16042_v39  ;;  %9435 = vmatprep.subr.bf16.mxu1 %v16045_v18  ;;  %v8171_v38 = vmax.f32 %v8091_v11, 0.0  ;;  %v16046_v39 = vld [vmem:[%s22585_s7 + $0x1f0] ss:$8 sps:$4 sm:$0xff]   ;;  %v23788_v46 = vld [vmem:[#allocation47_spill] sm:$0xff] }
 0x89d   : > { %v8174_v53 = vmax.f32 %v8094_v54, 0.0  ;;  %v8105_v24 = vadd.f32 %v21795_v25, %v7905_v35  ;;  %v7909_v23 = vmax.f32 %v23781_v47, %v7694_v55  ;;  %8726 = vmatprep.mubr.bf16.mxu0 %v8229_v40  ;;  %9376 = vmatprep.mubr.bf16.mxu1 %v8229_v40  ;;  %v23783_v2 = vld [vmem:[#allocation78_spill] sm:$0xff]  ;;  %v21828_v35 = vpop.permute.xlu1 %8032  ;;  %v23787_v40 = vld [vmem:[#allocation45_spill] sm:$0xff] }
 0x89e   : > { %v8175_v62 = vmax.f32 %v8095_v12, 0.0  ;;  %v8108_v30 = vadd.f32 %v21808_v22, %v7908_v45  ;;  %v7811_v13 = vpop.f32.mrb[124].mxu1  ;;  %8727 = vmatmul.mubr.bf16.gmra.mrb[156].mxu0 %v8228_v52  ;;  %9377 = vmatmul.mubr.bf16.gmra.mrb[164].mxu1 %v8228_v52  ;;  %v8184_v4 = vmax.f32 %v8104_v20, 0.0  ;;  %v23785_v17 = vld [vmem:[#allocation82_spill] sm:$0xff] }
 0x89f   : > { %v8109_v14 = vadd.f32 %v21808_v22, %v7909_v23  ;;  %v7898_v6 = vmax.f32 %v23782_v36, %v7811_v13  ;;  %v7813_v59 = vpop.f32.mrb[125].mxu1  ;;  %8786 = vmatpush1.bf16.msra.mxu0 %v16040_v34  ;;  %9436 = vmatpush1.bf16.msra.mxu1 %v16043_v60  ;;  %v21818_v1 = vpack.c.bf16 %v8174_v53, %v8170_v44  ;;  %v8185_v7 = vmax.f32 %v8105_v24, 0.0  ;;  %v23789_v24 = vld [vmem:[#allocation93_spill] sm:$0xff] }
 0x8a0   : > { %v8188_v28 = vmax.f32 %v8108_v30, 0.0  ;;  %v7899_v18 = vmax.f32 %v23783_v2, %v7813_v59  ;;  %v7815_v50 = vpop.f32.mrb[126].mxu1  ;;  %8787 = vmatprep.subr.bf16.mxu0 %v16048_v63  ;;  %9437 = vmatprep.subr.bf16.mxu1 %v16051_v5  ;;  %v21821_v9 = vpack.c.bf16 %v8175_v62, %v8171_v38  ;;  %v8038_v63 = vpop.permute.xlu0 %8037 }
 0x8a1   : > { %v8189_v19 = vmax.f32 %v8109_v14, 0.0  ;;  %v8098_v42 = vadd.f32 %v21759_v8, %v7898_v6  ;;  %v7902_v0 = vmax.f32 %v23784_v21, %v7815_v50  ;;  %v7698_v11 = vpop.f32.mrb[124].mxu0  ;;  %v7817_v10 = vpop.f32.mrb[127].mxu1 }
 0x8a2   : > { %v8099_v57 = vadd.f32 %v21759_v8, %v7899_v18  ;;  %v7912_v31 = vmax.f32 %v23785_v17, %v7698_v11  ;;  %v7903_v52 = vmax.f32 %v23786_v3, %v7817_v10  ;;  %v7700_v54 = vpop.f32.mrb[125].mxu0  ;;  %v8232_v51 = vpack.c.bf16 %v8188_v28, %v8184_v4  ;;  %v23793_v11 = vld [vmem:[#allocation52_spill] sm:$0xff] }
 0x8a3   : > { %v8102_v37 = vadd.f32 %v21772_v48, %v7902_v0  ;;  %v7913_v34 = vmax.f32 %v23787_v40, %v7700_v54  ;;  %v7702_v60 = vpop.f32.mrb[126].mxu0  ;;  %v8233_v20 = vpack.c.bf16 %v8189_v19, %v8185_v7  ;;  %8788 = vmatpush1.bf16.msra.mxu0 %v16046_v39  ;;  %9438 = vmatpush1.bf16.msra.mxu1 %v16049_v27  ;;  %v8178_v5 = vmax.f32 %v8098_v42, 0.0  ;;  %v23791_v27 = vld [vmem:[#allocation101_spill] sm:$0xff]  ;;  %v23792_v19 = vld [vmem:[#allocation50_spill] sm:$0xff] }
 0x8a4   : > { %v8112_v12 = vadd.f32 %v21828_v35, %v7912_v31  ;;  %v8103_v8 = vadd.f32 %v21772_v48, %v7903_v52  ;;  %v7916_v45 = vmax.f32 %v23788_v46, %v7702_v60  ;;  %v7704_v55 = vpop.f32.mrb[127].mxu0  ;;  %v8179_v23 = vmax.f32 %v8099_v57, 0.0  ;;  %v23790_v48 = vld [vmem:[#allocation99_spill] sm:$0xff] }
 0x8a5   : > { %v8182_v44 = vmax.f32 %v8102_v37, 0.0  ;;  %v8113_v53 = vadd.f32 %v21828_v35, %v7913_v34  ;;  %v7917_v47 = vmax.f32 %v23789_v24, %v7704_v55  ;;  %8736 = vmatprep.mubr.bf16.mxu0 %v8233_v20  ;;  %9386 = vmatprep.mubr.bf16.mxu1 %v8233_v20  ;;  %v23794_v34 = vld [vmem:[#allocation105_spill] sm:$0xff]  ;;  %v23796_v55 = vld [vmem:[#allocation55_spill] sm:$0xff] }
 0x8a6   : > { %v8183_v38 = vmax.f32 %v8103_v8, 0.0  ;;  %v8116_v62 = vadd.f32 %v8038_v63, %v7916_v45  ;;  %v7821_v30 = vpop.f32.mrb[128].mxu1  ;;  %8737 = vmatmul.mubr.bf16.gmra.mrb[160].mxu0 %v8232_v51  ;;  %9387 = vmatmul.mubr.bf16.gmra.mrb[168].mxu1 %v8232_v51  ;;  %v8192_v59 = vmax.f32 %v8112_v12, 0.0  ;;  %v23795_v12 = vld [vmem:[#allocation107_spill] sm:$0xff]  ;;  %v23797_v24 = vld [vmem:[#allocation57_spill] sm:$0xff] }
 0x8a7   : > { %v8117_v13 = vadd.f32 %v8038_v63, %v7917_v47  ;;  %v7906_v14 = vmax.f32 %v23790_v48, %v7821_v30  ;;  %v7823_v36 = vpop.f32.mrb[129].mxu1  ;;  %v21838_v6 = vpack.c.bf16 %v8182_v44, %v8178_v5  ;;  %v8193_v18 = vmax.f32 %v8113_v53, 0.0 }
 0x8a8   : > { %v8196_v39 = vmax.f32 %v8116_v62, 0.0  ;;  %v7907_v4 = vmax.f32 %v23791_v27, %v7823_v36  ;;  %v7825_v28 = vpop.f32.mrb[130].mxu1  ;;  %v21841_v2 = vpack.c.bf16 %v8183_v38, %v8179_v23 }
 0x8a9   : > { %v8197_v50 = vmax.f32 %v8117_v13, 0.0  ;;  %v8106_v7 = vadd.f32 %v21795_v25, %v7906_v14  ;;  %v7910_v42 = vmax.f32 %v23792_v19, %v7825_v28  ;;  %v7827_v21 = vpop.f32.mrb[131].mxu1 }
 0x8aa   : > { %v8107_v0 = vadd.f32 %v21795_v25, %v7907_v4  ;;  %v7911_v10 = vmax.f32 %v23793_v11, %v7827_v21  ;;  %v8236_v57 = vpack.c.bf16 %v8196_v39, %v8192_v59 }
 0x8ab   : > { %v8110_v17 = vadd.f32 %v21808_v22, %v7910_v42  ;;  %v8237_v31 = vpack.c.bf16 %v8197_v50, %v8193_v18  ;;  %v8186_v52 = vmax.f32 %v8106_v7, 0.0 }
 0x8ac   : > { %v8111_v3 = vadd.f32 %v21808_v22, %v7911_v10  ;;  %v8187_v51 = vmax.f32 %v8107_v0, 0.0 }
 0x8ad   : > { %v8190_v54 = vmax.f32 %v8110_v17, 0.0  ;;  %8746 = vmatprep.mubr.bf16.mxu0 %v8237_v31  ;;  %9396 = vmatprep.mubr.bf16.mxu1 %v8237_v31 }
 0x8ae   : > { %v8191_v37 = vmax.f32 %v8111_v3, 0.0  ;;  %v7831_v40 = vpop.f32.mrb[132].mxu1  ;;  %8747 = vmatmul.mubr.bf16.gmra.mrb[164].mxu0 %v8236_v57  ;;  %9397 = vmatmul.mubr.bf16.gmra.mrb[172].mxu1 %v8236_v57 }
 0x8af   : > { %v7914_v60 = vmax.f32 %v23794_v34, %v7831_v40  ;;  %v7833_v25 = vpop.f32.mrb[133].mxu1  ;;  %8789 = vmatprep.mubr.bf16.mxu0 %v21608_v58  ;;  %9439 = vmatprep.mubr.bf16.mxu1 %v21608_v58  ;;  %v8234_v20 = vpack.c.bf16 %v8190_v54, %v8186_v52 }
 0x8b0   : > { %v7915_v8 = vmax.f32 %v23795_v12, %v7833_v25  ;;  %v7835_v22 = vpop.f32.mrb[134].mxu1  ;;  %v8235_v46 = vpack.c.bf16 %v8191_v37, %v8187_v51 }
 0x8b1   : > { %v8114_v45 = vadd.f32 %v21828_v35, %v7914_v60  ;;  %v7918_v5 = vmax.f32 %v23796_v55, %v7835_v22  ;;  %v7837_v44 = vpop.f32.mrb[135].mxu1 }
 0x8b2   : > { %v8115_v53 = vadd.f32 %v21828_v35, %v7915_v8  ;;  %v7919_v47 = vmax.f32 %v23797_v24, %v7837_v44 }
 0x8b3   : > { %v8118_v23 = vadd.f32 %v8038_v63, %v7918_v5  ;;  %v8194_v62 = vmax.f32 %v8114_v45, 0.0 }
 0x8b4   : > { %v8119_v38 = vadd.f32 %v8038_v63, %v7919_v47  ;;  %v8195_v13 = vmax.f32 %v8115_v53, 0.0 }
 0x8b5   : > { %v8198_v30 = vmax.f32 %v8118_v23, 0.0 }
 0x8b6   : > { %v8199_v58 = vmax.f32 %v8119_v38, 0.0  ;;  %8790 = vmatmul.mubr.bf16.vlgmr.msra.gmra.mrb[128].mxu0 %v21600_v16  ;;  %9440 = vmatmul.mubr.bf16.vlgmr.msra.gmra.mrb[136].mxu1 %v21600_v16 }
 0x8b7   : > { %8799 = vmatprep.mubr.bf16.mxu0 %v21644_v43  ;;  %9449 = vmatprep.mubr.bf16.mxu1 %v21644_v43  ;;  %v8238_v48 = vpack.c.bf16 %v8198_v30, %v8194_v62 }
 0x8b8   : > { %v8239_v14 = vpack.c.bf16 %v8199_v58, %v8195_v13 }
 0x8be   : > { %8800 = vmatmul.mubr.bf16.gmra.mrb[132].mxu0 %v21641_v32  ;;  %9450 = vmatmul.mubr.bf16.gmra.mrb[140].mxu1 %v21641_v32 }
 0x8bf   : > { %8809 = vmatprep.mubr.bf16.mxu0 %v21680_v41  ;;  %9459 = vmatprep.mubr.bf16.mxu1 %v21680_v41 }
 0x8c6   : > { %8810 = vmatmul.mubr.bf16.gmra.mrb[136].mxu0 %v21677_v61  ;;  %9460 = vmatmul.mubr.bf16.gmra.mrb[144].mxu1 %v21677_v61 }
 0x8c7   : > { %8819 = vmatprep.mubr.bf16.mxu0 %v21716_v26  ;;  %9469 = vmatprep.mubr.bf16.mxu1 %v21716_v26 }
 0x8ce   : > { %8820 = vmatmul.mubr.bf16.gmra.mrb[140].mxu0 %v21713_v29  ;;  %9470 = vmatmul.mubr.bf16.gmra.mrb[148].mxu1 %v21713_v29 }
 0x8cf   : > { %8829 = vmatprep.mubr.bf16.mxu0 %v21752_v15  ;;  %9479 = vmatprep.mubr.bf16.mxu1 %v21752_v15 }
 0x8d6   : > { %8830 = vmatmul.mubr.bf16.gmra.mrb[144].mxu0 %v21749_v49  ;;  %9480 = vmatmul.mubr.bf16.gmra.mrb[152].mxu1 %v21749_v49 }
 0x8d7   : > { %8839 = vmatprep.mubr.bf16.mxu0 %v21788_v33  ;;  %9489 = vmatprep.mubr.bf16.mxu1 %v21788_v33 }
 0x8de   : > { %8840 = vmatmul.mubr.bf16.gmra.mrb[148].mxu0 %v21785_v56  ;;  %9490 = vmatmul.mubr.bf16.gmra.mrb[156].mxu1 %v21785_v56 }
 0x8df   : > { %8849 = vmatprep.mubr.bf16.mxu0 %v21821_v9  ;;  %9499 = vmatprep.mubr.bf16.mxu1 %v21821_v9 }
 0x8e6   : > { %8850 = vmatmul.mubr.bf16.gmra.mrb[152].mxu0 %v21818_v1  ;;  %9500 = vmatmul.mubr.bf16.gmra.mrb[160].mxu1 %v21818_v1 }
 0x8e7   : > { %8859 = vmatprep.mubr.bf16.mxu0 %v21841_v2  ;;  %9509 = vmatprep.mubr.bf16.mxu1 %v21841_v2 }
 0x8ee   : > { %8860 = vmatmul.mubr.bf16.gmra.mrb[156].mxu0 %v21838_v6  ;;  %9510 = vmatmul.mubr.bf16.gmra.mrb[164].mxu1 %v21838_v6 }
 0x8ef   : > { %8869 = vmatprep.mubr.bf16.mxu0 %v8235_v46  ;;  %9519 = vmatprep.mubr.bf16.mxu1 %v8235_v46 }
 0x8f6   : > { %8870 = vmatmul.mubr.bf16.gmra.mrb[160].mxu0 %v8234_v20  ;;  %9520 = vmatmul.mubr.bf16.gmra.mrb[168].mxu1 %v8234_v20 }
 0x8f7   : > { %8879 = vmatprep.mubr.bf16.mxu0 %v8239_v14  ;;  %9529 = vmatprep.mubr.bf16.mxu1 %v8239_v14 }
 0x8fe   : > { %8880 = vmatmul.mubr.bf16.gmra.mrb[164].mxu0 %v8238_v48  ;;  %9530 = vmatmul.mubr.bf16.gmra.mrb[172].mxu1 %v8238_v48 }
 0x989   : > { %v8791_v16 = vpop.f32.mrb[128].mxu0  ;;  %v9441_v32 = vpop.f32.mrb[136].mxu1 }
 0x98a   : > { %v9540_v43 = vmax.f32 %v8791_v16, %v9441_v32  ;;  %v8793_v61 = vpop.f32.mrb[129].mxu0  ;;  %v9443_v41 = vpop.f32.mrb[137].mxu1 }
 0x98b   : > { %v9541_v29 = vmax.f32 %v8793_v61, %v9443_v41  ;;  %v8795_v26 = vpop.f32.mrb[130].mxu0  ;;  %v9445_v49 = vpop.f32.mrb[138].mxu1 }
 0x98c   : > { %v9542_v15 = vmax.f32 %v8795_v26, %v9445_v49  ;;  %v8797_v56 = vpop.f32.mrb[131].mxu0  ;;  %v9447_v33 = vpop.f32.mrb[139].mxu1 }
 0x98d   : > { %v9543_v1 = vmax.f32 %v8797_v56, %v9447_v33 }
 0x98e   : > { %v21887_v9 = vpack.i.bf16 %v9542_v15, %v9540_v43  ;;  %v9820_v35 = vpack.c.bf16 %v9542_v15, %v9540_v43 }
 0x98f   : > { %v21889_v63 = vpack.i.bf16 %v9543_v1, %v9541_v29  ;;  %v9821_v36 = vpack.c.bf16 %v9543_v1, %v9541_v29 }
 0x990   : > { %14853 = vrot.lane.b32.xlu1 %v21887_v9, %s16600_s6 }
 0x991   : > { %v9451_v6 = vpop.f32.mrb[140].mxu1  ;;  %14858 = vrot.lane.b32.xlu0 %v21889_v63, %s16600_s6  ;;  %v8801_v59 = vpop.f32.mrb[132].mxu0  ;;  %10089 = vmatprep.subr.bf16.mxu0 %v9821_v36 }
 0x992   : > { %v9544_v39 = vmax.f32 %v8801_v59, %v9451_v6  ;;  %10523 = vmatprep.subr.bf16.mxu1 %v9821_v36  ;;  %v8803_v27 = vpop.f32.mrb[133].mxu0  ;;  %v9453_v4 = vpop.f32.mrb[141].mxu1  ;;  %10090 = vmatpush1.bf16.msra.mxu0 %v9820_v35 }
 0x993   : > { %v9545_v28 = vmax.f32 %v8803_v27, %v9453_v4  ;;  %10524 = vmatpush1.bf16.msra.mxu1 %v9820_v35  ;;  %v8805_v2 = vpop.f32.mrb[134].mxu0  ;;  %v9455_v18 = vpop.f32.mrb[142].mxu1 }
 0x994   : > { %v9546_v50 = vmax.f32 %v8805_v2, %v9455_v18  ;;  %v8807_v7 = vpop.f32.mrb[135].mxu0  ;;  %v9457_v19 = vpop.f32.mrb[143].mxu1 }
 0x995   : > { %v9547_v42 = vmax.f32 %v8807_v7, %v9457_v19 }
 0x996   : > { %v21895_v21 = vpack.i.bf16 %v9546_v50, %v9544_v39  ;;  %v9822_v0 = vpack.c.bf16 %v9546_v50, %v9544_v39 }
 0x997   : > { %v21897_v11 = vpack.i.bf16 %v9547_v42, %v9545_v28  ;;  %v9823_v10 = vpack.c.bf16 %v9547_v42, %v9545_v28 }
 0x998   : > { %14863 = vrot.lane.b32.xlu1 %v21895_v21, %s16600_s6 }
 0x999   : > { %v9461_v57 = vpop.f32.mrb[144].mxu1  ;;  %14868 = vrot.lane.b32.xlu0 %v21897_v11, %s16600_s6  ;;  %v8811_v17 = vpop.f32.mrb[136].mxu0  ;;  %10091 = vmatprep.subr.bf16.mxu0 %v9823_v10 }
 0x99a   : > { %v9548_v31 = vmax.f32 %v8811_v17, %v9461_v57  ;;  %10525 = vmatprep.subr.bf16.mxu1 %v9823_v10  ;;  %v8813_v3 = vpop.f32.mrb[137].mxu0  ;;  %v9463_v52 = vpop.f32.mrb[145].mxu1  ;;  %10092 = vmatpush1.bf16.msra.mxu0 %v9822_v0 }
 0x99b   : > { %v9549_v54 = vmax.f32 %v8813_v3, %v9463_v52  ;;  %10526 = vmatpush1.bf16.msra.mxu1 %v9822_v0  ;;  %v8815_v51 = vpop.f32.mrb[138].mxu0  ;;  %v9465_v37 = vpop.f32.mrb[146].mxu1  ;;  %v16054_v52 = vld [vmem:[%s22587_s9 + $0x4] ss:$16 sps:$4 sm:$0xff]  }
 0x99c   : > { %v9550_v40 = vmax.f32 %v8815_v51, %v9465_v37  ;;  %v8817_v34 = vpop.f32.mrb[139].mxu0  ;;  %v9467_v60 = vpop.f32.mrb[147].mxu1  ;;  %v16057_v37 = vld [vmem:[%s22588_s10 + $0x4] ss:$16 sps:$4 sm:$0xff]   ;;  %10121 = vmatprep.mubr.bf16.mxu0 %v16054_v52 }
 0x99d   : > { %v9551_v25 = vmax.f32 %v8817_v34, %v9467_v60  ;;  %10555 = vmatprep.mubr.bf16.mxu1 %v16057_v37 }
 0x99e   : > { %v21903_v20 = vpack.i.bf16 %v9550_v40, %v9548_v31  ;;  %v9824_v12 = vpack.c.bf16 %v9550_v40, %v9548_v31 }
 0x99f   : > { %v21905_v8 = vpack.i.bf16 %v9551_v25, %v9549_v54  ;;  %v9825_v22 = vpack.c.bf16 %v9551_v25, %v9549_v54 }
 0x9a0   : > { %14873 = vrot.lane.b32.xlu1 %v21903_v20, %s16600_s6 }
 0x9a1   : > { %v9471_v46 = vpop.f32.mrb[148].mxu1  ;;  %14878 = vrot.lane.b32.xlu0 %v21905_v8, %s16600_s6  ;;  %v8821_v45 = vpop.f32.mrb[140].mxu0  ;;  %10093 = vmatprep.subr.bf16.mxu0 %v9825_v22 }
 0x9a2   : > { %v9552_v55 = vmax.f32 %v8821_v45, %v9471_v46  ;;  %10527 = vmatprep.subr.bf16.mxu1 %v9825_v22  ;;  %v8823_v5 = vpop.f32.mrb[141].mxu0  ;;  %v9473_v44 = vpop.f32.mrb[149].mxu1  ;;  %10094 = vmatpush1.bf16.msra.mxu0 %v9824_v12 }
 0x9a3   : > { %v9553_v53 = vmax.f32 %v8823_v5, %v9473_v44  ;;  %10528 = vmatpush1.bf16.msra.mxu1 %v9824_v12  ;;  %v8825_v24 = vpop.f32.mrb[142].mxu0  ;;  %v9475_v47 = vpop.f32.mrb[150].mxu1 }
 0x9a4   : > { %v9554_v23 = vmax.f32 %v8825_v24, %v9475_v47  ;;  %v8827_v38 = vpop.f32.mrb[143].mxu0  ;;  %v9477_v62 = vpop.f32.mrb[151].mxu1 }
 0x9a5   : > { %v9555_v30 = vmax.f32 %v8827_v38, %v9477_v62 }
 0x9a6   : > { %v21911_v13 = vpack.i.bf16 %v9554_v23, %v9552_v55  ;;  %v9826_v58 = vpack.c.bf16 %v9554_v23, %v9552_v55 }
 0x9a7   : > { %v21913_v48 = vpack.i.bf16 %v9555_v30, %v9553_v53  ;;  %v9827_v14 = vpack.c.bf16 %v9555_v30, %v9553_v53 }
 0x9a8   : > { %14883 = vrot.lane.b32.xlu1 %v21911_v13, %s16600_s6 }
 0x9a9   : > { %v9481_v16 = vpop.f32.mrb[152].mxu1  ;;  %14888 = vrot.lane.b32.xlu0 %v21913_v48, %s16600_s6  ;;  %v8831_v32 = vpop.f32.mrb[144].mxu0  ;;  %10095 = vmatprep.subr.bf16.mxu0 %v9827_v14 }
 0x9aa   : > { %v9556_v43 = vmax.f32 %v8831_v32, %v9481_v16  ;;  %10529 = vmatprep.subr.bf16.mxu1 %v9827_v14  ;;  %v8833_v61 = vpop.f32.mrb[145].mxu0  ;;  %v9483_v41 = vpop.f32.mrb[153].mxu1  ;;  %10096 = vmatpush1.bf16.msra.mxu0 %v9826_v58 }
 0x9ab   : > { %v9557_v29 = vmax.f32 %v8833_v61, %v9483_v41  ;;  %10530 = vmatpush1.bf16.msra.mxu1 %v9826_v58  ;;  %v8835_v26 = vpop.f32.mrb[146].mxu0  ;;  %v9485_v49 = vpop.f32.mrb[154].mxu1 }
 0x9ac   : > { %v9558_v15 = vmax.f32 %v8835_v26, %v9485_v49  ;;  %v8837_v56 = vpop.f32.mrb[147].mxu0  ;;  %v9487_v33 = vpop.f32.mrb[155].mxu1 }
 0x9ad   : > { %v9559_v1 = vmax.f32 %v8837_v56, %v9487_v33 }
 0x9ae   : > { %v21919_v35 = vpack.i.bf16 %v9558_v15, %v9556_v43  ;;  %v9828_v36 = vpack.c.bf16 %v9558_v15, %v9556_v43 }
 0x9af   : > { %v21921_v6 = vpack.i.bf16 %v9559_v1, %v9557_v29  ;;  %v9829_v59 = vpack.c.bf16 %v9559_v1, %v9557_v29 }
 0x9b0   : > { %14893 = vrot.lane.b32.xlu1 %v21919_v35, %s16600_s6 }
 0x9b1   : > { %v9491_v39 = vpop.f32.mrb[156].mxu1  ;;  %14898 = vrot.lane.b32.xlu0 %v21921_v6, %s16600_s6  ;;  %v8841_v27 = vpop.f32.mrb[148].mxu0  ;;  %10097 = vmatprep.subr.bf16.mxu0 %v9829_v59 }
 0x9b2   : > { %v9560_v4 = vmax.f32 %v8841_v27, %v9491_v39  ;;  %10531 = vmatprep.subr.bf16.mxu1 %v9829_v59  ;;  %v8843_v28 = vpop.f32.mrb[149].mxu0  ;;  %v9493_v2 = vpop.f32.mrb[157].mxu1  ;;  %10098 = vmatpush1.bf16.msra.mxu0 %v9828_v36 }
 0x9b3   : > { %v9561_v18 = vmax.f32 %v8843_v28, %v9493_v2  ;;  %10532 = vmatpush1.bf16.msra.mxu1 %v9828_v36  ;;  %v8845_v50 = vpop.f32.mrb[150].mxu0  ;;  %v9495_v7 = vpop.f32.mrb[158].mxu1 }
 0x9b4   : > { %v9562_v19 = vmax.f32 %v8845_v50, %v9495_v7  ;;  %v8847_v42 = vpop.f32.mrb[151].mxu0  ;;  %v9497_v0 = vpop.f32.mrb[159].mxu1 }
 0x9b5   : > { %v9563_v10 = vmax.f32 %v8847_v42, %v9497_v0 }
 0x9b6   : > { %v21927_v57 = vpack.i.bf16 %v9562_v19, %v9560_v4  ;;  %v9830_v17 = vpack.c.bf16 %v9562_v19, %v9560_v4 }
 0x9b7   : > { %v21929_v31 = vpack.i.bf16 %v9563_v10, %v9561_v18  ;;  %v9831_v3 = vpack.c.bf16 %v9563_v10, %v9561_v18 }
 0x9b8   : > { %14903 = vrot.lane.b32.xlu1 %v21927_v57, %s16600_s6 }
 0x9b9   : > { %v9501_v54 = vpop.f32.mrb[160].mxu1  ;;  %14908 = vrot.lane.b32.xlu0 %v21929_v31, %s16600_s6  ;;  %v8851_v51 = vpop.f32.mrb[152].mxu0  ;;  %10099 = vmatprep.subr.bf16.mxu0 %v9831_v3 }
 0x9ba   : > { %v9564_v40 = vmax.f32 %v8851_v51, %v9501_v54  ;;  %10533 = vmatprep.subr.bf16.mxu1 %v9831_v3  ;;  %v8853_v34 = vpop.f32.mrb[153].mxu0  ;;  %v9503_v60 = vpop.f32.mrb[161].mxu1  ;;  %10100 = vmatpush1.bf16.msra.mxu0 %v9830_v17 }
 0x9bb   : > { %v9565_v25 = vmax.f32 %v8853_v34, %v9503_v60  ;;  %10534 = vmatpush1.bf16.msra.mxu1 %v9830_v17  ;;  %v8855_v12 = vpop.f32.mrb[154].mxu0  ;;  %v9505_v22 = vpop.f32.mrb[162].mxu1 }
 0x9bc   : > { %v9566_v46 = vmax.f32 %v8855_v12, %v9505_v22  ;;  %v8857_v45 = vpop.f32.mrb[155].mxu0  ;;  %v9507_v55 = vpop.f32.mrb[163].mxu1 }
 0x9bd   : > { %v9567_v5 = vmax.f32 %v8857_v45, %v9507_v55 }
 0x9be   : > { %v21941_v44 = vpack.i.bf16 %v9566_v46, %v9564_v40  ;;  %v9832_v53 = vpack.c.bf16 %v9566_v46, %v9564_v40 }
 0x9bf   : > { %v21943_v24 = vpack.i.bf16 %v9567_v5, %v9565_v25  ;;  %v9833_v47 = vpack.c.bf16 %v9567_v5, %v9565_v25 }
 0x9c0   : > { %14913 = vrot.lane.b32.xlu1 %v21941_v44, %s16600_s6 }
 0x9c1   : > { %v9511_v23 = vpop.f32.mrb[164].mxu1  ;;  %14918 = vrot.lane.b32.xlu0 %v21943_v24, %s16600_s6  ;;  %v8861_v38 = vpop.f32.mrb[156].mxu0  ;;  %10101 = vmatprep.subr.bf16.mxu0 %v9833_v47 }
 0x9c2   : > { %v9568_v62 = vmax.f32 %v8861_v38, %v9511_v23  ;;  %10535 = vmatprep.subr.bf16.mxu1 %v9833_v47  ;;  %v8863_v30 = vpop.f32.mrb[157].mxu0  ;;  %v9513_v58 = vpop.f32.mrb[165].mxu1  ;;  %10102 = vmatpush1.bf16.msra.mxu0 %v9832_v53  ;;  %v10785_v38 = vld [vmem:[%s22596_s18 + $0x20] sm:$0xff] }
 0x9c3   : > { %v9569_v14 = vmax.f32 %v8863_v30, %v9513_v58  ;;  %10536 = vmatpush1.bf16.msra.mxu1 %v9832_v53  ;;  %v8865_v16 = vpop.f32.mrb[158].mxu0  ;;  %v9515_v32 = vpop.f32.mrb[166].mxu1  ;;  %v10786_v30 = vld [vmem:[%s22596_s18 + $0x28] sm:$0xff] }
 0x9c4   : > { %v9570_v43 = vmax.f32 %v8865_v16, %v9515_v32  ;;  %v8867_v61 = vpop.f32.mrb[159].mxu0  ;;  %v9517_v41 = vpop.f32.mrb[167].mxu1 }
 0x9c5   : > { %v9571_v29 = vmax.f32 %v8867_v61, %v9517_v41  ;;  %v10787_v61 = vld [vmem:[%s22596_s18 + $0x30] sm:$0xff] }
 0x9c6   : > { %v21949_v26 = vpack.i.bf16 %v9570_v43, %v9568_v62  ;;  %v9834_v49 = vpack.c.bf16 %v9570_v43, %v9568_v62 }
 0x9c7   : > { %v21951_v15 = vpack.i.bf16 %v9571_v29, %v9569_v14  ;;  %v9835_v56 = vpack.c.bf16 %v9571_v29, %v9569_v14 }
 0x9c8   : > { %14923 = vrot.lane.b32.xlu1 %v21949_v26, %s16600_s6 }
 0x9c9   : > { %v9521_v33 = vpop.f32.mrb[168].mxu1  ;;  %14928 = vrot.lane.b32.xlu0 %v21951_v15, %s16600_s6  ;;  %v8871_v1 = vpop.f32.mrb[160].mxu0  ;;  %10103 = vmatprep.subr.bf16.mxu0 %v9835_v56 }
 0x9ca   : > { %v9572_v36 = vmax.f32 %v8871_v1, %v9521_v33  ;;  %10537 = vmatprep.subr.bf16.mxu1 %v9835_v56  ;;  %v8873_v59 = vpop.f32.mrb[161].mxu0  ;;  %v9523_v39 = vpop.f32.mrb[169].mxu1  ;;  %10104 = vmatpush1.bf16.msra.mxu0 %v9834_v49  ;;  %v10789_v1 = vld [vmem:[%s22596_s18 + $0x40] sm:$0xff] }
 0x9cb   : > { %v9573_v27 = vmax.f32 %v8873_v59, %v9523_v39  ;;  %10538 = vmatpush1.bf16.msra.mxu1 %v9834_v49  ;;  %v8875_v4 = vpop.f32.mrb[162].mxu0  ;;  %v9525_v28 = vpop.f32.mrb[170].mxu1  ;;  %v10790_v59 = vld [vmem:[%s22596_s18 + $0x48] sm:$0xff] }
 0x9cc   : > { %v9574_v2 = vmax.f32 %v8875_v4, %v9525_v28  ;;  %v8877_v18 = vpop.f32.mrb[163].mxu0  ;;  %v9527_v50 = vpop.f32.mrb[171].mxu1 }
 0x9cd   : > { %v9575_v7 = vmax.f32 %v8877_v18, %v9527_v50  ;;  %v10791_v18 = vld [vmem:[%s22596_s18 + $0x50] sm:$0xff] }
 0x9ce   : > { %v15032_v19 = vpack.i.bf16 %v9574_v2, %v9572_v36  ;;  %v9836_v42 = vpack.c.bf16 %v9574_v2, %v9572_v36 }
 0x9cf   : > { %v15037_v0 = vpack.i.bf16 %v9575_v7, %v9573_v27  ;;  %v9837_v10 = vpack.c.bf16 %v9575_v7, %v9573_v27 }
 0x9d0   : > { %14933 = vrot.lane.b32.xlu1 %v15032_v19, %s16600_s6 }
 0x9d1   : > { %v9531_v17 = vpop.f32.mrb[172].mxu1  ;;  %14938 = vrot.lane.b32.xlu0 %v15037_v0, %s16600_s6  ;;  %v8881_v3 = vpop.f32.mrb[164].mxu0  ;;  %10105 = vmatprep.subr.bf16.mxu0 %v9837_v10 }
 0x9d2   : > { %v9576_v52 = vmax.f32 %v8881_v3, %v9531_v17  ;;  %10539 = vmatprep.subr.bf16.mxu1 %v9837_v10  ;;  %v8883_v54 = vpop.f32.mrb[165].mxu0  ;;  %v9533_v51 = vpop.f32.mrb[173].mxu1  ;;  %10106 = vmatpush1.bf16.msra.mxu0 %v9836_v42  ;;  %v10793_v3 = vld [vmem:[%s22596_s18 + $0x60] sm:$0xff] }
 0x9d3   : > { %v9577_v37 = vmax.f32 %v8883_v54, %v9533_v51  ;;  %10540 = vmatpush1.bf16.msra.mxu1 %v9836_v42  ;;  %v8885_v40 = vpop.f32.mrb[166].mxu0  ;;  %v9535_v34 = vpop.f32.mrb[174].mxu1  ;;  %v10794_v54 = vld [vmem:[%s22596_s18 + $0x68] sm:$0xff] }
 0x9d4   : > { %v9578_v60 = vmax.f32 %v8885_v40, %v9535_v34  ;;  %v8887_v25 = vpop.f32.mrb[167].mxu0  ;;  %v9537_v12 = vpop.f32.mrb[175].mxu1 }
 0x9d5   : > { %v9579_v22 = vmax.f32 %v8887_v25, %v9537_v12  ;;  %v10795_v25 = vld [vmem:[%s22596_s18 + $0x70] sm:$0xff] }
 0x9d6   : > { %v15042_v46 = vpack.i.bf16 %v9578_v60, %v9576_v52  ;;  %v9838_v45 = vpack.c.bf16 %v9578_v60, %v9576_v52 }
 0x9d7   : > { %v15047_v55 = vpack.i.bf16 %v9579_v22, %v9577_v37  ;;  %v9839_v5 = vpack.c.bf16 %v9579_v22, %v9577_v37 }
 0x9d8   : > { %14943 = vrot.lane.b32.xlu1 %v15042_v46, %s16600_s6 }
 0x9d9   : > { %14953 = vrot.lane.b32.xlu0 %v15047_v55, %s16600_s6  ;;  %10107 = vmatprep.subr.bf16.mxu0 %v9839_v5  ;;  %s23805_s6 = sld [smem:[#allocation235_spill]] }
 0x9da   : > { %10541 = vmatprep.subr.bf16.mxu1 %v9839_v5  ;;  %10108 = vmatpush1.bf16.msra.mxu0 %v9838_v45 }
 0x9db   : > { %10542 = vmatpush1.bf16.msra.mxu1 %v9838_v45 }
 0x9dc   : > { %14948 = vrot.lane.b32.xlu1 %v21887_v9, %s16601_s13  ;;  %v10781_v9 = vld [vmem:[%s22596_s18] sm:$0xff] }
 0x9dd   : > { %14958 = vrot.lane.b32.xlu0 %v21889_v63, %s16601_s13 }
 0x9df   : > { %s22536_s2 = scalar_lea.hbm %s23805_s6, %s13218_s24 }
 0x9e0   : > { %14963 = vrot.lane.b32.xlu1 %v21895_v21, %s16601_s13  ;;  %v10782_v21 = vld [vmem:[%s22596_s18 + $0x8] sm:$0xff] }
 0x9e1   : > { %14968 = vrot.lane.b32.xlu0 %v21897_v11, %s16601_s13 }
 0x9e4   : > { %14973 = vrot.lane.b32.xlu1 %v21903_v20, %s16601_s13 }
 0x9e5   : > { %14978 = vrot.lane.b32.xlu0 %v21905_v8, %s16601_s13 }
 0x9e8   : > { %14983 = vrot.lane.b32.xlu1 %v21911_v13, %s16601_s13 }
 0x9e9   : > { %14988 = vrot.lane.b32.xlu0 %v21913_v48, %s16601_s13 }
 0x9ec   : > { %14993 = vrot.lane.b32.xlu1 %v21919_v35, %s16601_s13  ;;  %v10783_v35 = vld [vmem:[%s22596_s18 + $0x10] sm:$0xff] }
 0x9ed   : > { %14998 = vrot.lane.b32.xlu0 %v21921_v6, %s16601_s13  ;;  %v16106_v6 = vld [vmem:[%s22587_s9 + $0x2c] ss:$16 sps:$4 sm:$0xff]  }
 0x9f0   : > { %15003 = vrot.lane.b32.xlu1 %v21927_v57, %s16601_s13 }
 0x9f1   : > { %15008 = vrot.lane.b32.xlu0 %v21929_v31, %s16601_s13 }
 0x9f4   : > { %15013 = vrot.lane.b32.xlu1 %v21941_v44, %s16601_s13  ;;  %v10784_v44 = vld [vmem:[%s22596_s18 + $0x18] sm:$0xff] }
 0x9f5   : > { %15018 = vrot.lane.b32.xlu0 %v21943_v24, %s16601_s13 }
 0x9f8   : > { %15023 = vrot.lane.b32.xlu1 %v21949_v26, %s16601_s13  ;;  %v10788_v26 = vld [vmem:[%s22596_s18 + $0x38] sm:$0xff] }
 0x9f9   : > { %15028 = vrot.lane.b32.xlu0 %v21951_v15, %s16601_s13 }
 0x9fc   : > { %15033 = vrot.lane.b32.xlu1 %v15032_v19, %s16601_s13  ;;  %v10792_v19 = vld [vmem:[%s22596_s18 + $0x58] sm:$0xff] }
 0x9fd   : > { %15038 = vrot.lane.b32.xlu0 %v15037_v0, %s16601_s13 }
 0xa00   : > { %15043 = vrot.lane.b32.xlu1 %v15042_v46, %s16601_s13  ;;  %v10796_v46 = vld [vmem:[%s22596_s18 + $0x78] sm:$0xff] }
 0xa01   : > { %15048 = vrot.lane.b32.xlu0 %v15047_v55, %s16601_s13  ;;  %s23799_s13 = sld [smem:[#allocation232_spill]] }
 0xa02   : > { %v14854_v63 = vpop.permute.xlu1 %14853 }
 0xa03   : > { %v14856_v11 = vunpack.i.h.bf16 %v14854_v63  ;;  %v14855_v20 = vunpack.i.l.bf16 %v14854_v63  ;;  %v14859_v8 = vpop.permute.xlu0 %14858  ;;  %v11955_v63 = vld [vmem:[%s22597_s19] sm:$0xff] }
 0xa04   : > { %v14861_v13 = vunpack.i.h.bf16 %v14859_v8  ;;  %v14860_v48 = vunpack.i.l.bf16 %v14859_v8  ;;  %10799 = vperm.xlu1 %14800, %v10781_v9  }
 0xa05   : > { %10804 = vperm.xlu0 %14851, %v10782_v21  }
 0xa06   : > { %v9661_v57 = vsel %vm973_vm4, %v14856_v11, %v14861_v13  ;;  %v9660_v31 = vsel %vm973_vm4, %v14855_v20, %v14860_v48  ;;  %v9680_v53 = vsel %vm973_vm4, %v14860_v48, %v14855_v20  ;;  %v9681_v24 = vsel %vm973_vm4, %v14861_v13, %v14856_v11  ;;  %v11956_v11 = vld [vmem:[%s22597_s19 + $0x8] sm:$0xff] }
 0xa07   : > { %v9840_v47 = vpack.c.bf16 %v9661_v57, %v9660_v31  ;;  %v9841_v23 = vpack.c.bf16 %v9681_v24, %v9680_v53  ;;  %v11957_v57 = vld [vmem:[%s22597_s19 + $0x10] sm:$0xff]  ;;  %v11958_v53 = vld [vmem:[%s22597_s19 + $0x18] sm:$0xff] }
 0xa08   : > { %10809 = vperm.xlu1 %14800, %v10783_v35  }
 0xa09   : > { %10814 = vperm.xlu0 %14851, %v10784_v44   ;;  %10109 = vmatprep.subr.bf16.mxu0 %v9841_v23 }
 0xa0a   : > { %10543 = vmatprep.subr.bf16.mxu1 %v9841_v23  ;;  %v14864_v62 = vpop.permute.xlu1 %14863  ;;  %10110 = vmatpush1.bf16.msra.mxu0 %v9840_v47 }
 0xa0b   : > { %v14866_v58 = vunpack.i.h.bf16 %v14864_v62  ;;  %v14865_v14 = vunpack.i.l.bf16 %v14864_v62  ;;  %10544 = vmatpush1.bf16.msra.mxu1 %v9840_v47  ;;  %v14869_v16 = vpop.permute.xlu0 %14868  ;;  %v12069_v62 = vld [vmem:[#allocation3] sm:$0x1] }
 0xa0c   : > { %v14871_v32 = vunpack.i.h.bf16 %v14869_v16  ;;  %v14870_v43 = vunpack.i.l.bf16 %v14869_v16  ;;  %10819 = vperm.xlu1 %14800, %v10785_v38  }
 0xa0d   : > { %10824 = vperm.xlu0 %14851, %v10786_v30  }
 0xa0e   : > { %v9663_v41 = vsel %vm973_vm4, %v14866_v58, %v14871_v32  ;;  %v9662_v29 = vsel %vm973_vm4, %v14865_v14, %v14870_v43  ;;  %v9682_v49 = vsel %vm973_vm4, %v14870_v43, %v14865_v14  ;;  %v9683_v15 = vsel %vm973_vm4, %v14871_v32, %v14866_v58 }
 0xa0f   : > { %v9842_v56 = vpack.c.bf16 %v9663_v41, %v9662_v29  ;;  %v9843_v33 = vpack.c.bf16 %v9683_v15, %v9682_v49 }
 0xa10   : > { %10829 = vperm.xlu1 %14800, %v10787_v61  }
 0xa11   : > { %10834 = vperm.xlu0 %14851, %v10788_v26   ;;  %10111 = vmatprep.subr.bf16.mxu0 %v9843_v33 }
 0xa12   : > { %10545 = vmatprep.subr.bf16.mxu1 %v9843_v33  ;;  %v14874_v36 = vpop.permute.xlu1 %14873  ;;  %10112 = vmatpush1.bf16.msra.mxu0 %v9842_v56  ;;  %v16055_v33 = vld [vmem:[%s22588_s10] ss:$16 sps:$4 sm:$0xff]  }
 0xa13   : > { %v14876_v39 = vunpack.i.h.bf16 %v14874_v36  ;;  %v14875_v27 = vunpack.i.l.bf16 %v14874_v36  ;;  %10546 = vmatpush1.bf16.msra.mxu1 %v9842_v56  ;;  %v14879_v4 = vpop.permute.xlu0 %14878  ;;  %v16052_v56 = vld [vmem:[%s22587_s9] ss:$16 sps:$4 sm:$0xff]   ;;  %v16058_v36 = vld [vmem:[%s22587_s9 + $0x24] ss:$16 sps:$4 sm:$0xff]  }
 0xa14   : > { %v14881_v28 = vunpack.i.h.bf16 %v14879_v4  ;;  %v14880_v2 = vunpack.i.l.bf16 %v14879_v4  ;;  %10839 = vperm.xlu1 %14800, %v10789_v1   ;;  %v16060_v4 = vld [vmem:[%s22588_s10 + $0x24] ss:$16 sps:$4 sm:$0xff]  }
 0xa15   : > { %10844 = vperm.xlu0 %14851, %v10790_v59  }
 0xa16   : > { %v9665_v50 = vsel %vm973_vm4, %v14876_v39, %v14881_v28  ;;  %v9664_v7 = vsel %vm973_vm4, %v14875_v27, %v14880_v2  ;;  %v9684_v42 = vsel %vm973_vm4, %v14880_v2, %v14875_v27  ;;  %v9685_v0 = vsel %vm973_vm4, %v14881_v28, %v14876_v39 }
 0xa17   : > { %v9844_v10 = vpack.c.bf16 %v9665_v50, %v9664_v7  ;;  %v9845_v17 = vpack.c.bf16 %v9685_v0, %v9684_v42 }
 0xa18   : > { %10849 = vperm.xlu1 %14800, %v10791_v18  }
 0xa19   : > { %10854 = vperm.xlu0 %14851, %v10792_v19   ;;  %10113 = vmatprep.subr.bf16.mxu0 %v9845_v17 }
 0xa1a   : > { %10547 = vmatprep.subr.bf16.mxu1 %v9845_v17  ;;  %v14884_v52 = vpop.permute.xlu1 %14883  ;;  %10114 = vmatpush1.bf16.msra.mxu0 %v9844_v10  ;;  %v16063_v17 = vld [vmem:[%s22588_s10 + $0x20] ss:$16 sps:$4 sm:$0xff]  }
 0xa1b   : > { %v14886_v51 = vunpack.i.h.bf16 %v14884_v52  ;;  %v14885_v37 = vunpack.i.l.bf16 %v14884_v52  ;;  %10548 = vmatpush1.bf16.msra.mxu1 %v9844_v10  ;;  %v14889_v40 = vpop.permute.xlu0 %14888  ;;  %v16062_v10 = vld [vmem:[%s22587_s9 + $0x20] ss:$16 sps:$4 sm:$0xff]   ;;  %v16064_v52 = vld [vmem:[%s22587_s9 + $0x44] ss:$16 sps:$4 sm:$0xff]  }
 0xa1c   : > { %v14891_v34 = vunpack.i.h.bf16 %v14889_v40  ;;  %v14890_v60 = vunpack.i.l.bf16 %v14889_v40  ;;  %10859 = vperm.xlu1 %14800, %v10793_v3   ;;  %v16066_v40 = vld [vmem:[%s22588_s10 + $0x44] ss:$16 sps:$4 sm:$0xff]  }
 0xa1d   : > { %10864 = vperm.xlu0 %14851, %v10794_v54  }
 0xa1e   : > { %v9667_v12 = vsel %vm973_vm4, %v14886_v51, %v14891_v34  ;;  %v9666_v22 = vsel %vm973_vm4, %v14885_v37, %v14890_v60  ;;  %v9686_v45 = vsel %vm973_vm4, %v14890_v60, %v14885_v37  ;;  %v9687_v55 = vsel %vm973_vm4, %v14891_v34, %v14886_v51 }
 0xa1f   : > { %v9846_v5 = vpack.c.bf16 %v9667_v12, %v9666_v22  ;;  %v9847_v9 = vpack.c.bf16 %v9687_v55, %v9686_v45 }
 0xa20   : > { %10869 = vperm.xlu1 %14800, %v10795_v25  }
 0xa21   : > { %10874 = vperm.xlu0 %14851, %v10796_v46   ;;  %10115 = vmatprep.subr.bf16.mxu0 %v9847_v9 }
 0xa22   : > { %10549 = vmatprep.subr.bf16.mxu1 %v9847_v9  ;;  %v14894_v21 = vpop.permute.xlu1 %14893  ;;  %10116 = vmatpush1.bf16.msra.mxu0 %v9846_v5  ;;  %v16069_v9 = vld [vmem:[%s22588_s10 + $0x40] ss:$16 sps:$4 sm:$0xff]  }
 0xa23   : > { %v14896_v20 = vunpack.i.h.bf16 %v14894_v21  ;;  %v14895_v8 = vunpack.i.l.bf16 %v14894_v21  ;;  %10550 = vmatpush1.bf16.msra.mxu1 %v9846_v5  ;;  %v14899_v13 = vpop.permute.xlu0 %14898  ;;  %v16068_v5 = vld [vmem:[%s22587_s9 + $0x40] ss:$16 sps:$4 sm:$0xff]   ;;  %v16070_v21 = vld [vmem:[%s22587_s9 + $0x64] ss:$16 sps:$4 sm:$0xff]  }
 0xa24   : > { %v14901_v48 = vunpack.i.h.bf16 %v14899_v13  ;;  %v14900_v35 = vunpack.i.l.bf16 %v14899_v13  ;;  %11961 = vperm.xlu1 %14800, %v11955_v63   ;;  %v16072_v13 = vld [vmem:[%s22588_s10 + $0x64] ss:$16 sps:$4 sm:$0xff]  }
 0xa25   : > { %11966 = vperm.xlu0 %14851, %v11956_v11  }
 0xa26   : > { %v9669_v31 = vsel %vm973_vm4, %v14896_v20, %v14901_v48  ;;  %v9668_v44 = vsel %vm973_vm4, %v14895_v8, %v14900_v35  ;;  %v9688_v24 = vsel %vm973_vm4, %v14900_v35, %v14895_v8  ;;  %v9689_v47 = vsel %vm973_vm4, %v14901_v48, %v14896_v20 }
 0xa27   : > { %v9848_v23 = vpack.c.bf16 %v9669_v31, %v9668_v44  ;;  %v9849_v38 = vpack.c.bf16 %v9689_v47, %v9688_v24 }
 0xa28   : > { %11971 = vperm.xlu1 %14800, %v11957_v57  }
 0xa29   : > { %11976 = vperm.xlu0 %14851, %v11958_v53   ;;  %10117 = vmatprep.subr.bf16.mxu0 %v9849_v38 }
 0xa2a   : > { %10551 = vmatprep.subr.bf16.mxu1 %v9849_v38  ;;  %v14904_v30 = vpop.permute.xlu1 %14903  ;;  %10118 = vmatpush1.bf16.msra.mxu0 %v9848_v23  ;;  %v16075_v38 = vld [vmem:[%s22588_s10 + $0x60] ss:$16 sps:$4 sm:$0xff]  }
 0xa2b   : > { %v14906_v58 = vunpack.i.h.bf16 %v14904_v30  ;;  %v14905_v14 = vunpack.i.l.bf16 %v14904_v30  ;;  %10552 = vmatpush1.bf16.msra.mxu1 %v9848_v23  ;;  %v14909_v16 = vpop.permute.xlu0 %14908  ;;  %v16074_v23 = vld [vmem:[%s22587_s9 + $0x60] ss:$16 sps:$4 sm:$0xff]   ;;  %v16076_v30 = vld [vmem:[%s22587_s9 + $0x84] ss:$16 sps:$4 sm:$0xff]  }
 0xa2c   : > { %v14911_v32 = vunpack.i.h.bf16 %v14909_v16  ;;  %v14910_v43 = vunpack.i.l.bf16 %v14909_v16  ;;  %12072 = vperm.xlu1 %14800, %v12069_v62  }
 0xa2e   : > { %v9671_v61 = vsel %vm973_vm4, %v14906_v58, %v14911_v32  ;;  %v9670_v41 = vsel %vm973_vm4, %v14905_v14, %v14910_v43  ;;  %v9690_v29 = vsel %vm973_vm4, %v14910_v43, %v14905_v14  ;;  %v9691_v26 = vsel %vm973_vm4, %v14911_v32, %v14906_v58  ;;  %v16078_v32 = vld [vmem:[%s22588_s10 + $0x84] ss:$16 sps:$4 sm:$0xff]  }
 0xa2f   : > { %v9850_v49 = vpack.c.bf16 %v9671_v61, %v9670_v41  ;;  %v9851_v15 = vpack.c.bf16 %v9691_v26, %v9690_v29 }
 0xa31   : > { %10119 = vmatprep.subr.bf16.mxu0 %v9851_v15  ;;  %10553 = vmatprep.subr.bf16.mxu1 %v9851_v15 }
 0xa32   : > { %v14914_v1 = vpop.permute.xlu1 %14913  ;;  %10120 = vmatpush1.bf16.msra.mxu0 %v9850_v49  ;;  %10554 = vmatpush1.bf16.msra.mxu1 %v9850_v49 }
 0xa33   : > { %v14916_v59 = vunpack.i.h.bf16 %v14914_v1  ;;  %v14915_v39 = vunpack.i.l.bf16 %v14914_v1  ;;  %v14919_v27 = vpop.permute.xlu0 %14918 }
 0xa34   : > { %v14921_v28 = vunpack.i.h.bf16 %v14919_v27  ;;  %v14920_v2 = vunpack.i.l.bf16 %v14919_v27 }
 0xa35   : > { %10122 = vmatmul.mubr.bf16.vlgmr.msra.gmra.mrb[168].mxu0 %v16052_v56  ;;  %10556 = vmatmul.mubr.bf16.vlgmr.msra.gmra.mrb[176].mxu1 %v16055_v33 }
 0xa36   : > { %v9673_v18 = vsel %vm973_vm4, %v14916_v59, %v14921_v28  ;;  %v9672_v50 = vsel %vm973_vm4, %v14915_v39, %v14920_v2  ;;  %v9692_v7 = vsel %vm973_vm4, %v14920_v2, %v14915_v39  ;;  %v9693_v19 = vsel %vm973_vm4, %v14921_v28, %v14916_v59  ;;  %10131 = vmatprep.mubr.bf16.mxu0 %v16058_v36  ;;  %v16081_v28 = vld [vmem:[%s22588_s10 + $0x80] ss:$16 sps:$4 sm:$0xff]  }
 0xa37   : > { %v9852_v42 = vpack.c.bf16 %v9673_v18, %v9672_v50  ;;  %v9853_v0 = vpack.c.bf16 %v9693_v19, %v9692_v7  ;;  %10565 = vmatprep.mubr.bf16.mxu1 %v16060_v4  ;;  %v16080_v4 = vld [vmem:[%s22587_s9 + $0x80] ss:$16 sps:$4 sm:$0xff]  }
 0xa39   : > { %10202 = vmatprep.subr.bf16.mxu0 %v9853_v0  ;;  %10636 = vmatprep.subr.bf16.mxu1 %v9853_v0 }
 0xa3a   : > { %v14924_v3 = vpop.permute.xlu1 %14923  ;;  %10203 = vmatpush1.bf16.msra.mxu0 %v9852_v42  ;;  %10637 = vmatpush1.bf16.msra.mxu1 %v9852_v42 }
 0xa3b   : > { %v14926_v54 = vunpack.i.h.bf16 %v14924_v3  ;;  %v14925_v51 = vunpack.i.l.bf16 %v14924_v3  ;;  %v14929_v37 = vpop.permute.xlu0 %14928 }
 0xa3c   : > { %v14931_v34 = vunpack.i.h.bf16 %v14929_v37  ;;  %v14930_v60 = vunpack.i.l.bf16 %v14929_v37  ;;  %v16084_v37 = vld [vmem:[%s22588_s10 + $0xa4] ss:$16 sps:$4 sm:$0xff]  }
 0xa3d   : > { %10132 = vmatmul.mubr.bf16.gmra.mrb[172].mxu0 %v16062_v10  ;;  %10566 = vmatmul.mubr.bf16.gmra.mrb[180].mxu1 %v16063_v17 }
 0xa3e   : > { %v9675_v25 = vsel %vm973_vm4, %v14926_v54, %v14931_v34  ;;  %v9674_v12 = vsel %vm973_vm4, %v14925_v51, %v14930_v60  ;;  %v9694_v22 = vsel %vm973_vm4, %v14930_v60, %v14925_v51  ;;  %v9695_v46 = vsel %vm973_vm4, %v14931_v34, %v14926_v54  ;;  %10141 = vmatprep.mubr.bf16.mxu0 %v16064_v52  ;;  %v16082_v51 = vld [vmem:[%s22587_s9 + $0xa4] ss:$16 sps:$4 sm:$0xff]  }
 0xa3f   : > { %v9854_v45 = vpack.c.bf16 %v9675_v25, %v9674_v12  ;;  %v9855_v55 = vpack.c.bf16 %v9695_v46, %v9694_v22  ;;  %10575 = vmatprep.mubr.bf16.mxu1 %v16066_v40 }
 0xa41   : > { %10204 = vmatprep.subr.bf16.mxu0 %v9855_v55  ;;  %10638 = vmatprep.subr.bf16.mxu1 %v9855_v55 }
 0xa42   : > { %v14934_v63 = vpop.permute.xlu1 %14933  ;;  %10205 = vmatpush1.bf16.msra.mxu0 %v9854_v45  ;;  %10639 = vmatpush1.bf16.msra.mxu1 %v9854_v45 }
 0xa43   : > { %v14936_v11 = vunpack.i.h.bf16 %v14934_v63  ;;  %v14935_v20 = vunpack.i.l.bf16 %v14934_v63  ;;  %v14939_v8 = vpop.permute.xlu0 %14938 }
 0xa44   : > { %v14941_v48 = vunpack.i.h.bf16 %v14939_v8  ;;  %v14940_v35 = vunpack.i.l.bf16 %v14939_v8 }
 0xa45   : > { %10142 = vmatmul.mubr.bf16.gmra.mrb[176].mxu0 %v16068_v5  ;;  %10576 = vmatmul.mubr.bf16.gmra.mrb[184].mxu1 %v16069_v9 }
 0xa46   : > { %v9677_v57 = vsel %vm973_vm4, %v14936_v11, %v14941_v48  ;;  %v9676_v31 = vsel %vm973_vm4, %v14935_v20, %v14940_v35  ;;  %v9696_v44 = vsel %vm973_vm4, %v14940_v35, %v14935_v20  ;;  %v9697_v53 = vsel %vm973_vm4, %v14941_v48, %v14936_v11  ;;  %10151 = vmatprep.mubr.bf16.mxu0 %v16070_v21  ;;  %v16086_v21 = vld [vmem:[%s22587_s9 + $0xa0] ss:$16 sps:$4 sm:$0xff]  }
 0xa47   : > { %v9856_v24 = vpack.c.bf16 %v9677_v57, %v9676_v31  ;;  %v9857_v47 = vpack.c.bf16 %v9697_v53, %v9696_v44  ;;  %10585 = vmatprep.mubr.bf16.mxu1 %v16072_v13  ;;  %v16087_v11 = vld [vmem:[%s22588_s10 + $0xa0] ss:$16 sps:$4 sm:$0xff]  }
 0xa49   : > { %10206 = vmatprep.subr.bf16.mxu0 %v9857_v47  ;;  %10640 = vmatprep.subr.bf16.mxu1 %v9857_v47 }
 0xa4a   : > { %v14944_v62 = vpop.permute.xlu1 %14943  ;;  %10207 = vmatpush1.bf16.msra.mxu0 %v9856_v24  ;;  %10641 = vmatpush1.bf16.msra.mxu1 %v9856_v24 }
 0xa4b   : > { %v14946_v58 = vunpack.i.h.bf16 %v14944_v62  ;;  %v14945_v14 = vunpack.i.l.bf16 %v14944_v62  ;;  %v14954_v16 = vpop.permute.xlu0 %14953  ;;  %v16090_v62 = vld [vmem:[%s22588_s10 + $0xc4] ss:$16 sps:$4 sm:$0xff]  }
 0xa4c   : > { %v14956_v43 = vunpack.i.h.bf16 %v14954_v16  ;;  %v14955_v61 = vunpack.i.l.bf16 %v14954_v16 }
 0xa4d   : > { %10152 = vmatmul.mubr.bf16.gmra.mrb[180].mxu0 %v16074_v23  ;;  %10586 = vmatmul.mubr.bf16.gmra.mrb[188].mxu1 %v16075_v38  ;;  %v16088_v38 = vld [vmem:[%s22587_s9 + $0xc4] ss:$16 sps:$4 sm:$0xff]  }
 0xa4e   : > { %v9679_v41 = vsel %vm973_vm4, %v14946_v58, %v14956_v43  ;;  %v9678_v29 = vsel %vm973_vm4, %v14945_v14, %v14955_v61  ;;  %v14949_v26 = vpop.permute.xlu1 %14948  ;;  %v9698_v49 = vsel %vm973_vm4, %v14955_v61, %v14945_v14  ;;  %v9699_v15 = vsel %vm973_vm4, %v14956_v43, %v14946_v58  ;;  %10161 = vmatprep.mubr.bf16.mxu0 %v16076_v30 }
 0xa4f   : > { %v9858_v56 = vpack.c.bf16 %v9679_v41, %v9678_v29  ;;  %v14951_v33 = vunpack.i.h.bf16 %v14949_v26  ;;  %v14950_v1 = vunpack.i.l.bf16 %v14949_v26  ;;  %v14959_v36 = vpop.permute.xlu0 %14958  ;;  %v9859_v59 = vpack.c.bf16 %v9699_v15, %v9698_v49  ;;  %10595 = vmatprep.mubr.bf16.mxu1 %v16078_v32 }
 0xa50   : > { %v14961_v39 = vunpack.i.h.bf16 %v14959_v36  ;;  %v14960_v27 = vunpack.i.l.bf16 %v14959_v36 }
 0xa51   : > { %10208 = vmatprep.subr.bf16.mxu0 %v9859_v59  ;;  %10642 = vmatprep.subr.bf16.mxu1 %v9859_v59 }
 0xa52   : > { %v9781_v2 = vsel %vm1142_vm6, %v14951_v33, %v14961_v39  ;;  %v9780_v18 = vsel %vm1142_vm6, %v14950_v1, %v14960_v27  ;;  %v14964_v50 = vpop.permute.xlu1 %14963  ;;  %10209 = vmatpush1.bf16.msra.mxu0 %v9858_v56  ;;  %10643 = vmatpush1.bf16.msra.mxu1 %v9858_v56  ;;  %v9800_v7 = vsel %vm1142_vm6, %v14960_v27, %v14950_v1  ;;  %v16092_v56 = vld [vmem:[%s22587_s9 + $0xc0] ss:$16 sps:$4 sm:$0xff]  }
 0xa53   : > { %v9860_v19 = vpack.c.bf16 %v9781_v2, %v9780_v18  ;;  %v14966_v42 = vunpack.i.h.bf16 %v14964_v50  ;;  %v14965_v0 = vunpack.i.l.bf16 %v14964_v50  ;;  %v14969_v10 = vpop.permute.xlu0 %14968  ;;  %v9801_v17 = vsel %vm1142_vm6, %v14961_v39, %v14951_v33  ;;  %v16093_v33 = vld [vmem:[%s22588_s10 + $0xc0] ss:$16 sps:$4 sm:$0xff]  }
 0xa54   : > { %v14971_v3 = vunpack.i.h.bf16 %v14969_v10  ;;  %v14970_v52 = vunpack.i.l.bf16 %v14969_v10  ;;  %v9861_v54 = vpack.c.bf16 %v9801_v17, %v9800_v7 }
 0xa55   : > { %10162 = vmatmul.mubr.bf16.gmra.mrb[184].mxu0 %v16080_v4  ;;  %10596 = vmatmul.mubr.bf16.gmra.mrb[192].mxu1 %v16081_v28 }
 0xa56   : > { %v9783_v40 = vsel %vm1142_vm6, %v14966_v42, %v14971_v3  ;;  %v9782_v34 = vsel %vm1142_vm6, %v14965_v0, %v14970_v52  ;;  %10210 = vmatprep.subr.bf16.mxu0 %v9861_v54  ;;  %10644 = vmatprep.subr.bf16.mxu1 %v9861_v54  ;;  %v14974_v60 = vpop.permute.xlu1 %14973  ;;  %v9802_v25 = vsel %vm1142_vm6, %v14970_v52, %v14965_v0  ;;  %v16096_v0 = vld [vmem:[%s22588_s10 + $0xe4] ss:$16 sps:$4 sm:$0xff]  }
 0xa57   : > { %v9862_v12 = vpack.c.bf16 %v9783_v40, %v9782_v34  ;;  %v14976_v22 = vunpack.i.h.bf16 %v14974_v60  ;;  %v14975_v46 = vunpack.i.l.bf16 %v14974_v60  ;;  %10211 = vmatpush1.bf16.msra.mxu0 %v9860_v19  ;;  %10645 = vmatpush1.bf16.msra.mxu1 %v9860_v19  ;;  %v14979_v45 = vpop.permute.xlu0 %14978  ;;  %v9803_v55 = vsel %vm1142_vm6, %v14971_v3, %v14966_v42  ;;  %v16094_v42 = vld [vmem:[%s22587_s9 + $0xe4] ss:$16 sps:$4 sm:$0xff]  }
 0xa58   : > { %v14981_v5 = vunpack.i.h.bf16 %v14979_v45  ;;  %v14980_v9 = vunpack.i.l.bf16 %v14979_v45  ;;  %v9863_v63 = vpack.c.bf16 %v9803_v55, %v9802_v25  ;;  %10171 = vmatprep.mubr.bf16.mxu0 %v16082_v51  ;;  %10605 = vmatprep.mubr.bf16.mxu1 %v16084_v37 }
 0xa5a   : > { %v9785_v20 = vsel %vm1142_vm6, %v14976_v22, %v14981_v5  ;;  %v9784_v8 = vsel %vm1142_vm6, %v14975_v46, %v14980_v9  ;;  %10212 = vmatprep.subr.bf16.mxu0 %v9863_v63  ;;  %10646 = vmatprep.subr.bf16.mxu1 %v9863_v63  ;;  %v14984_v13 = vpop.permute.xlu1 %14983  ;;  %v9804_v48 = vsel %vm1142_vm6, %v14980_v9, %v14975_v46  ;;  %v16099_v46 = vld [vmem:[%s22588_s10 + $0xe0] ss:$16 sps:$4 sm:$0xff]  }
 0xa5b   : > { %v9864_v35 = vpack.c.bf16 %v9785_v20, %v9784_v8  ;;  %v14986_v57 = vunpack.i.h.bf16 %v14984_v13  ;;  %v14985_v31 = vunpack.i.l.bf16 %v14984_v13  ;;  %10213 = vmatpush1.bf16.msra.mxu0 %v9862_v12  ;;  %10647 = vmatpush1.bf16.msra.mxu1 %v9862_v12  ;;  %v14989_v44 = vpop.permute.xlu0 %14988  ;;  %v9805_v53 = vsel %vm1142_vm6, %v14981_v5, %v14976_v22  ;;  %v16098_v22 = vld [vmem:[%s22587_s9 + $0xe0] ss:$16 sps:$4 sm:$0xff]  }
 0xa5c   : > { %v14991_v24 = vunpack.i.h.bf16 %v14989_v44  ;;  %v14990_v47 = vunpack.i.l.bf16 %v14989_v44  ;;  %v9865_v23 = vpack.c.bf16 %v9805_v53, %v9804_v48 }
 0xa5d   : > { %10172 = vmatmul.mubr.bf16.gmra.mrb[188].mxu0 %v16086_v21  ;;  %10606 = vmatmul.mubr.bf16.gmra.mrb[196].mxu1 %v16087_v11 }
 0xa5e   : > { %v9787_v30 = vsel %vm1142_vm6, %v14986_v57, %v14991_v24  ;;  %v9786_v58 = vsel %vm1142_vm6, %v14985_v31, %v14990_v47  ;;  %10214 = vmatprep.subr.bf16.mxu0 %v9865_v23  ;;  %10648 = vmatprep.subr.bf16.mxu1 %v9865_v23  ;;  %v14994_v14 = vpop.permute.xlu1 %14993  ;;  %v9806_v16 = vsel %vm1142_vm6, %v14990_v47, %v14985_v31  ;;  %v16105_v31 = vld [vmem:[%s22588_s10 + $0xc] ss:$16 sps:$4 sm:$0xff]  }
 0xa5f   : > { %v9866_v32 = vpack.c.bf16 %v9787_v30, %v9786_v58  ;;  %v14996_v43 = vunpack.i.h.bf16 %v14994_v14  ;;  %v14995_v61 = vunpack.i.l.bf16 %v14994_v14  ;;  %10215 = vmatpush1.bf16.msra.mxu0 %v9864_v35  ;;  %10649 = vmatpush1.bf16.msra.mxu1 %v9864_v35  ;;  %v14999_v41 = vpop.permute.xlu0 %14998  ;;  %v9807_v29 = vsel %vm1142_vm6, %v14991_v24, %v14986_v57  ;;  %v16102_v57 = vld [vmem:[%s22587_s9 + $0xc] ss:$16 sps:$4 sm:$0xff]  }
 0xa60   : > { %v15001_v26 = vunpack.i.h.bf16 %v14999_v41  ;;  %v15000_v49 = vunpack.i.l.bf16 %v14999_v41  ;;  %v9867_v15 = vpack.c.bf16 %v9807_v29, %v9806_v16  ;;  %10181 = vmatprep.mubr.bf16.mxu0 %v16088_v38  ;;  %10615 = vmatprep.mubr.bf16.mxu1 %v16090_v62 }
 0xa62   : > { %v9789_v1 = vsel %vm1142_vm6, %v14996_v43, %v15001_v26  ;;  %v9788_v36 = vsel %vm1142_vm6, %v14995_v61, %v15000_v49  ;;  %10216 = vmatprep.subr.bf16.mxu0 %v9867_v15  ;;  %10650 = vmatprep.subr.bf16.mxu1 %v9867_v15  ;;  %v15004_v59 = vpop.permute.xlu1 %15003  ;;  %v9808_v39 = vsel %vm1142_vm6, %v15000_v49, %v14995_v61 }
 0xa63   : > { %v9868_v27 = vpack.c.bf16 %v9789_v1, %v9788_v36  ;;  %v15006_v4 = vunpack.i.h.bf16 %v15004_v59  ;;  %v15005_v28 = vunpack.i.l.bf16 %v15004_v59  ;;  %10217 = vmatpush1.bf16.msra.mxu0 %v9866_v32  ;;  %10651 = vmatpush1.bf16.msra.mxu1 %v9866_v32  ;;  %v15009_v2 = vpop.permute.xlu0 %15008  ;;  %v9809_v18 = vsel %vm1142_vm6, %v15001_v26, %v14996_v43 }
 0xa64   : > { %v15011_v50 = vunpack.i.h.bf16 %v15009_v2  ;;  %v15010_v7 = vunpack.i.l.bf16 %v15009_v2  ;;  %v9869_v19 = vpack.c.bf16 %v9809_v18, %v9808_v39 }
 0xa65   : > { %10182 = vmatmul.mubr.bf16.gmra.mrb[192].mxu0 %v16092_v56  ;;  %10616 = vmatmul.mubr.bf16.gmra.mrb[200].mxu1 %v16093_v33 }
 0xa66   : > { %v9791_v10 = vsel %vm1142_vm6, %v15006_v4, %v15011_v50  ;;  %v9790_v17 = vsel %vm1142_vm6, %v15005_v28, %v15010_v7  ;;  %10218 = vmatprep.subr.bf16.mxu0 %v9869_v19  ;;  %10652 = vmatprep.subr.bf16.mxu1 %v9869_v19  ;;  %v15014_v3 = vpop.permute.xlu1 %15013  ;;  %v9810_v52 = vsel %vm1142_vm6, %v15010_v7, %v15005_v28  ;;  %v16149_v7 = vld [vmem:[#allocation15 + $0x40] sm:$0xff]  }
 0xa67   : > { %v9870_v54 = vpack.c.bf16 %v9791_v10, %v9790_v17  ;;  %v15016_v51 = vunpack.i.h.bf16 %v15014_v3  ;;  %v15015_v37 = vunpack.i.l.bf16 %v15014_v3  ;;  %10219 = vmatpush1.bf16.msra.mxu0 %v9868_v27  ;;  %10653 = vmatpush1.bf16.msra.mxu1 %v9868_v27  ;;  %v15019_v40 = vpop.permute.xlu0 %15018  ;;  %v9811_v34 = vsel %vm1142_vm6, %v15011_v50, %v15006_v4  ;;  %v16148_v50 = vld [vmem:[#allocation13 + $0x40] sm:$0xff]   ;;  %v16152_v3 = vld [vmem:[#allocation13 + $0x48] sm:$0xff]  }
 0xa68   : > { %v15021_v60 = vunpack.i.h.bf16 %v15019_v40  ;;  %v15020_v25 = vunpack.i.l.bf16 %v15019_v40  ;;  %v9871_v12 = vpack.c.bf16 %v9811_v34, %v9810_v52  ;;  %10191 = vmatprep.mubr.bf16.mxu0 %v16094_v42  ;;  %10625 = vmatprep.mubr.bf16.mxu1 %v16096_v0  ;;  %v16100_v19 = vld [vmem:[%s22587_s9 + $0x8] ss:$16 sps:$4 sm:$0xff]   ;;  %v16108_v0 = vld [vmem:[%s22588_s10 + $0x2c] ss:$16 sps:$4 sm:$0xff]  }
 0xa69   : > { %v16103_v42 = vld [vmem:[%s22588_s10 + $0x8] ss:$16 sps:$4 sm:$0xff]  }
 0xa6a   : > { %v9793_v45 = vsel %vm1142_vm6, %v15016_v51, %v15021_v60  ;;  %v9792_v55 = vsel %vm1142_vm6, %v15015_v37, %v15020_v25  ;;  %10220 = vmatprep.subr.bf16.mxu0 %v9871_v12  ;;  %10654 = vmatprep.subr.bf16.mxu1 %v9871_v12  ;;  %v15024_v5 = vpop.permute.xlu1 %15023  ;;  %v9812_v9 = vsel %vm1142_vm6, %v15020_v25, %v15015_v37  ;;  %v16150_v10 = vld [vmem:[#allocation13] sm:$0xff]   ;;  %v16153_v52 = vld [vmem:[#allocation15 + $0x48] sm:$0xff]   ;;  %v16156_v37 = vld [vmem:[#allocation13 + $0x50] sm:$0xff]  }
 0xa6b   : > { %v9872_v63 = vpack.c.bf16 %v9793_v45, %v9792_v55  ;;  %v15026_v21 = vunpack.i.h.bf16 %v15024_v5  ;;  %v15025_v11 = vunpack.i.l.bf16 %v15024_v5  ;;  %10221 = vmatpush1.bf16.msra.mxu0 %v9870_v54  ;;  %10655 = vmatpush1.bf16.msra.mxu1 %v9870_v54  ;;  %v15029_v20 = vpop.permute.xlu0 %15028  ;;  %v9813_v8 = vsel %vm1142_vm6, %v15021_v60, %v15016_v51  ;;  %v16151_v17 = vld [vmem:[#allocation15] sm:$0xff]   ;;  %v16154_v54 = vld [vmem:[#allocation13 + $0x8] sm:$0xff]   ;;  %v16157_v40 = vld [vmem:[#allocation15 + $0x50] sm:$0xff]  }
 0xa6c   : > { %v15031_v13 = vunpack.i.h.bf16 %v15029_v20  ;;  %v15030_v48 = vunpack.i.l.bf16 %v15029_v20  ;;  %v9873_v35 = vpack.c.bf16 %v9813_v8, %v9812_v9  ;;  %v16155_v51 = vld [vmem:[#allocation15 + $0x8] sm:$0xff]   ;;  %v16160_v45 = vld [vmem:[#allocation13 + $0x58] sm:$0xff]  }
 0xa6d   : > { %10192 = vmatmul.mubr.bf16.gmra.mrb[196].mxu0 %v16098_v22  ;;  %10626 = vmatmul.mubr.bf16.gmra.mrb[204].mxu1 %v16099_v46  ;;  %v16110_v34 = vld [vmem:[%s22587_s9 + $0x28] ss:$16 sps:$4 sm:$0xff]   ;;  %v16112_v25 = vld [vmem:[%s22587_s9 + $0x4c] ss:$16 sps:$4 sm:$0xff]  }
 0xa6e   : > { %v9795_v44 = vsel %vm1142_vm6, %v15026_v21, %v15031_v13  ;;  %v9794_v53 = vsel %vm1142_vm6, %v15025_v11, %v15030_v48  ;;  %10222 = vmatprep.subr.bf16.mxu0 %v9873_v35  ;;  %10656 = vmatprep.subr.bf16.mxu1 %v9873_v35  ;;  %v15034_v24 = vpop.permute.xlu1 %15033  ;;  %v9814_v47 = vsel %vm1142_vm6, %v15030_v48, %v15025_v11  ;;  %v16111_v60 = vld [vmem:[%s22588_s10 + $0x28] ss:$16 sps:$4 sm:$0xff]   ;;  %v16114_v12 = vld [vmem:[%s22588_s10 + $0x4c] ss:$16 sps:$4 sm:$0xff]  }
 0xa6f   : > { %v9874_v23 = vpack.c.bf16 %v9795_v44, %v9794_v53  ;;  %v15036_v38 = vunpack.i.h.bf16 %v15034_v24  ;;  %v15035_v62 = vunpack.i.l.bf16 %v15034_v24  ;;  %10223 = vmatpush1.bf16.msra.mxu0 %v9872_v63  ;;  %10657 = vmatpush1.bf16.msra.mxu1 %v9872_v63  ;;  %v15039_v30 = vpop.permute.xlu0 %15038  ;;  %v9815_v58 = vsel %vm1142_vm6, %v15031_v13, %v15026_v21  ;;  %v16158_v22 = vld [vmem:[#allocation13 + $0x10] sm:$0xff]   ;;  %v16161_v55 = vld [vmem:[#allocation15 + $0x58] sm:$0xff]   ;;  %v16164_v63 = vld [vmem:[#allocation13 + $0x60] sm:$0xff]  }
 0xa70   : > { %v15041_v14 = vunpack.i.h.bf16 %v15039_v30  ;;  %v15040_v16 = vunpack.i.l.bf16 %v15039_v30  ;;  %v9875_v32 = vpack.c.bf16 %v9815_v58, %v9814_v47  ;;  %13106 = vmatprep.mubr.msk.bf16.mxu0 %vm10064_vm9, %v16102_v57  ;;  %13146 = vmatprep.mubr.msk.bf16.mxu1 %vm10064_vm9, %v16105_v31  ;;  %v16159_v46 = vld [vmem:[#allocation15 + $0x10] sm:$0xff]   ;;  %v16162_v5 = vld [vmem:[#allocation13 + $0x18] sm:$0xff]   ;;  %v16165_v21 = vld [vmem:[#allocation15 + $0x60] sm:$0xff]  }
 0xa71   : > { %v16163_v9 = vld [vmem:[#allocation15 + $0x18] sm:$0xff]   ;;  %v16166_v48 = vld [vmem:[#allocation13 + $0x20] sm:$0xff]   ;;  %v16168_v57 = vld [vmem:[#allocation13 + $0x68] sm:$0xff]  }
 0xa72   : > { %v9797_v43 = vsel %vm1142_vm6, %v15036_v38, %v15041_v14  ;;  %v9796_v61 = vsel %vm1142_vm6, %v15035_v62, %v15040_v16  ;;  %10224 = vmatprep.subr.bf16.mxu0 %v9875_v32  ;;  %10658 = vmatprep.subr.bf16.mxu1 %v9875_v32  ;;  %v15044_v41 = vpop.permute.xlu1 %15043  ;;  %v9816_v29 = vsel %vm1142_vm6, %v15040_v16, %v15035_v62  ;;  %v16116_v11 = vld [vmem:[%s22587_s9 + $0x48] ss:$16 sps:$4 sm:$0xff]   ;;  %v16118_v8 = vld [vmem:[%s22587_s9 + $0x6c] ss:$16 sps:$4 sm:$0xff]  }
 0xa73   : > { %v9876_v26 = vpack.c.bf16 %v9797_v43, %v9796_v61  ;;  %v15046_v49 = vunpack.i.h.bf16 %v15044_v41  ;;  %v15045_v15 = vunpack.i.l.bf16 %v15044_v41  ;;  %10225 = vmatpush1.bf16.msra.mxu0 %v9874_v23  ;;  %10659 = vmatpush1.bf16.msra.mxu1 %v9874_v23  ;;  %v15049_v56 = vpop.permute.xlu0 %15048  ;;  %v9817_v33 = vsel %vm1142_vm6, %v15041_v14, %v15036_v38  ;;  %v16117_v20 = vld [vmem:[%s22588_s10 + $0x48] ss:$16 sps:$4 sm:$0xff]   ;;  %v16120_v13 = vld [vmem:[%s22588_s10 + $0x6c] ss:$16 sps:$4 sm:$0xff]  }
 0xa74   : > { %v15051_v1 = vunpack.i.h.bf16 %v15049_v56  ;;  %v15050_v36 = vunpack.i.l.bf16 %v15049_v56  ;;  %v9877_v59 = vpack.c.bf16 %v9817_v33, %v9816_v29  ;;  %v16167_v35 = vld [vmem:[#allocation15 + $0x20] sm:$0xff]   ;;  %v16169_v31 = vld [vmem:[#allocation15 + $0x68] sm:$0xff]   ;;  %v16172_v33 = vld [vmem:[#allocation13 + $0x70] sm:$0xff]  }
 0xa75   : > { %v16170_v44 = vld [vmem:[#allocation13 + $0x28] sm:$0xff]  }
 0xa76   : > { %v9799_v39 = vsel %vm1142_vm6, %v15046_v49, %v15051_v1  ;;  %v9798_v27 = vsel %vm1142_vm6, %v15045_v15, %v15050_v36  ;;  %10226 = vmatprep.subr.bf16.mxu0 %v9877_v59  ;;  %10660 = vmatprep.subr.bf16.mxu1 %v9877_v59  ;;  %v9818_v4 = vsel %vm1142_vm6, %v15050_v36, %v15045_v15  ;;  %v16171_v53 = vld [vmem:[#allocation15 + $0x28] sm:$0xff]   ;;  %v16174_v36 = vld [vmem:[#allocation13 + $0x30] sm:$0xff]  }
 0xa77   : > { %v9878_v28 = vpack.c.bf16 %v9799_v39, %v9798_v27  ;;  %10227 = vmatpush1.bf16.msra.mxu0 %v9876_v26  ;;  %10661 = vmatpush1.bf16.msra.mxu1 %v9876_v26  ;;  %v9819_v2 = vsel %vm1142_vm6, %v15051_v1, %v15046_v49  ;;  %v16122_v24 = vld [vmem:[%s22587_s9 + $0x68] ss:$16 sps:$4 sm:$0xff]   ;;  %v16124_v23 = vld [vmem:[%s22587_s9 + $0x8c] ss:$16 sps:$4 sm:$0xff]  }
 0xa78   : > { %v9879_v18 = vpack.c.bf16 %v9819_v2, %v9818_v4  ;;  %v16123_v47 = vld [vmem:[%s22588_s10 + $0x68] ss:$16 sps:$4 sm:$0xff]   ;;  %v16126_v38 = vld [vmem:[%s22588_s10 + $0x8c] ss:$16 sps:$4 sm:$0xff]  }
 0xa79   : > { %v16128_v62 = vld [vmem:[%s22587_s9 + $0x88] ss:$16 sps:$4 sm:$0xff]   ;;  %v16130_v58 = vld [vmem:[%s22587_s9 + $0xac] ss:$16 sps:$4 sm:$0xff]  }
 0xa7a   : > { %10228 = vmatprep.subr.bf16.mxu0 %v9879_v18  ;;  %10662 = vmatprep.subr.bf16.mxu1 %v9879_v18  ;;  %v16129_v30 = vld [vmem:[%s22588_s10 + $0x88] ss:$16 sps:$4 sm:$0xff]   ;;  %v16132_v14 = vld [vmem:[%s22588_s10 + $0xac] ss:$16 sps:$4 sm:$0xff]  }
 0xa7b   : > { %10229 = vmatpush1.bf16.msra.mxu0 %v9878_v28  ;;  %10663 = vmatpush1.bf16.msra.mxu1 %v9878_v28  ;;  %v16134_v16 = vld [vmem:[%s22587_s9 + $0xa8] ss:$16 sps:$4 sm:$0xff]   ;;  %v16136_v43 = vld [vmem:[%s22587_s9 + $0xcc] ss:$16 sps:$4 sm:$0xff]  }
 0xa7c   : > { %13221 = vmatprep.subr.bf16.mxu0 %v16148_v50  ;;  %13285 = vmatprep.subr.bf16.mxu1 %v16149_v7  ;;  %v16135_v32 = vld [vmem:[%s22588_s10 + $0xa8] ss:$16 sps:$4 sm:$0xff]   ;;  %v16138_v61 = vld [vmem:[%s22588_s10 + $0xcc] ss:$16 sps:$4 sm:$0xff]  }
 0xa7d   : > { %v16140_v41 = vld [vmem:[%s22587_s9 + $0xc8] ss:$16 sps:$4 sm:$0xff]   ;;  %v16142_v26 = vld [vmem:[%s22587_s9 + $0xec] ss:$16 sps:$4 sm:$0xff]  }
 0xa7e   : > { %10235 = vmatmul.mubr.bf16.vlgmr.msra.gmra.mrb[168].mxu0 %v16100_v19  ;;  %10669 = vmatmul.mubr.bf16.vlgmr.msra.gmra.mrb[176].mxu1 %v16103_v42  ;;  %v16141_v29 = vld [vmem:[%s22588_s10 + $0xc8] ss:$16 sps:$4 sm:$0xff]   ;;  %v16144_v49 = vld [vmem:[%s22588_s10 + $0xec] ss:$16 sps:$4 sm:$0xff]  }
 0xa7f   : > { %13107 = vmatprep.mubr.msk.bf16.mxu0 %vm10064_vm9, %v16106_v6  ;;  %13147 = vmatprep.mubr.msk.bf16.mxu1 %vm10064_vm9, %v16108_v0  ;;  %v16146_v15 = vld [vmem:[%s22587_s9 + $0xe8] ss:$16 sps:$4 sm:$0xff]  }
 0xa80   : > { %13222 = vmatpush3.bf16.msra.mxu0 %v16150_v10  ;;  %13286 = vmatpush3.bf16.msra.mxu1 %v16151_v17  ;;  %v16147_v56 = vld [vmem:[%s22588_s10 + $0xe8] ss:$16 sps:$4 sm:$0xff]  }
 0xa81   : > { %13223 = vmatprep.subr.bf16.mxu0 %v16152_v3  ;;  %13287 = vmatprep.subr.bf16.mxu1 %v16153_v52  ;;  %v16173_v1 = vld [vmem:[#allocation15 + $0x70] sm:$0xff]   ;;  %v16176_v39 = vld [vmem:[#allocation13 + $0x78] sm:$0xff]  }
 0xa82   : > { %v16175_v59 = vld [vmem:[#allocation15 + $0x30] sm:$0xff]   ;;  %v16177_v27 = vld [vmem:[#allocation15 + $0x78] sm:$0xff]  }
 0xa83   : > { %v16178_v4 = vld [vmem:[#allocation13 + $0x38] sm:$0xff]   ;;  %v10800_v2 = vpop.permute.xlu1 %10799 }
 0xa84   : > { %13224 = vmatpush3.bf16.msra.mxu0 %v16154_v54  ;;  %13288 = vmatpush3.bf16.msra.mxu1 %v16155_v51  ;;  %v16179_v28 = vld [vmem:[#allocation15 + $0x38] sm:$0xff]   ;;  %v10805_v51 = vpop.permute.xlu0 %10804 }
 0xa85   : > { %13225 = vmatprep.subr.bf16.mxu0 %v16156_v37  ;;  %13289 = vmatprep.subr.bf16.mxu1 %v16157_v40 }
 0xa86   : > { %10245 = vmatmul.mubr.bf16.gmra.mrb[172].mxu0 %v16110_v34  ;;  %10679 = vmatmul.mubr.bf16.gmra.mrb[180].mxu1 %v16111_v60 }
 0xa87   : > { %13108 = vmatprep.mubr.msk.bf16.mxu0 %vm10064_vm9, %v16112_v25  ;;  %13148 = vmatprep.mubr.msk.bf16.mxu1 %vm10064_vm9, %v16114_v12  ;;  %v10810_v25 = vpop.permute.xlu1 %10809 }
 0xa88   : > { %13226 = vmatpush3.bf16.msra.mxu0 %v16158_v22  ;;  %13290 = vmatpush3.bf16.msra.mxu1 %v16159_v46 }
 0xa89   : > { %13227 = vmatprep.subr.bf16.mxu0 %v16160_v45  ;;  %13291 = vmatprep.subr.bf16.mxu1 %v16161_v55 }
 0xa8c   : > { %13228 = vmatpush3.bf16.msra.mxu0 %v16162_v5  ;;  %13292 = vmatpush3.bf16.msra.mxu1 %v16163_v9 }
 0xa8d   : > { %13229 = vmatprep.subr.bf16.mxu0 %v16164_v63  ;;  %13293 = vmatprep.subr.bf16.mxu1 %v16165_v21 }
 0xa8e   : > { %10255 = vmatmul.mubr.bf16.gmra.mrb[176].mxu0 %v16116_v11  ;;  %10689 = vmatmul.mubr.bf16.gmra.mrb[184].mxu1 %v16117_v20 }
 0xa8f   : > { %13109 = vmatprep.mubr.msk.bf16.mxu0 %vm10064_vm9, %v16118_v8  ;;  %13149 = vmatprep.mubr.msk.bf16.mxu1 %vm10064_vm9, %v16120_v13 }
 0xa90   : > { %13230 = vmatpush3.bf16.msra.mxu0 %v16166_v48  ;;  %13294 = vmatpush3.bf16.msra.mxu1 %v16167_v35 }
 0xa91   : > { %13231 = vmatprep.subr.bf16.mxu0 %v16168_v57  ;;  %13295 = vmatprep.subr.bf16.mxu1 %v16169_v31 }
 0xa94   : > { %13232 = vmatpush3.bf16.msra.mxu0 %v16170_v44  ;;  %13296 = vmatpush3.bf16.msra.mxu1 %v16171_v53  ;;  %v10815_v53 = vpop.permute.xlu0 %10814 }
 0xa95   : > { %13233 = vmatprep.subr.bf16.mxu0 %v16172_v33  ;;  %13297 = vmatprep.subr.bf16.mxu1 %v16173_v1 }
 0xa96   : > { %10265 = vmatmul.mubr.bf16.gmra.mrb[180].mxu0 %v16122_v24  ;;  %10699 = vmatmul.mubr.bf16.gmra.mrb[188].mxu1 %v16123_v47 }
 0xa97   : > { %13110 = vmatprep.mubr.msk.bf16.mxu0 %vm10064_vm9, %v16124_v23  ;;  %13150 = vmatprep.mubr.msk.bf16.mxu1 %vm10064_vm9, %v16126_v38 }
 0xa98   : > { %13234 = vmatpush3.bf16.msra.mxu0 %v16174_v36  ;;  %13298 = vmatpush3.bf16.msra.mxu1 %v16175_v59 }
 0xa99   : > { %13235 = vmatprep.subr.bf16.mxu0 %v16176_v39  ;;  %13299 = vmatprep.subr.bf16.mxu1 %v16177_v27  ;;  %v10825_v27 = vpop.permute.xlu0 %10824 }
 0xa9c   : > { %13236 = vmatpush3.bf16.msra.mxu0 %v16178_v4  ;;  %13300 = vmatpush3.bf16.msra.mxu1 %v16179_v28 }
 0xa9e   : > { %10275 = vmatmul.mubr.bf16.gmra.mrb[184].mxu0 %v16128_v62  ;;  %10709 = vmatmul.mubr.bf16.gmra.mrb[192].mxu1 %v16129_v30  ;;  %v10820_v62 = vpop.permute.xlu1 %10819 }
 0xa9f   : > { %13111 = vmatprep.mubr.msk.bf16.mxu0 %vm10064_vm9, %v16130_v58  ;;  %13151 = vmatprep.mubr.msk.bf16.mxu1 %vm10064_vm9, %v16132_v14 }
 0xaa6   : > { %10285 = vmatmul.mubr.bf16.gmra.mrb[188].mxu0 %v16134_v16  ;;  %10719 = vmatmul.mubr.bf16.gmra.mrb[196].mxu1 %v16135_v32 }
 0xaa7   : > { %13112 = vmatprep.mubr.msk.bf16.mxu0 %vm10064_vm9, %v16136_v43  ;;  %13152 = vmatprep.mubr.msk.bf16.mxu1 %vm10064_vm9, %v16138_v61 }
 0xaae   : > { %10295 = vmatmul.mubr.bf16.gmra.mrb[192].mxu0 %v16140_v41  ;;  %10729 = vmatmul.mubr.bf16.gmra.mrb[200].mxu1 %v16141_v29 }
 0xaaf   : > { %13113 = vmatprep.mubr.msk.bf16.mxu0 %vm10064_vm9, %v16142_v26  ;;  %13153 = vmatprep.mubr.msk.bf16.mxu1 %vm10064_vm9, %v16144_v49 }
 0xab6   : > { %10305 = vmatmul.mubr.bf16.gmra.mrb[196].mxu0 %v16146_v15  ;;  %10739 = vmatmul.mubr.bf16.gmra.mrb[204].mxu1 %v16147_v56 }
 0xb51   : > { %v10236_v18 = vpop.f32.mrb[168].mxu0  ;;  %v10670_v50 = vpop.f32.mrb[176].mxu1 }
 0xb52   : > { %v10749_v7 = vmax.f32 %v10236_v18, %v10670_v50  ;;  %v10238_v19 = vpop.f32.mrb[169].mxu0  ;;  %v10672_v42 = vpop.f32.mrb[177].mxu1 }
 0xb53   : > { %v10750_v6 = vmax.f32 %v10238_v19, %v10672_v42  ;;  %v10240_v0 = vpop.f32.mrb[170].mxu0  ;;  %v10674_v10 = vpop.f32.mrb[178].mxu1 }
 0xb54   : > { %v10877_v17 = vadd.f32 %v10800_v2, %v10749_v7  ;;  %v10751_v3 = vmax.f32 %v10240_v0, %v10674_v10  ;;  %v10242_v52 = vpop.f32.mrb[171].mxu0  ;;  %v10676_v54 = vpop.f32.mrb[179].mxu1 }
 0xb55   : > { %v10878_v37 = vadd.f32 %v10800_v2, %v10750_v6  ;;  %v10752_v40 = vmax.f32 %v10242_v52, %v10676_v54  ;;  %v10830_v50 = vpop.permute.xlu1 %10829 }
 0xb56   : > { %v10879_v34 = vadd.f32 %v10805_v51, %v10751_v3  ;;  %v10909_v12 = vmax.f32 %v10877_v17, 0.0 }
 0xb57   : > { %v10880_v60 = vadd.f32 %v10805_v51, %v10752_v40  ;;  %v10910_v46 = vmax.f32 %v10878_v37, 0.0 }
 0xb58   : > { %v10911_v22 = vmax.f32 %v10879_v34, 0.0 }
 0xb59   : > { %v10912_v45 = vmax.f32 %v10880_v60, 0.0  ;;  %v10246_v55 = vpop.f32.mrb[172].mxu0  ;;  %v10680_v5 = vpop.f32.mrb[180].mxu1 }
 0xb5a   : > { %v10941_v9 = vpack.c.bf16 %v10911_v22, %v10909_v12  ;;  %v10753_v63 = vmax.f32 %v10246_v55, %v10680_v5  ;;  %v10248_v21 = vpop.f32.mrb[173].mxu0  ;;  %v10682_v11 = vpop.f32.mrb[181].mxu1 }
 0xb5b   : > { %v10754_v20 = vmax.f32 %v10248_v21, %v10682_v11  ;;  %v10250_v8 = vpop.f32.mrb[174].mxu0  ;;  %v10684_v13 = vpop.f32.mrb[182].mxu1  ;;  %v10942_v48 = vpack.c.bf16 %v10912_v45, %v10910_v46 }
 0xb5c   : > { %v10881_v35 = vadd.f32 %v10810_v25, %v10753_v63  ;;  %v10755_v57 = vmax.f32 %v10250_v8, %v10684_v13  ;;  %v10252_v31 = vpop.f32.mrb[175].mxu0  ;;  %v10686_v44 = vpop.f32.mrb[183].mxu1 }
 0xb5d   : > { %v10882_v24 = vadd.f32 %v10810_v25, %v10754_v20  ;;  %v10756_v47 = vmax.f32 %v10252_v31, %v10686_v44  ;;  %11117 = vmatprep.mubr.bf16.mxu0 %v10942_v48  ;;  %11342 = vmatprep.mubr.bf16.mxu1 %v10942_v48  ;;  %v10835_v46 = vpop.permute.xlu0 %10834  ;;  %v10840_v63 = vpop.permute.xlu1 %10839 }
 0xb5e   : > { %v10883_v23 = vadd.f32 %v10815_v53, %v10755_v57  ;;  %11118 = vmatmul.mubr.bf16.vlgmr.msra.gmra.mrb[200].mxu0 %v10941_v9  ;;  %11343 = vmatmul.mubr.bf16.vlgmr.msra.gmra.mrb[208].mxu1 %v10941_v9  ;;  %v10913_v30 = vmax.f32 %v10881_v35, 0.0 }
 0xb5f   : > { %v10884_v38 = vadd.f32 %v10815_v53, %v10756_v47  ;;  %v10914_v14 = vmax.f32 %v10882_v24, 0.0 }
 0xb60   : > { %v10915_v58 = vmax.f32 %v10883_v23, 0.0 }
 0xb61   : > { %v10916_v16 = vmax.f32 %v10884_v38, 0.0  ;;  %v10256_v32 = vpop.f32.mrb[176].mxu0  ;;  %v10690_v43 = vpop.f32.mrb[184].mxu1 }
 0xb62   : > { %v10757_v61 = vmax.f32 %v10256_v32, %v10690_v43  ;;  %v10258_v41 = vpop.f32.mrb[177].mxu0  ;;  %v10692_v29 = vpop.f32.mrb[185].mxu1  ;;  %v10943_v26 = vpack.c.bf16 %v10915_v58, %v10913_v30 }
 0xb63   : > { %v10758_v49 = vmax.f32 %v10258_v41, %v10692_v29  ;;  %v10260_v15 = vpop.f32.mrb[178].mxu0  ;;  %v10694_v56 = vpop.f32.mrb[186].mxu1  ;;  %v10944_v33 = vpack.c.bf16 %v10916_v16, %v10914_v14 }
 0xb64   : > { %v10885_v1 = vadd.f32 %v10820_v62, %v10757_v61  ;;  %v10759_v36 = vmax.f32 %v10260_v15, %v10694_v56  ;;  %v10262_v59 = vpop.f32.mrb[179].mxu0  ;;  %v10696_v39 = vpop.f32.mrb[187].mxu1 }
 0xb65   : > { %v10886_v4 = vadd.f32 %v10820_v62, %v10758_v49  ;;  %v10760_v28 = vmax.f32 %v10262_v59, %v10696_v39  ;;  %11125 = vmatprep.mubr.bf16.mxu0 %v10944_v33  ;;  %11350 = vmatprep.mubr.bf16.mxu1 %v10944_v33  ;;  %v10845_v14 = vpop.permute.xlu0 %10844  ;;  %v10850_v41 = vpop.permute.xlu1 %10849 }
 0xb66   : > { %v10887_v2 = vadd.f32 %v10825_v27, %v10759_v36  ;;  %11126 = vmatmul.mubr.bf16.gmra.mrb[204].mxu0 %v10943_v26  ;;  %11351 = vmatmul.mubr.bf16.gmra.mrb[212].mxu1 %v10943_v26  ;;  %v10917_v7 = vmax.f32 %v10885_v1, 0.0 }
 0xb67   : > { %v10888_v18 = vadd.f32 %v10825_v27, %v10760_v28  ;;  %v10918_v42 = vmax.f32 %v10886_v4, 0.0 }
 0xb68   : > { %v10919_v19 = vmax.f32 %v10887_v2, 0.0 }
 0xb69   : > { %v10920_v6 = vmax.f32 %v10888_v18, 0.0  ;;  %v10266_v0 = vpop.f32.mrb[180].mxu0  ;;  %v10700_v10 = vpop.f32.mrb[188].mxu1 }
 0xb6a   : > { %v10761_v17 = vmax.f32 %v10266_v0, %v10700_v10  ;;  %v10268_v3 = vpop.f32.mrb[181].mxu0  ;;  %v10702_v52 = vpop.f32.mrb[189].mxu1  ;;  %v10945_v54 = vpack.c.bf16 %v10919_v19, %v10917_v7 }
 0xb6b   : > { %v10762_v51 = vmax.f32 %v10268_v3, %v10702_v52  ;;  %v10270_v37 = vpop.f32.mrb[182].mxu0  ;;  %v10704_v40 = vpop.f32.mrb[190].mxu1  ;;  %v10946_v34 = vpack.c.bf16 %v10920_v6, %v10918_v42 }
 0xb6c   : > { %v10889_v60 = vadd.f32 %v10830_v50, %v10761_v17  ;;  %v10763_v25 = vmax.f32 %v10270_v37, %v10704_v40  ;;  %v10272_v12 = vpop.f32.mrb[183].mxu0  ;;  %v10706_v22 = vpop.f32.mrb[191].mxu1 }
 0xb6d   : > { %v10890_v45 = vadd.f32 %v10830_v50, %v10762_v51  ;;  %v10764_v55 = vmax.f32 %v10272_v12, %v10706_v22  ;;  %11133 = vmatprep.mubr.bf16.mxu0 %v10946_v34  ;;  %11358 = vmatprep.mubr.bf16.mxu1 %v10946_v34  ;;  %v10855_v42 = vpop.permute.xlu0 %10854  ;;  %v10860_v3 = vpop.permute.xlu1 %10859 }
 0xb6e   : > { %v10891_v5 = vadd.f32 %v10835_v46, %v10763_v25  ;;  %11134 = vmatmul.mubr.bf16.gmra.mrb[208].mxu0 %v10945_v54  ;;  %11359 = vmatmul.mubr.bf16.gmra.mrb[216].mxu1 %v10945_v54  ;;  %v10921_v21 = vmax.f32 %v10889_v60, 0.0 }
 0xb6f   : > { %v10892_v9 = vadd.f32 %v10835_v46, %v10764_v55  ;;  %v10922_v20 = vmax.f32 %v10890_v45, 0.0 }
 0xb70   : > { %v10923_v11 = vmax.f32 %v10891_v5, 0.0 }
 0xb71   : > { %v10924_v8 = vmax.f32 %v10892_v9, 0.0  ;;  %v10276_v13 = vpop.f32.mrb[184].mxu0  ;;  %v10710_v48 = vpop.f32.mrb[192].mxu1 }
 0xb72   : > { %v10765_v35 = vmax.f32 %v10276_v13, %v10710_v48  ;;  %v10278_v57 = vpop.f32.mrb[185].mxu0  ;;  %v10712_v31 = vpop.f32.mrb[193].mxu1  ;;  %v10947_v44 = vpack.c.bf16 %v10923_v11, %v10921_v21 }
 0xb73   : > { %v10766_v53 = vmax.f32 %v10278_v57, %v10712_v31  ;;  %v10280_v24 = vpop.f32.mrb[186].mxu0  ;;  %v10714_v47 = vpop.f32.mrb[194].mxu1  ;;  %v10948_v23 = vpack.c.bf16 %v10924_v8, %v10922_v20 }
 0xb74   : > { %v10893_v38 = vadd.f32 %v10840_v63, %v10765_v35  ;;  %v10767_v62 = vmax.f32 %v10280_v24, %v10714_v47  ;;  %v10282_v30 = vpop.f32.mrb[187].mxu0  ;;  %v10716_v58 = vpop.f32.mrb[195].mxu1 }
 0xb75   : > { %v10894_v16 = vadd.f32 %v10840_v63, %v10766_v53  ;;  %v10768_v32 = vmax.f32 %v10282_v30, %v10716_v58  ;;  %11141 = vmatprep.mubr.bf16.mxu0 %v10948_v23  ;;  %11366 = vmatprep.mubr.bf16.mxu1 %v10948_v23  ;;  %v10865_v20 = vpop.permute.xlu0 %10864  ;;  %v10870_v57 = vpop.permute.xlu1 %10869 }
 0xb76   : > { %v10895_v43 = vadd.f32 %v10845_v14, %v10767_v62  ;;  %11142 = vmatmul.mubr.bf16.gmra.mrb[212].mxu0 %v10947_v44  ;;  %11367 = vmatmul.mubr.bf16.gmra.mrb[220].mxu1 %v10947_v44  ;;  %v10925_v29 = vmax.f32 %v10893_v38, 0.0 }
 0xb77   : > { %v10896_v61 = vadd.f32 %v10845_v14, %v10768_v32  ;;  %v10926_v49 = vmax.f32 %v10894_v16, 0.0 }
 0xb78   : > { %v10927_v26 = vmax.f32 %v10895_v43, 0.0 }
 0xb79   : > { %v10928_v15 = vmax.f32 %v10896_v61, 0.0  ;;  %v10286_v56 = vpop.f32.mrb[188].mxu0  ;;  %v10720_v33 = vpop.f32.mrb[196].mxu1 }
 0xb7a   : > { %v10769_v1 = vmax.f32 %v10286_v56, %v10720_v33  ;;  %v10288_v36 = vpop.f32.mrb[189].mxu0  ;;  %v10722_v59 = vpop.f32.mrb[197].mxu1  ;;  %v10949_v39 = vpack.c.bf16 %v10927_v26, %v10925_v29 }
 0xb7b   : > { %v10770_v27 = vmax.f32 %v10288_v36, %v10722_v59  ;;  %v10290_v4 = vpop.f32.mrb[190].mxu0  ;;  %v10724_v28 = vpop.f32.mrb[198].mxu1  ;;  %v10950_v2 = vpack.c.bf16 %v10928_v15, %v10926_v49 }
 0xb7c   : > { %v10897_v18 = vadd.f32 %v10850_v41, %v10769_v1  ;;  %v10771_v50 = vmax.f32 %v10290_v4, %v10724_v28  ;;  %v10292_v7 = vpop.f32.mrb[191].mxu0  ;;  %v10726_v19 = vpop.f32.mrb[199].mxu1 }
 0xb7d   : > { %v10898_v6 = vadd.f32 %v10850_v41, %v10770_v27  ;;  %v10772_v0 = vmax.f32 %v10292_v7, %v10726_v19  ;;  %11149 = vmatprep.mubr.bf16.mxu0 %v10950_v2  ;;  %11374 = vmatprep.mubr.bf16.mxu1 %v10950_v2  ;;  %v10875_v49 = vpop.permute.xlu0 %10874  ;;  %v16180_v2 = vld [vmem:[%s23799_s13] sm:$0xff]  }
 0xb7e   : > { %v10899_v10 = vadd.f32 %v10855_v42, %v10771_v50  ;;  %11150 = vmatmul.mubr.bf16.gmra.mrb[216].mxu0 %v10949_v39  ;;  %11375 = vmatmul.mubr.bf16.gmra.mrb[224].mxu1 %v10949_v39  ;;  %v10929_v52 = vmax.f32 %v10897_v18, 0.0 }
 0xb7f   : > { %v10900_v17 = vadd.f32 %v10855_v42, %v10772_v0  ;;  %v10930_v51 = vmax.f32 %v10898_v6, 0.0 }
 0xb80   : > { %v10931_v54 = vmax.f32 %v10899_v10, 0.0 }
 0xb81   : > { %v10932_v37 = vmax.f32 %v10900_v17, 0.0  ;;  %v10296_v40 = vpop.f32.mrb[192].mxu0  ;;  %v10730_v34 = vpop.f32.mrb[200].mxu1 }
 0xb82   : > { %v10773_v60 = vmax.f32 %v10296_v40, %v10730_v34  ;;  %v10298_v25 = vpop.f32.mrb[193].mxu0  ;;  %v10732_v12 = vpop.f32.mrb[201].mxu1  ;;  %v10951_v22 = vpack.c.bf16 %v10931_v54, %v10929_v52 }
 0xb83   : > { %v10774_v46 = vmax.f32 %v10298_v25, %v10732_v12  ;;  %v10300_v45 = vpop.f32.mrb[194].mxu0  ;;  %v10734_v55 = vpop.f32.mrb[202].mxu1  ;;  %v10952_v5 = vpack.c.bf16 %v10932_v37, %v10930_v51 }
 0xb84   : > { %v10901_v9 = vadd.f32 %v10860_v3, %v10773_v60  ;;  %v10775_v63 = vmax.f32 %v10300_v45, %v10734_v55  ;;  %v10302_v21 = vpop.f32.mrb[195].mxu0  ;;  %v10736_v11 = vpop.f32.mrb[203].mxu1 }
 0xb85   : > { %v10902_v8 = vadd.f32 %v10860_v3, %v10774_v46  ;;  %v10776_v13 = vmax.f32 %v10302_v21, %v10736_v11  ;;  %11157 = vmatprep.mubr.bf16.mxu0 %v10952_v5  ;;  %11382 = vmatprep.mubr.bf16.mxu1 %v10952_v5 }
 0xb86   : > { %v10903_v48 = vadd.f32 %v10865_v20, %v10775_v63  ;;  %11158 = vmatmul.mubr.bf16.gmra.mrb[220].mxu0 %v10951_v22  ;;  %11383 = vmatmul.mubr.bf16.gmra.mrb[228].mxu1 %v10951_v22  ;;  %v10933_v31 = vmax.f32 %v10901_v9, 0.0 }
 0xb87   : > { %v10904_v35 = vadd.f32 %v10865_v20, %v10776_v13  ;;  %v10934_v53 = vmax.f32 %v10902_v8, 0.0 }
 0xb88   : > { %v10935_v44 = vmax.f32 %v10903_v48, 0.0 }
 0xb89   : > { %v10936_v24 = vmax.f32 %v10904_v35, 0.0  ;;  %v10306_v47 = vpop.f32.mrb[196].mxu0  ;;  %v10740_v23 = vpop.f32.mrb[204].mxu1 }
 0xb8a   : > { %v10777_v38 = vmax.f32 %v10306_v47, %v10740_v23  ;;  %v10308_v62 = vpop.f32.mrb[197].mxu0  ;;  %v10742_v30 = vpop.f32.mrb[205].mxu1  ;;  %v10953_v58 = vpack.c.bf16 %v10935_v44, %v10933_v31 }
 0xb8b   : > { %v10778_v14 = vmax.f32 %v10308_v62, %v10742_v30  ;;  %v10310_v16 = vpop.f32.mrb[198].mxu0  ;;  %v10744_v32 = vpop.f32.mrb[206].mxu1  ;;  %v10954_v43 = vpack.c.bf16 %v10936_v24, %v10934_v53 }
 0xb8c   : > { %v10905_v61 = vadd.f32 %v10870_v57, %v10777_v38  ;;  %v10779_v41 = vmax.f32 %v10310_v16, %v10744_v32  ;;  %v10312_v29 = vpop.f32.mrb[199].mxu0  ;;  %v10746_v26 = vpop.f32.mrb[207].mxu1 }
 0xb8d   : > { %v10906_v15 = vadd.f32 %v10870_v57, %v10778_v14  ;;  %v10780_v56 = vmax.f32 %v10312_v29, %v10746_v26  ;;  %11165 = vmatprep.mubr.bf16.mxu0 %v10954_v43  ;;  %11390 = vmatprep.mubr.bf16.mxu1 %v10954_v43 }
 0xb8e   : > { %v10907_v33 = vadd.f32 %v10875_v49, %v10779_v41  ;;  %11166 = vmatmul.mubr.bf16.gmra.mrb[224].mxu0 %v10953_v58  ;;  %11391 = vmatmul.mubr.bf16.gmra.mrb[232].mxu1 %v10953_v58  ;;  %v10937_v36 = vmax.f32 %v10905_v61, 0.0 }
 0xb8f   : > { %v10908_v1 = vadd.f32 %v10875_v49, %v10780_v56  ;;  %v10938_v39 = vmax.f32 %v10906_v15, 0.0 }
 0xb90   : > { %v10939_v59 = vmax.f32 %v10907_v33, 0.0 }
 0xb91   : > { %v10940_v27 = vmax.f32 %v10908_v1, 0.0 }
 0xb92   : > { %v10955_v4 = vpack.c.bf16 %v10939_v59, %v10937_v36 }
 0xb93   : > { %v10956_v28 = vpack.c.bf16 %v10940_v27, %v10938_v39 }
 0xb95   : > { %11173 = vmatprep.mubr.bf16.mxu0 %v10956_v28  ;;  %11398 = vmatprep.mubr.bf16.mxu1 %v10956_v28 }
 0xb96   : > { %11174 = vmatmul.mubr.bf16.gmra.mrb[228].mxu0 %v10955_v4  ;;  %11399 = vmatmul.mubr.bf16.gmra.mrb[236].mxu1 %v10955_v4 }
 0xb97   : > { %13418 = vmatprep.mubr.bf16.mxu0 %v16180_v2 }
 0xc31   : > { %v13237_v18 = vpop.f32.mrb[200].mxu0  ;;  %v13301_v50 = vpop.f32.mrb[208].mxu1 }
 0xc32   : > { %v13238_v7 = vpop.f32.mrb[201].mxu0  ;;  %v13302_v19 = vpop.f32.mrb[209].mxu1 }
 0xc33   : > { %v13239_v42 = vadd.f32 %v13238_v7, %v13237_v18  ;;  %v13303_v6 = vadd.f32 %v13302_v19, %v13301_v50  ;;  %v13240_v0 = vpop.f32.mrb[202].mxu0  ;;  %v13304_v10 = vpop.f32.mrb[210].mxu1 }
 0xc34   : > { %v13241_v17 = vpop.f32.mrb[203].mxu0  ;;  %v13305_v3 = vpop.f32.mrb[211].mxu1 }
 0xc35   : > { %v11407_v52 = vmax.f32 %v13239_v42, %v13303_v6  ;;  %v13242_v54 = vadd.f32 %v13241_v17, %v13240_v0  ;;  %v13306_v51 = vadd.f32 %v13305_v3, %v13304_v10 }
 0xc37   : > { %v11408_v37 = vmax.f32 %v13242_v54, %v13306_v51 }
 0xc39   : > { %v13243_v40 = vpop.f32.mrb[204].mxu0  ;;  %v13307_v34 = vpop.f32.mrb[212].mxu1  ;;  %v11463_v60 = vpack.c.bf16 %v11408_v37, %v11407_v52 }
 0xc3a   : > { %v13244_v25 = vpop.f32.mrb[205].mxu0  ;;  %v13308_v12 = vpop.f32.mrb[213].mxu1 }
 0xc3b   : > { %v13245_v22 = vadd.f32 %v13244_v25, %v13243_v40  ;;  %v13309_v46 = vadd.f32 %v13308_v12, %v13307_v34  ;;  %v13246_v45 = vpop.f32.mrb[206].mxu0  ;;  %v13310_v55 = vpop.f32.mrb[214].mxu1  ;;  %13402 = vmatprep.subr.bf16.mxu0 %v11463_v60 }
 0xc3c   : > { %v13247_v5 = vpop.f32.mrb[207].mxu0  ;;  %v13311_v9 = vpop.f32.mrb[215].mxu1  ;;  %13403 = vmatpush3.bf16.msra.mxu0 %v11463_v60 }
 0xc3d   : > { %v11409_v63 = vmax.f32 %v13245_v22, %v13309_v46  ;;  %v13248_v21 = vadd.f32 %v13247_v5, %v13246_v45  ;;  %v13312_v11 = vadd.f32 %v13311_v9, %v13310_v55 }
 0xc3f   : > { %v11410_v20 = vmax.f32 %v13248_v21, %v13312_v11 }
 0xc41   : > { %v13249_v8 = vpop.f32.mrb[208].mxu0  ;;  %v13313_v13 = vpop.f32.mrb[216].mxu1  ;;  %v11464_v48 = vpack.c.bf16 %v11410_v20, %v11409_v63 }
 0xc42   : > { %v13250_v35 = vpop.f32.mrb[209].mxu0  ;;  %v13314_v57 = vpop.f32.mrb[217].mxu1 }
 0xc43   : > { %v13251_v31 = vadd.f32 %v13250_v35, %v13249_v8  ;;  %v13315_v44 = vadd.f32 %v13314_v57, %v13313_v13  ;;  %v13252_v53 = vpop.f32.mrb[210].mxu0  ;;  %v13316_v24 = vpop.f32.mrb[218].mxu1  ;;  %13404 = vmatprep.subr.bf16.mxu0 %v11464_v48 }
 0xc44   : > { %v13253_v47 = vpop.f32.mrb[211].mxu0  ;;  %v13317_v23 = vpop.f32.mrb[219].mxu1  ;;  %13405 = vmatpush3.bf16.msra.mxu0 %v11464_v48 }
 0xc45   : > { %v11411_v38 = vmax.f32 %v13251_v31, %v13315_v44  ;;  %v13254_v62 = vadd.f32 %v13253_v47, %v13252_v53  ;;  %v13318_v30 = vadd.f32 %v13317_v23, %v13316_v24 }
 0xc47   : > { %v11412_v58 = vmax.f32 %v13254_v62, %v13318_v30 }
 0xc49   : > { %v13255_v14 = vpop.f32.mrb[212].mxu0  ;;  %v13319_v16 = vpop.f32.mrb[220].mxu1  ;;  %v11465_v32 = vpack.c.bf16 %v11412_v58, %v11411_v38 }
 0xc4a   : > { %v13256_v43 = vpop.f32.mrb[213].mxu0  ;;  %v13320_v61 = vpop.f32.mrb[221].mxu1 }
 0xc4b   : > { %v13257_v41 = vadd.f32 %v13256_v43, %v13255_v14  ;;  %v13321_v29 = vadd.f32 %v13320_v61, %v13319_v16  ;;  %v13258_v26 = vpop.f32.mrb[214].mxu0  ;;  %v13322_v49 = vpop.f32.mrb[222].mxu1  ;;  %13406 = vmatprep.subr.bf16.mxu0 %v11465_v32 }
 0xc4c   : > { %v13259_v15 = vpop.f32.mrb[215].mxu0  ;;  %v13323_v56 = vpop.f32.mrb[223].mxu1  ;;  %13407 = vmatpush3.bf16.msra.mxu0 %v11465_v32 }
 0xc4d   : > { %v11413_v33 = vmax.f32 %v13257_v41, %v13321_v29  ;;  %v13260_v1 = vadd.f32 %v13259_v15, %v13258_v26  ;;  %v13324_v36 = vadd.f32 %v13323_v56, %v13322_v49 }
 0xc4f   : > { %v11414_v59 = vmax.f32 %v13260_v1, %v13324_v36  ;;  %v16181_v1 = vld [vmem:[%s23799_s13 + $0x8] sm:$0xff]   ;;  %v16182_v36 = vld [vmem:[%s23799_s13 + $0x10] sm:$0xff]  }
 0xc51   : > { %v13261_v39 = vpop.f32.mrb[216].mxu0  ;;  %v13325_v27 = vpop.f32.mrb[224].mxu1  ;;  %v11466_v4 = vpack.c.bf16 %v11414_v59, %v11413_v33  ;;  %v16183_v59 = vld [vmem:[%s23799_s13 + $0x18] sm:$0xff]  }
 0xc52   : > { %v13262_v28 = vpop.f32.mrb[217].mxu0  ;;  %v13326_v2 = vpop.f32.mrb[225].mxu1 }
 0xc53   : > { %v13263_v18 = vadd.f32 %v13262_v28, %v13261_v39  ;;  %v13327_v50 = vadd.f32 %v13326_v2, %v13325_v27  ;;  %v13264_v7 = vpop.f32.mrb[218].mxu0  ;;  %v13328_v19 = vpop.f32.mrb[226].mxu1  ;;  %13408 = vmatprep.subr.bf16.mxu0 %v11466_v4  ;;  %v16184_v39 = vld [vmem:[%s23799_s13 + $0x20] sm:$0xff]   ;;  %v16185_v27 = vld [vmem:[%s23799_s13 + $0x28] sm:$0xff]   ;;  %v16187_v28 = vld [vmem:[%s23799_s13 + $0x38] sm:$0xff]  }
 0xc54   : > { %v13265_v42 = vpop.f32.mrb[219].mxu0  ;;  %v13329_v6 = vpop.f32.mrb[227].mxu1  ;;  %13409 = vmatpush3.bf16.msra.mxu0 %v11466_v4  ;;  %v16186_v4 = vld [vmem:[%s23799_s13 + $0x30] sm:$0xff]   ;;  %v16188_v2 = vld [vmem:[%s23799_s13 + $0x40] sm:$0xff]  }
 0xc55   : > { %v11415_v0 = vmax.f32 %v13263_v18, %v13327_v50  ;;  %v13266_v10 = vadd.f32 %v13265_v42, %v13264_v7  ;;  %v13330_v17 = vadd.f32 %v13329_v6, %v13328_v19  ;;  %v16189_v18 = vld [vmem:[%s23799_s13 + $0x48] sm:$0xff]   ;;  %v16190_v50 = vld [vmem:[%s23799_s13 + $0x50] sm:$0xff]   ;;  %v16191_v7 = vld [vmem:[%s23799_s13 + $0x58] sm:$0xff]  }
 0xc56   : > { %v16192_v19 = vld [vmem:[%s23799_s13 + $0x60] sm:$0xff]   ;;  %v16193_v42 = vld [vmem:[%s23799_s13 + $0x68] sm:$0xff]   ;;  %v16194_v6 = vld [vmem:[%s23799_s13 + $0x70] sm:$0xff]  }
 0xc57   : > { %v11416_v3 = vmax.f32 %v13266_v10, %v13330_v17  ;;  %v16196_v10 = vld [vmem:[%s23799_s13 + $0x80] sm:$0xff]   ;;  %v16197_v17 = vld [vmem:[%s23799_s13 + $0x88] sm:$0xff]  }
 0xc59   : > { %v13267_v52 = vpop.f32.mrb[220].mxu0  ;;  %v13331_v54 = vpop.f32.mrb[228].mxu1  ;;  %v11467_v51 = vpack.c.bf16 %v11416_v3, %v11415_v0  ;;  %v16195_v0 = vld [vmem:[%s23799_s13 + $0x78] sm:$0xff]   ;;  %v16198_v3 = vld [vmem:[%s23799_s13 + $0x90] sm:$0xff]  }
 0xc5a   : > { %v13268_v37 = vpop.f32.mrb[221].mxu0  ;;  %v13332_v40 = vpop.f32.mrb[229].mxu1 }
 0xc5b   : > { %v13269_v34 = vadd.f32 %v13268_v37, %v13267_v52  ;;  %v13333_v60 = vadd.f32 %v13332_v40, %v13331_v54  ;;  %v13270_v25 = vpop.f32.mrb[222].mxu0  ;;  %v13334_v12 = vpop.f32.mrb[230].mxu1  ;;  %13410 = vmatprep.subr.bf16.mxu0 %v11467_v51  ;;  %v16199_v52 = vld [vmem:[%s23799_s13 + $0x98] sm:$0xff]   ;;  %v11939_v54 = vld [vmem:[%s23800_s30] sm:$0xff]  ;;  %v11941_v40 = vld [vmem:[%s23800_s30 + $0x10] sm:$0xff] }
 0xc5c   : > { %v13271_v22 = vpop.f32.mrb[223].mxu0  ;;  %v13335_v46 = vpop.f32.mrb[231].mxu1  ;;  %13411 = vmatpush3.bf16.msra.mxu0 %v11467_v51  ;;  %v11940_v51 = vld [vmem:[%s23800_s30 + $0x8] sm:$0xff] }
 0xc5d   : > { %v11417_v45 = vmax.f32 %v13269_v34, %v13333_v60  ;;  %v13272_v55 = vadd.f32 %v13271_v22, %v13270_v25  ;;  %v13336_v5 = vadd.f32 %v13335_v46, %v13334_v12  ;;  %v13507_v37 = vpack.c.bf16 %v11940_v51, %v11939_v54  ;;  %v11942_v34 = vld [vmem:[%s23800_s30 + $0x18] sm:$0xff]  ;;  %v11943_v25 = vld [vmem:[%s23800_s30 + $0x20] sm:$0xff]  ;;  %v11944_v12 = vld [vmem:[%s23800_s30 + $0x28] sm:$0xff] }
 0xc5e   : > { %v13511_v60 = vpack.c.bf16 %v11942_v34, %v11941_v40  ;;  %v13515_v22 = vpack.c.bf16 %v11944_v12, %v11943_v25  ;;  %v11945_v46 = vld [vmem:[%s23800_s30 + $0x30] sm:$0xff] }
 0xc5f   : > { %v11418_v9 = vmax.f32 %v13272_v55, %v13336_v5  ;;  %13508 = vmatprep.subr.bf16.mxu1 %v13507_v37  ;;  %v11947_v5 = vld [vmem:[%s23800_s30 + $0x40] sm:$0xff] }
 0xc60   : > { %13510 = vmatpush3.bf16.msra.mxu1 %v13507_v37 }
 0xc61   : > { %v13273_v63 = vpop.f32.mrb[224].mxu0  ;;  %v13337_v21 = vpop.f32.mrb[232].mxu1  ;;  %v11468_v11 = vpack.c.bf16 %v11418_v9, %v11417_v45  ;;  %13512 = vmatprep.subr.bf16.mxu1 %v13511_v60  ;;  %v11946_v45 = vld [vmem:[%s23800_s30 + $0x38] sm:$0xff]  ;;  %v11948_v9 = vld [vmem:[%s23800_s30 + $0x48] sm:$0xff] }
 0xc62   : > { %v13274_v20 = vpop.f32.mrb[225].mxu0  ;;  %v13338_v8 = vpop.f32.mrb[233].mxu1  ;;  %v13519_v55 = vpack.c.bf16 %v11946_v45, %v11945_v46 }
 0xc63   : > { %v13275_v13 = vadd.f32 %v13274_v20, %v13273_v63  ;;  %v13339_v48 = vadd.f32 %v13338_v8, %v13337_v21  ;;  %v13276_v35 = vpop.f32.mrb[226].mxu0  ;;  %v13340_v57 = vpop.f32.mrb[234].mxu1  ;;  %13412 = vmatprep.subr.bf16.mxu0 %v11468_v11  ;;  %v13523_v63 = vpack.c.bf16 %v11948_v9, %v11947_v5  ;;  %v11949_v21 = vld [vmem:[%s23800_s30 + $0x50] sm:$0xff]  ;;  %v11951_v8 = vld [vmem:[%s23800_s30 + $0x60] sm:$0xff] }
 0xc64   : > { %v13277_v31 = vpop.f32.mrb[227].mxu0  ;;  %v13341_v44 = vpop.f32.mrb[235].mxu1  ;;  %13413 = vmatpush3.bf16.msra.mxu0 %v11468_v11  ;;  %13514 = vmatpush3.bf16.msra.mxu1 %v13511_v60  ;;  %v11950_v11 = vld [vmem:[%s23800_s30 + $0x58] sm:$0xff] }
 0xc65   : > { %v11419_v53 = vmax.f32 %v13275_v13, %v13339_v48  ;;  %v13278_v24 = vadd.f32 %v13277_v31, %v13276_v35  ;;  %v13342_v47 = vadd.f32 %v13341_v44, %v13340_v57  ;;  %13516 = vmatprep.subr.bf16.mxu1 %v13515_v22  ;;  %v13527_v20 = vpack.c.bf16 %v11950_v11, %v11949_v21  ;;  %v11952_v13 = vld [vmem:[%s23800_s30 + $0x68] sm:$0xff]  ;;  %v11953_v35 = vld [vmem:[%s23800_s30 + $0x70] sm:$0xff]  ;;  %v11954_v57 = vld [vmem:[%s23800_s30 + $0x78] sm:$0xff] }
 0xc66   : > { %v13531_v48 = vpack.c.bf16 %v11952_v13, %v11951_v8  ;;  %v13535_v31 = vpack.c.bf16 %v11954_v57, %v11953_v35  ;;  %v13211_v35 = vld [vmem:[#allocation16 + $0x5] ss:$0 sm:$0xff] }
 0xc67   : > { %v11420_v23 = vmax.f32 %v13278_v24, %v13342_v47 }
 0xc68   : > { %13518 = vmatpush3.bf16.msra.mxu1 %v13515_v22  ;;  %v13210_v22 = vld [vmem:[#allocation16 + $0x4] ss:$0 sm:$0xff] }
 0xc69   : > { %v13279_v38 = vpop.f32.mrb[228].mxu0  ;;  %v13343_v62 = vpop.f32.mrb[236].mxu1  ;;  %v11469_v30 = vpack.c.bf16 %v11420_v23, %v11419_v53  ;;  %13520 = vmatprep.subr.bf16.mxu1 %v13519_v55  ;;  %v13206_v23 = vld [vmem:[#allocation16] ss:$0 sm:$0xff] }
 0xc6a   : > { %v13280_v58 = vpop.f32.mrb[229].mxu0  ;;  %v13344_v14 = vpop.f32.mrb[237].mxu1 }
 0xc6b   : > { %v13281_v16 = vadd.f32 %v13280_v58, %v13279_v38  ;;  %v13345_v32 = vadd.f32 %v13344_v14, %v13343_v62  ;;  %v13282_v43 = vpop.f32.mrb[230].mxu0  ;;  %v13346_v61 = vpop.f32.mrb[238].mxu1  ;;  %13414 = vmatprep.subr.bf16.mxu0 %v11469_v30  ;;  %v13207_v38 = vld [vmem:[#allocation16 + $0x1] ss:$0 sm:$0xff] }
 0xc6c   : > { %v13283_v41 = vpop.f32.mrb[231].mxu0  ;;  %v13347_v29 = vpop.f32.mrb[239].mxu1  ;;  %13415 = vmatpush3.bf16.msra.mxu0 %v11469_v30  ;;  %13522 = vmatpush3.bf16.msra.mxu1 %v13519_v55 }
 0xc6d   : > { %v11421_v26 = vmax.f32 %v13281_v16, %v13345_v32  ;;  %v13284_v49 = vadd.f32 %v13283_v41, %v13282_v43  ;;  %v13348_v15 = vadd.f32 %v13347_v29, %v13346_v61  ;;  %13524 = vmatprep.subr.bf16.mxu1 %v13523_v63 }
 0xc6f   : > { %v11422_v56 = vmax.f32 %v13284_v49, %v13348_v15 }
 0xc70   : > { %13526 = vmatpush3.bf16.msra.mxu1 %v13523_v63 }
 0xc71   : > { %v11470_v33 = vpack.c.bf16 %v11422_v56, %v11421_v26  ;;  %13528 = vmatprep.subr.bf16.mxu1 %v13527_v20 }
 0xc73   : > { %13416 = vmatprep.subr.bf16.mxu0 %v11470_v33 }
 0xc74   : > { %13417 = vmatpush3.bf16.msra.mxu0 %v11470_v33  ;;  %13530 = vmatpush3.bf16.msra.mxu1 %v13527_v20 }
 0xc75   : > { %13532 = vmatprep.subr.bf16.mxu1 %v13531_v48 }
 0xc77   : > { %13419 = vmatmul.mubr.bf16.vlgmr.msra.gmra.mrb[232].mxu0 %v16181_v1 }
 0xc78   : > { %13422 = vmatprep.mubr.bf16.mxu0 %v16182_v36  ;;  %13534 = vmatpush3.bf16.msra.mxu1 %v13531_v48  ;;  %v13208_v36 = vld [vmem:[#allocation16 + $0x2] ss:$0 sm:$0xff] }
 0xc79   : > { %13536 = vmatprep.subr.bf16.mxu1 %v13535_v31 }
 0xc7c   : > { %13538 = vmatpush3.bf16.msra.mxu1 %v13535_v31 }
 0xc7f   : > { %13423 = vmatmul.mubr.bf16.gmra.mrb[236].mxu0 %v16183_v59 }
 0xc80   : > { %13426 = vmatprep.mubr.bf16.mxu0 %v16184_v39 }
 0xc87   : > { %13427 = vmatmul.mubr.bf16.gmra.mrb[240].mxu0 %v16185_v27 }
 0xc88   : > { %13430 = vmatprep.mubr.bf16.mxu0 %v16186_v4 }
 0xc8f   : > { %13431 = vmatmul.mubr.bf16.gmra.mrb[244].mxu0 %v16187_v28 }
 0xc90   : > { %13434 = vmatprep.mubr.bf16.mxu0 %v16188_v2 }
 0xc97   : > { %13435 = vmatmul.mubr.bf16.gmra.mrb[248].mxu0 %v16189_v18 }
 0xc98   : > { %13438 = vmatprep.mubr.bf16.mxu0 %v16190_v50 }
 0xc9f   : > { %13439 = vmatmul.mubr.bf16.gmra.mrb[252].mxu0 %v16191_v7 }
 0xca0   : > { %13442 = vmatprep.mubr.bf16.mxu0 %v16192_v19 }
 0xca7   : > { %13443 = vmatmul.mubr.bf16.gmra.mrb[0].mxu0 %v16193_v42 }
 0xca8   : > { %13446 = vmatprep.mubr.bf16.mxu0 %v16194_v6 }
 0xcaf   : > { %13447 = vmatmul.mubr.bf16.gmra.mrb[4].mxu0 %v16195_v0  ;;  %v13209_v0 = vld [vmem:[#allocation16 + $0x3] ss:$0 sm:$0xff] }
 0xcb0   : > { %13450 = vmatprep.mubr.bf16.mxu0 %v16196_v10 }
 0xcb7   : > { %13451 = vmatmul.mubr.bf16.gmra.mrb[8].mxu0 %v16197_v17 }
 0xcb8   : > { %13454 = vmatprep.mubr.bf16.mxu0 %v16198_v3 }
 0xcbf   : > { %13455 = vmatmul.mubr.bf16.gmra.mrb[12].mxu0 %v16199_v52 }
 0xd4a   : > { %v13420_v44 = vpop.f32.mrb[232].mxu0 }
 0xd4b   : > { %v11625_v53 = vpop.f32.mrb[233].mxu0  ;;  %v11793_v30 = vmul.f32 %v13420_v44, %v13206_v23 }
 0xd4c   : > { %v13421_v24 = vpop.f32.mrb[234].mxu0  ;;  %v11791_v16 = vmul.f32 %v13206_v23, %v11625_v53 }
 0xd4d   : > { %v11628_v47 = vpop.f32.mrb[235].mxu0  ;;  %v11794_v61 = vmul.f32 %v13421_v24, %v13206_v23 }
 0xd4e   : > { %v11792_v49 = vmul.f32 %v13206_v23, %v11628_v47 }
 0xd52   : > { %v13424_v62 = vpop.f32.mrb[236].mxu0 }
 0xd53   : > { %v11805_v58 = vmul.f32 %v13424_v62, %v13207_v38  ;;  %v11641_v14 = vpop.f32.mrb[237].mxu0 }
 0xd54   : > { %v11803_v32 = vmul.f32 %v13207_v38, %v11641_v14  ;;  %v13425_v43 = vpop.f32.mrb[238].mxu0 }
 0xd55   : > { %v11809_v41 = vadd.f32 %v11805_v58, %v11793_v30  ;;  %v11806_v29 = vmul.f32 %v13425_v43, %v13207_v38  ;;  %v11644_v26 = vpop.f32.mrb[239].mxu0 }
 0xd56   : > { %v11807_v15 = vadd.f32 %v11803_v32, %v11791_v16  ;;  %v11804_v56 = vmul.f32 %v13207_v38, %v11644_v26  ;;  %v13212_v16 = vld [vmem:[#allocation16 + $0x6] ss:$0 sm:$0xff] }
 0xd57   : > { %v11810_v33 = vadd.f32 %v11806_v29, %v11794_v61 }
 0xd58   : > { %v11808_v1 = vadd.f32 %v11804_v56, %v11792_v49 }
 0xd5a   : > { %v13428_v59 = vpop.f32.mrb[240].mxu0 }
 0xd5b   : > { %v11821_v39 = vmul.f32 %v13428_v59, %v13208_v36  ;;  %v11657_v27 = vpop.f32.mrb[241].mxu0  ;;  %v13213_v59 = vld [vmem:[#allocation16 + $0x7] ss:$0 sm:$0xff] }
 0xd5c   : > { %v11819_v4 = vmul.f32 %v13208_v36, %v11657_v27  ;;  %v13429_v28 = vpop.f32.mrb[242].mxu0 }
 0xd5d   : > { %v11825_v2 = vadd.f32 %v11821_v39, %v11809_v41  ;;  %v11822_v18 = vmul.f32 %v13429_v28, %v13208_v36  ;;  %v11660_v50 = vpop.f32.mrb[243].mxu0 }
 0xd5e   : > { %v11823_v7 = vadd.f32 %v11819_v4, %v11807_v15  ;;  %v11820_v19 = vmul.f32 %v13208_v36, %v11660_v50 }
 0xd5f   : > { %v11826_v42 = vadd.f32 %v11822_v18, %v11810_v33 }
 0xd60   : > { %v11824_v6 = vadd.f32 %v11820_v19, %v11808_v1 }
 0xd62   : > { %v13432_v10 = vpop.f32.mrb[244].mxu0 }
 0xd63   : > { %v11837_v17 = vmul.f32 %v13432_v10, %v13209_v0  ;;  %v11673_v3 = vpop.f32.mrb[245].mxu0  ;;  %v13214_v10 = vld [vmem:[#allocation16 + $0x8] ss:$0 sm:$0xff] }
 0xd64   : > { %v11835_v52 = vmul.f32 %v13209_v0, %v11673_v3  ;;  %v13433_v54 = vpop.f32.mrb[246].mxu0 }
 0xd65   : > { %v11841_v51 = vadd.f32 %v11837_v17, %v11825_v2  ;;  %v11838_v37 = vmul.f32 %v13433_v54, %v13209_v0  ;;  %v11676_v40 = vpop.f32.mrb[247].mxu0 }
 0xd66   : > { %v11839_v34 = vadd.f32 %v11835_v52, %v11823_v7  ;;  %v11836_v60 = vmul.f32 %v13209_v0, %v11676_v40 }
 0xd67   : > { %v11842_v25 = vadd.f32 %v11838_v37, %v11826_v42 }
 0xd68   : > { %v11840_v12 = vadd.f32 %v11836_v60, %v11824_v6 }
 0xd6a   : > { %v13436_v46 = vpop.f32.mrb[248].mxu0 }
 0xd6b   : > { %v11853_v45 = vmul.f32 %v13436_v46, %v13210_v22  ;;  %v11689_v55 = vpop.f32.mrb[249].mxu0  ;;  %v13215_v46 = vld [vmem:[#allocation16 + $0x9] ss:$0 sm:$0xff] }
 0xd6c   : > { %v11851_v5 = vmul.f32 %v13210_v22, %v11689_v55  ;;  %v13437_v9 = vpop.f32.mrb[250].mxu0 }
 0xd6d   : > { %v11857_v63 = vadd.f32 %v11853_v45, %v11841_v51  ;;  %v11854_v21 = vmul.f32 %v13437_v9, %v13210_v22  ;;  %v11692_v11 = vpop.f32.mrb[251].mxu0 }
 0xd6e   : > { %v11855_v20 = vadd.f32 %v11851_v5, %v11839_v34  ;;  %v11852_v8 = vmul.f32 %v13210_v22, %v11692_v11 }
 0xd6f   : > { %v11858_v13 = vadd.f32 %v11854_v21, %v11842_v25 }
 0xd70   : > { %v11856_v48 = vadd.f32 %v11852_v8, %v11840_v12 }
 0xd72   : > { %v13440_v57 = vpop.f32.mrb[252].mxu0 }
 0xd73   : > { %v11869_v31 = vmul.f32 %v13440_v57, %v13211_v35  ;;  %v11705_v44 = vpop.f32.mrb[253].mxu0  ;;  %v16604_v57 = vmov 0.0|0.0  }
 0xd74   : > { %v11867_v53 = vmul.f32 %v13211_v35, %v11705_v44  ;;  %v13441_v24 = vpop.f32.mrb[254].mxu0  ;;  %13539 = vmatprep.subr.bf16.mxu1 %v16604_v57  ;;  %v11967_v44 = vpop.permute.xlu0 %11966 }
 0xd75   : > { %v11873_v47 = vadd.f32 %v11869_v31, %v11857_v63  ;;  %v11870_v23 = vmul.f32 %v13441_v24, %v13211_v35  ;;  %v11708_v38 = vpop.f32.mrb[255].mxu0  ;;  %v16606_v31 = vmov 0.0  }
 0xd76   : > { %v11871_v62 = vadd.f32 %v11867_v53, %v11855_v20  ;;  %v11868_v30 = vmul.f32 %v13211_v35, %v11708_v38  ;;  %v11962_v53 = vpop.permute.xlu1 %11961 }
 0xd77   : > { %v11874_v58 = vadd.f32 %v11870_v23, %v11858_v13 }
 0xd78   : > { %v11872_v14 = vadd.f32 %v11868_v30, %v11856_v48  ;;  %v11977_v30 = vpop.permute.xlu0 %11976 }
 0xd7a   : > { %v13444_v32 = vpop.f32.mrb[0].mxu0 }
 0xd7b   : > { %v11885_v43 = vmul.f32 %v13444_v32, %v13212_v16  ;;  %v11721_v61 = vpop.f32.mrb[1].mxu0 }
 0xd7c   : > { %v11883_v41 = vmul.f32 %v13212_v16, %v11721_v61  ;;  %v13445_v29 = vpop.f32.mrb[2].mxu0 }
 0xd7d   : > { %v11889_v26 = vadd.f32 %v11885_v43, %v11873_v47  ;;  %v11886_v49 = vmul.f32 %v13445_v29, %v13212_v16  ;;  %v11724_v15 = vpop.f32.mrb[3].mxu0 }
 0xd7e   : > { %v11887_v56 = vadd.f32 %v11883_v41, %v11871_v62  ;;  %v11884_v33 = vmul.f32 %v13212_v16, %v11724_v15  ;;  %v11972_v16 = vpop.permute.xlu1 %11971  ;;  %v12068_v15 = vld [vmem:[%s23801_s1] sm:$0x1]  ;;  %s16504_s1 = scalar_lea.vmem %s16503_s15, 32 }
 0xd7f   : > { %v11890_v1 = vadd.f32 %v11886_v49, %v11874_v58  ;;  %p16506_p2 = scmp.lt.s32.totalorder %s16504_s1, %s16498_s0 }
 0xd80   : > { %v11888_v36 = vadd.f32 %v11884_v33, %v11872_v14 }
 0xd81   : > { %p16507_p3 = por %p16506_p2, %p16505_p10 }
 0xd82   : > { %v13448_v39 = vpop.f32.mrb[4].mxu0 }
 0xd83   : > { %v11901_v27 = vmul.f32 %v13448_v39, %v13213_v59  ;;  %v11737_v4 = vpop.f32.mrb[5].mxu0  ;;  %p16508_p4 = pnand %p16507_p3, %p16501_p0 }
 0xd84   : > { %v11899_v28 = vmul.f32 %v13213_v59, %v11737_v4  ;;  %v13449_v2 = vpop.f32.mrb[6].mxu0 }
 0xd85   : > { %v11905_v18 = vadd.f32 %v11901_v27, %v11889_v26  ;;  %v11902_v50 = vmul.f32 %v13449_v2, %v13213_v59  ;;  %v11740_v7 = vpop.f32.mrb[7].mxu0 }
 0xd86   : > { %v11903_v19 = vadd.f32 %v11899_v28, %v11887_v56  ;;  %v11900_v42 = vmul.f32 %v13213_v59, %v11740_v7  ;;  %v23803_v56 = vlaneseq }
 0xd87   : > { %v11906_v6 = vadd.f32 %v11902_v50, %v11890_v1 }
 0xd88   : > { %v11904_v0 = vadd.f32 %v11900_v42, %v11888_v36  ;;  %v12076_v33 = vshrl.u32 %v23803_v56, 7  ;;  %v12073_v36 = vpop.permute.xlu1 %12072 }
 0xd8a   : > { %v13452_v17 = vpop.f32.mrb[8].mxu0  ;;  %v12077_v1 = vsub.s32 0, %v12076_v33 }
 0xd8b   : > { %v11917_v3 = vmul.f32 %v13452_v17, %v13214_v10  ;;  %v11753_v52 = vpop.f32.mrb[9].mxu0 }
 0xd8c   : > { %v11915_v54 = vmul.f32 %v13214_v10, %v11753_v52  ;;  %v13453_v51 = vpop.f32.mrb[10].mxu0  ;;  %v12078_v59 = vrot.slane %v12073_v36, %v12077_v1 }
 0xd8d   : > { %v11921_v37 = vadd.f32 %v11917_v3, %v11905_v18  ;;  %v11918_v40 = vmul.f32 %v13453_v51, %v13214_v10  ;;  %v11756_v34 = vpop.f32.mrb[11].mxu0 }
 0xd8e   : > { %v11919_v60 = vadd.f32 %v11915_v54, %v11903_v19  ;;  %v11916_v25 = vmul.f32 %v13214_v10, %v11756_v34 }
 0xd8f   : > { %v11922_v12 = vadd.f32 %v11918_v40, %v11906_v6 }
 0xd90   : > { %v11920_v22 = vadd.f32 %v11916_v25, %v11904_v0 }
 0xd92   : > { %v13456_v45 = vpop.f32.mrb[12].mxu0 }
 0xd93   : > { %v11933_v55 = vmul.f32 %v13456_v45, %v13215_v46  ;;  %v11769_v5 = vpop.f32.mrb[13].mxu0 }
 0xd94   : > { %v11931_v9 = vmul.f32 %v13215_v46, %v11769_v5  ;;  %v13457_v63 = vpop.f32.mrb[14].mxu0 }
 0xd95   : > { %v11937_v21 = vadd.f32 %v11933_v55, %v11921_v37  ;;  %v11934_v11 = vmul.f32 %v13457_v63, %v13215_v46  ;;  %v11772_v20 = vpop.f32.mrb[15].mxu0 }
 0xd96   : > { %v11935_v8 = vadd.f32 %v11931_v9, %v11919_v60  ;;  %v11932_v13 = vmul.f32 %v13215_v46, %v11772_v20 }
 0xd97   : > { %v11938_v48 = vadd.f32 %v11934_v11, %v11922_v12 }
 0xd98   : > { %v11936_v35 = vadd.f32 %v11932_v13, %v11920_v22  ;;  %13490 = vmatprep.mubr.f32.mxu1 %v11935_v8 }
 0xd9a   : > { %13491 = vmatmul.mubr.f32.vlgmr.msra.gmra.mrb[240].mxu1 %v11936_v35 }
 0xd9b   : > { %13493 = vmatprep.mubr.f32.mxu1 %v11937_v21 }
 0xd9e   : > { %13494 = vmatmul.mubr.f32.gmra.mrb[242].mxu1 %v11938_v48 }
 0xd9f   : > { %13504 = vmatprep.mubr.msk.f32.mxu1 %vm16605_vm10, %v16606_v31 }
 0xe6d   : > { %v13492_v24 = vpop.f32.mrb[240].mxu1 }
 0xe6e   : > { %v12051_v47 = vadd.f32 %v13492_v24, %v11967_v44  ;;  %v12045_v23 = vpop.f32.mrb[241].mxu1 }
 0xe6f   : > { %v12046_v38 = vadd.f32 %v12045_v23, %v11962_v53 }
 0xe70   : > { %v12065_v62 = vmax.f32 %v12051_v47, 0.0 }
 0xe71   : > { %v12064_v58 = vmax.f32 %v12046_v38, 0.0  ;;  %v13495_v14 = vpop.f32.mrb[242].mxu1 }
 0xe72   : > { %v12061_v32 = vadd.f32 %v13495_v14, %v11977_v30  ;;  %v12055_v43 = vpop.f32.mrb[243].mxu1 }
 0xe73   : > { %v13540_v61 = vpack.c.bf16 %v12065_v62, %v12064_v58  ;;  %v12056_v41 = vadd.f32 %v12055_v43, %v11972_v16 }
 0xe74   : > { %v12067_v29 = vmax.f32 %v12061_v32, 0.0 }
 0xe75   : > { %v12066_v26 = vmax.f32 %v12056_v41, 0.0  ;;  %13541 = vmatpush3.bf16.msra.mxu1 %v13540_v61 }
 0xe76   : > { %13542 = vmatprep.subr.bf16.mxu1 %v16604_v57 }
 0xe77   : > { %v13543_v49 = vpack.c.bf16 %v12067_v29, %v12066_v26 }
 0xe79   : > { %13544 = vmatpush3.bf16.msra.mxu1 %v13543_v49 }
 0xe7c   : > { %13505 = vmatmul.mubr.msk.f32.vlgmr.msra.gmra.mrb[244].mxu1 %vm12079_vm11, %v12068_v15 }
 0xf4f   : > { %v12149_v39 = vpop.f32.mrb[244].mxu1 }
 0xf50   : > { %v12150_v27 = vadd.f32 %v12149_v39, %v12078_v59  ;;  %v13506_v4 = vpop.f32.mrb[245].mxu1 }
 0xf52   : > { %v13217_v28 = vmul.f32 -1.442695, %v12150_v27 }
 0xf54   : > { %16200 = vpow2.f32 %v13217_v28 }
 0xf5e   : > { %v16201_v2 = vpop.eup %16200 }
 0xf5f   : > { %v12156_v18 = vadd.f32 1.0, %v16201_v2 }
 0xf61   : > { %16202 = vrcp.f32 %v12156_v18 }
 0xf6b   : > { %v16203_v50 = vpop.eup %16202 }
 0xf6c   : > { %12160 = vst.msk [vmem:[%s796_s22] sm:$0x1] %vm12159_vm12, %v16203_v50 }
 0xf6d   : > { %16511 = shalt.err (!%p16508_p4)
}
 0xf6e   : > { %s16512_s16 = scalar_lea.hbm %s22536_s2, 16  ;;  %s16516_s22 = scalar_lea.hbm %s23805_s6, 32 }
 0xf6f   : > { %p16513_p12 = scmp.ne.s32.totalorder %s22536_s2, %s16512_s16  ;;  %p16517_p11 = scmp.lt.u32.totalorder %s22536_s2, %s23805_s6 }
 0xf70   : > { %p16518_p13 = scmp.lt.u32.totalorder %s16516_s22, %s16512_s16  ;;  %p16520_p6 = scmp.lt.u32.totalorder %s16512_s16, %s22536_s2 }
 0xf71   : > { %p16514_p7 = pnand %p16513_p12, %p23806_p9 }
 0xf72   : > { %p16519_p1 = por %p16518_p13, %p16517_p11 }
 0xf73   : > { %p16515_p8 = pneg %p16514_p7 }
 0xf74   : > { %p16521_p5 = por %p16520_p6, %p16519_p1 }
 0xf76   : > { %p16522_p0 = pnand %p16521_p5, %p16515_p8 }
 0xf78   : > { %16525 = shalt.err (!%p16522_p0)
}
 0xf79   : > { %13880 = dma.vmem_to_hbm [thread:$0]  (%p23806_p9), %s22538_s20, 16, %s22536_s2, %s12162_s23  }
 0xf7a PF: > { %s23807_s0 = sld [smem:[#allocation28_spill]]  ;;  %s23808_s21 = sld [smem:[#allocation25_spill]] }
 0xf7b   : > { %s23809_s15 = sld [smem:[#allocation32_spill]] }
 0xf80   : > { %p13927_p10 = scmp.ge.s32.totalorder %s23807_s0, 2  ;;  %s12186_s1 = sand.u32 1, %s23808_s21  }
 0xf81   : > { %p23810_p2 = scmp.ne.s32.totalorder %s23809_s15, 0  ;;  %s12187_s5 = scalar_lea.sflag [#allocation6], %s12186_s1 }
 0xf83   : > { %p13908_p3 = pnand %p13927_p10, %p23810_p2 }
 0xf85   : > { %16563 = dma.done.wait (!%p13908_p3), %s12187_s5, 16  }
 0xf86   : > { %16565 = vsyncadd (!%p13908_p3), %s12187_s5, 4294967280  ;;  %s23811_s16 = sld [smem:[#allocation29_spill]]  ;;  %s23812_s4 = sld [smem:[#allocation26_spill]] }
 0xf87   : > { %s23813_s0 = sld [smem:[#allocation27_spill]]  ;;  %s23814_s23 = sld [smem:[#allocation30_spill]] }
 0xf8c   : > { %p41_p4 = scmp.ge.s32.totalorder %s23811_s16, 4  }
 0xf8e   :  { %43 = sbr.rel (!%p41_p4) target bundleno = 20 (0x14), region = 185 }
 0xf95   :  { %12191 = vsyncpa [#allocation5], 1 }
 0xf96   :  { %12193 = vsyncpa [#allocation5 + $0x1], 1 }
 0xf97   :  { %12194 = vsyncpa [#allocation8], 1 }
 0xf98   :  { %12195 = vsyncpa [#allocation11], 1 }
 0xf99   :  { %12196 = vsyncpa [#allocation14], 1 }
 0xf9a   :  { %12197 = vsyncpa [#allocation17], 1 }
 0xf9b   :  { %12198 = vsyncpa [#allocation6], 1 }
 0xf9c   :  { %12200 = vsyncpa [#allocation6 + $0x1], 1 }

</bundles_post_ra>
